<compile_context>
chip_gen: v6e
topology: v6e:2x2x1
jax: 0.10.0
libtpu: 0.0.40
codegen_flags: <defaults>
</compile_context>

<pallas_src>
import jax
import jax.numpy as jnp
from jax.experimental import pallas as pl
from jax.experimental.pallas import tpu as pltpu

NEG_SLOPE = 0.2   # LeakyReLU slope
BN_EPS = 1e-5     # nn.BatchNorm2d default eps


# ---------------------------------------------------------------------------
# In-kernel helpers
# ---------------------------------------------------------------------------
def _leaky_relu(y):
    return jnp.where(y >= 0.0, y, NEG_SLOPE * y)


def _conv_s2(a_f32, selh_ref, bigw_ref):
    """4x4 / stride-2 / pad-1 conv on an (N*H, W*Cin) VMEM-resident activation.

    For each of the 4 kh taps: a 0/1 row-selection matmul (stride-2 row gather
    incl. zero padding) followed by a matmul against a weight matrix that
    folds the kw taps + stride-2 column selection.  Output: (N*Ho, Wo*Cout).
    """
    a_bf = a_f32.astype(jnp.bfloat16)
    acc = None
    for kh in range(4):
        rows = jnp.dot(selh_ref[kh], a_bf,
                       preferred_element_type=jnp.float32).astype(jnp.bfloat16)
        part = jnp.dot(rows, bigw_ref[kh], preferred_element_type=jnp.float32)
        acc = part if acc is None else acc + part
    return acc


def _bn_train(y, g_ref, b_ref, f_ref, ft_ref):
    """Training-mode BatchNorm on y:(N*Ho, Wo*C) f32, per-channel over N*Ho*Wo.

    f:(Wo*C, C) folds the (wo, c) lanes to per-channel sums; ft = f.T widens
    per-channel scale/shift back to the (wo, c) lane layout.
    """
    count = y.shape[0] * (f_ref.shape[0] // f_ref.shape[1])   # N*Ho*Wo (static)
    inv = 1.0 / count
    s1 = jnp.dot(jnp.sum(y, axis=0, keepdims=True), f_ref[...],
                 preferred_element_type=jnp.float32)                    # (1, C)
    s2 = jnp.dot(jnp.sum(y * y, axis=0, keepdims=True), f_ref[...],
                 preferred_element_type=jnp.float32)                    # (1, C)
    mean = s1 * inv
    var = jnp.maximum(s2 * inv - mean * mean, 0.0)        # clamp cancellation
    scale = g_ref[...] * jax.lax.rsqrt(var + BN_EPS)
    shift = b_ref[...] - mean * scale
    scale_w = jnp.dot(scale, ft_ref[...], preferred_element_type=jnp.float32)
    shift_w = jnp.dot(shift, ft_ref[...], preferred_element_type=jnp.float32)
    return y * scale_w + shift_w


def _discriminator_kernel(x_ref,
                          sh1, bw1,
                          sh2, bw2, g2, b2, f2, ft2,
                          sh3, bw3, g3, b3, f3, ft3,
                          sh4, bw4, g4, b4, f4, ft4,
                          v5, seln, o_ref):
    # layer 1: conv + LeakyReLU
    a1 = _leaky_relu(_conv_s2(x_ref[...], sh1, bw1))                  # (N*32, 32*ndf)
    # layers 2-4: conv + BN + LeakyReLU
    a2 = _leaky_relu(_bn_train(_conv_s2(a1, sh2, bw2), g2, b2, f2, ft2))
    a3 = _leaky_relu(_bn_train(_conv_s2(a2, sh3, bw3), g3, b3, f3, ft3))
    a4 = _leaky_relu(_bn_train(_conv_s2(a3, sh4, bw4), g4, b4, f4, ft4))  # (N*4, 4*8ndf)
    # layer 5 head: 4x4/s1/p0 conv (1 out channel) + Sigmoid, folded in.
    p = a4 * v5[...]                                                  # (N*4, 4*C4)
    z = jnp.dot(seln[...], p, preferred_element_type=jnp.float32)     # (N, 4*C4)
    z = jnp.sum(z, axis=1, keepdims=True)                             # (N, 1)
    o_ref[...] = jax.nn.sigmoid(z)


# ---------------------------------------------------------------------------
# Wrapper-side constant builders (tiny, run under jit, outside the kernel)
# ---------------------------------------------------------------------------
def _conv_consts(w, n, h, width, cin_pad):
    """SelH (4, N*Ho, N*H) row gather and BigW (4, W*Cin_pad, Wo*Cout)."""
    cout, cin = w.shape[0], w.shape[1]
    ho, wo = h // 2, width // 2
    wf = w.astype(jnp.float32)
    if cin_pad > cin:
        wf = jnp.pad(wf, ((0, 0), (0, cin_pad - cin), (0, 0), (0, 0)))
    k = jnp.arange(4)
    # column selector: input col w feeds output col wo through tap kw (pad=1)
    sw = (jnp.arange(width)[None, :, None]
          == 2 * jnp.arange(wo)[None, None, :] + k[:, None, None] - 1
          ).astype(jnp.float32)                                      # (4, W, Wo)
    bigw = jnp.einsum('kwv,ochk->hwcvo', sw, wf)                     # (4,W,Ci,Wo,Co)
    bigw = bigw.reshape(4, width * cin_pad, wo * cout)
    # row selector: input row h feeds output row ho through tap kh (pad=1)
    shl = (jnp.arange(h)[None, None, :]
           == 2 * jnp.arange(ho)[None, :, None] + k[:, None, None] - 1
           ).astype(jnp.float32)                                     # (4, Ho, H)
    selh = jnp.einsum('nm,kih->knimh', jnp.eye(n, dtype=jnp.float32), shl)
    selh = selh.reshape(4, n * ho, n * h)
    return selh.astype(jnp.bfloat16), bigw.astype(jnp.bfloat16)


def _bn_consts(gamma, beta, wo):
    c = gamma.shape[0]
    f = jnp.tile(jnp.eye(c, dtype=jnp.float32), (wo, 1))             # (Wo*C, C)
    return (gamma.reshape(1, c).astype(jnp.float32),
            beta.reshape(1, c).astype(jnp.float32),
            f, jnp.transpose(f))


def _head_consts(w5, n):
    # w5: (1, C4, 4, 4) -> V[h, w*C4 + c] = w5[0, c, h, w], tiled per sample.
    c4 = w5.shape[1]
    v = jnp.transpose(w5[0].astype(jnp.float32), (1, 2, 0)).reshape(4, 4 * c4)
    v_tiled = jnp.tile(v, (n, 1))                                    # (N*4, 4*C4)
    seln = jnp.kron(jnp.eye(n, dtype=jnp.float32),
                    jnp.ones((1, 4), jnp.float32))                   # (N, N*4)
    return v_tiled, seln


# ---------------------------------------------------------------------------
# Discriminator parameters + forward
# ---------------------------------------------------------------------------
def init_params(key, nc=3, ndf=8):
    ks = jax.random.split(key, 5)

    def conv_w(k, cout, cin):
        # deterministic synthetic weights (DCGAN-style N(0, 0.02))
        return 0.02 * jax.random.normal(k, (cout, cin, 4, 4), jnp.float32)

    return {
        "w1": conv_w(ks[0], ndf, nc),
        "w2": conv_w(ks[1], ndf * 2, ndf),
        "w3": conv_w(ks[2], ndf * 4, ndf * 2),
        "w4": conv_w(ks[3], ndf * 8, ndf * 4),
        "w5": conv_w(ks[4], 1, ndf * 8),
        # BatchNorm2d default init: weight=1, bias=0
        "g2": jnp.ones((ndf * 2,), jnp.float32), "b2": jnp.zeros((ndf * 2,), jnp.float32),
        "g3": jnp.ones((ndf * 4,), jnp.float32), "b3": jnp.zeros((ndf * 4,), jnp.float32),
        "g4": jnp.ones((ndf * 8,), jnp.float32), "b4": jnp.zeros((ndf * 8,), jnp.float32),
    }


@jax.jit
def discriminator_forward(params, x_nchw):
    n, cin, h, width = x_nchw.shape
    if h // 16 != 4 or width // 16 != 4:
        raise ValueError("DCGAN Discriminator requires 64x64 input")

    # NCHW -> (N*H, W*Cin_pad) once; Cin padded to 4 so the input is lane-dense.
    cin_pad = ((cin + 3) // 4) * 4
    x = jnp.transpose(x_nchw, (0, 2, 3, 1))
    if cin_pad > cin:
        x = jnp.pad(x, ((0, 0), (0, 0), (0, 0), (0, cin_pad - cin)))
    x2d = x.reshape(n * h, width * cin_pad)

    c1 = params["w1"].shape[0]
    c2 = params["w2"].shape[0]
    c3 = params["w3"].shape[0]

    sh1, bw1 = _conv_consts(params["w1"], n, h, width, cin_pad)
    sh2, bw2 = _conv_consts(params["w2"], n, h // 2, width // 2, c1)
    sh3, bw3 = _conv_consts(params["w3"], n, h // 4, width // 4, c2)
    sh4, bw4 = _conv_consts(params["w4"], n, h // 8, width // 8, c3)

    g2, b2, f2, ft2 = _bn_consts(params["g2"], params["b2"], width // 4)
    g3, b3, f3, ft3 = _bn_consts(params["g3"], params["b3"], width // 8)
    g4, b4, f4, ft4 = _bn_consts(params["g4"], params["b4"], width // 16)

    v5, seln = _head_consts(params["w5"], n)

    args = (x2d,
            sh1, bw1,
            sh2, bw2, g2, b2, f2, ft2,
            sh3, bw3, g3, b3, f3, ft3,
            sh4, bw4, g4, b4, f4, ft4,
            v5, seln)

    vmem_spec = pl.BlockSpec(memory_space=pltpu.MemorySpace.VMEM)
    out = pl.pallas_call(
        _discriminator_kernel,
        out_shape=jax.ShapeDtypeStruct((n, 1), jnp.float32),
        in_specs=[vmem_spec] * len(args),
        out_specs=vmem_spec,
        compiler_params=pltpu.CompilerParams(vmem_limit_bytes=32 * 1024 * 1024),
    )(*args)
    # .view(-1, 1).squeeze(1) -> (N,)
    return out.reshape(-1)


if __name__ == "__main__":
    key = jax.random.PRNGKey(0)
    kx, kp = jax.random.split(key)
    nc, ndf, batch = 3, 8, 2      # 64x64 spatial is required by the 4x4/s1 final conv
    x = jax.random.normal(kx, (batch, nc, 64, 64), jnp.float32)
    params = init_params(kp, nc=nc, ndf=ndf)

    out = discriminator_forward(params, x)
    out = jax.block_until_ready(out)
    assert out.shape == (batch,), out.shape
    assert bool(jnp.all(jnp.isfinite(out)))
    assert bool(jnp.all((out >= 0.0) & (out <= 1.0)))
    print("KERNEL_OK")
</pallas_src>

<mosaic_0001>
module attributes {stable_mosaic.version = 11 : i64} {
  func.func @_discriminator_kernel(%arg0: memref<128x256xf32, #tpu.memory_space<vmem>>, %arg1: memref<4x64x128xbf16, #tpu.memory_space<vmem>>, %arg2: memref<4x256x256xbf16, #tpu.memory_space<vmem>>, %arg3: memref<4x32x64xbf16, #tpu.memory_space<vmem>>, %arg4: memref<4x256x256xbf16, #tpu.memory_space<vmem>>, %arg5: memref<1x16xf32, #tpu.memory_space<vmem>>, %arg6: memref<1x16xf32, #tpu.memory_space<vmem>>, %arg7: memref<256x16xf32, #tpu.memory_space<vmem>>, %arg8: memref<16x256xf32, #tpu.memory_space<vmem>>, %arg9: memref<4x16x32xbf16, #tpu.memory_space<vmem>>, %arg10: memref<4x256x256xbf16, #tpu.memory_space<vmem>>, %arg11: memref<1x32xf32, #tpu.memory_space<vmem>>, %arg12: memref<1x32xf32, #tpu.memory_space<vmem>>, %arg13: memref<256x32xf32, #tpu.memory_space<vmem>>, %arg14: memref<32x256xf32, #tpu.memory_space<vmem>>, %arg15: memref<4x8x16xbf16, #tpu.memory_space<vmem>>, %arg16: memref<4x256x256xbf16, #tpu.memory_space<vmem>>, %arg17: memref<1x64xf32, #tpu.memory_space<vmem>>, %arg18: memref<1x64xf32, #tpu.memory_space<vmem>>, %arg19: memref<256x64xf32, #tpu.memory_space<vmem>>, %arg20: memref<64x256xf32, #tpu.memory_space<vmem>>, %arg21: memref<8x256xf32, #tpu.memory_space<vmem>>, %arg22: memref<2x8xf32, #tpu.memory_space<vmem>>, %arg23: memref<2x1xf32, #tpu.memory_space<vmem>>) attributes {dimension_semantics = [], scalar_prefetch = 0 : i64, scratch_operands = 0 : i64, tpu.core_type = #tpu.core_type<tc>} {
    %c0 = arith.constant 0 : index
    %c0_0 = arith.constant 0 : index
    %0 = vector.load %arg0[%c0, %c0_0] : memref<128x256xf32, #tpu.memory_space<vmem>>, vector<128x256xf32>
    %1 = arith.truncf %0 : vector<128x256xf32> to vector<128x256xbf16>
    %c0_1 = arith.constant 0 : index
    %c0_2 = arith.constant 0 : index
    %c0_3 = arith.constant 0 : index
    %2 = vector.load %arg1[%c0_1, %c0_2, %c0_3] : memref<4x64x128xbf16, #tpu.memory_space<vmem>>, vector<1x64x128xbf16>
    %3 = vector.shape_cast %2 : vector<1x64x128xbf16> to vector<64x128xbf16>
    %cst = arith.constant dense<0.000000e+00> : vector<64x256xf32>
    %4 = tpu.matmul %3, %1, %cst {dimension_numbers = #tpu.dot_dimension_numbers<[1], [0], [0], [1], [0, 0, 1, 1], [], []>} : vector<64x128xbf16>, vector<128x256xbf16>, vector<64x256xf32> -> vector<64x256xf32>
    %5 = arith.truncf %4 : vector<64x256xf32> to vector<64x256xbf16>
    %c0_4 = arith.constant 0 : index
    %c0_5 = arith.constant 0 : index
    %c0_6 = arith.constant 0 : index
    %6 = vector.load %arg2[%c0_4, %c0_5, %c0_6] : memref<4x256x256xbf16, #tpu.memory_space<vmem>>, vector<1x256x256xbf16>
    %7 = vector.shape_cast %6 : vector<1x256x256xbf16> to vector<256x256xbf16>
    %cst_7 = arith.constant dense<0.000000e+00> : vector<64x256xf32>
    %8 = tpu.matmul %5, %7, %cst_7 {dimension_numbers = #tpu.dot_dimension_numbers<[1], [0], [0], [1], [0, 0, 1, 1], [], []>} : vector<64x256xbf16>, vector<256x256xbf16>, vector<64x256xf32> -> vector<64x256xf32>
    %c1 = arith.constant 1 : index
    %c0_8 = arith.constant 0 : index
    %c0_9 = arith.constant 0 : index
    %9 = vector.load %arg1[%c1, %c0_8, %c0_9] : memref<4x64x128xbf16, #tpu.memory_space<vmem>>, vector<1x64x128xbf16>
    %10 = vector.shape_cast %9 : vector<1x64x128xbf16> to vector<64x128xbf16>
    %cst_10 = arith.constant dense<0.000000e+00> : vector<64x256xf32>
    %11 = tpu.matmul %10, %1, %cst_10 {dimension_numbers = #tpu.dot_dimension_numbers<[1], [0], [0], [1], [0, 0, 1, 1], [], []>} : vector<64x128xbf16>, vector<128x256xbf16>, vector<64x256xf32> -> vector<64x256xf32>
    %12 = arith.truncf %11 : vector<64x256xf32> to vector<64x256xbf16>
    %c1_11 = arith.constant 1 : index
    %c0_12 = arith.constant 0 : index
    %c0_13 = arith.constant 0 : index
    %13 = vector.load %arg2[%c1_11, %c0_12, %c0_13] : memref<4x256x256xbf16, #tpu.memory_space<vmem>>, vector<1x256x256xbf16>
    %14 = vector.shape_cast %13 : vector<1x256x256xbf16> to vector<256x256xbf16>
    %cst_14 = arith.constant dense<0.000000e+00> : vector<64x256xf32>
    %15 = tpu.matmul %12, %14, %cst_14 {dimension_numbers = #tpu.dot_dimension_numbers<[1], [0], [0], [1], [0, 0, 1, 1], [], []>} : vector<64x256xbf16>, vector<256x256xbf16>, vector<64x256xf32> -> vector<64x256xf32>
    %16 = arith.addf %8, %15 : vector<64x256xf32>
    %c2 = arith.constant 2 : index
    %c0_15 = arith.constant 0 : index
    %c0_16 = arith.constant 0 : index
    %17 = vector.load %arg1[%c2, %c0_15, %c0_16] : memref<4x64x128xbf16, #tpu.memory_space<vmem>>, vector<1x64x128xbf16>
    %18 = vector.shape_cast %17 : vector<1x64x128xbf16> to vector<64x128xbf16>
    %cst_17 = arith.constant dense<0.000000e+00> : vector<64x256xf32>
    %19 = tpu.matmul %18, %1, %cst_17 {dimension_numbers = #tpu.dot_dimension_numbers<[1], [0], [0], [1], [0, 0, 1, 1], [], []>} : vector<64x128xbf16>, vector<128x256xbf16>, vector<64x256xf32> -> vector<64x256xf32>
    %20 = arith.truncf %19 : vector<64x256xf32> to vector<64x256xbf16>
    %c2_18 = arith.constant 2 : index
    %c0_19 = arith.constant 0 : index
    %c0_20 = arith.constant 0 : index
    %21 = vector.load %arg2[%c2_18, %c0_19, %c0_20] : memref<4x256x256xbf16, #tpu.memory_space<vmem>>, vector<1x256x256xbf16>
    %22 = vector.shape_cast %21 : vector<1x256x256xbf16> to vector<256x256xbf16>
    %cst_21 = arith.constant dense<0.000000e+00> : vector<64x256xf32>
    %23 = tpu.matmul %20, %22, %cst_21 {dimension_numbers = #tpu.dot_dimension_numbers<[1], [0], [0], [1], [0, 0, 1, 1], [], []>} : vector<64x256xbf16>, vector<256x256xbf16>, vector<64x256xf32> -> vector<64x256xf32>
    %24 = arith.addf %16, %23 : vector<64x256xf32>
    %c3 = arith.constant 3 : index
    %c0_22 = arith.constant 0 : index
    %c0_23 = arith.constant 0 : index
    %25 = vector.load %arg1[%c3, %c0_22, %c0_23] : memref<4x64x128xbf16, #tpu.memory_space<vmem>>, vector<1x64x128xbf16>
    %26 = vector.shape_cast %25 : vector<1x64x128xbf16> to vector<64x128xbf16>
    %cst_24 = arith.constant dense<0.000000e+00> : vector<64x256xf32>
    %27 = tpu.matmul %26, %1, %cst_24 {dimension_numbers = #tpu.dot_dimension_numbers<[1], [0], [0], [1], [0, 0, 1, 1], [], []>} : vector<64x128xbf16>, vector<128x256xbf16>, vector<64x256xf32> -> vector<64x256xf32>
    %28 = arith.truncf %27 : vector<64x256xf32> to vector<64x256xbf16>
    %c3_25 = arith.constant 3 : index
    %c0_26 = arith.constant 0 : index
    %c0_27 = arith.constant 0 : index
    %29 = vector.load %arg2[%c3_25, %c0_26, %c0_27] : memref<4x256x256xbf16, #tpu.memory_space<vmem>>, vector<1x256x256xbf16>
    %30 = vector.shape_cast %29 : vector<1x256x256xbf16> to vector<256x256xbf16>
    %cst_28 = arith.constant dense<0.000000e+00> : vector<64x256xf32>
    %31 = tpu.matmul %28, %30, %cst_28 {dimension_numbers = #tpu.dot_dimension_numbers<[1], [0], [0], [1], [0, 0, 1, 1], [], []>} : vector<64x256xbf16>, vector<256x256xbf16>, vector<64x256xf32> -> vector<64x256xf32>
    %32 = arith.addf %24, %31 : vector<64x256xf32>
    %cst_29 = arith.constant 0.000000e+00 : f32
    %33 = vector.broadcast %cst_29 : f32 to vector<64x256xf32>
    %34 = arith.cmpf oge, %32, %33 : vector<64x256xf32>
    %cst_30 = arith.constant 2.000000e-01 : f32
    %35 = vector.broadcast %cst_30 : f32 to vector<64x256xf32>
    %36 = arith.mulf %35, %32 : vector<64x256xf32>
    %37 = arith.select %34, %32, %36 : vector<64x256xi1>, vector<64x256xf32>
    %38 = arith.truncf %37 : vector<64x256xf32> to vector<64x256xbf16>
    %c0_31 = arith.constant 0 : index
    %c0_32 = arith.constant 0 : index
    %c0_33 = arith.constant 0 : index
    %39 = vector.load %arg3[%c0_31, %c0_32, %c0_33] : memref<4x32x64xbf16, #tpu.memory_space<vmem>>, vector<1x32x64xbf16>
    %40 = vector.shape_cast %39 : vector<1x32x64xbf16> to vector<32x64xbf16>
    %cst_34 = arith.constant dense<0.000000e+00> : vector<32x256xf32>
    %41 = tpu.matmul %40, %38, %cst_34 {dimension_numbers = #tpu.dot_dimension_numbers<[1], [0], [0], [1], [0, 0, 1, 1], [], []>} : vector<32x64xbf16>, vector<64x256xbf16>, vector<32x256xf32> -> vector<32x256xf32>
    %42 = arith.truncf %41 : vector<32x256xf32> to vector<32x256xbf16>
    %c0_35 = arith.constant 0 : index
    %c0_36 = arith.constant 0 : index
    %c0_37 = arith.constant 0 : index
    %43 = vector.load %arg4[%c0_35, %c0_36, %c0_37] : memref<4x256x256xbf16, #tpu.memory_space<vmem>>, vector<1x256x256xbf16>
    %44 = vector.shape_cast %43 : vector<1x256x256xbf16> to vector<256x256xbf16>
    %cst_38 = arith.constant dense<0.000000e+00> : vector<32x256xf32>
    %45 = tpu.matmul %42, %44, %cst_38 {dimension_numbers = #tpu.dot_dimension_numbers<[1], [0], [0], [1], [0, 0, 1, 1], [], []>} : vector<32x256xbf16>, vector<256x256xbf16>, vector<32x256xf32> -> vector<32x256xf32>
    %c1_39 = arith.constant 1 : index
    %c0_40 = arith.constant 0 : index
    %c0_41 = arith.constant 0 : index
    %46 = vector.load %arg3[%c1_39, %c0_40, %c0_41] : memref<4x32x64xbf16, #tpu.memory_space<vmem>>, vector<1x32x64xbf16>
    %47 = vector.shape_cast %46 : vector<1x32x64xbf16> to vector<32x64xbf16>
    %cst_42 = arith.constant dense<0.000000e+00> : vector<32x256xf32>
    %48 = tpu.matmul %47, %38, %cst_42 {dimension_numbers = #tpu.dot_dimension_numbers<[1], [0], [0], [1], [0, 0, 1, 1], [], []>} : vector<32x64xbf16>, vector<64x256xbf16>, vector<32x256xf32> -> vector<32x256xf32>
    %49 = arith.truncf %48 : vector<32x256xf32> to vector<32x256xbf16>
    %c1_43 = arith.constant 1 : index
    %c0_44 = arith.constant 0 : index
    %c0_45 = arith.constant 0 : index
    %50 = vector.load %arg4[%c1_43, %c0_44, %c0_45] : memref<4x256x256xbf16, #tpu.memory_space<vmem>>, vector<1x256x256xbf16>
    %51 = vector.shape_cast %50 : vector<1x256x256xbf16> to vector<256x256xbf16>
    %cst_46 = arith.constant dense<0.000000e+00> : vector<32x256xf32>
    %52 = tpu.matmul %49, %51, %cst_46 {dimension_numbers = #tpu.dot_dimension_numbers<[1], [0], [0], [1], [0, 0, 1, 1], [], []>} : vector<32x256xbf16>, vector<256x256xbf16>, vector<32x256xf32> -> vector<32x256xf32>
    %53 = arith.addf %45, %52 : vector<32x256xf32>
    %c2_47 = arith.constant 2 : index
    %c0_48 = arith.constant 0 : index
    %c0_49 = arith.constant 0 : index
    %54 = vector.load %arg3[%c2_47, %c0_48, %c0_49] : memref<4x32x64xbf16, #tpu.memory_space<vmem>>, vector<1x32x64xbf16>
    %55 = vector.shape_cast %54 : vector<1x32x64xbf16> to vector<32x64xbf16>
    %cst_50 = arith.constant dense<0.000000e+00> : vector<32x256xf32>
    %56 = tpu.matmul %55, %38, %cst_50 {dimension_numbers = #tpu.dot_dimension_numbers<[1], [0], [0], [1], [0, 0, 1, 1], [], []>} : vector<32x64xbf16>, vector<64x256xbf16>, vector<32x256xf32> -> vector<32x256xf32>
    %57 = arith.truncf %56 : vector<32x256xf32> to vector<32x256xbf16>
    %c2_51 = arith.constant 2 : index
    %c0_52 = arith.constant 0 : index
    %c0_53 = arith.constant 0 : index
    %58 = vector.load %arg4[%c2_51, %c0_52, %c0_53] : memref<4x256x256xbf16, #tpu.memory_space<vmem>>, vector<1x256x256xbf16>
    %59 = vector.shape_cast %58 : vector<1x256x256xbf16> to vector<256x256xbf16>
    %cst_54 = arith.constant dense<0.000000e+00> : vector<32x256xf32>
    %60 = tpu.matmul %57, %59, %cst_54 {dimension_numbers = #tpu.dot_dimension_numbers<[1], [0], [0], [1], [0, 0, 1, 1], [], []>} : vector<32x256xbf16>, vector<256x256xbf16>, vector<32x256xf32> -> vector<32x256xf32>
    %61 = arith.addf %53, %60 : vector<32x256xf32>
    %c3_55 = arith.constant 3 : index
    %c0_56 = arith.constant 0 : index
    %c0_57 = arith.constant 0 : index
    %62 = vector.load %arg3[%c3_55, %c0_56, %c0_57] : memref<4x32x64xbf16, #tpu.memory_space<vmem>>, vector<1x32x64xbf16>
    %63 = vector.shape_cast %62 : vector<1x32x64xbf16> to vector<32x64xbf16>
    %cst_58 = arith.constant dense<0.000000e+00> : vector<32x256xf32>
    %64 = tpu.matmul %63, %38, %cst_58 {dimension_numbers = #tpu.dot_dimension_numbers<[1], [0], [0], [1], [0, 0, 1, 1], [], []>} : vector<32x64xbf16>, vector<64x256xbf16>, vector<32x256xf32> -> vector<32x256xf32>
    %65 = arith.truncf %64 : vector<32x256xf32> to vector<32x256xbf16>
    %c3_59 = arith.constant 3 : index
    %c0_60 = arith.constant 0 : index
    %c0_61 = arith.constant 0 : index
    %66 = vector.load %arg4[%c3_59, %c0_60, %c0_61] : memref<4x256x256xbf16, #tpu.memory_space<vmem>>, vector<1x256x256xbf16>
    %67 = vector.shape_cast %66 : vector<1x256x256xbf16> to vector<256x256xbf16>
    %cst_62 = arith.constant dense<0.000000e+00> : vector<32x256xf32>
    %68 = tpu.matmul %65, %67, %cst_62 {dimension_numbers = #tpu.dot_dimension_numbers<[1], [0], [0], [1], [0, 0, 1, 1], [], []>} : vector<32x256xbf16>, vector<256x256xbf16>, vector<32x256xf32> -> vector<32x256xf32>
    %69 = arith.addf %61, %68 : vector<32x256xf32>
    %cst_63 = arith.constant dense<0.000000e+00> : vector<256xf32>
    %70 = vector.multi_reduction <add>, %69, %cst_63 [0] : vector<32x256xf32> to vector<256xf32>
    %71 = vector.shape_cast %70 : vector<256xf32> to vector<1x256xf32>
    %c0_64 = arith.constant 0 : index
    %c0_65 = arith.constant 0 : index
    %72 = vector.load %arg7[%c0_64, %c0_65] : memref<256x16xf32, #tpu.memory_space<vmem>>, vector<256x16xf32>
    %cst_66 = arith.constant dense<0.000000e+00> : vector<1x16xf32>
    %73 = tpu.matmul %71, %72, %cst_66 {dimension_numbers = #tpu.dot_dimension_numbers<[1], [0], [0], [1], [0, 0, 1, 1], [], []>} : vector<1x256xf32>, vector<256x16xf32>, vector<1x16xf32> -> vector<1x16xf32>
    %74 = arith.mulf %69, %69 : vector<32x256xf32>
    %cst_67 = arith.constant dense<0.000000e+00> : vector<256xf32>
    %75 = vector.multi_reduction <add>, %74, %cst_67 [0] : vector<32x256xf32> to vector<256xf32>
    %76 = vector.shape_cast %75 : vector<256xf32> to vector<1x256xf32>
    %c0_68 = arith.constant 0 : index
    %c0_69 = arith.constant 0 : index
    %77 = vector.load %arg7[%c0_68, %c0_69] : memref<256x16xf32, #tpu.memory_space<vmem>>, vector<256x16xf32>
    %cst_70 = arith.constant dense<0.000000e+00> : vector<1x16xf32>
    %78 = tpu.matmul %76, %77, %cst_70 {dimension_numbers = #tpu.dot_dimension_numbers<[1], [0], [0], [1], [0, 0, 1, 1], [], []>} : vector<1x256xf32>, vector<256x16xf32>, vector<1x16xf32> -> vector<1x16xf32>
    %cst_71 = arith.constant 0.001953125 : f32
    %79 = vector.broadcast %cst_71 : f32 to vector<1x16xf32>
    %80 = arith.mulf %73, %79 : vector<1x16xf32>
    %cst_72 = arith.constant 0.001953125 : f32
    %81 = vector.broadcast %cst_72 : f32 to vector<1x16xf32>
    %82 = arith.mulf %78, %81 : vector<1x16xf32>
    %83 = arith.mulf %80, %80 : vector<1x16xf32>
    %84 = arith.subf %82, %83 : vector<1x16xf32>
    %cst_73 = arith.constant 0.000000e+00 : f32
    %85 = vector.broadcast %cst_73 : f32 to vector<1x16xf32>
    %86 = arith.maximumf %84, %85 : vector<1x16xf32>
    %c0_74 = arith.constant 0 : index
    %c0_75 = arith.constant 0 : index
    %87 = vector.load %arg5[%c0_74, %c0_75] : memref<1x16xf32, #tpu.memory_space<vmem>>, vector<1x16xf32>
    %cst_76 = arith.constant 9.99999974E-6 : f32
    %88 = vector.broadcast %cst_76 : f32 to vector<1x16xf32>
    %89 = arith.addf %86, %88 : vector<1x16xf32>
    %90 = math.rsqrt %89 : vector<1x16xf32>
    %91 = arith.mulf %87, %90 : vector<1x16xf32>
    %c0_77 = arith.constant 0 : index
    %c0_78 = arith.constant 0 : index
    %92 = vector.load %arg6[%c0_77, %c0_78] : memref<1x16xf32, #tpu.memory_space<vmem>>, vector<1x16xf32>
    %93 = arith.mulf %80, %91 : vector<1x16xf32>
    %94 = arith.subf %92, %93 : vector<1x16xf32>
    %c0_79 = arith.constant 0 : index
    %c0_80 = arith.constant 0 : index
    %95 = vector.load %arg8[%c0_79, %c0_80] : memref<16x256xf32, #tpu.memory_space<vmem>>, vector<16x256xf32>
    %cst_81 = arith.constant dense<0.000000e+00> : vector<1x256xf32>
    %96 = tpu.matmul %91, %95, %cst_81 {dimension_numbers = #tpu.dot_dimension_numbers<[1], [0], [0], [1], [0, 0, 1, 1], [], []>} : vector<1x16xf32>, vector<16x256xf32>, vector<1x256xf32> -> vector<1x256xf32>
    %c0_82 = arith.constant 0 : index
    %c0_83 = arith.constant 0 : index
    %97 = vector.load %arg8[%c0_82, %c0_83] : memref<16x256xf32, #tpu.memory_space<vmem>>, vector<16x256xf32>
    %cst_84 = arith.constant dense<0.000000e+00> : vector<1x256xf32>
    %98 = tpu.matmul %94, %97, %cst_84 {dimension_numbers = #tpu.dot_dimension_numbers<[1], [0], [0], [1], [0, 0, 1, 1], [], []>} : vector<1x16xf32>, vector<16x256xf32>, vector<1x256xf32> -> vector<1x256xf32>
    %99 = vector.broadcast %96 : vector<1x256xf32> to vector<32x256xf32>
    %100 = arith.mulf %69, %99 : vector<32x256xf32>
    %101 = vector.broadcast %98 : vector<1x256xf32> to vector<32x256xf32>
    %102 = arith.addf %100, %101 : vector<32x256xf32>
    %cst_85 = arith.constant 0.000000e+00 : f32
    %103 = vector.broadcast %cst_85 : f32 to vector<32x256xf32>
    %104 = arith.cmpf oge, %102, %103 : vector<32x256xf32>
    %cst_86 = arith.constant 2.000000e-01 : f32
    %105 = vector.broadcast %cst_86 : f32 to vector<32x256xf32>
    %106 = arith.mulf %105, %102 : vector<32x256xf32>
    %107 = arith.select %104, %102, %106 : vector<32x256xi1>, vector<32x256xf32>
    %108 = arith.truncf %107 : vector<32x256xf32> to vector<32x256xbf16>
    %c0_87 = arith.constant 0 : index
    %c0_88 = arith.constant 0 : index
    %c0_89 = arith.constant 0 : index
    %109 = vector.load %arg9[%c0_87, %c0_88, %c0_89] : memref<4x16x32xbf16, #tpu.memory_space<vmem>>, vector<1x16x32xbf16>
    %110 = vector.shape_cast %109 : vector<1x16x32xbf16> to vector<16x32xbf16>
    %cst_90 = arith.constant dense<0.000000e+00> : vector<16x256xf32>
    %111 = tpu.matmul %110, %108, %cst_90 {dimension_numbers = #tpu.dot_dimension_numbers<[1], [0], [0], [1], [0, 0, 1, 1], [], []>} : vector<16x32xbf16>, vector<32x256xbf16>, vector<16x256xf32> -> vector<16x256xf32>
    %112 = arith.truncf %111 : vector<16x256xf32> to vector<16x256xbf16>
    %c0_91 = arith.constant 0 : index
    %c0_92 = arith.constant 0 : index
    %c0_93 = arith.constant 0 : index
    %113 = vector.load %arg10[%c0_91, %c0_92, %c0_93] : memref<4x256x256xbf16, #tpu.memory_space<vmem>>, vector<1x256x256xbf16>
    %114 = vector.shape_cast %113 : vector<1x256x256xbf16> to vector<256x256xbf16>
    %cst_94 = arith.constant dense<0.000000e+00> : vector<16x256xf32>
    %115 = tpu.matmul %112, %114, %cst_94 {dimension_numbers = #tpu.dot_dimension_numbers<[1], [0], [0], [1], [0, 0, 1, 1], [], []>} : vector<16x256xbf16>, vector<256x256xbf16>, vector<16x256xf32> -> vector<16x256xf32>
    %c1_95 = arith.constant 1 : index
    %c0_96 = arith.constant 0 : index
    %c0_97 = arith.constant 0 : index
    %116 = vector.load %arg9[%c1_95, %c0_96, %c0_97] : memref<4x16x32xbf16, #tpu.memory_space<vmem>>, vector<1x16x32xbf16>
    %117 = vector.shape_cast %116 : vector<1x16x32xbf16> to vector<16x32xbf16>
    %cst_98 = arith.constant dense<0.000000e+00> : vector<16x256xf32>
    %118 = tpu.matmul %117, %108, %cst_98 {dimension_numbers = #tpu.dot_dimension_numbers<[1], [0], [0], [1], [0, 0, 1, 1], [], []>} : vector<16x32xbf16>, vector<32x256xbf16>, vector<16x256xf32> -> vector<16x256xf32>
    %119 = arith.truncf %118 : vector<16x256xf32> to vector<16x256xbf16>
    %c1_99 = arith.constant 1 : index
    %c0_100 = arith.constant 0 : index
    %c0_101 = arith.constant 0 : index
    %120 = vector.load %arg10[%c1_99, %c0_100, %c0_101] : memref<4x256x256xbf16, #tpu.memory_space<vmem>>, vector<1x256x256xbf16>
    %121 = vector.shape_cast %120 : vector<1x256x256xbf16> to vector<256x256xbf16>
    %cst_102 = arith.constant dense<0.000000e+00> : vector<16x256xf32>
    %122 = tpu.matmul %119, %121, %cst_102 {dimension_numbers = #tpu.dot_dimension_numbers<[1], [0], [0], [1], [0, 0, 1, 1], [], []>} : vector<16x256xbf16>, vector<256x256xbf16>, vector<16x256xf32> -> vector<16x256xf32>
    %123 = arith.addf %115, %122 : vector<16x256xf32>
    %c2_103 = arith.constant 2 : index
    %c0_104 = arith.constant 0 : index
    %c0_105 = arith.constant 0 : index
    %124 = vector.load %arg9[%c2_103, %c0_104, %c0_105] : memref<4x16x32xbf16, #tpu.memory_space<vmem>>, vector<1x16x32xbf16>
    %125 = vector.shape_cast %124 : vector<1x16x32xbf16> to vector<16x32xbf16>
    %cst_106 = arith.constant dense<0.000000e+00> : vector<16x256xf32>
    %126 = tpu.matmul %125, %108, %cst_106 {dimension_numbers = #tpu.dot_dimension_numbers<[1], [0], [0], [1], [0, 0, 1, 1], [], []>} : vector<16x32xbf16>, vector<32x256xbf16>, vector<16x256xf32> -> vector<16x256xf32>
    %127 = arith.truncf %126 : vector<16x256xf32> to vector<16x256xbf16>
    %c2_107 = arith.constant 2 : index
    %c0_108 = arith.constant 0 : index
    %c0_109 = arith.constant 0 : index
    %128 = vector.load %arg10[%c2_107, %c0_108, %c0_109] : memref<4x256x256xbf16, #tpu.memory_space<vmem>>, vector<1x256x256xbf16>
    %129 = vector.shape_cast %128 : vector<1x256x256xbf16> to vector<256x256xbf16>
    %cst_110 = arith.constant dense<0.000000e+00> : vector<16x256xf32>
    %130 = tpu.matmul %127, %129, %cst_110 {dimension_numbers = #tpu.dot_dimension_numbers<[1], [0], [0], [1], [0, 0, 1, 1], [], []>} : vector<16x256xbf16>, vector<256x256xbf16>, vector<16x256xf32> -> vector<16x256xf32>
    %131 = arith.addf %123, %130 : vector<16x256xf32>
    %c3_111 = arith.constant 3 : index
    %c0_112 = arith.constant 0 : index
    %c0_113 = arith.constant 0 : index
    %132 = vector.load %arg9[%c3_111, %c0_112, %c0_113] : memref<4x16x32xbf16, #tpu.memory_space<vmem>>, vector<1x16x32xbf16>
    %133 = vector.shape_cast %132 : vector<1x16x32xbf16> to vector<16x32xbf16>
    %cst_114 = arith.constant dense<0.000000e+00> : vector<16x256xf32>
    %134 = tpu.matmul %133, %108, %cst_114 {dimension_numbers = #tpu.dot_dimension_numbers<[1], [0], [0], [1], [0, 0, 1, 1], [], []>} : vector<16x32xbf16>, vector<32x256xbf16>, vector<16x256xf32> -> vector<16x256xf32>
    %135 = arith.truncf %134 : vector<16x256xf32> to vector<16x256xbf16>
    %c3_115 = arith.constant 3 : index
    %c0_116 = arith.constant 0 : index
    %c0_117 = arith.constant 0 : index
    %136 = vector.load %arg10[%c3_115, %c0_116, %c0_117] : memref<4x256x256xbf16, #tpu.memory_space<vmem>>, vector<1x256x256xbf16>
    %137 = vector.shape_cast %136 : vector<1x256x256xbf16> to vector<256x256xbf16>
    %cst_118 = arith.constant dense<0.000000e+00> : vector<16x256xf32>
    %138 = tpu.matmul %135, %137, %cst_118 {dimension_numbers = #tpu.dot_dimension_numbers<[1], [0], [0], [1], [0, 0, 1, 1], [], []>} : vector<16x256xbf16>, vector<256x256xbf16>, vector<16x256xf32> -> vector<16x256xf32>
    %139 = arith.addf %131, %138 : vector<16x256xf32>
    %cst_119 = arith.constant dense<0.000000e+00> : vector<256xf32>
    %140 = vector.multi_reduction <add>, %139, %cst_119 [0] : vector<16x256xf32> to vector<256xf32>
    %141 = vector.shape_cast %140 : vector<256xf32> to vector<1x256xf32>
    %c0_120 = arith.constant 0 : index
    %c0_121 = arith.constant 0 : index
    %142 = vector.load %arg13[%c0_120, %c0_121] : memref<256x32xf32, #tpu.memory_space<vmem>>, vector<256x32xf32>
    %cst_122 = arith.constant dense<0.000000e+00> : vector<1x32xf32>
    %143 = tpu.matmul %141, %142, %cst_122 {dimension_numbers = #tpu.dot_dimension_numbers<[1], [0], [0], [1], [0, 0, 1, 1], [], []>} : vector<1x256xf32>, vector<256x32xf32>, vector<1x32xf32> -> vector<1x32xf32>
    %144 = arith.mulf %139, %139 : vector<16x256xf32>
    %cst_123 = arith.constant dense<0.000000e+00> : vector<256xf32>
    %145 = vector.multi_reduction <add>, %144, %cst_123 [0] : vector<16x256xf32> to vector<256xf32>
    %146 = vector.shape_cast %145 : vector<256xf32> to vector<1x256xf32>
    %c0_124 = arith.constant 0 : index
    %c0_125 = arith.constant 0 : index
    %147 = vector.load %arg13[%c0_124, %c0_125] : memref<256x32xf32, #tpu.memory_space<vmem>>, vector<256x32xf32>
    %cst_126 = arith.constant dense<0.000000e+00> : vector<1x32xf32>
    %148 = tpu.matmul %146, %147, %cst_126 {dimension_numbers = #tpu.dot_dimension_numbers<[1], [0], [0], [1], [0, 0, 1, 1], [], []>} : vector<1x256xf32>, vector<256x32xf32>, vector<1x32xf32> -> vector<1x32xf32>
    %cst_127 = arith.constant 7.812500e-03 : f32
    %149 = vector.broadcast %cst_127 : f32 to vector<1x32xf32>
    %150 = arith.mulf %143, %149 : vector<1x32xf32>
    %cst_128 = arith.constant 7.812500e-03 : f32
    %151 = vector.broadcast %cst_128 : f32 to vector<1x32xf32>
    %152 = arith.mulf %148, %151 : vector<1x32xf32>
    %153 = arith.mulf %150, %150 : vector<1x32xf32>
    %154 = arith.subf %152, %153 : vector<1x32xf32>
    %cst_129 = arith.constant 0.000000e+00 : f32
    %155 = vector.broadcast %cst_129 : f32 to vector<1x32xf32>
    %156 = arith.maximumf %154, %155 : vector<1x32xf32>
    %c0_130 = arith.constant 0 : index
    %c0_131 = arith.constant 0 : index
    %157 = vector.load %arg11[%c0_130, %c0_131] : memref<1x32xf32, #tpu.memory_space<vmem>>, vector<1x32xf32>
    %cst_132 = arith.constant 9.99999974E-6 : f32
    %158 = vector.broadcast %cst_132 : f32 to vector<1x32xf32>
    %159 = arith.addf %156, %158 : vector<1x32xf32>
    %160 = math.rsqrt %159 : vector<1x32xf32>
    %161 = arith.mulf %157, %160 : vector<1x32xf32>
    %c0_133 = arith.constant 0 : index
    %c0_134 = arith.constant 0 : index
    %162 = vector.load %arg12[%c0_133, %c0_134] : memref<1x32xf32, #tpu.memory_space<vmem>>, vector<1x32xf32>
    %163 = arith.mulf %150, %161 : vector<1x32xf32>
    %164 = arith.subf %162, %163 : vector<1x32xf32>
    %c0_135 = arith.constant 0 : index
    %c0_136 = arith.constant 0 : index
    %165 = vector.load %arg14[%c0_135, %c0_136] : memref<32x256xf32, #tpu.memory_space<vmem>>, vector<32x256xf32>
    %cst_137 = arith.constant dense<0.000000e+00> : vector<1x256xf32>
    %166 = tpu.matmul %161, %165, %cst_137 {dimension_numbers = #tpu.dot_dimension_numbers<[1], [0], [0], [1], [0, 0, 1, 1], [], []>} : vector<1x32xf32>, vector<32x256xf32>, vector<1x256xf32> -> vector<1x256xf32>
    %c0_138 = arith.constant 0 : index
    %c0_139 = arith.constant 0 : index
    %167 = vector.load %arg14[%c0_138, %c0_139] : memref<32x256xf32, #tpu.memory_space<vmem>>, vector<32x256xf32>
    %cst_140 = arith.constant dense<0.000000e+00> : vector<1x256xf32>
    %168 = tpu.matmul %164, %167, %cst_140 {dimension_numbers = #tpu.dot_dimension_numbers<[1], [0], [0], [1], [0, 0, 1, 1], [], []>} : vector<1x32xf32>, vector<32x256xf32>, vector<1x256xf32> -> vector<1x256xf32>
    %169 = vector.broadcast %166 : vector<1x256xf32> to vector<16x256xf32>
    %170 = arith.mulf %139, %169 : vector<16x256xf32>
    %171 = vector.broadcast %168 : vector<1x256xf32> to vector<16x256xf32>
    %172 = arith.addf %170, %171 : vector<16x256xf32>
    %cst_141 = arith.constant 0.000000e+00 : f32
    %173 = vector.broadcast %cst_141 : f32 to vector<16x256xf32>
    %174 = arith.cmpf oge, %172, %173 : vector<16x256xf32>
    %cst_142 = arith.constant 2.000000e-01 : f32
    %175 = vector.broadcast %cst_142 : f32 to vector<16x256xf32>
    %176 = arith.mulf %175, %172 : vector<16x256xf32>
    %177 = arith.select %174, %172, %176 : vector<16x256xi1>, vector<16x256xf32>
    %178 = arith.truncf %177 : vector<16x256xf32> to vector<16x256xbf16>
    %c0_143 = arith.constant 0 : index
    %c0_144 = arith.constant 0 : index
    %c0_145 = arith.constant 0 : index
    %179 = vector.load %arg15[%c0_143, %c0_144, %c0_145] : memref<4x8x16xbf16, #tpu.memory_space<vmem>>, vector<1x8x16xbf16>
    %180 = vector.shape_cast %179 : vector<1x8x16xbf16> to vector<8x16xbf16>
    %cst_146 = arith.constant dense<0.000000e+00> : vector<8x256xf32>
    %181 = tpu.matmul %180, %178, %cst_146 {dimension_numbers = #tpu.dot_dimension_numbers<[1], [0], [0], [1], [0, 0, 1, 1], [], []>} : vector<8x16xbf16>, vector<16x256xbf16>, vector<8x256xf32> -> vector<8x256xf32>
    %182 = arith.truncf %181 : vector<8x256xf32> to vector<8x256xbf16>
    %c0_147 = arith.constant 0 : index
    %c0_148 = arith.constant 0 : index
    %c0_149 = arith.constant 0 : index
    %183 = vector.load %arg16[%c0_147, %c0_148, %c0_149] : memref<4x256x256xbf16, #tpu.memory_space<vmem>>, vector<1x256x256xbf16>
    %184 = vector.shape_cast %183 : vector<1x256x256xbf16> to vector<256x256xbf16>
    %cst_150 = arith.constant dense<0.000000e+00> : vector<8x256xf32>
    %185 = tpu.matmul %182, %184, %cst_150 {dimension_numbers = #tpu.dot_dimension_numbers<[1], [0], [0], [1], [0, 0, 1, 1], [], []>} : vector<8x256xbf16>, vector<256x256xbf16>, vector<8x256xf32> -> vector<8x256xf32>
    %c1_151 = arith.constant 1 : index
    %c0_152 = arith.constant 0 : index
    %c0_153 = arith.constant 0 : index
    %186 = vector.load %arg15[%c1_151, %c0_152, %c0_153] : memref<4x8x16xbf16, #tpu.memory_space<vmem>>, vector<1x8x16xbf16>
    %187 = vector.shape_cast %186 : vector<1x8x16xbf16> to vector<8x16xbf16>
    %cst_154 = arith.constant dense<0.000000e+00> : vector<8x256xf32>
    %188 = tpu.matmul %187, %178, %cst_154 {dimension_numbers = #tpu.dot_dimension_numbers<[1], [0], [0], [1], [0, 0, 1, 1], [], []>} : vector<8x16xbf16>, vector<16x256xbf16>, vector<8x256xf32> -> vector<8x256xf32>
    %189 = arith.truncf %188 : vector<8x256xf32> to vector<8x256xbf16>
    %c1_155 = arith.constant 1 : index
    %c0_156 = arith.constant 0 : index
    %c0_157 = arith.constant 0 : index
    %190 = vector.load %arg16[%c1_155, %c0_156, %c0_157] : memref<4x256x256xbf16, #tpu.memory_space<vmem>>, vector<1x256x256xbf16>
    %191 = vector.shape_cast %190 : vector<1x256x256xbf16> to vector<256x256xbf16>
    %cst_158 = arith.constant dense<0.000000e+00> : vector<8x256xf32>
    %192 = tpu.matmul %189, %191, %cst_158 {dimension_numbers = #tpu.dot_dimension_numbers<[1], [0], [0], [1], [0, 0, 1, 1], [], []>} : vector<8x256xbf16>, vector<256x256xbf16>, vector<8x256xf32> -> vector<8x256xf32>
    %193 = arith.addf %185, %192 : vector<8x256xf32>
    %c2_159 = arith.constant 2 : index
    %c0_160 = arith.constant 0 : index
    %c0_161 = arith.constant 0 : index
    %194 = vector.load %arg15[%c2_159, %c0_160, %c0_161] : memref<4x8x16xbf16, #tpu.memory_space<vmem>>, vector<1x8x16xbf16>
    %195 = vector.shape_cast %194 : vector<1x8x16xbf16> to vector<8x16xbf16>
    %cst_162 = arith.constant dense<0.000000e+00> : vector<8x256xf32>
    %196 = tpu.matmul %195, %178, %cst_162 {dimension_numbers = #tpu.dot_dimension_numbers<[1], [0], [0], [1], [0, 0, 1, 1], [], []>} : vector<8x16xbf16>, vector<16x256xbf16>, vector<8x256xf32> -> vector<8x256xf32>
    %197 = arith.truncf %196 : vector<8x256xf32> to vector<8x256xbf16>
    %c2_163 = arith.constant 2 : index
    %c0_164 = arith.constant 0 : index
    %c0_165 = arith.constant 0 : index
    %198 = vector.load %arg16[%c2_163, %c0_164, %c0_165] : memref<4x256x256xbf16, #tpu.memory_space<vmem>>, vector<1x256x256xbf16>
    %199 = vector.shape_cast %198 : vector<1x256x256xbf16> to vector<256x256xbf16>
    %cst_166 = arith.constant dense<0.000000e+00> : vector<8x256xf32>
    %200 = tpu.matmul %197, %199, %cst_166 {dimension_numbers = #tpu.dot_dimension_numbers<[1], [0], [0], [1], [0, 0, 1, 1], [], []>} : vector<8x256xbf16>, vector<256x256xbf16>, vector<8x256xf32> -> vector<8x256xf32>
    %201 = arith.addf %193, %200 : vector<8x256xf32>
    %c3_167 = arith.constant 3 : index
    %c0_168 = arith.constant 0 : index
    %c0_169 = arith.constant 0 : index
    %202 = vector.load %arg15[%c3_167, %c0_168, %c0_169] : memref<4x8x16xbf16, #tpu.memory_space<vmem>>, vector<1x8x16xbf16>
    %203 = vector.shape_cast %202 : vector<1x8x16xbf16> to vector<8x16xbf16>
    %cst_170 = arith.constant dense<0.000000e+00> : vector<8x256xf32>
    %204 = tpu.matmul %203, %178, %cst_170 {dimension_numbers = #tpu.dot_dimension_numbers<[1], [0], [0], [1], [0, 0, 1, 1], [], []>} : vector<8x16xbf16>, vector<16x256xbf16>, vector<8x256xf32> -> vector<8x256xf32>
    %205 = arith.truncf %204 : vector<8x256xf32> to vector<8x256xbf16>
    %c3_171 = arith.constant 3 : index
    %c0_172 = arith.constant 0 : index
    %c0_173 = arith.constant 0 : index
    %206 = vector.load %arg16[%c3_171, %c0_172, %c0_173] : memref<4x256x256xbf16, #tpu.memory_space<vmem>>, vector<1x256x256xbf16>
    %207 = vector.shape_cast %206 : vector<1x256x256xbf16> to vector<256x256xbf16>
    %cst_174 = arith.constant dense<0.000000e+00> : vector<8x256xf32>
    %208 = tpu.matmul %205, %207, %cst_174 {dimension_numbers = #tpu.dot_dimension_numbers<[1], [0], [0], [1], [0, 0, 1, 1], [], []>} : vector<8x256xbf16>, vector<256x256xbf16>, vector<8x256xf32> -> vector<8x256xf32>
    %209 = arith.addf %201, %208 : vector<8x256xf32>
    %cst_175 = arith.constant dense<0.000000e+00> : vector<256xf32>
    %210 = vector.multi_reduction <add>, %209, %cst_175 [0] : vector<8x256xf32> to vector<256xf32>
    %211 = vector.shape_cast %210 : vector<256xf32> to vector<1x256xf32>
    %c0_176 = arith.constant 0 : index
    %c0_177 = arith.constant 0 : index
    %212 = vector.load %arg19[%c0_176, %c0_177] : memref<256x64xf32, #tpu.memory_space<vmem>>, vector<256x64xf32>
    %cst_178 = arith.constant dense<0.000000e+00> : vector<1x64xf32>
    %213 = tpu.matmul %211, %212, %cst_178 {dimension_numbers = #tpu.dot_dimension_numbers<[1], [0], [0], [1], [0, 0, 1, 1], [], []>} : vector<1x256xf32>, vector<256x64xf32>, vector<1x64xf32> -> vector<1x64xf32>
    %214 = arith.mulf %209, %209 : vector<8x256xf32>
    %cst_179 = arith.constant dense<0.000000e+00> : vector<256xf32>
    %215 = vector.multi_reduction <add>, %214, %cst_179 [0] : vector<8x256xf32> to vector<256xf32>
    %216 = vector.shape_cast %215 : vector<256xf32> to vector<1x256xf32>
    %c0_180 = arith.constant 0 : index
    %c0_181 = arith.constant 0 : index
    %217 = vector.load %arg19[%c0_180, %c0_181] : memref<256x64xf32, #tpu.memory_space<vmem>>, vector<256x64xf32>
    %cst_182 = arith.constant dense<0.000000e+00> : vector<1x64xf32>
    %218 = tpu.matmul %216, %217, %cst_182 {dimension_numbers = #tpu.dot_dimension_numbers<[1], [0], [0], [1], [0, 0, 1, 1], [], []>} : vector<1x256xf32>, vector<256x64xf32>, vector<1x64xf32> -> vector<1x64xf32>
    %cst_183 = arith.constant 3.125000e-02 : f32
    %219 = vector.broadcast %cst_183 : f32 to vector<1x64xf32>
    %220 = arith.mulf %213, %219 : vector<1x64xf32>
    %cst_184 = arith.constant 3.125000e-02 : f32
    %221 = vector.broadcast %cst_184 : f32 to vector<1x64xf32>
    %222 = arith.mulf %218, %221 : vector<1x64xf32>
    %223 = arith.mulf %220, %220 : vector<1x64xf32>
    %224 = arith.subf %222, %223 : vector<1x64xf32>
    %cst_185 = arith.constant 0.000000e+00 : f32
    %225 = vector.broadcast %cst_185 : f32 to vector<1x64xf32>
    %226 = arith.maximumf %224, %225 : vector<1x64xf32>
    %c0_186 = arith.constant 0 : index
    %c0_187 = arith.constant 0 : index
    %227 = vector.load %arg17[%c0_186, %c0_187] : memref<1x64xf32, #tpu.memory_space<vmem>>, vector<1x64xf32>
    %cst_188 = arith.constant 9.99999974E-6 : f32
    %228 = vector.broadcast %cst_188 : f32 to vector<1x64xf32>
    %229 = arith.addf %226, %228 : vector<1x64xf32>
    %230 = math.rsqrt %229 : vector<1x64xf32>
    %231 = arith.mulf %227, %230 : vector<1x64xf32>
    %c0_189 = arith.constant 0 : index
    %c0_190 = arith.constant 0 : index
    %232 = vector.load %arg18[%c0_189, %c0_190] : memref<1x64xf32, #tpu.memory_space<vmem>>, vector<1x64xf32>
    %233 = arith.mulf %220, %231 : vector<1x64xf32>
    %234 = arith.subf %232, %233 : vector<1x64xf32>
    %c0_191 = arith.constant 0 : index
    %c0_192 = arith.constant 0 : index
    %235 = vector.load %arg20[%c0_191, %c0_192] : memref<64x256xf32, #tpu.memory_space<vmem>>, vector<64x256xf32>
    %cst_193 = arith.constant dense<0.000000e+00> : vector<1x256xf32>
    %236 = tpu.matmul %231, %235, %cst_193 {dimension_numbers = #tpu.dot_dimension_numbers<[1], [0], [0], [1], [0, 0, 1, 1], [], []>} : vector<1x64xf32>, vector<64x256xf32>, vector<1x256xf32> -> vector<1x256xf32>
    %c0_194 = arith.constant 0 : index
    %c0_195 = arith.constant 0 : index
    %237 = vector.load %arg20[%c0_194, %c0_195] : memref<64x256xf32, #tpu.memory_space<vmem>>, vector<64x256xf32>
    %cst_196 = arith.constant dense<0.000000e+00> : vector<1x256xf32>
    %238 = tpu.matmul %234, %237, %cst_196 {dimension_numbers = #tpu.dot_dimension_numbers<[1], [0], [0], [1], [0, 0, 1, 1], [], []>} : vector<1x64xf32>, vector<64x256xf32>, vector<1x256xf32> -> vector<1x256xf32>
    %239 = vector.broadcast %236 : vector<1x256xf32> to vector<8x256xf32>
    %240 = arith.mulf %209, %239 : vector<8x256xf32>
    %241 = vector.broadcast %238 : vector<1x256xf32> to vector<8x256xf32>
    %242 = arith.addf %240, %241 : vector<8x256xf32>
    %cst_197 = arith.constant 0.000000e+00 : f32
    %243 = vector.broadcast %cst_197 : f32 to vector<8x256xf32>
    %244 = arith.cmpf oge, %242, %243 : vector<8x256xf32>
    %cst_198 = arith.constant 2.000000e-01 : f32
    %245 = vector.broadcast %cst_198 : f32 to vector<8x256xf32>
    %246 = arith.mulf %245, %242 : vector<8x256xf32>
    %247 = arith.select %244, %242, %246 : vector<8x256xi1>, vector<8x256xf32>
    %c0_199 = arith.constant 0 : index
    %c0_200 = arith.constant 0 : index
    %248 = vector.load %arg21[%c0_199, %c0_200] : memref<8x256xf32, #tpu.memory_space<vmem>>, vector<8x256xf32>
    %249 = arith.mulf %247, %248 : vector<8x256xf32>
    %c0_201 = arith.constant 0 : index
    %c0_202 = arith.constant 0 : index
    %250 = vector.load %arg22[%c0_201, %c0_202] : memref<2x8xf32, #tpu.memory_space<vmem>>, vector<2x8xf32>
    %cst_203 = arith.constant dense<0.000000e+00> : vector<2x256xf32>
    %251 = tpu.matmul %250, %249, %cst_203 {dimension_numbers = #tpu.dot_dimension_numbers<[1], [0], [0], [1], [0, 0, 1, 1], [], []>} : vector<2x8xf32>, vector<8x256xf32>, vector<2x256xf32> -> vector<2x256xf32>
    %cst_204 = arith.constant dense<0.000000e+00> : vector<2xf32>
    %252 = vector.multi_reduction <add>, %251, %cst_204 [1] : vector<2x256xf32> to vector<2xf32>
    %253 = vector.shape_cast %252 : vector<2xf32> to vector<2x1xf32>
    %254 = arith.negf %253 : vector<2x1xf32>
    %255 = math.exp %254 : vector<2x1xf32>
    %cst_205 = arith.constant 1.000000e+00 : f32
    %256 = vector.broadcast %cst_205 : f32 to vector<2x1xf32>
    %257 = arith.addf %256, %255 : vector<2x1xf32>
    %258 = arith.divf %256, %257 : vector<2x1xf32>
    %c0_206 = arith.constant 0 : index
    %c0_207 = arith.constant 0 : index
    %259 = vector.load %arg23[%c0_206, %c0_207] : memref<2x1xf32, #tpu.memory_space<vmem>>, vector<2x1xf32>
    tpu.vector_store %arg23[%c0_206, %c0_207], %258 {strides = array<i32>} : memref<2x1xf32, #tpu.memory_space<vmem>>, vector<2x1xf32>,
    return
  }
}

</mosaic_0001>

<bundles_post_ra>
// kernel: tile.33
= control target key start
LH: loop header
LB: loop body
LE: loop exit
PB: predicated region body
PF: predicated region fallthrough
CT: control target
= control target key end

     0   :  { %s1117_s22 = smov 3  ;;  %vm323_vm0 = vcmask 523264   ;;  %s1119_s23 = smov 3  ;;  %vm707_vm1 = vcmask 1047556   ;;  %vm711_vm2 = vcmask 1048064   ;;  %s1703_s0 = inlined_call_operand.vmem [shape: f32[4,64,64], index: 0, kind: input, shape index: {}]   ;;  %s1704_s1 = inlined_call_operand.vmem [shape: f32[256,64], index: 1, kind: output, shape index: {}]  }
   0x1   :  { %v996_v0 = vld [vmem:[%s1703_s0 + $0x1c] sm:$0xf]  ;;  %v997_v1 = vld [vmem:[%s1703_s0 + $0x18] sm:$0xf]  ;;  %v998_v2 = vld [vmem:[%s1703_s0 + $0x14] sm:$0xf] }
   0x2   :  { %289 = vst [vmem:[#allocation0 + $0x38] sm:$0xf] %v996_v0  ;;  %294 = vst [vmem:[#allocation0 + $0x30] sm:$0xf] %v997_v1  ;;  %v999_v3 = vld [vmem:[%s1703_s0 + $0x10] sm:$0xf] }
   0x3   :  { %299 = vst [vmem:[#allocation0 + $0x28] sm:$0xf] %v998_v2  ;;  %v1000_v4 = vld [vmem:[%s1703_s0 + $0xc] sm:$0xf]  ;;  %v1001_v5 = vld [vmem:[%s1703_s0 + $0x8] sm:$0xf] }
   0x4   :  { %304 = vst [vmem:[#allocation0 + $0x20] sm:$0xf] %v999_v3  ;;  %309 = vst [vmem:[#allocation0 + $0x18] sm:$0xf] %v1000_v4  ;;  %v1002_v6 = vld [vmem:[%s1703_s0 + $0x4] sm:$0xf] }
   0x5   :  { %314 = vst [vmem:[#allocation0 + $0x10] sm:$0xf] %v1001_v5  ;;  %v319_v7 = vld [vmem:[%s1703_s0] sm:$0xf]  ;;  %318 = vst [vmem:[#allocation0 + $0x8] sm:$0xf] %v1002_v6 }
   0x6   :  { %320 = vst [vmem:[#allocation0] sm:$0xf] %v319_v7  ;;  %s1121_s24 = smov 3  ;;  %v995_v8 = vld [vmem:[%s1703_s0 + $0x20] sm:$0xf]  ;;  %s338_s27 = smov 3 }
   0x7   :  { %s344_s28 = smov 3  ;;  %284 = vst [vmem:[#allocation0 + $0x40] sm:$0xf] %v995_v8  ;;  %v964_v9 = vld [vmem:[%s1703_s0 + $0x9c] sm:$0xf]  ;;  %s350_s4 = smov 3 }
   0x8   :  { %v965_v10 = vld [vmem:[%s1703_s0 + $0x98] sm:$0xf]  ;;  %s356_s5 = smov 3  ;;  %129 = vst [vmem:[#allocation0 + $0x138] sm:$0xf] %v964_v9  ;;  %s1138_s10 = smov 3 }
   0x9   :  { %134 = vst [vmem:[#allocation0 + $0x130] sm:$0xf] %v965_v10  ;;  %v966_v11 = vld [vmem:[%s1703_s0 + $0x94] sm:$0xf]  ;;  %v967_v12 = vld [vmem:[%s1703_s0 + $0x90] sm:$0xf] }
   0xa   :  { %139 = vst [vmem:[#allocation0 + $0x128] sm:$0xf] %v966_v11  ;;  %144 = vst [vmem:[#allocation0 + $0x120] sm:$0xf] %v967_v12  ;;  %v968_v13 = vld [vmem:[%s1703_s0 + $0x8c] sm:$0xf] }
   0xb   :  { %v969_v14 = vld [vmem:[%s1703_s0 + $0x88] sm:$0xf]  ;;  %149 = vst [vmem:[#allocation0 + $0x118] sm:$0xf] %v968_v13  ;;  %v970_v15 = vld [vmem:[%s1703_s0 + $0x84] sm:$0xf] }
   0xc   :  { %154 = vst [vmem:[#allocation0 + $0x110] sm:$0xf] %v969_v14  ;;  %v971_v16 = vld [vmem:[%s1703_s0 + $0x80] sm:$0xf]  ;;  %v972_v17 = vld [vmem:[%s1703_s0 + $0x7c] sm:$0xf] }
   0xd   :  { %v351_v18 = vld [vmem:[#allocation0 + $0x28] ss:$2 sm:%s350_s4]   ;;  %159 = vst [vmem:[#allocation0 + $0x108] sm:$0xf] %v970_v15  ;;  %164 = vst [vmem:[#allocation0 + $0x100] sm:$0xf] %v971_v16 }
   0xe   :  { %v357_v19 = vld [vmem:[#allocation0 + $0x30] ss:$2 sm:%s356_s5]   ;;  %169 = vst [vmem:[#allocation0 + $0xf8] sm:$0xf] %v972_v17  ;;  %s1155_s21 = smov 3  ;;  %s1157_s25 = smov 3 }
   0xf   :  { %v333_v20 = vld [vmem:[#allocation0 + $0x10] ss:$2 sm:%s1121_s24]   ;;  %v345_v22 = vld [vmem:[#allocation0 + $0x20] ss:$2 sm:%s344_s28]   ;;  %s518_s4 = smov 3  ;;  %s524_s5 = smov 3 }
  0x10   :  { %v339_v21 = vld [vmem:[#allocation0 + $0x18] ss:$2 sm:%s338_s27]   ;;  %1007 = vst.msk [vmem:[%s1704_s1 + $0x5] ss:$8 sm:$0x3] %vm323_vm0, %v351_v18   ;;  %s536_s11 = smov 3 }
  0x11   :  { %1008 = vst.msk [vmem:[%s1704_s1 + $0x6] ss:$8 sm:$0x3] %vm323_vm0, %v357_v19   ;;  %v322_v23 = vld [vmem:[#allocation0] ss:$2 sm:%s1117_s22]   ;;  %s1082_s14 = smov 64  }
  0x12   :  { %v327_v24 = vld [vmem:[#allocation0 + $0x8] ss:$2 sm:%s1119_s23]   ;;  %1004 = vst.msk [vmem:[%s1704_s1 + $0x2] ss:$8 sm:$0x3] %vm323_vm0, %v333_v20   ;;  %s542_s17 = smov 3 }
  0x13   :  { %1005 = vst.msk [vmem:[%s1704_s1 + $0x3] ss:$8 sm:$0x3] %vm323_vm0, %v339_v21   ;;  %1006 = vst.msk [vmem:[%s1704_s1 + $0x4] ss:$8 sm:$0x3] %vm323_vm0, %v345_v22  }
  0x14   :  { %324 = vst.msk [vmem:[%s1704_s1] ss:$8 sm:$0x3] %vm323_vm0, %v322_v23   ;;  %1003 = vst.msk [vmem:[%s1704_s1 + $0x1] ss:$8 sm:$0x3] %vm323_vm0, %v327_v24  }
  0x15   :  { %v704_v25 = vld [vmem:[#allocation0 + $0x1] ss:$8 sm:$0xf]   ;;  %v363_v28 = vld [vmem:[#allocation0 + $0x38] ss:$2 sm:%s1138_s10]   ;;  %s530_s10 = smov 3 }
  0x16   :  { %v706_v26 = vld [vmem:[#allocation0 + $0x1] ss:$8 sm:$0xf0]   ;;  %1009 = vst.msk [vmem:[%s1704_s1 + $0x7] ss:$8 sm:$0x3] %vm323_vm0, %v363_v28  }
  0x17   :  { %v708_v27 = vsel %vm707_vm1, %v706_v26, %v704_v25  ;;  %v963_v29 = vld [vmem:[%s1703_s0 + $0xa0] sm:$0xf]  ;;  %s548_s18 = smov 3  ;;  %v980_v31 = vld [vmem:[%s1703_s0 + $0x5c] sm:$0xf]  ;;  %s554_s6 = smov 3 }
  0x18   :  { %709 = vrot.lane.b32.xlu0 %v708_v27, %s1082_s14  ;;  %v537_v30 = vld [vmem:[#allocation0 + $0x120] ss:$2 sm:%s536_s11]   ;;  %124 = vst [vmem:[#allocation0 + $0x140] sm:$0xf] %v963_v29  ;;  %v525_v32 = vld [vmem:[#allocation0 + $0x110] ss:$2 sm:%s524_s5]  }
  0x19   :  { %v531_v33 = vld [vmem:[#allocation0 + $0x118] ss:$2 sm:%s530_s10]   ;;  %1038 = vst.msk [vmem:[%s1704_s1 + $0x44] ss:$8 sm:$0x3] %vm323_vm0, %v537_v30   ;;  %s1240_s11 = smov 3 }
  0x1a   :  { %v543_v34 = vld [vmem:[#allocation0 + $0x128] ss:$2 sm:%s542_s17]   ;;  %209 = vst [vmem:[#allocation0 + $0xb8] sm:$0xf] %v980_v31  ;;  %v507_v35 = vld [vmem:[#allocation0 + $0xf8] ss:$2 sm:%s1155_s21]  }
  0x1b   :  { %v513_v36 = vld [vmem:[#allocation0 + $0x100] ss:$2 sm:%s1157_s25]   ;;  %1036 = vst.msk [vmem:[%s1704_s1 + $0x42] ss:$8 sm:$0x3] %vm323_vm0, %v525_v32   ;;  %s1262_s27 = smov 3 }
  0x1c   :  { %v519_v37 = vld [vmem:[#allocation0 + $0x108] ss:$2 sm:%s518_s4]   ;;  %1037 = vst.msk [vmem:[%s1704_s1 + $0x43] ss:$8 sm:$0x3] %vm323_vm0, %v531_v33   ;;  %s1264_s28 = smov 3 }
  0x1d   :  { %1039 = vst.msk [vmem:[%s1704_s1 + $0x45] ss:$8 sm:$0x3] %vm323_vm0, %v543_v34   ;;  %1033 = vst.msk [vmem:[%s1704_s1 + $0x37] ss:$8 sm:$0x3] %vm323_vm0, %v507_v35  }
  0x1e   :  { %1034 = vst.msk [vmem:[%s1704_s1 + $0x40] ss:$8 sm:$0x3] %vm323_vm0, %v513_v36   ;;  %1035 = vst.msk [vmem:[%s1704_s1 + $0x41] ss:$8 sm:$0x3] %vm323_vm0, %v519_v37  }
  0x1f   :  { %v725_v38 = vld [vmem:[#allocation0 + $0x101] ss:$8 sm:$0xf]   ;;  %v549_v39 = vld [vmem:[#allocation0 + $0x130] ss:$2 sm:%s548_s18]   ;;  %s434_s2 = smov 3 }
  0x20   :  { %v727_v40 = vld [vmem:[#allocation0 + $0x101] ss:$8 sm:$0xf0]   ;;  %1040 = vst.msk [vmem:[%s1704_s1 + $0x46] ss:$8 sm:$0x3] %vm323_vm0, %v549_v39  }
  0x21   :  { %v981_v41 = vld [vmem:[%s1703_s0 + $0x58] sm:$0xf]  ;;  %v729_v42 = vsel %vm707_vm1, %v727_v40, %v725_v38  ;;  %v982_v43 = vld [vmem:[%s1703_s0 + $0x54] sm:$0xf]  ;;  %v983_v44 = vld [vmem:[%s1703_s0 + $0x50] sm:$0xf] }
  0x22   :  { %214 = vst [vmem:[#allocation0 + $0xb0] sm:$0xf] %v981_v41  ;;  %v984_v45 = vld [vmem:[%s1703_s0 + $0x4c] sm:$0xf]  ;;  %730 = vrot.lane.b32.xlu1 %v729_v42, %s1082_s14  ;;  %219 = vst [vmem:[#allocation0 + $0xa8] sm:$0xf] %v982_v43 }
  0x23   :  { %224 = vst [vmem:[#allocation0 + $0xa0] sm:$0xf] %v983_v44  ;;  %229 = vst [vmem:[#allocation0 + $0x98] sm:$0xf] %v984_v45  ;;  %v985_v46 = vld [vmem:[%s1703_s0 + $0x48] sm:$0xf] }
  0x24   :  { %v986_v47 = vld [vmem:[%s1703_s0 + $0x44] sm:$0xf]  ;;  %v987_v48 = vld [vmem:[%s1703_s0 + $0x40] sm:$0xf]  ;;  %234 = vst [vmem:[#allocation0 + $0x90] sm:$0xf] %v985_v46 }
  0x25   :  { %v555_v49 = vld [vmem:[#allocation0 + $0x138] ss:$2 sm:%s554_s6]   ;;  %239 = vst [vmem:[#allocation0 + $0x88] sm:$0xf] %v986_v47  ;;  %244 = vst [vmem:[#allocation0 + $0x80] sm:$0xf] %v987_v48 }
  0x26   :  { %v979_v50 = vld [vmem:[%s1703_s0 + $0x60] sm:$0xf]  ;;  %1041 = vst.msk [vmem:[%s1704_s1 + $0x47] ss:$8 sm:$0x3] %vm323_vm0, %v555_v49   ;;  %s440_s3 = smov 3 }
  0x27   :  { %204 = vst [vmem:[#allocation0 + $0xc0] sm:$0xf] %v979_v50  ;;  %v948_v51 = vld [vmem:[%s1703_s0 + $0xdc] sm:$0xf]  ;;  %v949_v52 = vld [vmem:[%s1703_s0 + $0xd8] sm:$0xf] }
  0x28   :  { %s446_s8 = smov 3  ;;  %s452_s9 = smov 3  ;;  %49 = vst [vmem:[#allocation0 + $0x1b8] sm:$0xf] %v948_v51  ;;  %54 = vst [vmem:[#allocation0 + $0x1b0] sm:$0xf] %v949_v52 }
  0x29   :  { %v950_v53 = vld [vmem:[%s1703_s0 + $0xd4] sm:$0xf]  ;;  %v951_v54 = vld [vmem:[%s1703_s0 + $0xd0] sm:$0xf]  ;;  %s1285_s16 = smov 3  ;;  %s1293_s24 = smov 3 }
  0x2a   :  { %59 = vst [vmem:[#allocation0 + $0x1a8] sm:$0xf] %v950_v53  ;;  %64 = vst [vmem:[#allocation0 + $0x1a0] sm:$0xf] %v951_v54  ;;  %v952_v55 = vld [vmem:[%s1703_s0 + $0xcc] sm:$0xf] }
  0x2b   :  { %v953_v56 = vld [vmem:[%s1703_s0 + $0xc8] sm:$0xf]  ;;  %69 = vst [vmem:[#allocation0 + $0x198] sm:$0xf] %v952_v55  ;;  %v954_v57 = vld [vmem:[%s1703_s0 + $0xc4] sm:$0xf] }
  0x2c   :  { %74 = vst [vmem:[#allocation0 + $0x190] sm:$0xf] %v953_v56  ;;  %v955_v58 = vld [vmem:[%s1703_s0 + $0xc0] sm:$0xf]  ;;  %v956_v59 = vld [vmem:[%s1703_s0 + $0xbc] sm:$0xf] }
  0x2d   :  { %v453_v60 = vld [vmem:[#allocation0 + $0xb0] ss:$2 sm:%s452_s9]   ;;  %79 = vst [vmem:[#allocation0 + $0x188] sm:$0xf] %v954_v57  ;;  %84 = vst [vmem:[#allocation0 + $0x180] sm:$0xf] %v955_v58 }
  0x2e   :  { %89 = vst [vmem:[#allocation0 + $0x178] sm:$0xf] %v956_v59  ;;  %s1304_s30 = smov 3  ;;  %s1306_s4 = smov 3  ;;  %v947_v61 = vld [vmem:[%s1703_s0 + $0xe0] sm:$0xf] }
  0x2f   :  { %v435_v62 = vld [vmem:[#allocation0 + $0x98] ss:$2 sm:%s434_s2]   ;;  %v447_v0 = vld [vmem:[#allocation0 + $0xa8] ss:$2 sm:%s446_s8]   ;;  %44 = vst [vmem:[#allocation0 + $0x1c0] sm:$0xf] %v947_v61 }
  0x30   :  { %v441_v63 = vld [vmem:[#allocation0 + $0xa0] ss:$2 sm:%s440_s3]   ;;  %1024 = vst.msk [vmem:[%s1704_s1 + $0x26] ss:$8 sm:$0x3] %vm323_vm0, %v453_v60   ;;  %s626_s19 = smov 3 }
  0x31   :  { %v417_v1 = vld [vmem:[#allocation0 + $0x80] ss:$2 sm:%s1240_s11]   ;;  %v429_v3 = vld [vmem:[#allocation0 + $0x90] ss:$2 sm:%s1264_s28]   ;;  %s632_s22 = smov 3  ;;  %s638_s23 = smov 3 }
  0x32   :  { %v423_v2 = vld [vmem:[#allocation0 + $0x88] ss:$2 sm:%s1262_s27]   ;;  %1021 = vst.msk [vmem:[%s1704_s1 + $0x23] ss:$8 sm:$0x3] %vm323_vm0, %v435_v62   ;;  %s644_s8 = smov 3 }
  0x33   :  { %1022 = vst.msk [vmem:[%s1704_s1 + $0x24] ss:$8 sm:$0x3] %vm323_vm0, %v441_v63   ;;  %1023 = vst.msk [vmem:[%s1704_s1 + $0x25] ss:$8 sm:$0x3] %vm323_vm0, %v447_v0  }
  0x34   :  { %1018 = vst.msk [vmem:[%s1704_s1 + $0x20] ss:$8 sm:$0x3] %vm323_vm0, %v417_v1   ;;  %1019 = vst.msk [vmem:[%s1704_s1 + $0x21] ss:$8 sm:$0x3] %vm323_vm0, %v423_v2  }
  0x35   :  { %1020 = vst.msk [vmem:[%s1704_s1 + $0x22] ss:$8 sm:$0x3] %vm323_vm0, %v429_v3   ;;  %v714_v4 = vld [vmem:[#allocation0 + $0x81] ss:$8 sm:$0xf]  }
  0x36   :  { %v716_v5 = vld [vmem:[#allocation0 + $0x81] ss:$8 sm:$0xf0]   ;;  %v459_v7 = vld [vmem:[#allocation0 + $0xb8] ss:$2 sm:%s1285_s16]   ;;  %s620_s16 = smov 3 }
  0x37   :  { %v718_v6 = vsel %vm707_vm1, %v716_v5, %v714_v4  ;;  %v988_v8 = vld [vmem:[%s1703_s0 + $0x3c] sm:$0xf]  ;;  %1025 = vst.msk [vmem:[%s1704_s1 + $0x27] ss:$8 sm:$0x3] %vm323_vm0, %v459_v7   ;;  %s650_s9 = smov 3 }
  0x38   :  { %719 = vrot.lane.b32.xlu0 %v718_v6, %s1082_s14  ;;  %v738_v9 = vld [vmem:[#allocation0 + $0x181] ss:$8 sm:$0xf0]   ;;  %249 = vst [vmem:[#allocation0 + $0x78] sm:$0xf] %v988_v8  ;;  %s1386_s17 = smov 3 }
  0x39   :  { %v621_v10 = vld [vmem:[#allocation0 + $0x190] ss:$2 sm:%s620_s16]   ;;  %v633_v12 = vld [vmem:[#allocation0 + $0x1a0] ss:$2 sm:%s632_s22]   ;;  %s1407_s22 = smov 3  ;;  %s1423_s3 = smov 3 }
  0x3a   :  { %v627_v11 = vld [vmem:[#allocation0 + $0x198] ss:$2 sm:%s626_s19]   ;;  %v615_v15 = vld [vmem:[#allocation0 + $0x188] ss:$2 sm:%s1306_s4]   ;;  %s1393_s19 = smov 3  ;;  %s1425_s11 = smov 3 }
  0x3b   :  { %v603_v13 = vld [vmem:[#allocation0 + $0x178] ss:$2 sm:%s1293_s24]   ;;  %1052 = vst.msk [vmem:[%s1704_s1 + $0x62] ss:$8 sm:$0x3] %vm323_vm0, %v621_v10   ;;  %s1431_s7 = smov 3 }
  0x3c   :  { %v609_v14 = vld [vmem:[#allocation0 + $0x180] ss:$2 sm:%s1304_s30]   ;;  %1053 = vst.msk [vmem:[%s1704_s1 + $0x63] ss:$8 sm:$0x3] %vm323_vm0, %v627_v11   ;;  %s410_s15 = smov 3 }
  0x3d   :  { %1054 = vst.msk [vmem:[%s1704_s1 + $0x64] ss:$8 sm:$0x3] %vm323_vm0, %v633_v12   ;;  %1049 = vst.msk [vmem:[%s1704_s1 + $0x57] ss:$8 sm:$0x3] %vm323_vm0, %v603_v13  }
  0x3e   :  { %1050 = vst.msk [vmem:[%s1704_s1 + $0x60] ss:$8 sm:$0x3] %vm323_vm0, %v609_v14   ;;  %1051 = vst.msk [vmem:[%s1704_s1 + $0x61] ss:$8 sm:$0x3] %vm323_vm0, %v615_v15  }
  0x3f   :  { %v639_v16 = vld [vmem:[#allocation0 + $0x1a8] ss:$2 sm:%s638_s23]   ;;  %v989_v17 = vld [vmem:[%s1703_s0 + $0x38] sm:$0xf]  ;;  %v994_v38 = vld [vmem:[%s1703_s0 + $0x24] sm:$0xf] }
  0x40   :  { %1055 = vst.msk [vmem:[%s1704_s1 + $0x65] ss:$8 sm:$0x3] %vm323_vm0, %v639_v16   ;;  %v736_v18 = vld [vmem:[#allocation0 + $0x181] ss:$8 sm:$0xf]  }
  0x41   :  { %v645_v19 = vld [vmem:[#allocation0 + $0x1b0] ss:$2 sm:%s644_s8]   ;;  %254 = vst [vmem:[#allocation0 + $0x70] sm:$0xf] %v989_v17  ;;  %v740_v20 = vsel %vm707_vm1, %v738_v9, %v736_v18  ;;  %v992_v35 = vld [vmem:[%s1703_s0 + $0x2c] sm:$0xf] }
  0x42   :  { %1056 = vst.msk [vmem:[%s1704_s1 + $0x66] ss:$8 sm:$0x3] %vm323_vm0, %v645_v19   ;;  %v651_v21 = vld [vmem:[#allocation0 + $0x1b8] ss:$2 sm:%s650_s9]   ;;  %741 = vrot.lane.b32.xlu1 %v740_v20, %s1082_s14  ;;  %s404_s8 = smov 3 }
  0x43   :  { %v747_v22 = vld [vmem:[#allocation0 + $0x3] ss:$8 sm:$0xf]   ;;  %1057 = vst.msk [vmem:[%s1704_s1 + $0x67] ss:$8 sm:$0x3] %vm323_vm0, %v651_v21  }
  0x44   :  { %v749_v23 = vld [vmem:[#allocation0 + $0x3] ss:$8 sm:$0xf0]   ;;  %v990_v33 = vld [vmem:[%s1703_s0 + $0x34] sm:$0xf]  ;;  %s1442_s20 = smov 3 }
  0x45   :  { %v758_v24 = vld [vmem:[#allocation0 + $0x83] ss:$8 sm:$0xf]   ;;  %v751_v25 = vsel %vm707_vm1, %v749_v23, %v747_v22  ;;  %259 = vst [vmem:[#allocation0 + $0x68] sm:$0xf] %v990_v33  ;;  %s1459_s5 = smov 3 }
  0x46   :  { %v760_v26 = vld [vmem:[#allocation0 + $0x83] ss:$8 sm:$0xf0]   ;;  %752 = vrot.lane.b32.xlu0 %v751_v25, %s1082_s14  ;;  %269 = vst [vmem:[#allocation0 + $0x58] sm:$0xf] %v992_v35  ;;  %s1461_s6 = smov 3 }
  0x47   :  { %v769_v27 = vld [vmem:[#allocation0 + $0x103] ss:$8 sm:$0xf]   ;;  %v762_v28 = vsel %vm707_vm1, %v760_v26, %v758_v24  ;;  %279 = vst [vmem:[#allocation0 + $0x48] sm:$0xf] %v994_v38  ;;  %s482_s9 = smov 3 }
  0x48   :  { %v771_v29 = vld [vmem:[#allocation0 + $0x103] ss:$8 sm:$0xf0]   ;;  %763 = vrot.lane.b32.xlu1 %v762_v28, %s1082_s14  ;;  %v974_v40 = vld [vmem:[%s1703_s0 + $0x74] sm:$0xf]  ;;  %s488_s10 = smov 3 }
  0x49   :  { %v780_v30 = vld [vmem:[#allocation0 + $0x183] ss:$8 sm:$0xf]   ;;  %v773_v31 = vsel %vm707_vm1, %v771_v29, %v769_v27  ;;  %v405_v42 = vld [vmem:[#allocation0 + $0x70] ss:$2 sm:%s404_s8]   ;;  %s500_s16 = smov 3 }
  0x4a   :  { %v782_v32 = vld [vmem:[#allocation0 + $0x183] ss:$8 sm:$0xf0]   ;;  %774 = vrot.lane.b32.xlu0 %v773_v31, %s1082_s14  ;;  %179 = vst [vmem:[#allocation0 + $0xe8] sm:$0xf] %v974_v40  ;;  %s566_s18 = smov 3 }
  0x4b   :  { %v991_v34 = vld [vmem:[%s1703_s0 + $0x30] sm:$0xf]  ;;  %v993_v36 = vld [vmem:[%s1703_s0 + $0x28] sm:$0xf]  ;;  %v784_v37 = vsel %vm707_vm1, %v782_v32, %v780_v30  ;;  %v973_v39 = vld [vmem:[%s1703_s0 + $0x78] sm:$0xf] }
  0x4c   :  { %264 = vst [vmem:[#allocation0 + $0x60] sm:$0xf] %v991_v34  ;;  %274 = vst [vmem:[#allocation0 + $0x50] sm:$0xf] %v993_v36  ;;  %v975_v41 = vld [vmem:[%s1703_s0 + $0x70] sm:$0xf]  ;;  %785 = vrot.lane.b32.xlu1 %v784_v37, %s1082_s14 }
  0x4d   :  { %174 = vst [vmem:[#allocation0 + $0xf0] sm:$0xf] %v973_v39  ;;  %184 = vst [vmem:[#allocation0 + $0xe0] sm:$0xf] %v975_v41  ;;  %v976_v43 = vld [vmem:[%s1703_s0 + $0x6c] sm:$0xf] }
  0x4e   :  { %1016 = vst.msk [vmem:[%s1704_s1 + $0x16] ss:$8 sm:$0x3] %vm323_vm0, %v405_v42   ;;  %v411_v44 = vld [vmem:[#allocation0 + $0x78] ss:$2 sm:%s410_s15]   ;;  %s656_s26 = smov 3 }
  0x4f   :  { %189 = vst [vmem:[#allocation0 + $0xd8] sm:$0xf] %v976_v43  ;;  %v977_v45 = vld [vmem:[%s1703_s0 + $0x68] sm:$0xf]  ;;  %v978_v46 = vld [vmem:[%s1703_s0 + $0x64] sm:$0xf] }
  0x50   :  { %1017 = vst.msk [vmem:[%s1704_s1 + $0x17] ss:$8 sm:$0x3] %vm323_vm0, %v411_v44   ;;  %194 = vst [vmem:[#allocation0 + $0xd0] sm:$0xf] %v977_v45  ;;  %s662_s24 = smov 3 }
  0x51   :  { %199 = vst [vmem:[#allocation0 + $0xc8] sm:$0xf] %v978_v46  ;;  %v957_v47 = vld [vmem:[%s1703_s0 + $0xb8] sm:$0xf]  ;;  %v958_v48 = vld [vmem:[%s1703_s0 + $0xb4] sm:$0xf] }
  0x52   :  { %94 = vst [vmem:[#allocation0 + $0x170] sm:$0xf] %v957_v47  ;;  %99 = vst [vmem:[#allocation0 + $0x168] sm:$0xf] %v958_v48  ;;  %v959_v49 = vld [vmem:[%s1703_s0 + $0xb0] sm:$0xf] }
  0x53   :  { %v960_v50 = vld [vmem:[%s1703_s0 + $0xac] sm:$0xf]  ;;  %104 = vst [vmem:[#allocation0 + $0x160] sm:$0xf] %v959_v49  ;;  %v961_v52 = vld [vmem:[%s1703_s0 + $0xa8] sm:$0xf] }
  0x54   :  { %v399_v51 = vld [vmem:[#allocation0 + $0x68] ss:$2 sm:%s1431_s7]   ;;  %s494_s7 = smov 3  ;;  %109 = vst [vmem:[#allocation0 + $0x158] sm:$0xf] %v960_v50  ;;  %s668_s29 = smov 3 }
  0x55   :  { %v381_v53 = vld [vmem:[#allocation0 + $0x50] ss:$2 sm:%s1407_s22]   ;;  %v393_v55 = vld [vmem:[#allocation0 + $0x60] ss:$2 sm:%s1425_s11]   ;;  %114 = vst [vmem:[#allocation0 + $0x150] sm:$0xf] %v961_v52 }
  0x56   :  { %v387_v54 = vld [vmem:[#allocation0 + $0x58] ss:$2 sm:%s1423_s3]   ;;  %1015 = vst.msk [vmem:[%s1704_s1 + $0x15] ss:$8 sm:$0x3] %vm323_vm0, %v399_v51   ;;  %s584_s22 = smov 3 }
  0x57   :  { %v369_v56 = vld [vmem:[#allocation0 + $0x40] ss:$2 sm:%s1386_s17]   ;;  %1012 = vst.msk [vmem:[%s1704_s1 + $0x12] ss:$8 sm:$0x3] %vm323_vm0, %v381_v53   ;;  %s590_s3 = smov 3 }
  0x58   :  { %v375_v57 = vld [vmem:[#allocation0 + $0x48] ss:$2 sm:%s1393_s19]   ;;  %1013 = vst.msk [vmem:[%s1704_s1 + $0x13] ss:$8 sm:$0x3] %vm323_vm0, %v387_v54   ;;  %s596_s11 = smov 3 }
  0x59   :  { %1014 = vst.msk [vmem:[%s1704_s1 + $0x14] ss:$8 sm:$0x3] %vm323_vm0, %v393_v55   ;;  %v501_v58 = vld [vmem:[#allocation0 + $0xf0] ss:$2 sm:%s500_s16]   ;;  %s578_s16 = smov 3 }
  0x5a   :  { %1010 = vst.msk [vmem:[%s1704_s1 + $0x10] ss:$8 sm:$0x3] %vm323_vm0, %v369_v56   ;;  %1011 = vst.msk [vmem:[%s1704_s1 + $0x11] ss:$8 sm:$0x3] %vm323_vm0, %v375_v57  }
  0x5b   :  { %v791_v59 = vld [vmem:[#allocation0 + $0x41] ss:$8 sm:$0xf]   ;;  %1032 = vst.msk [vmem:[%s1704_s1 + $0x36] ss:$8 sm:$0x3] %vm323_vm0, %v501_v58  }
  0x5c   :  { %v793_v60 = vld [vmem:[#allocation0 + $0x41] ss:$8 sm:$0xf0]   ;;  %v483_v62 = vld [vmem:[#allocation0 + $0xd8] ss:$2 sm:%s482_s9]   ;;  %s674_s30 = smov 3 }
  0x5d   :  { %v795_v61 = vsel %vm707_vm1, %v793_v60, %v791_v59  ;;  %v489_v63 = vld [vmem:[#allocation0 + $0xe0] ss:$2 sm:%s488_s10]   ;;  %v477_v3 = vld [vmem:[#allocation0 + $0xd0] ss:$2 sm:%s1461_s6]   ;;  %s680_s4 = smov 3  ;;  %s686_s2 = smov 3 }
  0x5e   :  { %v495_v0 = vld [vmem:[#allocation0 + $0xe8] ss:$2 sm:%s494_s7]   ;;  %796 = vrot.lane.b32.xlu0 %v795_v61, %s1082_s14  ;;  %1029 = vst.msk [vmem:[%s1704_s1 + $0x33] ss:$8 sm:$0x3] %vm323_vm0, %v483_v62   ;;  %s572_s7 = smov 3 }
  0x5f   :  { %v465_v1 = vld [vmem:[#allocation0 + $0xc0] ss:$2 sm:%s1442_s20]   ;;  %1030 = vst.msk [vmem:[%s1704_s1 + $0x34] ss:$8 sm:$0x3] %vm323_vm0, %v489_v63   ;;  %s692_s12 = smov 3 }
  0x60   :  { %v471_v2 = vld [vmem:[#allocation0 + $0xc8] ss:$2 sm:%s1459_s5]   ;;  %1031 = vst.msk [vmem:[%s1704_s1 + $0x35] ss:$8 sm:$0x3] %vm323_vm0, %v495_v0   ;;  %s698_s13 = smov 3 }
  0x61   :  { %1026 = vst.msk [vmem:[%s1704_s1 + $0x30] ss:$8 sm:$0x3] %vm323_vm0, %v465_v1   ;;  %1027 = vst.msk [vmem:[%s1704_s1 + $0x31] ss:$8 sm:$0x3] %vm323_vm0, %v471_v2  }
  0x62   :  { %1028 = vst.msk [vmem:[%s1704_s1 + $0x32] ss:$8 sm:$0x3] %vm323_vm0, %v477_v3   ;;  %v802_v4 = vld [vmem:[#allocation0 + $0xc1] ss:$8 sm:$0xf]  }
  0x63   :  { %v804_v5 = vld [vmem:[#allocation0 + $0xc1] ss:$8 sm:$0xf0]   ;;  %v962_v7 = vld [vmem:[%s1703_s0 + $0xa4] sm:$0xf] }
  0x64   :  { %v806_v6 = vsel %vm707_vm1, %v804_v5, %v802_v4  ;;  %v940_v8 = vld [vmem:[%s1703_s0 + $0xfc] sm:$0xf]  ;;  %119 = vst [vmem:[#allocation0 + $0x148] sm:$0xf] %v962_v7  ;;  %v585_v9 = vld [vmem:[#allocation0 + $0x160] ss:$2 sm:%s584_s22]  }
  0x65   :  { %807 = vrot.lane.b32.xlu1 %v806_v6, %s1082_s14  ;;  %v591_v10 = vld [vmem:[#allocation0 + $0x168] ss:$2 sm:%s590_s3]   ;;  %9 = vst [vmem:[#allocation0 + $0x1f8] sm:$0xf] %v940_v8  ;;  %v941_v12 = vld [vmem:[%s1703_s0 + $0xf8] sm:$0xf] }
  0x66   :  { %1046 = vst.msk [vmem:[%s1704_s1 + $0x54] ss:$8 sm:$0x3] %vm323_vm0, %v585_v9   ;;  %1047 = vst.msk [vmem:[%s1704_s1 + $0x55] ss:$8 sm:$0x3] %vm323_vm0, %v591_v10  }
  0x67   :  { %v597_v11 = vld [vmem:[#allocation0 + $0x170] ss:$2 sm:%s596_s11]   ;;  %14 = vst [vmem:[#allocation0 + $0x1f0] sm:$0xf] %v941_v12  ;;  %v944_v15 = vld [vmem:[%s1703_s0 + $0xec] sm:$0xf] }
  0x68   :  { %1048 = vst.msk [vmem:[%s1704_s1 + $0x56] ss:$8 sm:$0x3] %vm323_vm0, %v597_v11   ;;  %v942_v13 = vld [vmem:[%s1703_s0 + $0xf4] sm:$0xf] }
  0x69   :  { %v943_v14 = vld [vmem:[%s1703_s0 + $0xf0] sm:$0xf]  ;;  %19 = vst [vmem:[#allocation0 + $0x1e8] sm:$0xf] %v942_v13  ;;  %v945_v16 = vld [vmem:[%s1703_s0 + $0xe8] sm:$0xf] }
  0x6a   :  { %24 = vst [vmem:[#allocation0 + $0x1e0] sm:$0xf] %v943_v14  ;;  %v946_v17 = vld [vmem:[%s1703_s0 + $0xe4] sm:$0xf]  ;;  %29 = vst [vmem:[#allocation0 + $0x1d8] sm:$0xf] %v944_v15 }
  0x6b   :  { %v815_v18 = vld [vmem:[#allocation0 + $0x141] ss:$8 sm:$0xf0]   ;;  %34 = vst [vmem:[#allocation0 + $0x1d0] sm:$0xf] %v945_v16  ;;  %s560_s0 = smov 3 }
  0x6c   :  { %39 = vst [vmem:[#allocation0 + $0x1c8] sm:$0xf] %v946_v17  ;;  %v835_v19 = vld [vmem:[#allocation0 + $0x43] ss:$8 sm:$0xf]  }
  0x6d   :  { %v837_v20 = vld [vmem:[#allocation0 + $0x43] ss:$8 sm:$0xf0]   ;;  %v813_v21 = vld [vmem:[#allocation0 + $0x141] ss:$8 sm:$0xf]  }
  0x6e   :  { %v561_v22 = vld [vmem:[#allocation0 + $0x140] ss:$2 sm:%s560_s0]   ;;  %v817_v23 = vsel %vm707_vm1, %v815_v18, %v813_v21  ;;  %v573_v25 = vld [vmem:[#allocation0 + $0x150] ss:$2 sm:%s572_s7]   ;;  %v839_v32 = vsel %vm707_vm1, %v837_v20, %v835_v19 }
  0x6f   :  { %1042 = vst.msk [vmem:[%s1704_s1 + $0x50] ss:$8 sm:$0x3] %vm323_vm0, %v561_v22   ;;  %v567_v24 = vld [vmem:[#allocation0 + $0x148] ss:$2 sm:%s566_s18]   ;;  %818 = vrot.lane.b32.xlu0 %v817_v23, %s1082_s14 }
  0x70   :  { %v579_v26 = vld [vmem:[#allocation0 + $0x158] ss:$2 sm:%s578_s16]   ;;  %v846_v27 = vld [vmem:[#allocation0 + $0xc3] ss:$8 sm:$0xf]  }
  0x71   :  { %v848_v28 = vld [vmem:[#allocation0 + $0xc3] ss:$8 sm:$0xf0]   ;;  %1043 = vst.msk [vmem:[%s1704_s1 + $0x51] ss:$8 sm:$0x3] %vm323_vm0, %v567_v24  }
  0x72   :  { %1044 = vst.msk [vmem:[%s1704_s1 + $0x52] ss:$8 sm:$0x3] %vm323_vm0, %v573_v25   ;;  %1045 = vst.msk [vmem:[%s1704_s1 + $0x53] ss:$8 sm:$0x3] %vm323_vm0, %v579_v26   ;;  %v850_v41 = vsel %vm707_vm1, %v848_v28, %v846_v27 }
  0x73   :  { %v857_v29 = vld [vmem:[#allocation0 + $0x143] ss:$8 sm:$0xf]   ;;  %v826_v31 = vld [vmem:[#allocation0 + $0x1c1] ss:$8 sm:$0xf0]   ;;  %840 = vrot.lane.b32.xlu0 %v839_v32, %s1082_s14 }
  0x74   :  { %v859_v30 = vld [vmem:[#allocation0 + $0x143] ss:$8 sm:$0xf0]   ;;  %v824_v33 = vld [vmem:[#allocation0 + $0x1c1] ss:$8 sm:$0xf]  }
  0x75   :  { %v657_v34 = vld [vmem:[#allocation0 + $0x1c0] ss:$2 sm:%s656_s26]   ;;  %v828_v35 = vsel %vm707_vm1, %v826_v31, %v824_v33  ;;  %v669_v37 = vld [vmem:[#allocation0 + $0x1d0] ss:$2 sm:%s668_s29]   ;;  %v861_v42 = vsel %vm707_vm1, %v859_v30, %v857_v29 }
  0x76   :  { %1058 = vst.msk [vmem:[%s1704_s1 + $0x70] ss:$8 sm:$0x3] %vm323_vm0, %v657_v34   ;;  %v663_v36 = vld [vmem:[#allocation0 + $0x1c8] ss:$2 sm:%s662_s24]   ;;  %829 = vrot.lane.b32.xlu1 %v828_v35, %s1082_s14 }
  0x77   :  { %v675_v38 = vld [vmem:[#allocation0 + $0x1d8] ss:$2 sm:%s674_s30]   ;;  %1059 = vst.msk [vmem:[%s1704_s1 + $0x71] ss:$8 sm:$0x3] %vm323_vm0, %v663_v36   ;;  %862 = vrot.lane.b32.xlu0 %v861_v42, %s1082_s14 }
  0x78   :  { %1060 = vst.msk [vmem:[%s1704_s1 + $0x72] ss:$8 sm:$0x3] %vm323_vm0, %v669_v37   ;;  %1061 = vst.msk [vmem:[%s1704_s1 + $0x73] ss:$8 sm:$0x3] %vm323_vm0, %v675_v38  }
  0x79   :  { %v681_v39 = vld [vmem:[#allocation0 + $0x1e0] ss:$2 sm:%s680_s4]   ;;  %v868_v43 = vld [vmem:[#allocation0 + $0x1c3] ss:$8 sm:$0xf]  }
  0x7a   :  { %v687_v40 = vld [vmem:[#allocation0 + $0x1e8] ss:$2 sm:%s686_s2]   ;;  %1062 = vst.msk [vmem:[%s1704_s1 + $0x74] ss:$8 sm:$0x3] %vm323_vm0, %v681_v39   ;;  %851 = vrot.lane.b32.xlu1 %v850_v41, %s1082_s14 }
  0x7b   :  { %1063 = vst.msk [vmem:[%s1704_s1 + $0x75] ss:$8 sm:$0x3] %vm323_vm0, %v687_v40   ;;  %v870_v44 = vld [vmem:[#allocation0 + $0x1c3] ss:$8 sm:$0xf0]  }
  0x7c   :  { %v693_v45 = vld [vmem:[#allocation0 + $0x1f0] ss:$2 sm:%s692_s12]   ;;  %v872_v47 = vsel %vm707_vm1, %v870_v44, %v868_v43 }
  0x7d   :  { %v699_v46 = vld [vmem:[#allocation0 + $0x1f8] ss:$2 sm:%s698_s13]   ;;  %1064 = vst.msk [vmem:[%s1704_s1 + $0x76] ss:$8 sm:$0x3] %vm323_vm0, %v693_v45  }
  0x7e   :  { %1065 = vst.msk [vmem:[%s1704_s1 + $0x77] ss:$8 sm:$0x3] %vm323_vm0, %v699_v46   ;;  %873 = vrot.lane.b32.xlu1 %v872_v47, %s1082_s14 }
  0x8a   :  { %v710_v48 = vpop.permute.xlu0 %709  }
  0x8b   :  { %712 = vst.msk [vmem:[%s1704_s1] sm:$0xff] %vm711_vm2, %v710_v48  }
  0x94   :  { %v731_v49 = vpop.permute.xlu1 %730  }
  0x95   :  { %1067 = vst.msk [vmem:[%s1704_s1 + $0x40] sm:$0xff] %vm711_vm2, %v731_v49  }
  0xaa   :  { %v720_v50 = vpop.permute.xlu0 %719  }
  0xab   :  { %1066 = vst.msk [vmem:[%s1704_s1 + $0x20] sm:$0xff] %vm711_vm2, %v720_v50  }
  0xb4   :  { %v742_v51 = vpop.permute.xlu1 %741  }
  0xb5   :  { %1068 = vst.msk [vmem:[%s1704_s1 + $0x60] sm:$0xff] %vm711_vm2, %v742_v51  }
  0xb8   :  { %v753_v52 = vpop.permute.xlu0 %752  }
  0xb9   :  { %1069 = vst.msk [vmem:[%s1704_s1 + $0x8] sm:$0xff] %vm711_vm2, %v753_v52  }
  0xba   :  { %v764_v53 = vpop.permute.xlu1 %763  }
  0xbb   :  { %1070 = vst.msk [vmem:[%s1704_s1 + $0x28] sm:$0xff] %vm711_vm2, %v764_v53  }
  0xbc   :  { %v775_v54 = vpop.permute.xlu0 %774  }
  0xbd   :  { %1071 = vst.msk [vmem:[%s1704_s1 + $0x48] sm:$0xff] %vm711_vm2, %v775_v54  }
  0xbe   :  { %v786_v55 = vpop.permute.xlu1 %785  }
  0xbf   :  { %1072 = vst.msk [vmem:[%s1704_s1 + $0x68] sm:$0xff] %vm711_vm2, %v786_v55  }
  0xd0   :  { %v797_v56 = vpop.permute.xlu0 %796  }
  0xd1   :  { %1073 = vst.msk [vmem:[%s1704_s1 + $0x10] sm:$0xff] %vm711_vm2, %v797_v56  }
  0xd7   :  { %v808_v57 = vpop.permute.xlu1 %807  }
  0xd8   :  { %1074 = vst.msk [vmem:[%s1704_s1 + $0x30] sm:$0xff] %vm711_vm2, %v808_v57  }
  0xe1   :  { %v819_v58 = vpop.permute.xlu0 %818  }
  0xe2   :  { %1075 = vst.msk [vmem:[%s1704_s1 + $0x50] sm:$0xff] %vm711_vm2, %v819_v58  }
  0xe5   :  { %v841_v60 = vpop.permute.xlu0 %840  }
  0xe6   :  { %1077 = vst.msk [vmem:[%s1704_s1 + $0x18] sm:$0xff] %vm711_vm2, %v841_v60  }
  0xe8   :  { %v830_v59 = vpop.permute.xlu1 %829  }
  0xe9   :  { %1076 = vst.msk [vmem:[%s1704_s1 + $0x70] sm:$0xff] %vm711_vm2, %v830_v59   ;;  %v863_v62 = vpop.permute.xlu0 %862  }
  0xea   :  { %1079 = vst.msk [vmem:[%s1704_s1 + $0x58] sm:$0xff] %vm711_vm2, %v863_v62  }
  0xec   :  { %v852_v61 = vpop.permute.xlu1 %851  }
  0xed   :  { %1078 = vst.msk [vmem:[%s1704_s1 + $0x38] sm:$0xff] %vm711_vm2, %v852_v61  }
  0xf0   :  { %v874_v63 = vpop.permute.xlu1 %873  }
  0xf1   :  { %1080 = vst.msk [vmem:[%s1704_s1 + $0x78] sm:$0xff] %vm711_vm2, %v874_v63  }

// kernel: tile.28
= control target key start
LH: loop header
LB: loop body
LE: loop exit
PB: predicated region body
PF: predicated region fallthrough
CT: control target
= control target key end

     0   :  { %vm92_vm0 = vcmask 1047556   ;;  %s459_s14 = smov 96   ;;  %s460_s26 = smov 64   ;;  %vm3_vm1 = vcmask 261120   ;;  %vm96_vm2 = vcmask 1048320   ;;  %vm183_vm3 = vcmask 785920   ;;  %s904_s0 = inlined_call_operand.vmem [shape: f32[8,32,32], index: 0, kind: input, shape index: {}]   ;;  %s905_s1 = inlined_call_operand.vmem [shape: f32[256,32], index: 1, kind: output, shape index: {}]  }
   0x1   :  { %v392_v0 = vld [vmem:[%s904_s0 + $0x7] ss:$8 sm:$0xf]   ;;  %v387_v3 = vld [vmem:[%s904_s0 + $0x3] ss:$8 sm:$0xf]  }
   0x2   :  { %v393_v1 = vld [vmem:[%s904_s0 + $0x7] ss:$8 sm:$0xf0]   ;;  %v388_v4 = vld [vmem:[%s904_s0 + $0x3] ss:$8 sm:$0xf0]  }
   0x3   :  { %v114_v2 = vsel %vm92_vm0, %v393_v1, %v392_v0  ;;  %v93_v5 = vsel %vm92_vm0, %v388_v4, %v387_v3  ;;  %v395_v6 = vld [vmem:[%s904_s0 + $0x87] ss:$8 sm:$0xf]   ;;  %v389_v9 = vld [vmem:[%s904_s0 + $0x83] ss:$8 sm:$0xf]  }
   0x4   :  { %115 = vrot.lane.b32.xlu1 %v114_v2, %s459_s14  ;;  %v396_v7 = vld [vmem:[%s904_s0 + $0x87] ss:$8 sm:$0xf0]   ;;  %94 = vrot.lane.b32.xlu0 %v93_v5, %s459_s14  ;;  %v390_v10 = vld [vmem:[%s904_s0 + $0x83] ss:$8 sm:$0xf0]  }
   0x5   :  { %v125_v8 = vsel %vm92_vm0, %v396_v7, %v395_v6  ;;  %v103_v11 = vsel %vm92_vm0, %v390_v10, %v389_v9  ;;  %v401_v12 = vld [vmem:[%s904_s0 + $0xc3] ss:$8 sm:$0xf]   ;;  %v407_v18 = vld [vmem:[%s904_s0 + $0xc7] ss:$8 sm:$0xf]  }
   0x6   :  { %v402_v13 = vld [vmem:[%s904_s0 + $0xc3] ss:$8 sm:$0xf0]   ;;  %v408_v19 = vld [vmem:[%s904_s0 + $0xc7] ss:$8 sm:$0xf0]  }
   0x7   :  { %v398_v14 = vld [vmem:[%s904_s0 + $0x43] ss:$8 sm:$0xf]   ;;  %v147_v16 = vsel %vm92_vm0, %v402_v13, %v401_v12  ;;  %v404_v20 = vld [vmem:[%s904_s0 + $0x47] ss:$8 sm:$0xf]   ;;  %v169_v22 = vsel %vm92_vm0, %v408_v19, %v407_v18 }
   0x8   :  { %v399_v15 = vld [vmem:[%s904_s0 + $0x43] ss:$8 sm:$0xf0]   ;;  %126 = vrot.lane.b32.xlu1 %v125_v8, %s459_s14  ;;  %104 = vrot.lane.b32.xlu0 %v103_v11, %s459_s14  ;;  %v405_v21 = vld [vmem:[%s904_s0 + $0x47] ss:$8 sm:$0xf0]  }
   0x9   :  { %v136_v17 = vsel %vm92_vm0, %v399_v15, %v398_v14  ;;  %v158_v23 = vsel %vm92_vm0, %v405_v21, %v404_v20  ;;  %v412_v24 = vld [vmem:[%s904_s0 + $0x82] ss:$8 sm:$0xf]   ;;  %v418_v30 = vld [vmem:[%s904_s0 + $0x86] ss:$8 sm:$0xf]  }
   0xa   :  { %v413_v25 = vld [vmem:[%s904_s0 + $0x82] ss:$8 sm:$0xf0]   ;;  %v419_v31 = vld [vmem:[%s904_s0 + $0x86] ss:$8 sm:$0xf0]  }
   0xb   :  { %v410_v26 = vld [vmem:[%s904_s0 + $0x2] ss:$8 sm:$0xf]   ;;  %v190_v28 = vsel %vm92_vm0, %v413_v25, %v412_v24  ;;  %v415_v32 = vld [vmem:[%s904_s0 + $0x6] ss:$8 sm:$0xf]   ;;  %v212_v34 = vsel %vm92_vm0, %v419_v31, %v418_v30 }
   0xc   :  { %148 = vrot.lane.b32.xlu1 %v147_v16, %s459_s14  ;;  %137 = vrot.lane.b32.xlu0 %v136_v17, %s459_s14  ;;  %v411_v27 = vld [vmem:[%s904_s0 + $0x2] ss:$8 sm:$0xf0]   ;;  %v416_v33 = vld [vmem:[%s904_s0 + $0x6] ss:$8 sm:$0xf0]  }
   0xd   :  { %v180_v29 = vsel %vm92_vm0, %v411_v27, %v410_v26  ;;  %v201_v35 = vsel %vm92_vm0, %v416_v33, %v415_v32  ;;  %v424_v36 = vld [vmem:[%s904_s0 + $0xc2] ss:$8 sm:$0xf]   ;;  %v430_v40 = vld [vmem:[%s904_s0 + $0xc6] ss:$8 sm:$0xf]  }
   0xe   :  { %v425_v37 = vld [vmem:[%s904_s0 + $0xc2] ss:$8 sm:$0xf0]   ;;  %v431_v42 = vld [vmem:[%s904_s0 + $0xc6] ss:$8 sm:$0xf0]  }
   0xf   :  { %v421_v38 = vld [vmem:[%s904_s0 + $0x42] ss:$8 sm:$0xf]   ;;  %v234_v41 = vsel %vm92_vm0, %v425_v37, %v424_v36  ;;  %v427_v43 = vld [vmem:[%s904_s0 + $0x46] ss:$8 sm:$0xf]   ;;  %v256_v53 = vsel %vm92_vm0, %v431_v42, %v430_v40 }
  0x10   :  { %170 = vrot.lane.b32.xlu1 %v169_v22, %s459_s14  ;;  %159 = vrot.lane.b32.xlu0 %v158_v23, %s459_s14  ;;  %v422_v39 = vld [vmem:[%s904_s0 + $0x42] ss:$8 sm:$0xf0]   ;;  %v428_v45 = vld [vmem:[%s904_s0 + $0x46] ss:$8 sm:$0xf0]  }
  0x11   :  { %v223_v44 = vsel %vm92_vm0, %v422_v39, %v421_v38  ;;  %v367_v46 = vld [vmem:[%s904_s0 + $0x80] ss:$4 sm:$0xff]   ;;  %v245_v55 = vsel %vm92_vm0, %v428_v45, %v427_v43  ;;  %v435_v56 = vld [vmem:[%s904_s0 + $0x81] ss:$8 sm:$0xf]   ;;  %s461_s25 = smov 32  }
  0x12   :  { %368 = vst.msk [vmem:[%s905_s1 + $0x20] ss:$8 sm:$0x3] %vm3_vm1, %v367_v46   ;;  %369 = vst.msk [vmem:[%s905_s1 + $0x11] ss:$8 sm:$0xc] %vm3_vm1, %v367_v46  }
  0x13   :  { %370 = vst.msk [vmem:[%s905_s1 + $0x2] ss:$8 sm:$0x30] %vm3_vm1, %v367_v46   ;;  %371 = vst.msk [vmem:[%s905_s1 - $0xd] ss:$8 sm:$0xc0] %vm3_vm1, %v367_v46  }
  0x14   :  { %191 = vrot.lane.b32.xlu1 %v190_v28, %s460_s26  ;;  %181 = vrot.lane.b32.xlu0 %v180_v29, %s460_s26  ;;  %v372_v47 = vld [vmem:[%s904_s0 + $0xa0] ss:$4 sm:$0xff]   ;;  %v436_v57 = vld [vmem:[%s904_s0 + $0x81] ss:$8 sm:$0xf0]   ;;  %vm270_vm4 = vcmask 523520  }
  0x15   :  { %v2_v48 = vld [vmem:[%s904_s0] ss:$4 sm:$0xff]   ;;  %373 = vst.msk [vmem:[%s905_s1 + $0x24] ss:$8 sm:$0x3] %vm3_vm1, %v372_v47   ;;  %v277_v60 = vsel %vm92_vm0, %v436_v57, %v435_v56 }
  0x16   :  { %v352_v49 = vld [vmem:[%s904_s0 + $0x20] ss:$4 sm:$0xff]   ;;  %374 = vst.msk [vmem:[%s905_s1 + $0x15] ss:$8 sm:$0xc] %vm3_vm1, %v372_v47  }
  0x17   :  { %375 = vst.msk [vmem:[%s905_s1 + $0x6] ss:$8 sm:$0x30] %vm3_vm1, %v372_v47   ;;  %376 = vst.msk [vmem:[%s905_s1 - $0x9] ss:$8 sm:$0xc0] %vm3_vm1, %v372_v47  }
  0x18   :  { %213 = vrot.lane.b32.xlu1 %v212_v34, %s460_s26  ;;  %202 = vrot.lane.b32.xlu0 %v201_v35, %s460_s26  ;;  %4 = vst.msk [vmem:[%s905_s1] ss:$8 sm:$0x3] %vm3_vm1, %v2_v48   ;;  %349 = vst.msk [vmem:[%s905_s1 - $0xf] ss:$8 sm:$0xc] %vm3_vm1, %v2_v48  }
  0x19   :  { %350 = vst.msk [vmem:[%s905_s1 - $0x1e] ss:$8 sm:$0x30] %vm3_vm1, %v2_v48   ;;  %351 = vst.msk [vmem:[%s905_s1 - $0x2d] ss:$8 sm:$0xc0] %vm3_vm1, %v2_v48  }
  0x1a   :  { %353 = vst.msk [vmem:[%s905_s1 + $0x4] ss:$8 sm:$0x3] %vm3_vm1, %v352_v49   ;;  %354 = vst.msk [vmem:[%s905_s1 - $0xb] ss:$8 sm:$0xc] %vm3_vm1, %v352_v49  }
  0x1b   :  { %355 = vst.msk [vmem:[%s905_s1 - $0x1a] ss:$8 sm:$0x30] %vm3_vm1, %v352_v49   ;;  %356 = vst.msk [vmem:[%s905_s1 - $0x29] ss:$8 sm:$0xc0] %vm3_vm1, %v352_v49  }
  0x1c   :  { %235 = vrot.lane.b32.xlu1 %v234_v41, %s460_s26  ;;  %v377_v50 = vld [vmem:[%s904_s0 + $0xc0] ss:$4 sm:$0xff]   ;;  %224 = vrot.lane.b32.xlu0 %v223_v44, %s460_s26  ;;  %v433_v58 = vld [vmem:[%s904_s0 + $0x1] ss:$8 sm:$0xf]  }
  0x1d   :  { %v382_v51 = vld [vmem:[%s904_s0 + $0xe0] ss:$4 sm:$0xff]   ;;  %378 = vst.msk [vmem:[%s905_s1 + $0x30] ss:$8 sm:$0x3] %vm3_vm1, %v377_v50  }
  0x1e   :  { %v357_v52 = vld [vmem:[%s904_s0 + $0x40] ss:$4 sm:$0xff]   ;;  %379 = vst.msk [vmem:[%s905_s1 + $0x21] ss:$8 sm:$0xc] %vm3_vm1, %v377_v50  }
  0x1f   :  { %380 = vst.msk [vmem:[%s905_s1 + $0x12] ss:$8 sm:$0x30] %vm3_vm1, %v377_v50   ;;  %381 = vst.msk [vmem:[%s905_s1 + $0x3] ss:$8 sm:$0xc0] %vm3_vm1, %v377_v50  }
  0x20   :  { %383 = vst.msk [vmem:[%s905_s1 + $0x34] ss:$8 sm:$0x3] %vm3_vm1, %v382_v51   ;;  %384 = vst.msk [vmem:[%s905_s1 + $0x25] ss:$8 sm:$0xc] %vm3_vm1, %v382_v51   ;;  %257 = vrot.lane.b32.xlu1 %v256_v53, %s460_s26  ;;  %246 = vrot.lane.b32.xlu0 %v245_v55, %s460_s26 }
  0x21   :  { %385 = vst.msk [vmem:[%s905_s1 + $0x16] ss:$8 sm:$0x30] %vm3_vm1, %v382_v51   ;;  %386 = vst.msk [vmem:[%s905_s1 + $0x7] ss:$8 sm:$0xc0] %vm3_vm1, %v382_v51  }
  0x22   :  { %358 = vst.msk [vmem:[%s905_s1 + $0x10] ss:$8 sm:$0x3] %vm3_vm1, %v357_v52   ;;  %359 = vst.msk [vmem:[%s905_s1 + $0x1] ss:$8 sm:$0xc] %vm3_vm1, %v357_v52  }
  0x23   :  { %360 = vst.msk [vmem:[%s905_s1 - $0xe] ss:$8 sm:$0x30] %vm3_vm1, %v357_v52   ;;  %361 = vst.msk [vmem:[%s905_s1 - $0x1d] ss:$8 sm:$0xc0] %vm3_vm1, %v357_v52  }
  0x24   :  { %v362_v54 = vld [vmem:[%s904_s0 + $0x60] ss:$4 sm:$0xff]   ;;  %v434_v59 = vld [vmem:[%s904_s0 + $0x1] ss:$8 sm:$0xf0]   ;;  %278 = vrot.lane.b32.xlu1 %v277_v60, %s461_s25 }
  0x25   :  { %363 = vst.msk [vmem:[%s905_s1 + $0x14] ss:$8 sm:$0x3] %vm3_vm1, %v362_v54   ;;  %364 = vst.msk [vmem:[%s905_s1 + $0x5] ss:$8 sm:$0xc] %vm3_vm1, %v362_v54   ;;  %v267_v61 = vsel %vm92_vm0, %v434_v59, %v433_v58 }
  0x26   :  { %365 = vst.msk [vmem:[%s905_s1 - $0xa] ss:$8 sm:$0x30] %vm3_vm1, %v362_v54   ;;  %366 = vst.msk [vmem:[%s905_s1 - $0x19] ss:$8 sm:$0xc0] %vm3_vm1, %v362_v54   ;;  %268 = vrot.lane.b32.xlu0 %v267_v61, %s461_s25 }
  0x27   :  { %v441_v62 = vld [vmem:[%s904_s0 + $0x85] ss:$8 sm:$0xf]   ;;  %v447_v4 = vld [vmem:[%s904_s0 + $0xc1] ss:$8 sm:$0xf]  }
  0x28   :  { %v442_v63 = vld [vmem:[%s904_s0 + $0x85] ss:$8 sm:$0xf0]   ;;  %v448_v5 = vld [vmem:[%s904_s0 + $0xc1] ss:$8 sm:$0xf0]  }
  0x29   :  { %v438_v0 = vld [vmem:[%s904_s0 + $0x5] ss:$8 sm:$0xf]   ;;  %v299_v2 = vsel %vm92_vm0, %v442_v63, %v441_v62  ;;  %v444_v6 = vld [vmem:[%s904_s0 + $0x41] ss:$8 sm:$0xf]   ;;  %v321_v8 = vsel %vm92_vm0, %v448_v5, %v447_v4 }
  0x2a   :  { %v439_v1 = vld [vmem:[%s904_s0 + $0x5] ss:$8 sm:$0xf0]   ;;  %v445_v7 = vld [vmem:[%s904_s0 + $0x41] ss:$8 sm:$0xf0]   ;;  %300 = vrot.lane.b32.xlu1 %v299_v2, %s461_s25 }
  0x2b   :  { %v288_v3 = vsel %vm92_vm0, %v439_v1, %v438_v0  ;;  %v310_v9 = vsel %vm92_vm0, %v445_v7, %v444_v6  ;;  %v453_v10 = vld [vmem:[%s904_s0 + $0xc5] ss:$8 sm:$0xf]  }
  0x2c   :  { %289 = vrot.lane.b32.xlu0 %v288_v3, %s461_s25  ;;  %v454_v11 = vld [vmem:[%s904_s0 + $0xc5] ss:$8 sm:$0xf0]  }
  0x2d   :  { %v450_v12 = vld [vmem:[%s904_s0 + $0x45] ss:$8 sm:$0xf]   ;;  %v343_v14 = vsel %vm92_vm0, %v454_v11, %v453_v10 }
  0x2e   :  { %v451_v13 = vld [vmem:[%s904_s0 + $0x45] ss:$8 sm:$0xf0]   ;;  %322 = vrot.lane.b32.xlu1 %v321_v8, %s461_s25 }
  0x2f   :  { %v332_v15 = vsel %vm92_vm0, %v451_v13, %v450_v12 }
  0x30   :  { %311 = vrot.lane.b32.xlu0 %v310_v9, %s461_s25 }
  0x32   :  { %344 = vrot.lane.b32.xlu1 %v343_v14, %s461_s25 }
  0x34   :  { %333 = vrot.lane.b32.xlu0 %v332_v15, %s461_s25 }
  0x76   :  { %v116_v16 = vpop.permute.xlu1 %115   ;;  %v95_v17 = vpop.permute.xlu0 %94  }
  0x77   :  { %394 = vst.msk [vmem:[%s905_s1 + $0x8] sm:$0xff] %vm96_vm2, %v116_v16   ;;  %97 = vst.msk [vmem:[%s905_s1] sm:$0xff] %vm96_vm2, %v95_v17  }
  0x7a   :  { %v127_v18 = vpop.permute.xlu1 %126   ;;  %v105_v19 = vpop.permute.xlu0 %104  }
  0x7b   :  { %397 = vst.msk [vmem:[%s905_s1 + $0x28] sm:$0xff] %vm96_vm2, %v127_v18   ;;  %391 = vst.msk [vmem:[%s905_s1 + $0x20] sm:$0xff] %vm96_vm2, %v105_v19  }
  0x7e   :  { %v149_v20 = vpop.permute.xlu1 %148   ;;  %v138_v21 = vpop.permute.xlu0 %137  }
  0x7f   :  { %403 = vst.msk [vmem:[%s905_s1 + $0x30] sm:$0xff] %vm96_vm2, %v149_v20   ;;  %400 = vst.msk [vmem:[%s905_s1 + $0x10] sm:$0xff] %vm96_vm2, %v138_v21  }
  0x82   :  { %v171_v22 = vpop.permute.xlu1 %170   ;;  %v160_v23 = vpop.permute.xlu0 %159  }
  0x83   :  { %409 = vst.msk [vmem:[%s905_s1 + $0x38] sm:$0xff] %vm96_vm2, %v171_v22   ;;  %406 = vst.msk [vmem:[%s905_s1 + $0x18] sm:$0xff] %vm96_vm2, %v160_v23  }
  0x86   :  { %v192_v24 = vpop.permute.xlu1 %191   ;;  %v182_v25 = vpop.permute.xlu0 %181  }
  0x87   :  { %414 = vst.msk [vmem:[%s905_s1 + $0x20] sm:$0xff] %vm183_vm3, %v192_v24   ;;  %184 = vst.msk [vmem:[%s905_s1] sm:$0xff] %vm183_vm3, %v182_v25  }
  0x8a   :  { %v214_v26 = vpop.permute.xlu1 %213   ;;  %v203_v27 = vpop.permute.xlu0 %202  }
  0x8b   :  { %420 = vst.msk [vmem:[%s905_s1 + $0x28] sm:$0xff] %vm183_vm3, %v214_v26   ;;  %417 = vst.msk [vmem:[%s905_s1 + $0x8] sm:$0xff] %vm183_vm3, %v203_v27  }
  0x8e   :  { %v236_v28 = vpop.permute.xlu1 %235   ;;  %v225_v29 = vpop.permute.xlu0 %224  }
  0x8f   :  { %426 = vst.msk [vmem:[%s905_s1 + $0x30] sm:$0xff] %vm183_vm3, %v236_v28   ;;  %423 = vst.msk [vmem:[%s905_s1 + $0x10] sm:$0xff] %vm183_vm3, %v225_v29  }
  0x92   :  { %v258_v30 = vpop.permute.xlu1 %257   ;;  %v247_v31 = vpop.permute.xlu0 %246  }
  0x93   :  { %432 = vst.msk [vmem:[%s905_s1 + $0x38] sm:$0xff] %vm183_vm3, %v258_v30   ;;  %429 = vst.msk [vmem:[%s905_s1 + $0x18] sm:$0xff] %vm183_vm3, %v247_v31  }
  0x96   :  { %v279_v32 = vpop.permute.xlu1 %278  }
  0x97   :  { %437 = vst.msk [vmem:[%s905_s1 + $0x20] sm:$0xff] %vm270_vm4, %v279_v32  }
  0x98   :  { %v269_v33 = vpop.permute.xlu0 %268  }
  0x99   :  { %271 = vst.msk [vmem:[%s905_s1] sm:$0xff] %vm270_vm4, %v269_v33  }
  0x9c   :  { %v301_v34 = vpop.permute.xlu1 %300  }
  0x9d   :  { %443 = vst.msk [vmem:[%s905_s1 + $0x28] sm:$0xff] %vm270_vm4, %v301_v34  }
  0x9e   :  { %v290_v35 = vpop.permute.xlu0 %289  }
  0x9f   :  { %440 = vst.msk [vmem:[%s905_s1 + $0x8] sm:$0xff] %vm270_vm4, %v290_v35  }
  0xa0   :  { %v323_v36 = vpop.permute.xlu1 %322  }
  0xa1   :  { %449 = vst.msk [vmem:[%s905_s1 + $0x30] sm:$0xff] %vm270_vm4, %v323_v36  }
  0xa2   :  { %v312_v37 = vpop.permute.xlu0 %311  }
  0xa3   :  { %446 = vst.msk [vmem:[%s905_s1 + $0x10] sm:$0xff] %vm270_vm4, %v312_v37  }
  0xa4   :  { %v345_v38 = vpop.permute.xlu1 %344  }
  0xa5   :  { %455 = vst.msk [vmem:[%s905_s1 + $0x38] sm:$0xff] %vm270_vm4, %v345_v38  }
  0xa6   :  { %v334_v39 = vpop.permute.xlu0 %333  }
  0xa7   :  { %452 = vst.msk [vmem:[%s905_s1 + $0x18] sm:$0xff] %vm270_vm4, %v334_v39  }

// kernel: tile.23
= control target key start
LH: loop header
LB: loop body
LE: loop exit
PB: predicated region body
PF: predicated region fallthrough
CT: control target
= control target key end

     0   :  { %vm65_vm0 = vcmask 1043458   ;;  %s105_s6 = smov 3  ;;  %vm70_vm1 = vcmask 1045508   ;;  %vm75_vm2 = vcmask 1047558   ;;  %s108_s9 = smov 12  ;;  %vm4_vm3 = vcmask 1047556   ;;  %s1498_s0 = inlined_call_operand.vmem [shape: f32[16,16,16], index: 0, kind: input, shape index: {}]   ;;  %s1499_s1 = inlined_call_operand.vmem [shape: f32[256,16], index: 1, kind: output, shape index: {}]  }
   0x1   :  { %v726_v0 = vld [vmem:[%s1498_s0 + $0x87] ss:$16 sm:%s105_s6]   ;;  %s113_s10 = smov 48  ;;  %s118_s15 = smov 192  ;;  %vm6_vm4 = vcmask 130048   ;;  %vm79_vm5 = vcmask 1048448  }
   0x2   :  { %v727_v1 = vld [vmem:[%s1498_s0 + $0x87] ss:$16 sm:%s108_s9]   ;;  %s60_s16 = smov 3  ;;  %s63_s21 = smov 12  ;;  %vm170_vm6 = vcmask 917248   ;;  %vm261_vm7 = vcmask 786048  }
   0x3   :  { %v728_v2 = vld [vmem:[%s1498_s0 + $0x87] ss:$16 sm:%s113_s10]   ;;  %v111_v3 = vsel %vm65_vm0, %v727_v1, %v726_v0  ;;  %s68_s22 = smov 48  ;;  %s73_s27 = smov 192  ;;  %vm352_vm8 = vcmask 654848   ;;  %vm443_vm9 = vcmask 523648  }
   0x4   :  { %v729_v4 = vld [vmem:[%s1498_s0 + $0x87] ss:$16 sm:%s118_s15]   ;;  %v116_v6 = vsel %vm70_vm1, %v728_v2, %v111_v3  ;;  %s128_s28 = smov 3  ;;  %s131_s4 = smov 12  ;;  %vm534_vm10 = vcmask 392448   ;;  %vm625_vm11 = vcmask 261248  }
   0x5   :  { %v717_v5 = vld [vmem:[%s1498_s0 + $0x7] ss:$16 sm:%s60_s16]   ;;  %v121_v9 = vsel %vm75_vm2, %v729_v4, %v116_v6  ;;  %v731_v12 = vld [vmem:[%s1498_s0 + $0x8f] ss:$16 sm:%s128_s28]   ;;  %s136_s5 = smov 48  ;;  %s857_s6 = smov 112  }
   0x6   :  { %v718_v7 = vld [vmem:[%s1498_s0 + $0x7] ss:$16 sm:%s63_s21]   ;;  %122 = vrot.lane.b32.xlu1 %v121_v9, %s857_s6  ;;  %s141_s9 = smov 192  ;;  %s82_s10 = smov 3 }
   0x7   :  { %v719_v8 = vld [vmem:[%s1498_s0 + $0x7] ss:$16 sm:%s68_s22]   ;;  %v66_v10 = vsel %vm65_vm0, %v718_v7, %v717_v5  ;;  %v732_v14 = vld [vmem:[%s1498_s0 + $0x8f] ss:$16 sm:%s131_s4]   ;;  %s85_s15 = smov 12  ;;  %s90_s16 = smov 48 }
   0x8   :  { %v720_v11 = vld [vmem:[%s1498_s0 + $0x7] ss:$16 sm:%s73_s27]   ;;  %v71_v13 = vsel %vm70_vm1, %v719_v8, %v66_v10  ;;  %v134_v16 = vsel %vm65_vm0, %v732_v14, %v731_v12  ;;  %v733_v17 = vld [vmem:[%s1498_s0 + $0x8f] ss:$16 sm:%s136_s5]   ;;  %s95_s19 = smov 192  ;;  %s173_s24 = smov 3 }
   0x9   :  { %v76_v15 = vsel %vm75_vm2, %v720_v11, %v71_v13  ;;  %v734_v18 = vld [vmem:[%s1498_s0 + $0x8f] ss:$16 sm:%s141_s9]   ;;  %v139_v19 = vsel %vm70_vm1, %v733_v17, %v134_v16  ;;  %s176_s25 = smov 12  ;;  %s181_s28 = smov 48  ;;  %v740_v27 = vld [vmem:[%s1498_s0 + $0xe] ss:$16 sm:%s173_s24]  }
   0xa   :  { %77 = vrot.lane.b32.xlu0 %v76_v15, %s857_s6  ;;  %v721_v20 = vld [vmem:[%s1498_s0 + $0xf] ss:$16 sm:%s82_s10]   ;;  %v144_v21 = vsel %vm75_vm2, %v734_v18, %v139_v19  ;;  %s186_s29 = smov 192  ;;  %s151_s5 = smov 3 }
   0xb   :  { %v722_v22 = vld [vmem:[%s1498_s0 + $0xf] ss:$16 sm:%s85_s15]   ;;  %145 = vrot.lane.b32.xlu1 %v144_v21, %s857_s6  ;;  %s154_s7 = smov 12  ;;  %s159_s12 = smov 48 }
   0xc   :  { %v723_v23 = vld [vmem:[%s1498_s0 + $0xf] ss:$16 sm:%s90_s16]   ;;  %v88_v24 = vsel %vm65_vm0, %v722_v22, %v721_v20  ;;  %v741_v28 = vld [vmem:[%s1498_s0 + $0xe] ss:$16 sm:%s176_s25]   ;;  %s164_s13 = smov 192  ;;  %s219_s15 = smov 3 }
   0xd   :  { %v724_v25 = vld [vmem:[%s1498_s0 + $0xf] ss:$16 sm:%s95_s19]   ;;  %v93_v26 = vsel %vm70_vm1, %v723_v23, %v88_v24  ;;  %v179_v30 = vsel %vm65_vm0, %v741_v28, %v740_v27  ;;  %v742_v31 = vld [vmem:[%s1498_s0 + $0xe] ss:$16 sm:%s181_s28]   ;;  %s222_s16 = smov 12  ;;  %s227_s21 = smov 48 }
   0xe   :  { %v98_v29 = vsel %vm75_vm2, %v724_v25, %v93_v26  ;;  %v743_v32 = vld [vmem:[%s1498_s0 + $0xe] ss:$16 sm:%s186_s29]   ;;  %v184_v33 = vsel %vm70_vm1, %v742_v31, %v179_v30  ;;  %v736_v34 = vld [vmem:[%s1498_s0 + $0x6] ss:$16 sm:%s151_s5]   ;;  %s232_s22 = smov 192  ;;  %s858_s23 = smov 96  }
   0xf   :  { %99 = vrot.lane.b32.xlu0 %v98_v29, %s857_s6  ;;  %v189_v35 = vsel %vm75_vm2, %v743_v32, %v184_v33  ;;  %v737_v36 = vld [vmem:[%s1498_s0 + $0x6] ss:$16 sm:%s154_s7]   ;;  %s196_s26 = smov 3  ;;  %s199_s2 = smov 12 }
  0x10   :  { %v738_v37 = vld [vmem:[%s1498_s0 + $0x6] ss:$16 sm:%s159_s12]   ;;  %190 = vrot.lane.b32.xlu1 %v189_v35, %s858_s23  ;;  %v157_v38 = vsel %vm65_vm0, %v737_v36, %v736_v34  ;;  %s204_s3 = smov 48  ;;  %s209_s9 = smov 192 }
  0x11   :  { %v739_v39 = vld [vmem:[%s1498_s0 + $0x6] ss:$16 sm:%s164_s13]   ;;  %v162_v40 = vsel %vm70_vm1, %v738_v37, %v157_v38  ;;  %v750_v41 = vld [vmem:[%s1498_s0 + $0x8e] ss:$16 sm:%s219_s15]   ;;  %s264_s12 = smov 3  ;;  %s267_s13 = smov 12 }
  0x12   :  { %v751_v42 = vld [vmem:[%s1498_s0 + $0x8e] ss:$16 sm:%s222_s16]   ;;  %v167_v43 = vsel %vm75_vm2, %v739_v39, %v162_v40  ;;  %v745_v48 = vld [vmem:[%s1498_s0 + $0x86] ss:$16 sm:%s196_s26]   ;;  %s272_s17 = smov 48  ;;  %s277_s18 = smov 192 }
  0x13   :  { %v225_v44 = vsel %vm65_vm0, %v751_v42, %v750_v41  ;;  %v752_v45 = vld [vmem:[%s1498_s0 + $0x8e] ss:$16 sm:%s227_s21]   ;;  %168 = vrot.lane.b32.xlu0 %v167_v43, %s858_s23  ;;  %s242_s21 = smov 3  ;;  %s245_s27 = smov 12 }
  0x14   :  { %v753_v46 = vld [vmem:[%s1498_s0 + $0x8e] ss:$16 sm:%s232_s22]   ;;  %v230_v47 = vsel %vm70_vm1, %v752_v45, %v225_v44  ;;  %v746_v50 = vld [vmem:[%s1498_s0 + $0x86] ss:$16 sm:%s199_s2]   ;;  %s250_s28 = smov 48  ;;  %s255_s4 = smov 192 }
  0x15   :  { %v235_v49 = vsel %vm75_vm2, %v753_v46, %v230_v47  ;;  %v747_v51 = vld [vmem:[%s1498_s0 + $0x86] ss:$16 sm:%s204_s3]   ;;  %v202_v52 = vsel %vm65_vm0, %v746_v50, %v745_v48  ;;  %v759_v55 = vld [vmem:[%s1498_s0 + $0xd] ss:$16 sm:%s264_s12]   ;;  %s310_s7 = smov 3  ;;  %s313_s8 = smov 12 }
  0x16   :  { %236 = vrot.lane.b32.xlu1 %v235_v49, %s858_s23  ;;  %v748_v53 = vld [vmem:[%s1498_s0 + $0x86] ss:$16 sm:%s209_s9]   ;;  %v207_v54 = vsel %vm70_vm1, %v747_v51, %v202_v52  ;;  %s323_s6 = smov 192  ;;  %s859_s14 = smov 80  }
  0x17   :  { %v760_v56 = vld [vmem:[%s1498_s0 + $0xd] ss:$16 sm:%s267_s13]   ;;  %v212_v57 = vsel %vm75_vm2, %v748_v53, %v207_v54  ;;  %v755_v62 = vld [vmem:[%s1498_s0 + $0x5] ss:$16 sm:%s242_s21]   ;;  %s318_s13 = smov 48  ;;  %s290_s22 = smov 12 }
  0x18   :  { %v270_v58 = vsel %vm65_vm0, %v760_v56, %v759_v55  ;;  %v761_v59 = vld [vmem:[%s1498_s0 + $0xd] ss:$16 sm:%s272_s17]   ;;  %213 = vrot.lane.b32.xlu0 %v212_v57, %s858_s23  ;;  %s287_s17 = smov 3  ;;  %s295_s24 = smov 48 }
  0x19   :  { %v762_v60 = vld [vmem:[%s1498_s0 + $0xd] ss:$16 sm:%s277_s18]   ;;  %v275_v61 = vsel %vm70_vm1, %v761_v59, %v270_v58  ;;  %v756_v0 = vld [vmem:[%s1498_s0 + $0x5] ss:$16 sm:%s245_s27]   ;;  %s300_s29 = smov 192  ;;  %s355_s3 = smov 3 }
  0x1a   :  { %v280_v63 = vsel %vm75_vm2, %v762_v60, %v275_v61  ;;  %v757_v1 = vld [vmem:[%s1498_s0 + $0x5] ss:$16 sm:%s250_s28]   ;;  %v248_v2 = vsel %vm65_vm0, %v756_v0, %v755_v62  ;;  %v769_v5 = vld [vmem:[%s1498_s0 + $0x8d] ss:$16 sm:%s310_s7]   ;;  %s363_s9 = smov 48  ;;  %s368_s10 = smov 192 }
  0x1b   :  { %281 = vrot.lane.b32.xlu1 %v280_v63, %s859_s14  ;;  %v758_v3 = vld [vmem:[%s1498_s0 + $0x5] ss:$16 sm:%s255_s4]   ;;  %v253_v4 = vsel %vm70_vm1, %v757_v1, %v248_v2  ;;  %s358_s4 = smov 12  ;;  %s336_s18 = smov 12 }
  0x1c   :  { %v770_v6 = vld [vmem:[%s1498_s0 + $0x8d] ss:$16 sm:%s313_s8]   ;;  %v258_v7 = vsel %vm75_vm2, %v758_v3, %v253_v4  ;;  %v764_v12 = vld [vmem:[%s1498_s0 + $0x85] ss:$16 sm:%s287_s17]   ;;  %s341_s19 = smov 48  ;;  %s346_s25 = smov 192 }
  0x1d   :  { %v316_v8 = vsel %vm65_vm0, %v770_v6, %v769_v5  ;;  %v771_v9 = vld [vmem:[%s1498_s0 + $0x8d] ss:$16 sm:%s318_s13]   ;;  %259 = vrot.lane.b32.xlu0 %v258_v7, %s859_s14  ;;  %s333_s13 = smov 3  ;;  %s401_s27 = smov 3 }
  0x1e   :  { %v772_v10 = vld [vmem:[%s1498_s0 + $0x8d] ss:$16 sm:%s323_s6]   ;;  %v321_v11 = vsel %vm70_vm1, %v771_v9, %v316_v8  ;;  %v765_v14 = vld [vmem:[%s1498_s0 + $0x85] ss:$16 sm:%s290_s22]   ;;  %s404_s28 = smov 12  ;;  %s414_s23 = smov 192 }
  0x1f   :  { %v326_v13 = vsel %vm75_vm2, %v772_v10, %v321_v11  ;;  %v766_v15 = vld [vmem:[%s1498_s0 + $0x85] ss:$16 sm:%s295_s24]   ;;  %v293_v16 = vsel %vm65_vm0, %v765_v14, %v764_v12  ;;  %v778_v19 = vld [vmem:[%s1498_s0 + $0xc] ss:$16 sm:%s355_s3]   ;;  %s860_s5 = smov 64   ;;  %s381_s6 = smov 12 }
  0x20   :  { %327 = vrot.lane.b32.xlu1 %v326_v13, %s859_s14  ;;  %v767_v17 = vld [vmem:[%s1498_s0 + $0x85] ss:$16 sm:%s300_s29]   ;;  %v298_v18 = vsel %vm70_vm1, %v766_v15, %v293_v16  ;;  %s386_s15 = smov 48  ;;  %s391_s20 = smov 192 }
  0x21   :  { %v779_v20 = vld [vmem:[%s1498_s0 + $0xc] ss:$16 sm:%s358_s4]   ;;  %v303_v21 = vsel %vm75_vm2, %v767_v17, %v298_v18  ;;  %v774_v26 = vld [vmem:[%s1498_s0 + $0x4] ss:$16 sm:%s333_s13]   ;;  %s409_s4 = smov 48  ;;  %s446_s24 = smov 3 }
  0x22   :  { %v361_v22 = vsel %vm65_vm0, %v779_v20, %v778_v19  ;;  %v780_v23 = vld [vmem:[%s1498_s0 + $0xc] ss:$16 sm:%s363_s9]   ;;  %304 = vrot.lane.b32.xlu0 %v303_v21, %s859_s14  ;;  %s378_s9 = smov 3  ;;  %s454_s29 = smov 48 }
  0x23   :  { %v781_v24 = vld [vmem:[%s1498_s0 + $0xc] ss:$16 sm:%s368_s10]   ;;  %v366_v25 = vsel %vm70_vm1, %v780_v23, %v361_v22  ;;  %v775_v28 = vld [vmem:[%s1498_s0 + $0x4] ss:$16 sm:%s336_s18]   ;;  %s459_s30 = smov 192  ;;  %s427_s10 = smov 12 }
  0x24   :  { %v371_v27 = vsel %vm75_vm2, %v781_v24, %v366_v25  ;;  %v776_v29 = vld [vmem:[%s1498_s0 + $0x4] ss:$16 sm:%s341_s19]   ;;  %v339_v30 = vsel %vm65_vm0, %v775_v28, %v774_v26  ;;  %v788_v33 = vld [vmem:[%s1498_s0 + $0x8c] ss:$16 sm:%s401_s27]   ;;  %s432_s11 = smov 48  ;;  %s437_s16 = smov 192 }
  0x25   :  { %372 = vrot.lane.b32.xlu1 %v371_v27, %s860_s5  ;;  %v777_v31 = vld [vmem:[%s1498_s0 + $0x4] ss:$16 sm:%s346_s25]   ;;  %v344_v32 = vsel %vm70_vm1, %v776_v29, %v339_v30  ;;  %s449_s25 = smov 12  ;;  %s492_s18 = smov 3 }
  0x26   :  { %v789_v34 = vld [vmem:[%s1498_s0 + $0x8c] ss:$16 sm:%s404_s28]   ;;  %v349_v35 = vsel %vm75_vm2, %v777_v31, %v344_v32  ;;  %v783_v40 = vld [vmem:[%s1498_s0 + $0x84] ss:$16 sm:%s378_s9]   ;;  %s495_s19 = smov 12  ;;  %s505_s14 = smov 192 }
  0x27   :  { %v407_v36 = vsel %vm65_vm0, %v789_v34, %v788_v33  ;;  %v790_v37 = vld [vmem:[%s1498_s0 + $0x8c] ss:$16 sm:%s409_s4]   ;;  %350 = vrot.lane.b32.xlu0 %v349_v35, %s860_s5  ;;  %s424_s4 = smov 3  ;;  %s861_s26 = smov 48  }
  0x28   :  { %v791_v38 = vld [vmem:[%s1498_s0 + $0x8c] ss:$16 sm:%s414_s23]   ;;  %v412_v39 = vsel %vm70_vm1, %v790_v37, %v407_v36  ;;  %v784_v42 = vld [vmem:[%s1498_s0 + $0x84] ss:$16 sm:%s381_s6]   ;;  %s472_s23 = smov 12  ;;  %s477_s7 = smov 48 }
  0x29   :  { %v417_v41 = vsel %vm75_vm2, %v791_v38, %v412_v39  ;;  %v785_v43 = vld [vmem:[%s1498_s0 + $0x84] ss:$16 sm:%s386_s15]   ;;  %v384_v44 = vsel %vm65_vm0, %v784_v42, %v783_v40  ;;  %v797_v47 = vld [vmem:[%s1498_s0 + $0xb] ss:$16 sm:%s446_s24]   ;;  %s482_s12 = smov 192  ;;  %s537_s15 = smov 3 }
  0x2a   :  { %418 = vrot.lane.b32.xlu1 %v417_v41, %s860_s5  ;;  %v786_v45 = vld [vmem:[%s1498_s0 + $0x84] ss:$16 sm:%s391_s20]   ;;  %v389_v46 = vsel %vm70_vm1, %v785_v43, %v384_v44  ;;  %s545_s20 = smov 48  ;;  %s550_s21 = smov 192 }
  0x2b   :  { %v798_v48 = vld [vmem:[%s1498_s0 + $0xb] ss:$16 sm:%s449_s25]   ;;  %v394_v49 = vsel %vm75_vm2, %v786_v45, %v389_v46  ;;  %v793_v54 = vld [vmem:[%s1498_s0 + $0x3] ss:$16 sm:%s424_s4]   ;;  %s500_s25 = smov 48  ;;  %s523_s2 = smov 48 }
  0x2c   :  { %v452_v50 = vsel %vm65_vm0, %v798_v48, %v797_v47  ;;  %v799_v51 = vld [vmem:[%s1498_s0 + $0xb] ss:$16 sm:%s454_s29]   ;;  %395 = vrot.lane.b32.xlu0 %v394_v49, %s860_s5  ;;  %s469_s29 = smov 3  ;;  %s528_s8 = smov 192 }
  0x2d   :  { %v800_v52 = vld [vmem:[%s1498_s0 + $0xb] ss:$16 sm:%s459_s30]   ;;  %v457_v53 = vsel %vm70_vm1, %v799_v51, %v452_v50  ;;  %v794_v56 = vld [vmem:[%s1498_s0 + $0x3] ss:$16 sm:%s427_s10]   ;;  %s518_s30 = smov 12  ;;  %s583_s10 = smov 3 }
  0x2e   :  { %v462_v55 = vsel %vm75_vm2, %v800_v52, %v457_v53  ;;  %v795_v57 = vld [vmem:[%s1498_s0 + $0x3] ss:$16 sm:%s432_s11]   ;;  %v430_v58 = vsel %vm65_vm0, %v794_v56, %v793_v54  ;;  %v807_v61 = vld [vmem:[%s1498_s0 + $0x8b] ss:$16 sm:%s492_s18]   ;;  %s586_s11 = smov 12  ;;  %s596_s5 = smov 192 }
  0x2f   :  { %463 = vrot.lane.b32.xlu1 %v462_v55, %s861_s26  ;;  %v796_v59 = vld [vmem:[%s1498_s0 + $0x3] ss:$16 sm:%s437_s16]   ;;  %v435_v60 = vsel %vm70_vm1, %v795_v57, %v430_v58  ;;  %s540_s16 = smov 12  ;;  %s862_s17 = smov 32  }
  0x30   :  { %v808_v62 = vld [vmem:[%s1498_s0 + $0x8b] ss:$16 sm:%s495_s19]   ;;  %v440_v63 = vsel %vm75_vm2, %v796_v59, %v435_v60  ;;  %v802_v4 = vld [vmem:[%s1498_s0 + $0x83] ss:$16 sm:%s469_s29]   ;;  %s568_s27 = smov 48  ;;  %s573_s3 = smov 192 }
  0x31   :  { %v498_v0 = vsel %vm65_vm0, %v808_v62, %v807_v61  ;;  %v809_v1 = vld [vmem:[%s1498_s0 + $0x8b] ss:$16 sm:%s500_s25]   ;;  %441 = vrot.lane.b32.xlu0 %v440_v63, %s861_s26  ;;  %s515_s25 = smov 3  ;;  %s641_s13 = smov 192 }
  0x32   :  { %v810_v2 = vld [vmem:[%s1498_s0 + $0x8b] ss:$16 sm:%s505_s14]   ;;  %v503_v3 = vsel %vm70_vm1, %v809_v1, %v498_v0  ;;  %v803_v6 = vld [vmem:[%s1498_s0 + $0x83] ss:$16 sm:%s472_s23]   ;;  %s563_s14 = smov 12  ;;  %s609_s24 = smov 12 }
  0x33   :  { %v508_v5 = vsel %vm75_vm2, %v810_v2, %v503_v3  ;;  %v804_v7 = vld [vmem:[%s1498_s0 + $0x83] ss:$16 sm:%s477_s7]   ;;  %v475_v8 = vsel %vm65_vm0, %v803_v6, %v802_v4  ;;  %v816_v11 = vld [vmem:[%s1498_s0 + $0xa] ss:$16 sm:%s537_s15]   ;;  %s628_s7 = smov 3  ;;  %s677_s4 = smov 12 }
  0x34   :  { %509 = vrot.lane.b32.xlu1 %v508_v5, %s861_s26  ;;  %v805_v9 = vld [vmem:[%s1498_s0 + $0x83] ss:$16 sm:%s482_s12]   ;;  %v480_v10 = vsel %vm70_vm1, %v804_v7, %v475_v8  ;;  %s636_s12 = smov 48  ;;  %v2_v38 = vld [vmem:[%s1498_s0] ss:$8 sm:$0xf]  }
  0x35   :  { %v817_v12 = vld [vmem:[%s1498_s0 + $0xa] ss:$16 sm:%s540_s16]   ;;  %v485_v13 = vsel %vm75_vm2, %v805_v9, %v480_v10  ;;  %v812_v18 = vld [vmem:[%s1498_s0 + $0x2] ss:$16 sm:%s515_s25]   ;;  %s591_s16 = smov 48  ;;  %s614_s25 = smov 48 }
  0x36   :  { %v543_v14 = vsel %vm65_vm0, %v817_v12, %v816_v11  ;;  %v818_v15 = vld [vmem:[%s1498_s0 + $0xa] ss:$16 sm:%s545_s20]   ;;  %486 = vrot.lane.b32.xlu0 %v485_v13, %s861_s26  ;;  %s560_s20 = smov 3  ;;  %v3_v48 = vld [vmem:[%s1498_s0] ss:$8 sm:$0xf0]  }
  0x37   :  { %v819_v16 = vld [vmem:[%s1498_s0 + $0xa] ss:$16 sm:%s550_s21]   ;;  %v548_v17 = vsel %vm70_vm1, %v818_v15, %v543_v14  ;;  %v813_v20 = vld [vmem:[%s1498_s0 + $0x2] ss:$16 sm:%s518_s30]   ;;  %s619_s30 = smov 192  ;;  %v5_v52 = vsel %vm4_vm3, %v3_v48, %v2_v38  ;;  %s664_s26 = smov 192 }
  0x38   :  { %v553_v19 = vsel %vm75_vm2, %v819_v16, %v548_v17  ;;  %v814_v21 = vld [vmem:[%s1498_s0 + $0x2] ss:$16 sm:%s523_s2]   ;;  %v521_v22 = vsel %vm65_vm0, %v813_v20, %v812_v18  ;;  %v826_v25 = vld [vmem:[%s1498_s0 + $0x8a] ss:$16 sm:%s583_s10]   ;;  %s674_s2 = smov 3 }
  0x39   :  { %554 = vrot.lane.b32.xlu1 %v553_v19, %s862_s17  ;;  %v815_v23 = vld [vmem:[%s1498_s0 + $0x2] ss:$16 sm:%s528_s8]   ;;  %v526_v24 = vsel %vm70_vm1, %v814_v21, %v521_v22  ;;  %s631_s8 = smov 12  ;;  %7 = vst.msk [vmem:[%s1499_s1] ss:$8 sm:$0x3] %vm6_vm4, %v5_v52  }
  0x3a   :  { %v827_v26 = vld [vmem:[%s1498_s0 + $0x8a] ss:$16 sm:%s586_s11]   ;;  %v531_v27 = vsel %vm75_vm2, %v815_v23, %v526_v24  ;;  %v821_v32 = vld [vmem:[%s1498_s0 + $0x82] ss:$16 sm:%s560_s20]   ;;  %s682_s11 = smov 48 }
  0x3b   :  { %v589_v28 = vsel %vm65_vm0, %v827_v26, %v826_v25  ;;  %v828_v29 = vld [vmem:[%s1498_s0 + $0x8a] ss:$16 sm:%s591_s16]   ;;  %532 = vrot.lane.b32.xlu0 %v531_v27, %s862_s17  ;;  %s606_s16 = smov 3  ;;  %696 = vst.msk [vmem:[%s1499_s1 - $0xf] ss:$8 sm:$0xc] %vm6_vm4, %v5_v52  }
  0x3c   :  { %v829_v30 = vld [vmem:[%s1498_s0 + $0x8a] ss:$16 sm:%s596_s5]   ;;  %v594_v31 = vsel %vm70_vm1, %v828_v29, %v589_v28  ;;  %v822_v34 = vld [vmem:[%s1498_s0 + $0x82] ss:$16 sm:%s563_s14]  }
  0x3d   :  { %v599_v33 = vsel %vm75_vm2, %v829_v30, %v594_v31  ;;  %v823_v35 = vld [vmem:[%s1498_s0 + $0x82] ss:$16 sm:%s568_s27]   ;;  %v566_v36 = vsel %vm65_vm0, %v822_v34, %v821_v32  ;;  %v835_v40 = vld [vmem:[%s1498_s0 + $0x9] ss:$16 sm:%s628_s7]  }
  0x3e   :  { %600 = vrot.lane.b32.xlu1 %v599_v33, %s862_s17  ;;  %v824_v37 = vld [vmem:[%s1498_s0 + $0x82] ss:$16 sm:%s573_s3]   ;;  %v571_v39 = vsel %vm70_vm1, %v823_v35, %v566_v36  ;;  %697 = vst.msk [vmem:[%s1499_s1 - $0x1e] ss:$8 sm:$0x30] %vm6_vm4, %v5_v52   ;;  %s659_s3 = smov 48 }
  0x3f   :  { %v836_v41 = vld [vmem:[%s1498_s0 + $0x9] ss:$16 sm:%s631_s8]   ;;  %v576_v42 = vsel %vm75_vm2, %v824_v37, %v571_v39  ;;  %v831_v47 = vld [vmem:[%s1498_s0 + $0x1] ss:$16 sm:%s606_s16]   ;;  %s651_s16 = smov 3 }
  0x40   :  { %v634_v43 = vsel %vm65_vm0, %v836_v41, %v835_v40  ;;  %v837_v44 = vld [vmem:[%s1498_s0 + $0x9] ss:$16 sm:%s636_s12]   ;;  %577 = vrot.lane.b32.xlu0 %v576_v42, %s862_s17  ;;  %s687_s12 = smov 192  ;;  %698 = vst.msk [vmem:[%s1499_s1 - $0x2d] ss:$8 sm:$0xc0] %vm6_vm4, %v5_v52  }
  0x41   :  { %v838_v45 = vld [vmem:[%s1498_s0 + $0x9] ss:$16 sm:%s641_s13]   ;;  %v639_v46 = vsel %vm70_vm1, %v837_v44, %v634_v43  ;;  %v832_v50 = vld [vmem:[%s1498_s0 + $0x1] ss:$16 sm:%s609_s24]   ;;  %s863_s13 = smov 16   ;;  %s654_s17 = smov 12 }
  0x42   :  { %v644_v49 = vsel %vm75_vm2, %v838_v45, %v639_v46  ;;  %v833_v51 = vld [vmem:[%s1498_s0 + $0x1] ss:$16 sm:%s614_s25]   ;;  %v612_v53 = vsel %vm65_vm0, %v832_v50, %v831_v47  ;;  %v699_v55 = vld [vmem:[%s1498_s0 + $0x40] ss:$8 sm:$0xf]  }
  0x43   :  { %645 = vrot.lane.b32.xlu1 %v644_v49, %s863_s13  ;;  %v834_v54 = vld [vmem:[%s1498_s0 + $0x1] ss:$16 sm:%s619_s30]   ;;  %v617_v56 = vsel %vm70_vm1, %v833_v51, %v612_v53  ;;  %v700_v1 = vld [vmem:[%s1498_s0 + $0x40] ss:$8 sm:$0xf0]  }
  0x44   :  { %v845_v57 = vld [vmem:[%s1498_s0 + $0x89] ss:$16 sm:%s674_s2]   ;;  %v622_v59 = vsel %vm75_vm2, %v834_v54, %v617_v56  ;;  %v840_v0 = vld [vmem:[%s1498_s0 + $0x81] ss:$16 sm:%s651_s16]   ;;  %v19_v5 = vsel %vm4_vm3, %v700_v1, %v699_v55 }
  0x45   :  { %v846_v58 = vld [vmem:[%s1498_s0 + $0x89] ss:$16 sm:%s677_s4]   ;;  %623 = vrot.lane.b32.xlu0 %v622_v59, %s863_s13  ;;  %701 = vst.msk [vmem:[%s1499_s1 + $0x4] ss:$8 sm:$0x3] %vm6_vm4, %v19_v5  }
  0x46   :  { %v680_v60 = vsel %vm65_vm0, %v846_v58, %v845_v57  ;;  %v847_v61 = vld [vmem:[%s1498_s0 + $0x89] ss:$16 sm:%s682_s11]   ;;  %v841_v3 = vld [vmem:[%s1498_s0 + $0x81] ss:$16 sm:%s654_s17]  }
  0x47   :  { %v848_v62 = vld [vmem:[%s1498_s0 + $0x89] ss:$16 sm:%s687_s12]   ;;  %v685_v63 = vsel %vm70_vm1, %v847_v61, %v680_v60  ;;  %v842_v4 = vld [vmem:[%s1498_s0 + $0x81] ss:$16 sm:%s659_s3]   ;;  %v657_v6 = vsel %vm65_vm0, %v841_v3, %v840_v0 }
  0x48   :  { %v690_v2 = vsel %vm75_vm2, %v848_v62, %v685_v63  ;;  %v843_v7 = vld [vmem:[%s1498_s0 + $0x81] ss:$16 sm:%s664_s26]   ;;  %702 = vst.msk [vmem:[%s1499_s1 - $0xb] ss:$8 sm:$0xc] %vm6_vm4, %v19_v5   ;;  %v662_v9 = vsel %vm70_vm1, %v842_v4, %v657_v6 }
  0x49   :  { %691 = vrot.lane.b32.xlu1 %v690_v2, %s863_s13  ;;  %703 = vst.msk [vmem:[%s1499_s1 - $0x1a] ss:$8 sm:$0x30] %vm6_vm4, %v19_v5   ;;  %704 = vst.msk [vmem:[%s1499_s1 - $0x29] ss:$8 sm:$0xc0] %vm6_vm4, %v19_v5   ;;  %v667_v12 = vsel %vm75_vm2, %v843_v7, %v662_v9 }
  0x4a   :  { %v705_v8 = vld [vmem:[%s1498_s0 + $0x80] ss:$8 sm:$0xf]   ;;  %668 = vrot.lane.b32.xlu0 %v667_v12, %s863_s13 }
  0x4b   :  { %v706_v10 = vld [vmem:[%s1498_s0 + $0x80] ss:$8 sm:$0xf0]  }
  0x4c   :  { %v711_v11 = vld [vmem:[%s1498_s0 + $0xc0] ss:$8 sm:$0xf]   ;;  %v34_v13 = vsel %vm4_vm3, %v706_v10, %v705_v8 }
  0x4d   :  { %v712_v14 = vld [vmem:[%s1498_s0 + $0xc0] ss:$8 sm:$0xf0]   ;;  %707 = vst.msk [vmem:[%s1499_s1 + $0x10] ss:$8 sm:$0x3] %vm6_vm4, %v34_v13  }
  0x4e   :  { %708 = vst.msk [vmem:[%s1499_s1 + $0x1] ss:$8 sm:$0xc] %vm6_vm4, %v34_v13   ;;  %709 = vst.msk [vmem:[%s1499_s1 - $0xe] ss:$8 sm:$0x30] %vm6_vm4, %v34_v13   ;;  %v49_v15 = vsel %vm4_vm3, %v712_v14, %v711_v11 }
  0x4f   :  { %710 = vst.msk [vmem:[%s1499_s1 - $0x1d] ss:$8 sm:$0xc0] %vm6_vm4, %v34_v13   ;;  %713 = vst.msk [vmem:[%s1499_s1 + $0x14] ss:$8 sm:$0x3] %vm6_vm4, %v49_v15  }
  0x50   :  { %714 = vst.msk [vmem:[%s1499_s1 + $0x5] ss:$8 sm:$0xc] %vm6_vm4, %v49_v15   ;;  %715 = vst.msk [vmem:[%s1499_s1 - $0xa] ss:$8 sm:$0x30] %vm6_vm4, %v49_v15  }
  0x51   :  { %716 = vst.msk [vmem:[%s1499_s1 - $0x19] ss:$8 sm:$0xc0] %vm6_vm4, %v49_v15  }
  0x78   :  { %v123_v16 = vpop.permute.xlu1 %122  }
  0x79   :  { %730 = vst.msk [vmem:[%s1499_s1 + $0x10] sm:$0xff] %vm79_vm5, %v123_v16  }
  0x7c   :  { %v78_v17 = vpop.permute.xlu0 %77  }
  0x7d   :  { %80 = vst.msk [vmem:[%s1499_s1] sm:$0xff] %vm79_vm5, %v78_v17   ;;  %v146_v18 = vpop.permute.xlu1 %145  }
  0x7e   :  { %735 = vst.msk [vmem:[%s1499_s1 + $0x18] sm:$0xff] %vm79_vm5, %v146_v18  }
  0x81   :  { %v100_v19 = vpop.permute.xlu0 %99  }
  0x82   :  { %725 = vst.msk [vmem:[%s1499_s1 + $0x8] sm:$0xff] %vm79_vm5, %v100_v19   ;;  %v191_v20 = vpop.permute.xlu1 %190  }
  0x83   :  { %744 = vst.msk [vmem:[%s1499_s1 + $0x8] sm:$0xff] %vm170_vm6, %v191_v20  }
  0x85   :  { %v169_v21 = vpop.permute.xlu0 %168  }
  0x86   :  { %171 = vst.msk [vmem:[%s1499_s1] sm:$0xff] %vm170_vm6, %v169_v21  }
  0x88   :  { %v237_v22 = vpop.permute.xlu1 %236  }
  0x89   :  { %754 = vst.msk [vmem:[%s1499_s1 + $0x18] sm:$0xff] %vm170_vm6, %v237_v22  }
  0x8a   :  { %v214_v23 = vpop.permute.xlu0 %213  }
  0x8b   :  { %749 = vst.msk [vmem:[%s1499_s1 + $0x10] sm:$0xff] %vm170_vm6, %v214_v23  }
  0x8d   :  { %v282_v24 = vpop.permute.xlu1 %281  }
  0x8e   :  { %763 = vst.msk [vmem:[%s1499_s1 + $0x8] sm:$0xff] %vm261_vm7, %v282_v24  }
  0x8f   :  { %v260_v25 = vpop.permute.xlu0 %259  }
  0x90   :  { %262 = vst.msk [vmem:[%s1499_s1] sm:$0xff] %vm261_vm7, %v260_v25  }
  0x92   :  { %v328_v26 = vpop.permute.xlu1 %327  }
  0x93   :  { %773 = vst.msk [vmem:[%s1499_s1 + $0x18] sm:$0xff] %vm261_vm7, %v328_v26  }
  0x94   :  { %v305_v27 = vpop.permute.xlu0 %304  }
  0x95   :  { %768 = vst.msk [vmem:[%s1499_s1 + $0x10] sm:$0xff] %vm261_vm7, %v305_v27  }
  0x97   :  { %v373_v28 = vpop.permute.xlu1 %372  }
  0x98   :  { %782 = vst.msk [vmem:[%s1499_s1 + $0x8] sm:$0xff] %vm352_vm8, %v373_v28  }
  0x99   :  { %v351_v29 = vpop.permute.xlu0 %350  }
  0x9a   :  { %353 = vst.msk [vmem:[%s1499_s1] sm:$0xff] %vm352_vm8, %v351_v29  }
  0x9c   :  { %v419_v30 = vpop.permute.xlu1 %418  }
  0x9d   :  { %792 = vst.msk [vmem:[%s1499_s1 + $0x18] sm:$0xff] %vm352_vm8, %v419_v30  }
  0x9e   :  { %v396_v31 = vpop.permute.xlu0 %395  }
  0x9f   :  { %787 = vst.msk [vmem:[%s1499_s1 + $0x10] sm:$0xff] %vm352_vm8, %v396_v31  }
  0xa1   :  { %v464_v32 = vpop.permute.xlu1 %463  }
  0xa2   :  { %801 = vst.msk [vmem:[%s1499_s1 + $0x8] sm:$0xff] %vm443_vm9, %v464_v32  }
  0xa3   :  { %v442_v33 = vpop.permute.xlu0 %441  }
  0xa4   :  { %444 = vst.msk [vmem:[%s1499_s1] sm:$0xff] %vm443_vm9, %v442_v33  }
  0xa6   :  { %v510_v34 = vpop.permute.xlu1 %509  }
  0xa7   :  { %811 = vst.msk [vmem:[%s1499_s1 + $0x18] sm:$0xff] %vm443_vm9, %v510_v34  }
  0xa8   :  { %v487_v35 = vpop.permute.xlu0 %486  }
  0xa9   :  { %806 = vst.msk [vmem:[%s1499_s1 + $0x10] sm:$0xff] %vm443_vm9, %v487_v35  }
  0xab   :  { %v555_v36 = vpop.permute.xlu1 %554  }
  0xac   :  { %820 = vst.msk [vmem:[%s1499_s1 + $0x8] sm:$0xff] %vm534_vm10, %v555_v36  }
  0xad   :  { %v533_v37 = vpop.permute.xlu0 %532  }
  0xae   :  { %535 = vst.msk [vmem:[%s1499_s1] sm:$0xff] %vm534_vm10, %v533_v37  }
  0xb0   :  { %v601_v38 = vpop.permute.xlu1 %600  }
  0xb1   :  { %830 = vst.msk [vmem:[%s1499_s1 + $0x18] sm:$0xff] %vm534_vm10, %v601_v38  }
  0xb2   :  { %v578_v39 = vpop.permute.xlu0 %577  }
  0xb3   :  { %825 = vst.msk [vmem:[%s1499_s1 + $0x10] sm:$0xff] %vm534_vm10, %v578_v39  }
  0xb5   :  { %v646_v40 = vpop.permute.xlu1 %645  }
  0xb6   :  { %839 = vst.msk [vmem:[%s1499_s1 + $0x8] sm:$0xff] %vm625_vm11, %v646_v40  }
  0xb7   :  { %v624_v41 = vpop.permute.xlu0 %623  }
  0xb8   :  { %626 = vst.msk [vmem:[%s1499_s1] sm:$0xff] %vm625_vm11, %v624_v41  }
  0xbb   :  { %v692_v42 = vpop.permute.xlu1 %691  }
  0xbc   :  { %849 = vst.msk [vmem:[%s1499_s1 + $0x18] sm:$0xff] %vm625_vm11, %v692_v42   ;;  %v669_v43 = vpop.permute.xlu0 %668  }
  0xbd   :  { %844 = vst.msk [vmem:[%s1499_s1 + $0x10] sm:$0xff] %vm625_vm11, %v669_v43  }

// kernel: tile.37
= control target key start
LH: loop header
LB: loop body
LE: loop exit
PB: predicated region body
PF: predicated region fallthrough
CT: control target
= control target key end

     0   :  { %s77_s0 = inlined_call_operand.vmem [shape: f32[2,4,256], index: 0, kind: input, shape index: {}]   ;;  %s78_s1 = inlined_call_operand.vmem [shape: f32[8,256], index: 1, kind: output, shape index: {}]  }
   0x1   :  { %v37_v0 = vld [vmem:[%s77_s0 + $0xc] sm:$0xf]  ;;  %v38_v1 = vld [vmem:[%s77_s0 + $0x8] sm:$0xf]  ;;  %v39_v2 = vld [vmem:[%s77_s0 + $0x4] sm:$0xf] }
   0x2   :  { %9 = vst [vmem:[#allocation0 + $0x8] sm:$0xf] %v37_v0  ;;  %14 = vst [vmem:[#allocation0 + $0x18] sm:$0xf] %v38_v1  ;;  %v19_v3 = vld [vmem:[%s77_s0] sm:$0xf] }
   0x3   :  { %18 = vst [vmem:[#allocation0] sm:$0xf] %v39_v2  ;;  %20 = vst [vmem:[#allocation0 + $0x10] sm:$0xf] %v19_v3 }
   0x9   :  { %v28_v5 = vld [vmem:[#allocation0 + $0x18] sm:$0xf]   ;;  %v32_v6 = vld [vmem:[#allocation0 + $0x8] sm:$0xf]  }
   0xa   :  { %v24_v4 = vld [vmem:[#allocation0] sm:$0xf]   ;;  %v21_v7 = vld [vmem:[#allocation0 + $0x10] sm:$0xf]   ;;  %41 = vst [vmem:[%s78_s1 + $0x4] sm:$0xf] %v28_v5  }
   0xb   :  { %40 = vst [vmem:[%s78_s1 + $0x8] sm:$0xf] %v24_v4   ;;  %42 = vst [vmem:[%s78_s1 + $0xc] sm:$0xf] %v32_v6  }
   0xc   :  { %22 = vst [vmem:[%s78_s1] sm:$0xf] %v21_v7  }

// kernel: discriminator_forward.1
= control target key start
LH: loop header
LB: loop body
LE: loop exit
PB: predicated region body
PF: predicated region fallthrough
CT: control target
= control target key end

     0   :  { %v8705_v3 = vmov 0   ;;  %s11458_s0 = inlined_call_operand.vmem [shape: f32[128,256], index: 0, kind: input, shape index: {}]   ;;  %s11459_s1 = inlined_call_operand.vmem [shape: bf16[4,64,128], index: 1, kind: input, shape index: {}]   ;;  %s11460_s2 = inlined_call_operand.vmem [shape: bf16[4,256,256], index: 2, kind: input, shape index: {}]   ;;  %s11461_s3 = inlined_call_operand.vmem [shape: bf16[4,32,64], index: 3, kind: input, shape index: {}]   ;;  %s11462_s4 = inlined_call_operand.vmem [shape: bf16[4,256,256], index: 4, kind: input, shape index: {}]   ;;  %s11463_s7 = inlined_call_operand.vmem [shape: f32[256,16], index: 7, kind: input, shape index: {}]   ;;  %s11464_s8 = inlined_call_operand.vmem [shape: f32[16,256], index: 8, kind: input, shape index: {}]   ;;  %s11465_s10 = inlined_call_operand.vmem [shape: bf16[4,256,256], index: 10, kind: input, shape index: {}]   ;;  %s11466_s5 = inlined_call_operand.vmem [shape: f32[1,16], index: 5, kind: input, shape index: {}]   ;;  %s11467_s6 = inlined_call_operand.vmem [shape: f32[1,16], index: 6, kind: input, shape index: {}]   ;;  %s11468_s9 = inlined_call_operand.vmem [shape: bf16[4,16,32], index: 9, kind: input, shape index: {}]   ;;  %s11469_s13 = inlined_call_operand.vmem [shape: f32[256,32], index: 13, kind: input, shape index: {}]   ;;  %s11470_s14 = inlined_call_operand.vmem [shape: f32[32,256], index: 14, kind: input, shape index: {}]   ;;  %s11471_s11 = inlined_call_operand.vmem [shape: f32[1,32], index: 11, kind: input, shape index: {}]   ;;  %s11472_s12 = inlined_call_operand.vmem [shape: f32[1,32], index: 12, kind: input, shape index: {}]   ;;  %s11473_s16 = inlined_call_operand.vmem [shape: bf16[4,256,256], index: 16, kind: input, shape index: {}]   ;;  %s11474_s15 = inlined_call_operand.vmem [shape: bf16[4,8,16], index: 15, kind: input, shape index: {}]   ;;  %s11475_s19 = inlined_call_operand.vmem [shape: f32[256,64], index: 19, kind: input, shape index: {}]   ;;  %s11476_s20 = inlined_call_operand.vmem [shape: f32[64,256], index: 20, kind: input, shape index: {}]   ;;  %s11477_s17 = inlined_call_operand.vmem [shape: f32[1,64], index: 17, kind: input, shape index: {}]   ;;  %s11478_s18 = inlined_call_operand.vmem [shape: f32[1,64], index: 18, kind: input, shape index: {}]   ;;  %s11479_s21 = inlined_call_operand.vmem [shape: f32[8,256], index: 21, kind: input, shape index: {}]   ;;  %s11480_s22 = inlined_call_operand.vmem [shape: f32[2,8], index: 22, kind: input, shape index: {}]   ;;  %s11481_s23 = inlined_call_operand.vmem [shape: f32[2,1], index: 23, kind: output, shape index: {}]  }
   0x1   :  { %11490 = sst [smem:[#allocation2_spill]] %s11458_s0  ;;  %187 = vmatprep.mubr.bf16.mxu0 %v8705_v3  ;;  %333 = vmatprep.mubr.bf16.mxu1 %v8705_v3 }
   0x2   :  { %11491 = sst [smem:[#allocation3_spill]] %s11459_s1 }
   0x3   :  { %11492 = sst [smem:[#allocation4_spill]] %s11460_s2 }
   0x4   :  { %11493 = sst [smem:[#allocation5_spill]] %s11461_s3 }
   0x5   :  { %11494 = sst [smem:[#allocation6_spill]] %s11462_s4 }
   0x6   :  { %11495 = sst [smem:[#allocation7_spill]] %s11463_s7 }
   0x7   :  { %11496 = sst [smem:[#allocation8_spill]] %s11464_s8 }
   0x8   :  { %11497 = sst [smem:[#allocation9_spill]] %s11465_s10 }
   0x9   :  { %s11498_s24 = sld [smem:[#allocation2_spill]] }
   0xa   :  { %s11499_s28 = sld [smem:[#allocation4_spill]] }
   0xb   :  { %s11500_s4 = sld [smem:[#allocation3_spill]] }
   0xc   :  { %s11501_s2 = sld [smem:[#allocation6_spill]] }
   0xd   :  { %s11502_s30 = sld [smem:[#allocation5_spill]] }
   0xe   :  { %s11503_s27 = sld [smem:[#allocation7_spill]] }
   0xf   :  { %v104_v0 = vld [vmem:[%s11498_s24 + $0xe8] sm:$0xff]  ;;  %v106_v1 = vld [vmem:[%s11498_s24 + $0xf8] sm:$0xff]  ;;  %v103_v2 = vld [vmem:[%s11498_s24 + $0xe0] sm:$0xff]  ;;  %s11504_s7 = sld [smem:[#allocation8_spill]] }
  0x10   :  { %v8838_v4 = vpack.c.bf16 %v106_v1, %v104_v0  ;;  %v105_v5 = vld [vmem:[%s11498_s24 + $0xf0] sm:$0xff]  ;;  %v100_v6 = vld [vmem:[%s11498_s24 + $0xc8] sm:$0xff]  ;;  %v102_v7 = vld [vmem:[%s11498_s24 + $0xd8] sm:$0xff] }
  0x11   :  { %v8849_v8 = vpack.c.bf16 %v105_v5, %v103_v2  ;;  %v8851_v9 = vpack.c.bf16 %v102_v7, %v100_v6  ;;  %v99_v10 = vld [vmem:[%s11498_s24 + $0xc0] sm:$0xff]  ;;  %v101_v11 = vld [vmem:[%s11498_s24 + $0xd0] sm:$0xff]  ;;  %v96_v12 = vld [vmem:[%s11498_s24 + $0xa8] sm:$0xff] }
  0x12   :  { %155 = vmatprep.subr.bf16.mxu0 %v8838_v4  ;;  %301 = vmatprep.subr.bf16.mxu1 %v8838_v4  ;;  %v98_v13 = vld [vmem:[%s11498_s24 + $0xb8] sm:$0xff]  ;;  %v8869_v14 = vpack.c.bf16 %v101_v11, %v99_v10  ;;  %v95_v16 = vld [vmem:[%s11498_s24 + $0xa0] sm:$0xff]  ;;  %v97_v17 = vld [vmem:[%s11498_s24 + $0xb0] sm:$0xff] }
  0x13   :  { %156 = vmatpush1.bf16.msra.mxu0 %v8849_v8  ;;  %302 = vmatpush1.bf16.msra.mxu1 %v8849_v8  ;;  %v8873_v15 = vpack.c.bf16 %v98_v13, %v96_v12  ;;  %v92_v18 = vld [vmem:[%s11498_s24 + $0x88] sm:$0xff]  ;;  %v94_v19 = vld [vmem:[%s11498_s24 + $0x98] sm:$0xff]  ;;  %v8889_v20 = vpack.c.bf16 %v97_v17, %v95_v16  ;;  %v91_v22 = vld [vmem:[%s11498_s24 + $0x80] sm:$0xff] }
  0x14   :  { %157 = vmatprep.subr.bf16.mxu0 %v8851_v9  ;;  %303 = vmatprep.subr.bf16.mxu1 %v8851_v9  ;;  %v8893_v21 = vpack.c.bf16 %v94_v19, %v92_v18  ;;  %v93_v23 = vld [vmem:[%s11498_s24 + $0x90] sm:$0xff]  ;;  %v88_v24 = vld [vmem:[%s11498_s24 + $0x68] sm:$0xff]  ;;  %v90_v25 = vld [vmem:[%s11498_s24 + $0x78] sm:$0xff] }
  0x15   :  { %v87_v26 = vld [vmem:[%s11498_s24 + $0x60] sm:$0xff]  ;;  %v8912_v27 = vpack.c.bf16 %v93_v23, %v91_v22  ;;  %v89_v28 = vld [vmem:[%s11498_s24 + $0x70] sm:$0xff]  ;;  %v8919_v29 = vpack.c.bf16 %v90_v25, %v88_v24  ;;  %v84_v30 = vld [vmem:[%s11498_s24 + $0x48] sm:$0xff] }
  0x16   :  { %v86_v31 = vld [vmem:[%s11498_s24 + $0x58] sm:$0xff]  ;;  %v83_v32 = vld [vmem:[%s11498_s24 + $0x40] sm:$0xff]  ;;  %v8932_v33 = vpack.c.bf16 %v89_v28, %v87_v26  ;;  %v85_v34 = vld [vmem:[%s11498_s24 + $0x50] sm:$0xff] }
  0x17   :  { %158 = vmatpush1.bf16.msra.mxu0 %v8869_v14  ;;  %304 = vmatpush1.bf16.msra.mxu1 %v8869_v14  ;;  %v8939_v35 = vpack.c.bf16 %v86_v31, %v84_v30  ;;  %v80_v36 = vld [vmem:[%s11498_s24 + $0x28] sm:$0xff]  ;;  %v82_v37 = vld [vmem:[%s11498_s24 + $0x38] sm:$0xff]  ;;  %v8949_v38 = vpack.c.bf16 %v85_v34, %v83_v32  ;;  %v79_v39 = vld [vmem:[%s11498_s24 + $0x20] sm:$0xff] }
  0x18   :  { %159 = vmatprep.subr.bf16.mxu0 %v8873_v15  ;;  %305 = vmatprep.subr.bf16.mxu1 %v8873_v15  ;;  %v8956_v40 = vpack.c.bf16 %v82_v37, %v80_v36  ;;  %v81_v41 = vld [vmem:[%s11498_s24 + $0x30] sm:$0xff]  ;;  %v76_v42 = vld [vmem:[%s11498_s24 + $0x8] sm:$0xff]  ;;  %v78_v43 = vld [vmem:[%s11498_s24 + $0x18] sm:$0xff] }
  0x19   :  { %v8969_v44 = vpack.c.bf16 %v81_v41, %v79_v39  ;;  %v75_v45 = vld [vmem:[%s11498_s24] sm:$0xff]  ;;  %v8976_v46 = vpack.c.bf16 %v78_v43, %v76_v42  ;;  %v77_v47 = vld [vmem:[%s11498_s24 + $0x10] sm:$0xff]  ;;  %v7901_v61 = vld [vmem:[%s11500_s4 + $0x8] sm:$0xff]  }
  0x1a   :  { %v8983_v48 = vpack.c.bf16 %v77_v47, %v75_v45  ;;  %v7909_v49 = vld [vmem:[%s11499_s28 + $0x174] ss:$8 sps:$4 sm:$0xff]   ;;  %v7899_v51 = vld [vmem:[%s11500_s4] sm:$0xff]   ;;  %v7907_v53 = vld [vmem:[%s11499_s28 + $0x170] ss:$8 sps:$4 sm:$0xff]  }
  0x1b   :  { %160 = vmatpush1.bf16.msra.mxu0 %v8889_v20  ;;  %306 = vmatpush1.bf16.msra.mxu1 %v8889_v20  ;;  %v7912_v50 = vld [vmem:[%s11499_s28 + $0x74] ss:$8 sps:$4 sm:$0xff]   ;;  %v7900_v52 = vld [vmem:[%s11500_s4 + $0x20] sm:$0xff]   ;;  %v7910_v54 = vld [vmem:[%s11499_s28 + $0x70] ss:$8 sps:$4 sm:$0xff]  }
  0x1c   :  { %161 = vmatprep.subr.bf16.mxu0 %v8893_v21  ;;  %307 = vmatprep.subr.bf16.mxu1 %v8893_v21  ;;  %v7915_v55 = vld [vmem:[%s11499_s28 + $0x164] ss:$8 sps:$4 sm:$0xff]   ;;  %v7913_v57 = vld [vmem:[%s11499_s28 + $0x160] ss:$8 sps:$4 sm:$0xff]   ;;  %v7921_v59 = vld [vmem:[%s11499_s28 + $0x154] ss:$8 sps:$4 sm:$0xff]  }
  0x1d   :  { %v7918_v56 = vld [vmem:[%s11499_s28 + $0x64] ss:$8 sps:$4 sm:$0xff]   ;;  %v7916_v58 = vld [vmem:[%s11499_s28 + $0x60] ss:$8 sps:$4 sm:$0xff]   ;;  %v7924_v60 = vld [vmem:[%s11499_s28 + $0x54] ss:$8 sps:$4 sm:$0xff]  }
  0x1e   :  { %v7902_v62 = vld [vmem:[%s11500_s4 + $0x28] sm:$0xff]   ;;  %v7919_v63 = vld [vmem:[%s11499_s28 + $0x150] ss:$8 sps:$4 sm:$0xff]   ;;  %v7933_v7 = vld [vmem:[%s11499_s28 + $0x134] ss:$8 sps:$4 sm:$0xff]  }
  0x1f   :  { %162 = vmatpush1.bf16.msra.mxu0 %v8912_v27  ;;  %308 = vmatpush1.bf16.msra.mxu1 %v8912_v27  ;;  %v7922_v0 = vld [vmem:[%s11499_s28 + $0x50] ss:$8 sps:$4 sm:$0xff]   ;;  %v7927_v1 = vld [vmem:[%s11499_s28 + $0x144] ss:$8 sps:$4 sm:$0xff]   ;;  %v7925_v5 = vld [vmem:[%s11499_s28 + $0x140] ss:$8 sps:$4 sm:$0xff]  }
  0x20   :  { %163 = vmatprep.subr.bf16.mxu0 %v8919_v29  ;;  %309 = vmatprep.subr.bf16.mxu1 %v8919_v29  ;;  %v7930_v2 = vld [vmem:[%s11499_s28 + $0x44] ss:$8 sps:$4 sm:$0xff]   ;;  %v7928_v6 = vld [vmem:[%s11499_s28 + $0x40] ss:$8 sps:$4 sm:$0xff]   ;;  %v7936_v10 = vld [vmem:[%s11499_s28 + $0x34] ss:$8 sps:$4 sm:$0xff]  }
  0x21   :  { %v7903_v11 = vld [vmem:[%s11500_s4 + $0x10] sm:$0xff]   ;;  %v7939_v17 = vld [vmem:[%s11499_s28 + $0x124] ss:$8 sps:$4 sm:$0xff]   ;;  %v7937_v19 = vld [vmem:[%s11499_s28 + $0x120] ss:$8 sps:$4 sm:$0xff]  }
  0x22   :  { %v7904_v12 = vld [vmem:[%s11500_s4 + $0x30] sm:$0xff]   ;;  %v7942_v18 = vld [vmem:[%s11499_s28 + $0x24] ss:$8 sps:$4 sm:$0xff]   ;;  %v7905_v22 = vld [vmem:[%s11500_s4 + $0x18] sm:$0xff]  }
  0x23   :  { %164 = vmatpush1.bf16.msra.mxu0 %v8932_v33  ;;  %310 = vmatpush1.bf16.msra.mxu1 %v8932_v33  ;;  %v7931_v13 = vld [vmem:[%s11499_s28 + $0x130] ss:$8 sps:$4 sm:$0xff]   ;;  %v7940_v24 = vld [vmem:[%s11499_s28 + $0x20] ss:$8 sps:$4 sm:$0xff]   ;;  %v7945_v25 = vld [vmem:[%s11499_s28 + $0x114] ss:$8 sps:$4 sm:$0xff]  }
  0x24   :  { %165 = vmatprep.subr.bf16.mxu0 %v8939_v35  ;;  %311 = vmatprep.subr.bf16.mxu1 %v8939_v35  ;;  %v7934_v16 = vld [vmem:[%s11499_s28 + $0x30] ss:$8 sps:$4 sm:$0xff]   ;;  %v7948_v26 = vld [vmem:[%s11499_s28 + $0x14] ss:$8 sps:$4 sm:$0xff]   ;;  %v7951_v31 = vld [vmem:[%s11499_s28 + $0x104] ss:$8 sps:$4 sm:$0xff]  }
  0x25   :  { %v7906_v23 = vld [vmem:[%s11500_s4 + $0x38] sm:$0xff]   ;;  %v7954_v32 = vld [vmem:[%s11499_s28 + $0x4] ss:$8 sps:$4 sm:$0xff]   ;;  %v7949_v34 = vld [vmem:[%s11499_s28 + $0x100] ss:$8 sps:$4 sm:$0xff]  }
  0x26   :  { %v7943_v28 = vld [vmem:[%s11499_s28 + $0x110] ss:$8 sps:$4 sm:$0xff]   ;;  %v7952_v36 = vld [vmem:[%s11499_s28] ss:$8 sps:$4 sm:$0xff]   ;;  %v7957_v37 = vld [vmem:[%s11499_s28 + $0x1f4] ss:$8 sps:$4 sm:$0xff]  }
  0x27   :  { %166 = vmatpush1.bf16.msra.mxu0 %v8949_v38  ;;  %312 = vmatpush1.bf16.msra.mxu1 %v8949_v38  ;;  %v7946_v30 = vld [vmem:[%s11499_s28 + $0x10] ss:$8 sps:$4 sm:$0xff]   ;;  %v7960_v39 = vld [vmem:[%s11499_s28 + $0xf4] ss:$8 sps:$4 sm:$0xff]   ;;  %v7963_v43 = vld [vmem:[%s11499_s28 + $0x1e4] ss:$8 sps:$4 sm:$0xff]  }
  0x28   :  { %167 = vmatprep.subr.bf16.mxu0 %v8956_v40  ;;  %313 = vmatprep.subr.bf16.mxu1 %v8956_v40  ;;  %v7955_v41 = vld [vmem:[%s11499_s28 + $0x1f0] ss:$8 sps:$4 sm:$0xff]   ;;  %v7966_v45 = vld [vmem:[%s11499_s28 + $0xe4] ss:$8 sps:$4 sm:$0xff]   ;;  %v7961_v47 = vld [vmem:[%s11499_s28 + $0x1e0] ss:$8 sps:$4 sm:$0xff]  }
  0x29   :  { %v7958_v42 = vld [vmem:[%s11499_s28 + $0xf0] ss:$8 sps:$4 sm:$0xff]  }
  0x2b   :  { %168 = vmatpush1.bf16.msra.mxu0 %v8969_v44  ;;  %314 = vmatpush1.bf16.msra.mxu1 %v8969_v44 }
  0x2c   :  { %169 = vmatprep.subr.bf16.mxu0 %v8976_v46  ;;  %315 = vmatprep.subr.bf16.mxu1 %v8976_v46 }
  0x2f   :  { %170 = vmatpush1.bf16.msra.mxu0 %v8983_v48  ;;  %316 = vmatpush1.bf16.msra.mxu1 %v8983_v48 }
  0x30   :  { %575 = vmatprep.subr.bf16.mxu0 %v7909_v49  ;;  %808 = vmatprep.subr.bf16.mxu1 %v7912_v50  ;;  %v7964_v49 = vld [vmem:[%s11499_s28 + $0xe0] ss:$8 sps:$4 sm:$0xff]   ;;  %v7969_v50 = vld [vmem:[%s11499_s28 + $0x1d4] ss:$8 sps:$4 sm:$0xff]  }
  0x32   :  { %188 = vmatmul.mubr.bf16.vlgmr.msra.gmra.mxu0 %v7899_v51  ;;  %334 = vmatmul.mubr.bf16.vlgmr.msra.gmra.mxu1 %v7900_v52  ;;  %v7972_v51 = vld [vmem:[%s11499_s28 + $0xd4] ss:$8 sps:$4 sm:$0xff]   ;;  %v7967_v52 = vld [vmem:[%s11499_s28 + $0x1d0] ss:$8 sps:$4 sm:$0xff]  }
  0x33   :  { %197 = vmatprep.mubr.bf16.mxu0 %v8705_v3  ;;  %343 = vmatprep.mubr.bf16.mxu1 %v8705_v3 }
  0x34   :  { %576 = vmatpush1.bf16.msra.mxu0 %v7907_v53  ;;  %809 = vmatpush1.bf16.msra.mxu1 %v7910_v54  ;;  %v7970_v53 = vld [vmem:[%s11499_s28 + $0xd0] ss:$8 sps:$4 sm:$0xff]   ;;  %v7975_v54 = vld [vmem:[%s11499_s28 + $0x1c4] ss:$8 sps:$4 sm:$0xff]  }
  0x35   :  { %577 = vmatprep.subr.bf16.mxu0 %v7915_v55  ;;  %810 = vmatprep.subr.bf16.mxu1 %v7918_v56  ;;  %v7978_v55 = vld [vmem:[%s11499_s28 + $0xc4] ss:$8 sps:$4 sm:$0xff]   ;;  %v7973_v56 = vld [vmem:[%s11499_s28 + $0x1c0] ss:$8 sps:$4 sm:$0xff]  }
  0x38   :  { %578 = vmatpush1.bf16.msra.mxu0 %v7913_v57  ;;  %811 = vmatpush1.bf16.msra.mxu1 %v7916_v58  ;;  %v7976_v57 = vld [vmem:[%s11499_s28 + $0xc0] ss:$8 sps:$4 sm:$0xff]   ;;  %v7981_v58 = vld [vmem:[%s11499_s28 + $0x1b4] ss:$8 sps:$4 sm:$0xff]  }
  0x39   :  { %579 = vmatprep.subr.bf16.mxu0 %v7921_v59  ;;  %812 = vmatprep.subr.bf16.mxu1 %v7924_v60  ;;  %v7984_v59 = vld [vmem:[%s11499_s28 + $0xb4] ss:$8 sps:$4 sm:$0xff]   ;;  %v7979_v60 = vld [vmem:[%s11499_s28 + $0x1b0] ss:$8 sps:$4 sm:$0xff]  }
  0x3a   :  { %198 = vmatmul.mubr.bf16.gmra.mxu0 %v7901_v61  ;;  %344 = vmatmul.mubr.bf16.gmra.mxu1 %v7902_v62  ;;  %v7982_v61 = vld [vmem:[%s11499_s28 + $0xb0] ss:$8 sps:$4 sm:$0xff]   ;;  %v7987_v62 = vld [vmem:[%s11499_s28 + $0x1a4] ss:$8 sps:$4 sm:$0xff]  }
  0x3b   :  { %207 = vmatprep.mubr.bf16.mxu0 %v8705_v3  ;;  %353 = vmatprep.mubr.bf16.mxu1 %v8705_v3 }
  0x3c   :  { %580 = vmatpush1.bf16.msra.mxu0 %v7919_v63  ;;  %813 = vmatpush1.bf16.msra.mxu1 %v7922_v0  ;;  %v7990_v63 = vld [vmem:[%s11499_s28 + $0xa4] ss:$8 sps:$4 sm:$0xff]   ;;  %v7985_v0 = vld [vmem:[%s11499_s28 + $0x1a0] ss:$8 sps:$4 sm:$0xff]  }
  0x3d   :  { %581 = vmatprep.subr.bf16.mxu0 %v7927_v1  ;;  %814 = vmatprep.subr.bf16.mxu1 %v7930_v2  ;;  %v7988_v1 = vld [vmem:[%s11499_s28 + $0xa0] ss:$8 sps:$4 sm:$0xff]   ;;  %v7993_v2 = vld [vmem:[%s11499_s28 + $0x194] ss:$8 sps:$4 sm:$0xff]  }
  0x40   :  { %582 = vmatpush1.bf16.msra.mxu0 %v7925_v5  ;;  %815 = vmatpush1.bf16.msra.mxu1 %v7928_v6  ;;  %v7996_v5 = vld [vmem:[%s11499_s28 + $0x94] ss:$8 sps:$4 sm:$0xff]   ;;  %v7991_v6 = vld [vmem:[%s11499_s28 + $0x190] ss:$8 sps:$4 sm:$0xff]  }
  0x41   :  { %583 = vmatprep.subr.bf16.mxu0 %v7933_v7  ;;  %816 = vmatprep.subr.bf16.mxu1 %v7936_v10  ;;  %v7994_v7 = vld [vmem:[%s11499_s28 + $0x90] ss:$8 sps:$4 sm:$0xff]   ;;  %v7999_v10 = vld [vmem:[%s11499_s28 + $0x184] ss:$8 sps:$4 sm:$0xff]  }
  0x42   :  { %208 = vmatmul.mubr.bf16.gmra.mxu0 %v7903_v11  ;;  %354 = vmatmul.mubr.bf16.gmra.mxu1 %v7904_v12  ;;  %v8002_v11 = vld [vmem:[%s11499_s28 + $0x84] ss:$8 sps:$4 sm:$0xff]   ;;  %v7997_v12 = vld [vmem:[%s11499_s28 + $0x180] ss:$8 sps:$4 sm:$0xff]  }
  0x43   :  { %217 = vmatprep.mubr.bf16.mxu0 %v8705_v3  ;;  %363 = vmatprep.mubr.bf16.mxu1 %v8705_v3 }
  0x44   :  { %584 = vmatpush1.bf16.msra.mxu0 %v7931_v13  ;;  %817 = vmatpush1.bf16.msra.mxu1 %v7934_v16  ;;  %v8000_v13 = vld [vmem:[%s11499_s28 + $0x80] ss:$8 sps:$4 sm:$0xff]   ;;  %v8013_v16 = vld [vmem:[%s11499_s28 + $0x274] ss:$8 sps:$4 sm:$0xff]  }
  0x45   :  { %585 = vmatprep.subr.bf16.mxu0 %v7939_v17  ;;  %818 = vmatprep.subr.bf16.mxu1 %v7942_v18 }
  0x48   :  { %586 = vmatpush1.bf16.msra.mxu0 %v7937_v19  ;;  %819 = vmatpush1.bf16.msra.mxu1 %v7940_v24 }
  0x49   :  { %587 = vmatprep.subr.bf16.mxu0 %v7945_v25  ;;  %820 = vmatprep.subr.bf16.mxu1 %v7948_v26 }
  0x4a   :  { %218 = vmatmul.mubr.bf16.gmra.mxu0 %v7905_v22  ;;  %364 = vmatmul.mubr.bf16.gmra.mxu1 %v7906_v23 }
  0x4c   :  { %588 = vmatpush1.bf16.msra.mxu0 %v7943_v28  ;;  %821 = vmatpush1.bf16.msra.mxu1 %v7946_v30 }
  0x4d   :  { %589 = vmatprep.subr.bf16.mxu0 %v7951_v31  ;;  %822 = vmatprep.subr.bf16.mxu1 %v7954_v32  ;;  %v8011_v32 = vld [vmem:[%s11499_s28 + $0x270] ss:$8 sps:$4 sm:$0xff]  }
  0x50   :  { %590 = vmatpush1.bf16.msra.mxu0 %v7949_v34  ;;  %823 = vmatpush1.bf16.msra.mxu1 %v7952_v36 }
  0x51   :  { %591 = vmatprep.subr.bf16.mxu0 %v7957_v37  ;;  %824 = vmatprep.subr.bf16.mxu1 %v7960_v39  ;;  %v8016_v39 = vld [vmem:[%s11499_s28 + $0x264] ss:$8 sps:$4 sm:$0xff]  }
  0x54   :  { %592 = vmatpush2.bf16.msra.mxu0 %v7955_v41  ;;  %825 = vmatpush2.bf16.msra.mxu1 %v7958_v42 }
  0x55   :  { %593 = vmatprep.subr.bf16.mxu0 %v7963_v43  ;;  %826 = vmatprep.subr.bf16.mxu1 %v7966_v45  ;;  %v8014_v43 = vld [vmem:[%s11499_s28 + $0x260] ss:$8 sps:$4 sm:$0xff]  }
  0x58   :  { %594 = vmatpush2.bf16.msra.mxu0 %v7961_v47  ;;  %827 = vmatpush2.bf16.msra.mxu1 %v7964_v49  ;;  %v8019_v49 = vld [vmem:[%s11499_s28 + $0x254] ss:$8 sps:$4 sm:$0xff]  }
  0x59   :  { %595 = vmatprep.subr.bf16.mxu0 %v7969_v50  ;;  %828 = vmatprep.subr.bf16.mxu1 %v7972_v51 }
  0x5c   :  { %596 = vmatpush2.bf16.msra.mxu0 %v7967_v52  ;;  %829 = vmatpush2.bf16.msra.mxu1 %v7970_v53 }
  0x5d   :  { %597 = vmatprep.subr.bf16.mxu0 %v7975_v54  ;;  %830 = vmatprep.subr.bf16.mxu1 %v7978_v55  ;;  %v8017_v55 = vld [vmem:[%s11499_s28 + $0x250] ss:$8 sps:$4 sm:$0xff]  }
  0x60   :  { %598 = vmatpush2.bf16.msra.mxu0 %v7973_v56  ;;  %831 = vmatpush2.bf16.msra.mxu1 %v7976_v57 }
  0x61   :  { %599 = vmatprep.subr.bf16.mxu0 %v7981_v58  ;;  %832 = vmatprep.subr.bf16.mxu1 %v7984_v59  ;;  %v8022_v59 = vld [vmem:[%s11499_s28 + $0x244] ss:$8 sps:$4 sm:$0xff]  }
  0x64   :  { %600 = vmatpush2.bf16.msra.mxu0 %v7979_v60  ;;  %833 = vmatpush2.bf16.msra.mxu1 %v7982_v61 }
  0x65   :  { %601 = vmatprep.subr.bf16.mxu0 %v7987_v62  ;;  %834 = vmatprep.subr.bf16.mxu1 %v7990_v63  ;;  %v8020_v62 = vld [vmem:[%s11499_s28 + $0x240] ss:$8 sps:$4 sm:$0xff]  }
  0x68   :  { %602 = vmatpush2.bf16.msra.mxu0 %v7985_v0  ;;  %835 = vmatpush2.bf16.msra.mxu1 %v7988_v1  ;;  %v8025_v1 = vld [vmem:[%s11499_s28 + $0x234] ss:$8 sps:$4 sm:$0xff]  }
  0x69   :  { %603 = vmatprep.subr.bf16.mxu0 %v7993_v2  ;;  %836 = vmatprep.subr.bf16.mxu1 %v7996_v5 }
  0x6c   :  { %604 = vmatpush2.bf16.msra.mxu0 %v7991_v6  ;;  %837 = vmatpush2.bf16.msra.mxu1 %v7994_v7 }
  0x6d   :  { %605 = vmatprep.subr.bf16.mxu0 %v7999_v10  ;;  %838 = vmatprep.subr.bf16.mxu1 %v8002_v11  ;;  %v8023_v11 = vld [vmem:[%s11499_s28 + $0x230] ss:$8 sps:$4 sm:$0xff]  }
  0x70   :  { %606 = vmatpush2.bf16.msra.mxu0 %v7997_v12  ;;  %839 = vmatpush2.bf16.msra.mxu1 %v8000_v13 }
  0x71   :  { %914 = vmatprep.subr.bf16.mxu0 %v8838_v4  ;;  %1188 = vmatprep.subr.bf16.mxu1 %v8013_v16 }
  0xf2   :  { %v189_v17 = vpop.f32.mrf.mxu0  ;;  %v335_v18 = vpop.f32.mrf.mxu1 }
  0xf4   :  { %v191_v19 = vpop.f32.mrf.mxu0  ;;  %v337_v22 = vpop.f32.mrf.mxu1 }
  0xf6   :  { %v193_v23 = vpop.f32.mrf.mxu0  ;;  %v339_v24 = vpop.f32.mrf.mxu1 }
  0xf7   :  { %v228_v25 = vpack.c.bf16 %v193_v23, %v189_v17  ;;  %v374_v34 = vpack.c.bf16 %v339_v24, %v335_v18  ;;  %v8028_v17 = vld [vmem:[%s11499_s28 + $0x224] ss:$8 sps:$4 sm:$0xff]  }
  0xf8   :  { %v195_v26 = vpop.f32.mrf.mxu0  ;;  %v341_v28 = vpop.f32.mrf.mxu1 }
  0xf9   :  { %v229_v30 = vpack.c.bf16 %v195_v26, %v191_v19  ;;  %v375_v31 = vpack.c.bf16 %v341_v28, %v337_v22  ;;  %v8026_v22 = vld [vmem:[%s11499_s28 + $0x220] ss:$8 sps:$4 sm:$0xff]  }
  0xfa   :  { %v199_v36 = vpop.f32.mrf.mxu0  ;;  %v345_v37 = vpop.f32.mrf.mxu1 }
  0xfb   :  { %607 = vmatprep.mubr.bf16.mxu0 %v375_v31  ;;  %840 = vmatprep.mubr.bf16.mxu1 %v229_v30 }
  0xfc   :  { %v201_v41 = vpop.f32.mrf.mxu0  ;;  %v347_v42 = vpop.f32.mrf.mxu1  ;;  %608 = vmatmul.mubr.bf16.vlgmr.msra.gmra.mxu0 %v374_v34  ;;  %841 = vmatmul.mubr.bf16.vlgmr.msra.gmra.mxu1 %v228_v25  ;;  %v8003_v34 = vld [vmem:[%s11500_s4 + $0x40] sm:$0xff]  }
  0xfd   :  { %915 = vmatpush1.bf16.msra.mxu0 %v8849_v8  ;;  %1189 = vmatpush1.bf16.msra.mxu1 %v8011_v32 }
  0xfe   :  { %v203_v45 = vpop.f32.mrf.mxu0  ;;  %v349_v47 = vpop.f32.mrf.mxu1  ;;  %916 = vmatprep.subr.bf16.mxu0 %v8851_v9  ;;  %1190 = vmatprep.subr.bf16.mxu1 %v8016_v39  ;;  %v8049_v39 = vld [vmem:[%s11499_s28 + $0x2d4] ss:$8 sps:$4 sm:$0xff]  }
  0xff   :  { %v230_v50 = vpack.c.bf16 %v203_v45, %v199_v36  ;;  %v376_v56 = vpack.c.bf16 %v349_v47, %v345_v37  ;;  %v8004_v36 = vld [vmem:[%s11500_s4 + $0x48] sm:$0xff]   ;;  %v8010_v45 = vld [vmem:[%s11500_s4 + $0x78] sm:$0xff]  }
 0x100   :  { %v205_v51 = vpop.f32.mrf.mxu0  ;;  %v351_v52 = vpop.f32.mrf.mxu1  ;;  %v8044_v37 = vld [vmem:[%s11499_s28 + $0x360] ss:$8 sps:$4 sm:$0xff]   ;;  %v8055_v47 = vld [vmem:[%s11499_s28 + $0x2c4] ss:$8 sps:$4 sm:$0xff]  }
 0x101   :  { %v231_v53 = vpack.c.bf16 %v205_v51, %v201_v41  ;;  %v377_v54 = vpack.c.bf16 %v351_v52, %v347_v42  ;;  %917 = vmatpush1.bf16.msra.mxu0 %v8869_v14  ;;  %1191 = vmatpush1.bf16.msra.mxu1 %v8014_v43  ;;  %v8052_v41 = vld [vmem:[%s11499_s28 + $0x354] ss:$8 sps:$4 sm:$0xff]   ;;  %v8047_v42 = vld [vmem:[%s11499_s28 + $0x2d0] ss:$8 sps:$4 sm:$0xff]   ;;  %v8056_v51 = vld [vmem:[%s11499_s28 + $0x340] ss:$8 sps:$4 sm:$0xff]  }
 0x102   :  { %v209_v57 = vpop.f32.mrf.mxu0  ;;  %v355_v58 = vpop.f32.mrf.mxu1  ;;  %918 = vmatprep.subr.bf16.mxu0 %v8873_v15  ;;  %1192 = vmatprep.subr.bf16.mxu1 %v8019_v49  ;;  %v8050_v43 = vld [vmem:[%s11499_s28 + $0x350] ss:$8 sps:$4 sm:$0xff]   ;;  %v8058_v49 = vld [vmem:[%s11499_s28 + $0x344] ss:$8 sps:$4 sm:$0xff]   ;;  %v8061_v52 = vld [vmem:[%s11499_s28 + $0x2b4] ss:$8 sps:$4 sm:$0xff]  }
 0x103   :  { %617 = vmatprep.mubr.bf16.mxu0 %v377_v54  ;;  %850 = vmatprep.mubr.bf16.mxu1 %v231_v53  ;;  %v8064_v53 = vld [vmem:[%s11499_s28 + $0x334] ss:$8 sps:$4 sm:$0xff]   ;;  %v8059_v54 = vld [vmem:[%s11499_s28 + $0x2b0] ss:$8 sps:$4 sm:$0xff]  }
 0x104   :  { %v211_v60 = vpop.f32.mrf.mxu0  ;;  %v357_v61 = vpop.f32.mrf.mxu1  ;;  %618 = vmatmul.mubr.bf16.gmra.mxu0 %v376_v56  ;;  %851 = vmatmul.mubr.bf16.gmra.mxu1 %v230_v50  ;;  %v8053_v50 = vld [vmem:[%s11499_s28 + $0x2c0] ss:$8 sps:$4 sm:$0xff]   ;;  %v8067_v56 = vld [vmem:[%s11499_s28 + $0x2a4] ss:$8 sps:$4 sm:$0xff]  }
 0x105   :  { %919 = vmatpush1.bf16.msra.mxu0 %v8889_v20  ;;  %1193 = vmatpush1.bf16.msra.mxu1 %v8017_v55  ;;  %v8062_v55 = vld [vmem:[%s11499_s28 + $0x330] ss:$8 sps:$4 sm:$0xff]  }
 0x106   :  { %v213_v63 = vpop.f32.mrf.mxu0  ;;  %v359_v0 = vpop.f32.mrf.mxu1  ;;  %920 = vmatprep.subr.bf16.mxu0 %v8893_v21  ;;  %1194 = vmatprep.subr.bf16.mxu1 %v8022_v59  ;;  %v8068_v59 = vld [vmem:[%s11499_s28 + $0x320] ss:$8 sps:$4 sm:$0xff]  }
 0x107   :  { %v232_v2 = vpack.c.bf16 %v213_v63, %v209_v57  ;;  %v378_v12 = vpack.c.bf16 %v359_v0, %v355_v58  ;;  %v8070_v57 = vld [vmem:[%s11499_s28 + $0x324] ss:$8 sps:$4 sm:$0xff]   ;;  %v8065_v58 = vld [vmem:[%s11499_s28 + $0x2a0] ss:$8 sps:$4 sm:$0xff]   ;;  %v8074_v63 = vld [vmem:[%s11499_s28 + $0x310] ss:$8 sps:$4 sm:$0xff]  }
 0x108   :  { %v215_v5 = vpop.f32.mrf.mxu0  ;;  %v361_v6 = vpop.f32.mrf.mxu1  ;;  %v8079_v0 = vld [vmem:[%s11499_s28 + $0x284] ss:$8 sps:$4 sm:$0xff]  }
 0x109   :  { %v233_v7 = vpack.c.bf16 %v215_v5, %v211_v60  ;;  %v379_v10 = vpack.c.bf16 %v361_v6, %v357_v61  ;;  %921 = vmatpush1.bf16.msra.mxu0 %v8912_v27  ;;  %1195 = vmatpush1.bf16.msra.mxu1 %v8020_v62  ;;  %v8073_v60 = vld [vmem:[%s11499_s28 + $0x294] ss:$8 sps:$4 sm:$0xff]   ;;  %v8071_v62 = vld [vmem:[%s11499_s28 + $0x290] ss:$8 sps:$4 sm:$0xff]   ;;  %v8080_v5 = vld [vmem:[%s11499_s28 + $0x300] ss:$8 sps:$4 sm:$0xff]  }
 0x10a   :  { %v219_v13 = vpop.f32.mrf.mxu0  ;;  %v365_v16 = vpop.f32.mrf.mxu1  ;;  %922 = vmatprep.subr.bf16.mxu0 %v8919_v29  ;;  %1196 = vmatprep.subr.bf16.mxu1 %v8025_v1  ;;  %v8076_v61 = vld [vmem:[%s11499_s28 + $0x314] ss:$8 sps:$4 sm:$0xff]   ;;  %v8082_v1 = vld [vmem:[%s11499_s28 + $0x304] ss:$8 sps:$4 sm:$0xff]  }
 0x10b   :  { %627 = vmatprep.mubr.bf16.mxu0 %v379_v10  ;;  %860 = vmatprep.mubr.bf16.mxu1 %v233_v7  ;;  %v8085_v6 = vld [vmem:[%s11499_s28 + $0x3f4] ss:$8 sps:$4 sm:$0xff]   ;;  %v8083_v7 = vld [vmem:[%s11499_s28 + $0x3f0] ss:$8 sps:$4 sm:$0xff]   ;;  %v8088_v10 = vld [vmem:[%s11499_s28 + $0x3e4] ss:$8 sps:$4 sm:$0xff]  }
 0x10c   :  { %v221_v18 = vpop.f32.mrf.mxu0  ;;  %v367_v19 = vpop.f32.mrf.mxu1  ;;  %628 = vmatmul.mubr.bf16.gmra.mxu0 %v378_v12  ;;  %861 = vmatmul.mubr.bf16.gmra.mxu1 %v232_v2  ;;  %v8077_v2 = vld [vmem:[%s11499_s28 + $0x280] ss:$8 sps:$4 sm:$0xff]   ;;  %v8091_v12 = vld [vmem:[%s11499_s28 + $0x3d4] ss:$8 sps:$4 sm:$0xff]  }
 0x10d   :  { %923 = vmatpush1.bf16.msra.mxu0 %v8932_v33  ;;  %1197 = vmatpush1.bf16.msra.mxu1 %v8023_v11  ;;  %v8086_v11 = vld [vmem:[%s11499_s28 + $0x3e0] ss:$8 sps:$4 sm:$0xff]  }
 0x10e   :  { %v223_v23 = vpop.f32.mrf.mxu0  ;;  %v369_v24 = vpop.f32.mrf.mxu1  ;;  %924 = vmatprep.subr.bf16.mxu0 %v8939_v35  ;;  %1198 = vmatprep.subr.bf16.mxu1 %v8028_v17  ;;  %v8092_v17 = vld [vmem:[%s11499_s28 + $0x3c0] ss:$8 sps:$4 sm:$0xff]  }
 0x10f   :  { %v234_v25 = vpack.c.bf16 %v223_v23, %v219_v13  ;;  %v380_v32 = vpack.c.bf16 %v369_v24, %v365_v16  ;;  %v8089_v13 = vld [vmem:[%s11499_s28 + $0x3d0] ss:$8 sps:$4 sm:$0xff]   ;;  %v8094_v16 = vld [vmem:[%s11499_s28 + $0x3c4] ss:$8 sps:$4 sm:$0xff]   ;;  %v8098_v23 = vld [vmem:[%s11499_s28 + $0x3a0] ss:$8 sps:$4 sm:$0xff]  }
 0x110   :  { %v225_v26 = vpop.f32.mrf.mxu0  ;;  %v371_v28 = vpop.f32.mrf.mxu1  ;;  %v8103_v24 = vld [vmem:[%s11499_s28 + $0x394] ss:$8 sps:$4 sm:$0xff]  }
 0x111   :  { %v235_v30 = vpack.c.bf16 %v225_v26, %v221_v18  ;;  %v381_v31 = vpack.c.bf16 %v371_v28, %v367_v19  ;;  %925 = vmatpush1.bf16.msra.mxu0 %v8949_v38  ;;  %1199 = vmatpush1.bf16.msra.mxu1 %v8026_v22  ;;  %v8097_v18 = vld [vmem:[%s11499_s28 + $0x3b4] ss:$8 sps:$4 sm:$0xff]   ;;  %v8095_v19 = vld [vmem:[%s11499_s28 + $0x3b0] ss:$8 sps:$4 sm:$0xff]   ;;  %v8100_v22 = vld [vmem:[%s11499_s28 + $0x3a4] ss:$8 sps:$4 sm:$0xff]  }
 0x112   :  { %926 = vmatprep.subr.bf16.mxu0 %v8956_v40  ;;  %v8106_v26 = vld [vmem:[%s11499_s28 + $0x384] ss:$8 sps:$4 sm:$0xff]   ;;  %v8104_v28 = vld [vmem:[%s11499_s28 + $0x380] ss:$8 sps:$4 sm:$0xff]  }
 0x113   :  { %637 = vmatprep.mubr.bf16.mxu0 %v381_v31  ;;  %870 = vmatprep.mubr.bf16.mxu1 %v235_v30 }
 0x114   :  { %638 = vmatmul.mubr.bf16.gmra.mxu0 %v380_v32  ;;  %871 = vmatmul.mubr.bf16.gmra.mxu1 %v234_v25  ;;  %v8101_v25 = vld [vmem:[%s11499_s28 + $0x390] ss:$8 sps:$4 sm:$0xff]  }
 0x115   :  { %927 = vmatpush1.bf16.msra.mxu0 %v8969_v44  ;;  %946 = vmatprep.mubr.bf16.mxu0 %v8705_v3 }
 0x116   :  { %928 = vmatprep.subr.bf16.mxu0 %v8976_v46 }
 0x119   :  { %929 = vmatpush1.bf16.msra.mxu0 %v8983_v48 }
 0x11a   :  { %1310 = vmatprep.subr.bf16.mxu0 %v8838_v4  ;;  %v8005_v4 = vld [vmem:[%s11500_s4 + $0x50] sm:$0xff]  }
 0x11c   :  { %947 = vmatmul.mubr.bf16.vlgmr.msra.gmra.mxu0 %v8003_v34 }
 0x11d   :  { %1311 = vmatpush1.bf16.msra.mxu0 %v8849_v8  ;;  %956 = vmatprep.mubr.bf16.mxu0 %v8705_v3  ;;  %v8006_v8 = vld [vmem:[%s11500_s4 + $0x58] sm:$0xff]  }
 0x11e   :  { %1312 = vmatprep.subr.bf16.mxu0 %v8851_v9  ;;  %v8007_v9 = vld [vmem:[%s11500_s4 + $0x60] sm:$0xff]  }
 0x121   :  { %1313 = vmatpush1.bf16.msra.mxu0 %v8869_v14  ;;  %v8031_v14 = vld [vmem:[%s11499_s28 + $0x214] ss:$8 sps:$4 sm:$0xff]  }
 0x122   :  { %1314 = vmatprep.subr.bf16.mxu0 %v8873_v15  ;;  %v8029_v15 = vld [vmem:[%s11499_s28 + $0x210] ss:$8 sps:$4 sm:$0xff]   ;;  %1200 = vmatprep.subr.bf16.mxu1 %v8031_v14 }
 0x123   :  { %1201 = vmatpush1.bf16.msra.mxu1 %v8029_v15 }
 0x124   :  { %957 = vmatmul.mubr.bf16.gmra.mxu0 %v8004_v36 }
 0x125   :  { %1315 = vmatpush1.bf16.msra.mxu0 %v8889_v20  ;;  %966 = vmatprep.mubr.bf16.mxu0 %v8705_v3  ;;  %v8008_v20 = vld [vmem:[%s11500_s4 + $0x68] sm:$0xff]  }
 0x126   :  { %1316 = vmatprep.subr.bf16.mxu0 %v8893_v21  ;;  %v8034_v21 = vld [vmem:[%s11499_s28 + $0x204] ss:$8 sps:$4 sm:$0xff]  }
 0x127   :  { %1202 = vmatprep.subr.bf16.mxu1 %v8034_v21 }
 0x129   :  { %1317 = vmatpush1.bf16.msra.mxu0 %v8912_v27  ;;  %v8032_v27 = vld [vmem:[%s11499_s28 + $0x200] ss:$8 sps:$4 sm:$0xff]  }
 0x12a   :  { %1318 = vmatprep.subr.bf16.mxu0 %v8919_v29  ;;  %1203 = vmatpush1.bf16.msra.mxu1 %v8032_v27  ;;  %v8037_v29 = vld [vmem:[%s11499_s28 + $0x2f4] ss:$8 sps:$4 sm:$0xff]  }
 0x12b   :  { %1204 = vmatprep.subr.bf16.mxu1 %v8037_v29 }
 0x12c   :  { %967 = vmatmul.mubr.bf16.gmra.mxu0 %v8005_v4 }
 0x12d   :  { %1319 = vmatpush1.bf16.msra.mxu0 %v8932_v33  ;;  %976 = vmatprep.mubr.bf16.mxu0 %v8705_v3  ;;  %v8040_v33 = vld [vmem:[%s11499_s28 + $0x374] ss:$8 sps:$4 sm:$0xff]  }
 0x12e   :  { %1320 = vmatprep.subr.bf16.mxu0 %v8939_v35  ;;  %v8035_v35 = vld [vmem:[%s11499_s28 + $0x2f0] ss:$8 sps:$4 sm:$0xff]  }
 0x12f   :  { %1205 = vmatpush2.bf16.msra.mxu1 %v8035_v35 }
 0x131   :  { %1321 = vmatpush1.bf16.msra.mxu0 %v8949_v38  ;;  %v8038_v38 = vld [vmem:[%s11499_s28 + $0x370] ss:$8 sps:$4 sm:$0xff]  }
 0x132   :  { %1322 = vmatprep.subr.bf16.mxu0 %v8956_v40  ;;  %v8009_v40 = vld [vmem:[%s11500_s4 + $0x70] sm:$0xff]   ;;  %s11505_s4 = sld [smem:[#allocation9_spill]] }
 0x134   :  { %977 = vmatmul.mubr.bf16.gmra.mxu0 %v8006_v8 }
 0x135   :  { %1323 = vmatpush1.bf16.msra.mxu0 %v8969_v44  ;;  %1342 = vmatprep.mubr.bf16.mxu0 %v8705_v3  ;;  %v8043_v44 = vld [vmem:[%s11499_s28 + $0x2e4] ss:$8 sps:$4 sm:$0xff]  }
 0x136   :  { %1324 = vmatprep.subr.bf16.mxu0 %v8976_v46  ;;  %v8046_v46 = vld [vmem:[%s11499_s28 + $0x364] ss:$8 sps:$4 sm:$0xff]   ;;  %1206 = vmatprep.subr.bf16.mxu1 %v8043_v44 }
 0x139   :  { %1325 = vmatpush1.bf16.msra.mxu0 %v8983_v48  ;;  %v8041_v48 = vld [vmem:[%s11499_s28 + $0x2e0] ss:$8 sps:$4 sm:$0xff]  }
 0x13a   :  { %1584 = vmatprep.subr.bf16.mxu0 %v8040_v33  ;;  %1207 = vmatpush2.bf16.msra.mxu1 %v8041_v48 }
 0x13b   :  { %1208 = vmatprep.subr.bf16.mxu1 %v8049_v39 }
 0x13c   :  { %1343 = vmatmul.mubr.bf16.vlgmr.msra.gmra.mxu0 %v8007_v9 }
 0x13d   :  { %1352 = vmatprep.mubr.bf16.mxu0 %v8705_v3  ;;  %1585 = vmatpush1.bf16.msra.mxu0 %v8038_v38 }
 0x13e   :  { %1586 = vmatprep.subr.bf16.mxu0 %v8046_v46  ;;  %1209 = vmatpush2.bf16.msra.mxu1 %v8047_v42 }
 0x13f   :  { %1210 = vmatprep.subr.bf16.mxu1 %v8055_v47 }
 0x141   :  { %1587 = vmatpush1.bf16.msra.mxu0 %v8044_v37 }
 0x142   :  { %1588 = vmatprep.subr.bf16.mxu0 %v8052_v41  ;;  %1211 = vmatpush2.bf16.msra.mxu1 %v8053_v50 }
 0x143   :  { %1212 = vmatprep.subr.bf16.mxu1 %v8061_v52 }
 0x144   :  { %1353 = vmatmul.mubr.bf16.gmra.mxu0 %v8008_v20 }
 0x145   :  { %1362 = vmatprep.mubr.bf16.mxu0 %v8705_v3  ;;  %1589 = vmatpush1.bf16.msra.mxu0 %v8050_v43 }
 0x146   :  { %1590 = vmatprep.subr.bf16.mxu0 %v8058_v49  ;;  %1213 = vmatpush2.bf16.msra.mxu1 %v8059_v54 }
 0x147   :  { %1214 = vmatprep.subr.bf16.mxu1 %v8067_v56 }
 0x149   :  { %1591 = vmatpush1.bf16.msra.mxu0 %v8056_v51 }
 0x14a   :  { %1592 = vmatprep.subr.bf16.mxu0 %v8064_v53  ;;  %1215 = vmatpush2.bf16.msra.mxu1 %v8065_v58 }
 0x14b   :  { %1216 = vmatprep.subr.bf16.mxu1 %v8073_v60 }
 0x14c   :  { %1363 = vmatmul.mubr.bf16.gmra.mxu0 %v8009_v40 }
 0x14d   :  { %1372 = vmatprep.mubr.bf16.mxu0 %v8705_v3  ;;  %1593 = vmatpush1.bf16.msra.mxu0 %v8062_v55 }
 0x14e   :  { %1594 = vmatprep.subr.bf16.mxu0 %v8070_v57  ;;  %1217 = vmatpush2.bf16.msra.mxu1 %v8071_v62 }
 0x14f   :  { %1218 = vmatprep.subr.bf16.mxu1 %v8079_v0 }
 0x151   :  { %1595 = vmatpush1.bf16.msra.mxu0 %v8068_v59 }
 0x152   :  { %1596 = vmatprep.subr.bf16.mxu0 %v8076_v61  ;;  %1219 = vmatpush2.bf16.msra.mxu1 %v8077_v2 }
 0x154   :  { %1373 = vmatmul.mubr.bf16.gmra.mxu0 %v8010_v45 }
 0x155   :  { %1597 = vmatpush1.bf16.msra.mxu0 %v8074_v63 }
 0x156   :  { %1598 = vmatprep.subr.bf16.mxu0 %v8082_v1 }
 0x159   :  { %1599 = vmatpush1.bf16.msra.mxu0 %v8080_v5 }
 0x15a   :  { %1600 = vmatprep.subr.bf16.mxu0 %v8085_v6 }
 0x15d   :  { %1601 = vmatpush2.bf16.msra.mxu0 %v8083_v7 }
 0x15e   :  { %1602 = vmatprep.subr.bf16.mxu0 %v8088_v10 }
 0x161   :  { %1603 = vmatpush2.bf16.msra.mxu0 %v8086_v11 }
 0x162   :  { %1604 = vmatprep.subr.bf16.mxu0 %v8091_v12 }
 0x165   :  { %1605 = vmatpush2.bf16.msra.mxu0 %v8089_v13 }
 0x166   :  { %1606 = vmatprep.subr.bf16.mxu0 %v8094_v16 }
 0x169   :  { %1607 = vmatpush2.bf16.msra.mxu0 %v8092_v17 }
 0x16a   :  { %1608 = vmatprep.subr.bf16.mxu0 %v8097_v18 }
 0x16d   :  { %1609 = vmatpush2.bf16.msra.mxu0 %v8095_v19 }
 0x16e   :  { %1610 = vmatprep.subr.bf16.mxu0 %v8100_v22 }
 0x171   :  { %1611 = vmatpush2.bf16.msra.mxu0 %v8098_v23 }
 0x172   :  { %1612 = vmatprep.subr.bf16.mxu0 %v8103_v24 }
 0x175   :  { %1613 = vmatpush2.bf16.msra.mxu0 %v8101_v25 }
 0x176   :  { %1614 = vmatprep.subr.bf16.mxu0 %v8106_v26 }
 0x179   :  { %1615 = vmatpush2.bf16.msra.mxu0 %v8104_v28 }
 0x1bc   :  { %v609_v30 = vpop.f32.mrf.mxu0  ;;  %v842_v31 = vpop.f32.mrf.mxu1 }
 0x1bd   :  { %v9467_v32 = vadd.f32 %v842_v31, %v609_v30 }
 0x1be   :  { %v611_v34 = vpop.f32.mrf.mxu0  ;;  %v844_v36 = vpop.f32.mrf.mxu1 }
 0x1bf   :  { %v9469_v4 = vadd.f32 %v844_v36, %v611_v34 }
 0x1c0   :  { %v613_v8 = vpop.f32.mrf.mxu0  ;;  %v846_v9 = vpop.f32.mrf.mxu1 }
 0x1c1   :  { %v9471_v14 = vadd.f32 %v846_v9, %v613_v8 }
 0x1c2   :  { %v9473_v15 = vpop.f32.mrf.mxu0 }
 0x1c4   :  { %v9475_v20 = vpop.f32.mrf.mxu0 }
 0x1c6   :  { %v9477_v21 = vpop.f32.mrf.mxu0 }
 0x1c8   :  { %v9479_v27 = vpop.f32.mrf.mxu0 }
 0x1ca   :  { %v9481_v29 = vpop.f32.mrf.mxu0 }
 0x1cc   :  { %v9483_v33 = vpop.f32.mrf.mxu0 }
 0x1ce   :  { %v9485_v35 = vpop.f32.mrf.mxu0 }
 0x1d0   :  { %v9487_v38 = vpop.f32.mrf.mxu0 }
 0x1d2   :  { %v9489_v40 = vpop.f32.mrf.mxu0 }
 0x1d4   :  { %v9491_v44 = vpop.f32.mrf.mxu0 }
 0x1d6   :  { %v9493_v46 = vpop.f32.mrf.mxu0 }
 0x1d8   :  { %v9495_v48 = vpop.f32.mrf.mxu0 }
 0x1da   :  { %v9497_v37 = vpop.f32.mrf.mxu0 }
 0x1dc   :  { %v948_v39 = vpop.f32.mrf.mxu0 }
 0x1de   :  { %v950_v41 = vpop.f32.mrf.mxu0 }
 0x1e0   :  { %v952_v42 = vpop.f32.mrf.mxu0 }
 0x1e1   :  { %v987_v47 = vpack.c.bf16 %v952_v42, %v948_v39 }
 0x1e2   :  { %v954_v43 = vpop.f32.mrf.mxu0 }
 0x1e3   :  { %v988_v45 = vpack.c.bf16 %v954_v43, %v950_v41  ;;  %v9500_v41 = vpop.f32.mrf.mxu1 }
 0x1e4   :  { %v958_v49 = vpop.f32.mrf.mxu0 }
 0x1e5   :  { %1220 = vmatprep.mubr.bf16.mxu1 %v988_v45  ;;  %v852_v42 = vpop.f32.mrf.mxu1 }
 0x1e6   :  { %v960_v50 = vpop.f32.mrf.mxu0  ;;  %1221 = vmatmul.mubr.bf16.vlgmr.msra.gmra.mxu1 %v987_v47 }
 0x1e7   :  { %v9502_v43 = vpop.f32.mrf.mxu1 }
 0x1e8   :  { %v962_v51 = vpop.f32.mrf.mxu0 }
 0x1e9   :  { %v989_v54 = vpack.c.bf16 %v962_v51, %v958_v49  ;;  %v856_v45 = vpop.f32.mrf.mxu1 }
 0x1ea   :  { %v964_v52 = vpop.f32.mrf.mxu0 }
 0x1eb   :  { %v990_v53 = vpack.c.bf16 %v964_v52, %v960_v50  ;;  %v9504_v47 = vpop.f32.mrf.mxu1 }
 0x1ec   :  { %v968_v55 = vpop.f32.mrf.mxu0 }
 0x1ed   :  { %1230 = vmatprep.mubr.bf16.mxu1 %v990_v53  ;;  %v862_v49 = vpop.f32.mrf.mxu1 }
 0x1ee   :  { %v970_v56 = vpop.f32.mrf.mxu0  ;;  %1231 = vmatmul.mubr.bf16.gmra.mxu1 %v989_v54 }
 0x1ef   :  { %v9506_v50 = vpop.f32.mrf.mxu1 }
 0x1f0   :  { %v972_v57 = vpop.f32.mrf.mxu0 }
 0x1f1   :  { %v991_v60 = vpack.c.bf16 %v972_v57, %v968_v55  ;;  %v9508_v51 = vpop.f32.mrf.mxu1 }
 0x1f2   :  { %v974_v58 = vpop.f32.mrf.mxu0 }
 0x1f3   :  { %v992_v59 = vpack.c.bf16 %v974_v58, %v970_v56  ;;  %v9510_v52 = vpop.f32.mrf.mxu1 }
 0x1f4   :  { %v978_v61 = vpop.f32.mrf.mxu0 }
 0x1f5   :  { %1240 = vmatprep.mubr.bf16.mxu1 %v992_v59  ;;  %v9512_v53 = vpop.f32.mrf.mxu1 }
 0x1f6   :  { %v980_v62 = vpop.f32.mrf.mxu0  ;;  %1241 = vmatmul.mubr.bf16.gmra.mxu1 %v991_v60 }
 0x1f7   :  { %v9514_v54 = vpop.f32.mrf.mxu1 }
 0x1f8   :  { %v982_v63 = vpop.f32.mrf.mxu0 }
 0x1f9   :  { %v993_v2 = vpack.c.bf16 %v982_v63, %v978_v61  ;;  %v9516_v55 = vpop.f32.mrf.mxu1 }
 0x1fa   :  { %v984_v0 = vpop.f32.mrf.mxu0 }
 0x1fb   :  { %v994_v1 = vpack.c.bf16 %v984_v0, %v980_v62  ;;  %v9518_v56 = vpop.f32.mrf.mxu1 }
 0x1fc   :  { %v1344_v5 = vpop.f32.mrf.mxu0 }
 0x1fd   :  { %1250 = vmatprep.mubr.bf16.mxu1 %v994_v1 }
 0x1fe   :  { %1251 = vmatmul.mubr.bf16.gmra.mxu1 %v993_v2  ;;  %v1346_v6 = vpop.f32.mrf.mxu0 }
 0x1ff   :  { %1782 = vmatprep.mubr.bf16.mxu1 %v8705_v3 }
 0x200   :  { %v1348_v7 = vpop.f32.mrf.mxu0 }
 0x201   :  { %v1383_v12 = vpack.c.bf16 %v1348_v7, %v1344_v5 }
 0x202   :  { %v1350_v10 = vpop.f32.mrf.mxu0 }
 0x203   :  { %v1384_v11 = vpack.c.bf16 %v1350_v10, %v1346_v6 }
 0x204   :  { %v1354_v13 = vpop.f32.mrf.mxu0 }
 0x205   :  { %1616 = vmatprep.mubr.bf16.mxu0 %v1384_v11 }
 0x206   :  { %v1356_v16 = vpop.f32.mrf.mxu0  ;;  %1617 = vmatmul.mubr.bf16.vlgmr.msra.gmra.mxu0 %v1383_v12 }
 0x208   :  { %v1358_v17 = vpop.f32.mrf.mxu0 }
 0x209   :  { %v1385_v22 = vpack.c.bf16 %v1358_v17, %v1354_v13  ;;  %v8159_v13 = vld [vmem:[%s11501_s2 + $0x70] ss:$8 sps:$4 sm:$0xff]   ;;  %v853_v17 = vadd.f32 %v852_v42, %v9475_v20 }
 0x20a   :  { %v1360_v18 = vpop.f32.mrf.mxu0  ;;  %v8165_v42 = vld [vmem:[%s11501_s2 + $0x50] ss:$8 sps:$4 sm:$0xff]  }
 0x20b   :  { %v1386_v19 = vpack.c.bf16 %v1360_v18, %v1356_v16  ;;  %v8161_v16 = vld [vmem:[%s11501_s2 + $0x74] ss:$8 sps:$4 sm:$0xff]  }
 0x20c   :  { %v1364_v23 = vpop.f32.mrf.mxu0  ;;  %2323 = vmatprep.subr.bf16.mxu0 %v8161_v16 }
 0x20d   :  { %1626 = vmatprep.mubr.bf16.mxu0 %v1386_v19  ;;  %v8164_v19 = vld [vmem:[%s11501_s2 + $0x64] ss:$8 sps:$4 sm:$0xff]   ;;  %2324 = vmatpush1.bf16.msra.mxu0 %v8159_v13 }
 0x20e   :  { %v1366_v24 = vpop.f32.mrf.mxu0  ;;  %1627 = vmatmul.mubr.bf16.gmra.mxu0 %v1385_v22  ;;  %2325 = vmatprep.subr.bf16.mxu0 %v8164_v19 }
 0x210   :  { %v1368_v25 = vpop.f32.mrf.mxu0 }
 0x211   :  { %v1387_v30 = vpack.c.bf16 %v1368_v25, %v1364_v23  ;;  %v8162_v25 = vld [vmem:[%s11501_s2 + $0x60] ss:$8 sps:$4 sm:$0xff]  }
 0x212   :  { %v1370_v26 = vpop.f32.mrf.mxu0  ;;  %2326 = vmatpush1.bf16.msra.mxu0 %v8162_v25  ;;  %v8176_v25 = vld [vmem:[%s11501_s2 + $0x24] ss:$8 sps:$4 sm:$0xff]  }
 0x213   :  { %v1388_v28 = vpack.c.bf16 %v1370_v26, %v1366_v24  ;;  %v8167_v26 = vld [vmem:[%s11501_s2 + $0x54] ss:$8 sps:$4 sm:$0xff]  }
 0x214   :  { %v1374_v31 = vpop.f32.mrf.mxu0  ;;  %2327 = vmatprep.subr.bf16.mxu0 %v8167_v26  ;;  %v869_v26 = vadd.f32 %v9510_v52, %v9489_v40  ;;  %v877_v40 = vadd.f32 %v9516_v55, %v9495_v48 }
 0x215   :  { %1636 = vmatprep.mubr.bf16.mxu0 %v1388_v28  ;;  %v857_v28 = vadd.f32 %v856_v45, %v9479_v27  ;;  %v8170_v27 = vld [vmem:[%s11501_s2 + $0x44] ss:$8 sps:$4 sm:$0xff]   ;;  %v863_v45 = vadd.f32 %v862_v49, %v9483_v33  ;;  %v8173_v33 = vld [vmem:[%s11501_s2 + $0x34] ss:$8 sps:$4 sm:$0xff]   ;;  %v867_v49 = vadd.f32 %v9508_v51, %v9487_v38  ;;  %v873_v38 = vadd.f32 %v9512_v53, %v9491_v44 }
 0x216   :  { %v1376_v34 = vpop.f32.mrf.mxu0  ;;  %1637 = vmatmul.mubr.bf16.gmra.mxu0 %v1387_v30  ;;  %v865_v44 = vadd.f32 %v9506_v50, %v9485_v35 }
 0x217   :  { %2328 = vmatpush1.bf16.msra.mxu0 %v8165_v42 }
 0x218   :  { %v1378_v36 = vpop.f32.mrf.mxu0  ;;  %2329 = vmatprep.subr.bf16.mxu0 %v8170_v27 }
 0x219   :  { %v1389_v39 = vpack.c.bf16 %v1378_v36, %v1374_v31 }
 0x21a   :  { %v1380_v8 = vpop.f32.mrf.mxu0 }
 0x21b   :  { %v1390_v9 = vpack.c.bf16 %v1380_v8, %v1376_v34 }
 0x21d   :  { %1646 = vmatprep.mubr.bf16.mxu0 %v1390_v9 }
 0x21e   :  { %1647 = vmatmul.mubr.bf16.gmra.mxu0 %v1389_v39 }
 0x2a6   :  { %v1222_v57 = vpop.f32.mrf.mxu1 }
 0x2a7   :  { %v1261_v2 = vadd.f32 %v1222_v57, %v9467_v32 }
 0x2a8   :  { %v9520_v58 = vpop.f32.mrf.mxu1 }
 0x2aa   :  { %v1226_v59 = vpop.f32.mrf.mxu1 }
 0x2ab   :  { %v1263_v11 = vadd.f32 %v1226_v59, %v9471_v14 }
 0x2ac   :  { %v9522_v60 = vpop.f32.mrf.mxu1 }
 0x2ae   :  { %v1232_v61 = vpop.f32.mrf.mxu1 }
 0x2af   :  { %v1265_v23 = vadd.f32 %v1232_v61, %v853_v17 }
 0x2b0   :  { %v9524_v62 = vpop.f32.mrf.mxu1 }
 0x2b2   :  { %v1236_v63 = vpop.f32.mrf.mxu1 }
 0x2b3   :  { %v1267_v39 = vadd.f32 %v1236_v63, %v857_v28 }
 0x2b4   :  { %v9526_v0 = vpop.f32.mrf.mxu1 }
 0x2b6   :  { %v1242_v1 = vpop.f32.mrf.mxu1 }
 0x2b7   :  { %v1269_v63 = vadd.f32 %v1242_v1, %v863_v45  ;;  %v859_v45 = vadd.f32 %v9504_v47, %v9481_v29  ;;  %v8177_v29 = vld [vmem:[%s11501_s2 + $0x10] ss:$8 sps:$4 sm:$0xff]   ;;  %v855_v47 = vadd.f32 %v9502_v43, %v9477_v21  ;;  %v8180_v43 = vld [vmem:[%s11501_s2] ss:$8 sps:$4 sm:$0xff]  }
 0x2b8   :  { %v9529_v7 = vpop.f32.mrf.mxu1 }
 0x2ba   :  { %v1246_v22 = vpop.f32.mrf.mxu1 }
 0x2bb   :  { %v1271_v19 = vadd.f32 %v1246_v22, %v867_v49 }
 0x2bc   :  { %v1248_v36 = vpop.f32.mrf.mxu1 }
 0x2bd   :  { %v1272_v52 = vadd.f32 %v1248_v36, %v869_v26  ;;  %v849_v36 = vadd.f32 %v9500_v41, %v9473_v15  ;;  %v8182_v15 = vld [vmem:[%s11501_s2 + $0x4] ss:$8 sps:$4 sm:$0xff]   ;;  %v8183_v26 = vld [vmem:[%s11501_s2 + $0xf0] ss:$8 sps:$4 sm:$0xff]  }
 0x2c6   :  { %v1618_v5 = vpop.f32.mrf.mxu0 }
 0x2c7   :  { %v1657_v6 = vadd.f32 %v1618_v5, %v1261_v2  ;;  %v1252_v2 = vpop.f32.mrf.mxu1 }
 0x2c8   :  { %v9531_v10 = vpop.f32.mrf.mxu0 }
 0x2c9   :  { %v1689_v32 = vmul.f32 0.2, %v1657_v6  ;;  %vm1673_vm0 = vcmp.ge.f32.partialorder %v1657_v6, 0.0  ;;  %v1254_v1 = vpop.f32.mrf.mxu1 }
 0x2ca   :  { %v1622_v12 = vpop.f32.mrf.mxu0 }
 0x2cb   :  { %v1659_v18 = vadd.f32 %v1622_v12, %v1263_v11  ;;  %v1705_v30 = vsel %vm1673_vm0, %v1657_v6, %v1689_v32  ;;  %v8168_v11 = vld [vmem:[%s11501_s2 + $0x40] ss:$8 sps:$4 sm:$0xff]   ;;  %v1256_v22 = vpop.f32.mrf.mxu1  ;;  %vm1743_vm0 = vcmask 523264  }
 0x2cc   :  { %v9544_v14 = vpop.f32.mrf.mxu0  ;;  %2330 = vmatpush1.bf16.msra.mxu0 %v8168_v11 }
 0x2cd   :  { %vm1675_vm1 = vcmp.ge.f32.partialorder %v1659_v18, 0.0  ;;  %v1691_v24 = vmul.f32 0.2, %v1659_v18  ;;  %2331 = vmatprep.subr.bf16.mxu0 %v8173_v33  ;;  %v1258_v35 = vpop.f32.mrf.mxu1  ;;  %v1266_v33 = vadd.f32 %v9524_v62, %v855_v47  ;;  %v8185_v62 = vld [vmem:[%s11501_s2 + $0xf4] ss:$8 sps:$4 sm:$0xff]  }
 0x2ce   :  { %v1628_v20 = vpop.f32.mrf.mxu0  ;;  %v8113_v47 = vld [vmem:[%s11501_s2 + $0x160] ss:$8 sps:$4 sm:$0xff]  }
 0x2cf   :  { %v1707_v31 = vsel %vm1675_vm1, %v1659_v18, %v1691_v24  ;;  %v1661_v34 = vadd.f32 %v1628_v20, %v1265_v23  ;;  %v8171_v23 = vld [vmem:[%s11501_s2 + $0x30] ss:$8 sps:$4 sm:$0xff]   ;;  %vm3272_vm1 = vcmask 130048  }
 0x2d0   :  { %v9553_v8 = vpack.c.bf16 %v1707_v31, %v1705_v30  ;;  %v9555_v9 = vpop.f32.mrf.mxu0  ;;  %v875_v30 = vadd.f32 %v9514_v54, %v9493_v46  ;;  %v1273_v31 = vadd.f32 %v1252_v2, %v873_v38  ;;  %2332 = vmatpush1.bf16.msra.mxu0 %v8171_v23  ;;  %v8179_v46 = vld [vmem:[%s11501_s2 + $0x14] ss:$8 sps:$4 sm:$0xff]   ;;  %v1275_v2 = vadd.f32 %v1256_v22, %v877_v40 }
 0x2d1   :  { %v1693_v59 = vmul.f32 0.2, %v1661_v34  ;;  %vm1677_vm2 = vcmp.ge.f32.partialorder %v1661_v34, 0.0  ;;  %2333 = vmatprep.subr.bf16.mxu0 %v8176_v25  ;;  %v1262_v23 = vadd.f32 %v9520_v58, %v9469_v4  ;;  %v8188_v4 = vld [vmem:[%s11501_s2 + $0xe4] ss:$8 sps:$4 sm:$0xff]  }
 0x2d2   :  { %v1632_v57 = vpop.f32.mrf.mxu0  ;;  %v1274_v54 = vadd.f32 %v1254_v1, %v875_v30 }
 0x2d3   :  { %v1663_v61 = vadd.f32 %v1632_v57, %v1267_v39  ;;  %v1709_v13 = vsel %vm1677_vm2, %v1661_v34, %v1693_v59  ;;  %v8174_v39 = vld [vmem:[%s11501_s2 + $0x20] ss:$8 sps:$4 sm:$0xff]   ;;  %v1270_v59 = vadd.f32 %v9529_v7, %v865_v44  ;;  %v1268_v7 = vadd.f32 %v9526_v0, %v859_v45  ;;  %v8197_v45 = vld [vmem:[%s11501_s2 + $0xb4] ss:$8 sps:$4 sm:$0xff]  }
 0x2d4   :  { %v9564_v5 = vpop.f32.mrf.mxu0  ;;  %2334 = vmatpush1.bf16.msra.mxu0 %v8174_v39  ;;  %v1658_v58 = vadd.f32 %v9531_v10, %v1262_v23  ;;  %v8186_v39 = vld [vmem:[%s11501_s2 + $0xe0] ss:$8 sps:$4 sm:$0xff]   ;;  %v8191_v10 = vld [vmem:[%s11501_s2 + $0xd4] ss:$8 sps:$4 sm:$0xff]   ;;  %v8147_v23 = vld [vmem:[%s11501_s2 + $0x1b0] ss:$8 sps:$4 sm:$0xff]  }
 0x2d5   :  { %vm1679_vm3 = vcmp.ge.f32.partialorder %v1663_v61, 0.0  ;;  %v1695_v6 = vmul.f32 0.2, %v1663_v61  ;;  %2335 = vmatprep.subr.bf16.mxu0 %v8179_v46  ;;  %v1664_v49 = vadd.f32 %v9564_v5, %v1268_v7  ;;  %v8189_v46 = vld [vmem:[%s11501_s2 + $0xd0] ss:$8 sps:$4 sm:$0xff]  }
 0x2d6   :  { %v1638_v12 = vpop.f32.mrf.mxu0  ;;  %v1690_v44 = vmul.f32 0.2, %v1658_v58  ;;  %vm1674_vm15 = vcmp.ge.f32.partialorder %v1658_v58, 0.0  ;;  %v8119_v7 = vld [vmem:[%s11501_s2 + $0x154] ss:$8 sps:$4 sm:$0xff]  }
 0x2d7   :  { %v1711_v16 = vsel %vm1679_vm3, %v1663_v61, %v1695_v6  ;;  %v1665_v17 = vadd.f32 %v1638_v12, %v1269_v63  ;;  %v879_v61 = vadd.f32 %v9518_v56, %v9497_v37  ;;  %v1264_v37 = vadd.f32 %v9522_v60, %v849_v36  ;;  %v8108_v36 = vld [vmem:[%s11502_s30 + $0x8] sm:$0xff]  }
 0x2d8   :  { %v9574_v32 = vpack.c.bf16 %v1711_v16, %v1709_v13  ;;  %v1640_v18 = vpop.f32.mrf.mxu0  ;;  %2336 = vmatpush1.bf16.msra.mxu0 %v8177_v29  ;;  %v1662_v60 = vadd.f32 %v9555_v9, %v1266_v33  ;;  %v1696_v9 = vmul.f32 0.2, %v1664_v49  ;;  %vm1680_vm12 = vcmp.ge.f32.partialorder %v1664_v49, 0.0  ;;  %v8115_v29 = vld [vmem:[%s11501_s2 + $0x164] ss:$8 sps:$4 sm:$0xff]  }
 0x2d9   :  { %v1697_v51 = vmul.f32 0.2, %v1665_v17  ;;  %vm1681_vm4 = vcmp.ge.f32.partialorder %v1665_v17, 0.0  ;;  %v1666_v6 = vadd.f32 %v1640_v18, %v1270_v59  ;;  %v1276_v41 = vadd.f32 %v1258_v35, %v879_v61  ;;  %2337 = vmatprep.subr.bf16.mxu0 %v8182_v15  ;;  %v8107_v59 = vld [vmem:[%s11502_s30] sm:$0xff]   ;;  %v8195_v35 = vld [vmem:[%s11501_s2 + $0xb0] ss:$8 sps:$4 sm:$0xff]  }
 0x2da   :  { %v1642_v24 = vpop.f32.mrf.mxu0  ;;  %vm1678_vm13 = vcmp.ge.f32.partialorder %v1662_v60, 0.0  ;;  %v8112_v61 = vld [vmem:[%s11501_s2 + $0x174] ss:$8 sps:$4 sm:$0xff]   ;;  %v8122_v15 = vld [vmem:[%s11501_s2 + $0x144] ss:$8 sps:$4 sm:$0xff]  }
 0x2db   :  { %v1667_v20 = vadd.f32 %v1642_v24, %v1271_v19  ;;  %v1713_v42 = vsel %vm1681_vm4, %v1665_v17, %v1697_v51  ;;  %v1698_v1 = vmul.f32 0.2, %v1666_v6  ;;  %v1660_v24 = vadd.f32 %v9544_v14, %v1264_v37  ;;  %v8120_v37 = vld [vmem:[%s11501_s2 + $0x140] ss:$8 sps:$4 sm:$0xff]  }
 0x2dc   :  { %v1644_v28 = vpop.f32.mrf.mxu0  ;;  %vm1682_vm11 = vcmp.ge.f32.partialorder %v1666_v6, 0.0  ;;  %2338 = vmatpush1.bf16.msra.mxu0 %v8180_v43  ;;  %v1694_v14 = vmul.f32 0.2, %v1662_v60  ;;  %v8126_v33 = vld [vmem:[%s11501_s2 + $0x120] ss:$8 sps:$4 sm:$0xff]  }
 0x2dd   :  { %vm1683_vm5 = vcmp.ge.f32.partialorder %v1667_v20, 0.0  ;;  %v1699_v34 = vmul.f32 0.2, %v1667_v20  ;;  %v1668_v48 = vadd.f32 %v1644_v28, %v1272_v52  ;;  %2339 = vmatprep.subr.bf16.mxu0 %v8185_v62  ;;  %v1714_v28 = vsel %vm1682_vm11, %v1666_v6, %v1698_v1  ;;  %v8116_v6 = vld [vmem:[%s11502_s30 + $0x18] sm:$0xff]   ;;  %v8132_v43 = vld [vmem:[%s11501_s2 + $0x100] ss:$8 sps:$4 sm:$0xff]  }
 0x2de   :  { %v1648_v53 = vpop.f32.mrf.mxu0  ;;  %vm1676_vm14 = vcmp.ge.f32.partialorder %v1660_v24, 0.0  ;;  %v1710_v40 = vsel %vm1678_vm13, %v1662_v60, %v1694_v14  ;;  %v8138_v60 = vld [vmem:[%s11501_s2 + $0x1e0] ss:$8 sps:$4 sm:$0xff]   ;;  %v8143_v1 = vld [vmem:[%s11501_s2 + $0x1d4] ss:$8 sps:$4 sm:$0xff]  }
 0x2df   :  { %v1715_v57 = vsel %vm1683_vm5, %v1667_v20, %v1699_v34  ;;  %v1669_v27 = vadd.f32 %v1648_v53, %v1273_v31  ;;  %v1700_v13 = vmul.f32 0.2, %v1668_v48  ;;  %vm1684_vm8 = vcmp.ge.f32.partialorder %v1668_v48, 0.0  ;;  %v8141_v62 = vld [vmem:[%s11501_s2 + $0x1d0] ss:$8 sps:$4 sm:$0xff]  }
 0x2e0   :  { %v9601_v50 = vpack.c.bf16 %v1715_v57, %v1713_v42  ;;  %v1650_v55 = vpop.f32.mrf.mxu0  ;;  %v1692_v31 = vmul.f32 0.2, %v1660_v24  ;;  %v1712_v34 = vsel %vm1680_vm12, %v1664_v49, %v1696_v9  ;;  %2340 = vmatpush2.bf16.msra.mxu0 %v8183_v26  ;;  %v1706_v42 = vsel %vm1674_vm15, %v1658_v58, %v1690_v44  ;;  %v8131_v49 = vld [vmem:[%s11501_s2 + $0x114] ss:$8 sps:$4 sm:$0xff]   ;;  %v8206_v26 = vld [vmem:[%s11501_s2 + $0x84] ss:$8 sps:$4 sm:$0xff]  }
 0x2e1   :  { %v1670_v63 = vadd.f32 %v1650_v55, %v1274_v54  ;;  %v1701_v56 = vmul.f32 0.2, %v1669_v27  ;;  %vm1685_vm6 = vcmp.ge.f32.partialorder %v1669_v27, 0.0  ;;  %v1716_v38 = vsel %vm1684_vm8, %v1668_v48, %v1700_v13  ;;  %2341 = vmatprep.subr.bf16.mxu0 %v8188_v4  ;;  %v8194_v54 = vld [vmem:[%s11501_s2 + $0xc4] ss:$8 sps:$4 sm:$0xff]  }
 0x2e2   :  { %v1652_v11 = vpop.f32.mrf.mxu0  ;;  %v9640_v30 = vpack.c.bf16 %v1716_v38, %v1714_v28  ;;  %v9651_v52 = vpack.c.bf16 %v1712_v34, %v1710_v40  ;;  %v1708_v53 = vsel %vm1676_vm14, %v1660_v24, %v1692_v31  ;;  %v8200_v48 = vld [vmem:[%s11501_s2 + $0xa4] ss:$8 sps:$4 sm:$0xff]   ;;  %v8198_v55 = vld [vmem:[%s11501_s2 + $0xa0] ss:$8 sps:$4 sm:$0xff]   ;;  %v8129_v13 = vld [vmem:[%s11501_s2 + $0x110] ss:$8 sps:$4 sm:$0xff]  }
 0x2e3   :  { %v1671_v12 = vadd.f32 %v1652_v11, %v1275_v2  ;;  %v1702_v0 = vmul.f32 0.2, %v1670_v63  ;;  %vm1686_vm9 = vcmp.ge.f32.partialorder %v1670_v63, 0.0  ;;  %v1717_v5 = vsel %vm1685_vm6, %v1669_v27, %v1701_v56  ;;  %v8192_v27 = vld [vmem:[%s11501_s2 + $0xc0] ss:$8 sps:$4 sm:$0xff]   ;;  %v8109_v2 = vld [vmem:[%s11502_s30 + $0x10] sm:$0xff]  }
 0x2e4   :  { %v1654_v21 = vpop.f32.mrf.mxu0  ;;  %2342 = vmatpush2.bf16.msra.mxu0 %v8186_v39  ;;  %v9661_v57 = vpack.c.bf16 %v1708_v53, %v1706_v42  ;;  %v8117_v11 = vld [vmem:[%s11501_s2 + $0x150] ss:$8 sps:$4 sm:$0xff]   ;;  %v8152_v24 = vld [vmem:[%s11501_s2 + $0x1a4] ss:$8 sps:$4 sm:$0xff]   ;;  %v8203_v9 = vld [vmem:[%s11501_s2 + $0x94] ss:$8 sps:$4 sm:$0xff]  }
 0x2e5   :  { %vm1687_vm7 = vcmp.ge.f32.partialorder %v1671_v12, 0.0  ;;  %v1703_v16 = vmul.f32 0.2, %v1671_v12  ;;  %v1672_v17 = vadd.f32 %v1654_v21, %v1276_v41  ;;  %v1718_v51 = vsel %vm1686_vm9, %v1670_v63, %v1702_v0  ;;  %2343 = vmatprep.subr.bf16.mxu0 %v8191_v10  ;;  %v8110_v63 = vld [vmem:[%s11501_s2 + $0x170] ss:$8 sps:$4 sm:$0xff]  }
 0x2e6   :  { %v8125_v41 = vld [vmem:[%s11501_s2 + $0x134] ss:$8 sps:$4 sm:$0xff]   ;;  %v8123_v56 = vld [vmem:[%s11501_s2 + $0x130] ss:$8 sps:$4 sm:$0xff]   ;;  %v8134_v21 = vld [vmem:[%s11501_s2 + $0x104] ss:$8 sps:$4 sm:$0xff]  }
 0x2e7   :  { %v1719_v18 = vsel %vm1687_vm7, %v1671_v12, %v1703_v16  ;;  %vm1688_vm10 = vcmp.ge.f32.partialorder %v1672_v17, 0.0  ;;  %v1704_v19 = vmul.f32 0.2, %v1672_v17  ;;  %v8128_v12 = vld [vmem:[%s11501_s2 + $0x124] ss:$8 sps:$4 sm:$0xff]  }
 0x2e8   :  { %v9629_v25 = vpack.c.bf16 %v1719_v18, %v1717_v5  ;;  %2344 = vmatpush2.bf16.msra.mxu0 %v8189_v46  ;;  %v8137_v0 = vld [vmem:[%s11501_s2 + $0x1f4] ss:$8 sps:$4 sm:$0xff]   ;;  %v8135_v16 = vld [vmem:[%s11501_s2 + $0x1f0] ss:$8 sps:$4 sm:$0xff]   ;;  %v8146_v5 = vld [vmem:[%s11501_s2 + $0x1c4] ss:$8 sps:$4 sm:$0xff]  }
 0x2e9   :  { %v1720_v20 = vsel %vm1688_vm10, %v1672_v17, %v1704_v19  ;;  %2345 = vmatprep.subr.bf16.mxu0 %v8194_v54  ;;  %v8140_v17 = vld [vmem:[%s11501_s2 + $0x1e4] ss:$8 sps:$4 sm:$0xff]   ;;  %v8144_v18 = vld [vmem:[%s11501_s2 + $0x1c0] ss:$8 sps:$4 sm:$0xff]   ;;  %v8149_v19 = vld [vmem:[%s11501_s2 + $0x1b4] ss:$8 sps:$4 sm:$0xff]  }
 0x2ea   :  { %v9634_v22 = vpack.c.bf16 %v1720_v20, %v1718_v51  ;;  %v8150_v38 = vld [vmem:[%s11501_s2 + $0x1a0] ss:$8 sps:$4 sm:$0xff]   ;;  %v8201_v51 = vld [vmem:[%s11501_s2 + $0x90] ss:$8 sps:$4 sm:$0xff]   ;;  %v8155_v20 = vld [vmem:[%s11501_s2 + $0x194] ss:$8 sps:$4 sm:$0xff]  }
 0x2eb   :  { %v8153_v4 = vld [vmem:[%s11501_s2 + $0x190] ss:$8 sps:$4 sm:$0xff]   ;;  %v8204_v58 = vld [vmem:[%s11501_s2 + $0x80] ss:$8 sps:$4 sm:$0xff]   ;;  %v8158_v14 = vld [vmem:[%s11501_s2 + $0x184] ss:$8 sps:$4 sm:$0xff]  }
 0x2ec   :  { %1758 = vmatprep.subr.bf16.mxu1 %v9634_v22  ;;  %2346 = vmatpush2.bf16.msra.mxu0 %v8192_v27  ;;  %v8156_v28 = vld [vmem:[%s11501_s2 + $0x180] ss:$8 sps:$4 sm:$0xff]   ;;  %v8213_v31 = vld [vmem:[%s11501_s2 + $0x274] ss:$8 sps:$4 sm:$0xff]   ;;  %v8211_v53 = vld [vmem:[%s11501_s2 + $0x270] ss:$8 sps:$4 sm:$0xff]  }
 0x2ed   :  { %1759 = vmatpush1.bf16.msra.mxu1 %v9629_v25  ;;  %2347 = vmatprep.subr.bf16.mxu0 %v8197_v45  ;;  %v8216_v42 = vld [vmem:[%s11501_s2 + $0x264] ss:$8 sps:$4 sm:$0xff]   ;;  %v8214_v45 = vld [vmem:[%s11501_s2 + $0x260] ss:$8 sps:$4 sm:$0xff]   ;;  %vm3488_vm10 = vcmask 261120  }
 0x2ee   :  { %1760 = vmatprep.subr.bf16.mxu1 %v9640_v30 }
 0x2f0   :  { %2348 = vmatpush2.bf16.msra.mxu0 %v8195_v35  ;;  %v8219_v35 = vld [vmem:[%s11501_s2 + $0x254] ss:$8 sps:$4 sm:$0xff]  }
 0x2f1   :  { %1761 = vmatpush1.bf16.msra.mxu1 %v9601_v50  ;;  %2349 = vmatprep.subr.bf16.mxu0 %v8200_v48 }
 0x2f2   :  { %1762 = vmatprep.subr.bf16.mxu1 %v9651_v52 }
 0x2f4   :  { %2350 = vmatpush2.bf16.msra.mxu0 %v8198_v55 }
 0x2f5   :  { %1763 = vmatpush1.bf16.msra.mxu1 %v9574_v32  ;;  %2351 = vmatprep.subr.bf16.mxu0 %v8203_v9  ;;  %v8250_v9 = vld [vmem:[%s11501_s2 + $0x330] ss:$8 sps:$4 sm:$0xff]  }
 0x2f6   :  { %1764 = vmatprep.subr.bf16.mxu1 %v9661_v57 }
 0x2f8   :  { %2352 = vmatpush2.bf16.msra.mxu0 %v8201_v51  ;;  %v8253_v51 = vld [vmem:[%s11501_s2 + $0x2e0] ss:$8 sps:$4 sm:$0xff]  }
 0x2f9   :  { %1765 = vmatpush1.bf16.msra.mxu1 %v9553_v8  ;;  %2353 = vmatprep.subr.bf16.mxu0 %v8206_v26  ;;  %v8256_v26 = vld [vmem:[%s11501_s2 + $0x320] ss:$8 sps:$4 sm:$0xff]  }
 0x2fa   :  { %1868 = vmatprep.subr.bf16.mxu1 %v9634_v22 }
 0x2fc   :  { %6960 = vmatmul.mubr.msk.bf16.vlgmr.msra.gmra.mxu1 %vm1743_vm0, %v8107_v59  ;;  %2354 = vmatpush2.bf16.msra.mxu0 %v8204_v58  ;;  %v8261_v58 = vld [vmem:[%s11501_s2 + $0x2d4] ss:$8 sps:$4 sm:$0xff]  }
 0x2fd   :  { %1869 = vmatpush1.bf16.msra.mxu1 %v9629_v25  ;;  %1792 = vmatprep.mubr.bf16.mxu1 %v8705_v3 }
 0x2fe   :  { %1870 = vmatprep.subr.bf16.mxu1 %v9640_v30  ;;  %2647 = vmatprep.subr.bf16.mxu0 %v8213_v31  ;;  %v8262_v31 = vld [vmem:[%s11501_s2 + $0x310] ss:$8 sps:$4 sm:$0xff]  }
 0x301   :  { %1871 = vmatpush1.bf16.msra.mxu1 %v9601_v50 }
 0x302   :  { %1872 = vmatprep.subr.bf16.mxu1 %v9651_v52 }
 0x304   :  { %6961 = vmatmul.mubr.msk.bf16.gmra.mxu1 %vm1743_vm0, %v8108_v36  ;;  %v8217_v36 = vld [vmem:[%s11501_s2 + $0x250] ss:$8 sps:$4 sm:$0xff]  }
 0x305   :  { %1873 = vmatpush1.bf16.msra.mxu1 %v9574_v32  ;;  %1892 = vmatprep.mubr.bf16.mxu1 %v8705_v3 }
 0x306   :  { %1874 = vmatprep.subr.bf16.mxu1 %v9661_v57 }
 0x309   :  { %1875 = vmatpush1.bf16.msra.mxu1 %v9553_v8 }
 0x30a   :  { %2110 = vmatprep.subr.bf16.mxu1 %v8112_v61 }
 0x30c   :  { %6968 = vmatmul.mubr.msk.bf16.vlgmr.msra.gmra.mxu1 %vm1743_vm0, %v8109_v2 }
 0x30d   :  { %2111 = vmatpush1.bf16.msra.mxu1 %v8110_v63  ;;  %1902 = vmatprep.mubr.bf16.mxu1 %v8705_v3  ;;  %v8222_v63 = vld [vmem:[%s11501_s2 + $0x244] ss:$8 sps:$4 sm:$0xff]  }
 0x30e   :  { %2112 = vmatprep.subr.bf16.mxu1 %v8115_v29 }
 0x311   :  { %2113 = vmatpush1.bf16.msra.mxu1 %v8113_v47  ;;  %v8220_v47 = vld [vmem:[%s11501_s2 + $0x240] ss:$8 sps:$4 sm:$0xff]  }
 0x312   :  { %2114 = vmatprep.subr.bf16.mxu1 %v8119_v7 }
 0x314   :  { %6969 = vmatmul.mubr.msk.bf16.gmra.mxu1 %vm1743_vm0, %v8116_v6  ;;  %v8225_v6 = vld [vmem:[%s11501_s2 + $0x234] ss:$8 sps:$4 sm:$0xff]  }
 0x315   :  { %2115 = vmatpush1.bf16.msra.mxu1 %v8117_v11 }
 0x316   :  { %2116 = vmatprep.subr.bf16.mxu1 %v8122_v15 }
 0x319   :  { %2117 = vmatpush1.bf16.msra.mxu1 %v8120_v37  ;;  %v8223_v37 = vld [vmem:[%s11501_s2 + $0x230] ss:$8 sps:$4 sm:$0xff]  }
 0x31a   :  { %2118 = vmatprep.subr.bf16.mxu1 %v8125_v41 }
 0x31d   :  { %2119 = vmatpush1.bf16.msra.mxu1 %v8123_v56 }
 0x31e   :  { %2120 = vmatprep.subr.bf16.mxu1 %v8128_v12  ;;  %v8231_v12 = vld [vmem:[%s11501_s2 + $0x224] ss:$8 sps:$4 sm:$0xff]  }
 0x321   :  { %2121 = vmatpush1.bf16.msra.mxu1 %v8126_v33 }
 0x322   :  { %2122 = vmatprep.subr.bf16.mxu1 %v8131_v49  ;;  %v8229_v49 = vld [vmem:[%s11501_s2 + $0x220] ss:$8 sps:$4 sm:$0xff]  }
 0x325   :  { %2123 = vmatpush1.bf16.msra.mxu1 %v8129_v13 }
 0x326   :  { %2124 = vmatprep.subr.bf16.mxu1 %v8134_v21 }
 0x329   :  { %2125 = vmatpush1.bf16.msra.mxu1 %v8132_v43 }
 0x32a   :  { %2126 = vmatprep.subr.bf16.mxu1 %v8137_v0 }
 0x32d   :  { %2127 = vmatpush2.bf16.msra.mxu1 %v8135_v16  ;;  %v8207_v16 = vld [vmem:[%s11502_s30 + $0x20] sm:$0xff]  }
 0x32e   :  { %2128 = vmatprep.subr.bf16.mxu1 %v8140_v17  ;;  %v8208_v17 = vld [vmem:[%s11502_s30 + $0x28] sm:$0xff]  }
 0x331   :  { %2129 = vmatpush2.bf16.msra.mxu1 %v8138_v60  ;;  %v8238_v60 = vld [vmem:[%s11501_s2 + $0x350] ss:$8 sps:$4 sm:$0xff]  }
 0x332   :  { %2130 = vmatprep.subr.bf16.mxu1 %v8143_v1  ;;  %v8240_v1 = vld [vmem:[%s11501_s2 + $0x354] ss:$8 sps:$4 sm:$0xff]  }
 0x335   :  { %2131 = vmatpush2.bf16.msra.mxu1 %v8141_v62  ;;  %v8241_v62 = vld [vmem:[%s11501_s2 + $0x200] ss:$8 sps:$4 sm:$0xff]  }
 0x336   :  { %2132 = vmatprep.subr.bf16.mxu1 %v8146_v5  ;;  %v8243_v5 = vld [vmem:[%s11501_s2 + $0x204] ss:$8 sps:$4 sm:$0xff]  }
 0x339   :  { %2133 = vmatpush2.bf16.msra.mxu1 %v8144_v18  ;;  %v8244_v18 = vld [vmem:[%s11501_s2 + $0x340] ss:$8 sps:$4 sm:$0xff]  }
 0x33a   :  { %2134 = vmatprep.subr.bf16.mxu1 %v8149_v19  ;;  %v8246_v19 = vld [vmem:[%s11501_s2 + $0x344] ss:$8 sps:$4 sm:$0xff]  }
 0x33d   :  { %2135 = vmatpush2.bf16.msra.mxu1 %v8147_v23  ;;  %v8247_v23 = vld [vmem:[%s11501_s2 + $0x2f0] ss:$8 sps:$4 sm:$0xff]  }
 0x33e   :  { %2136 = vmatprep.subr.bf16.mxu1 %v8152_v24  ;;  %v8249_v24 = vld [vmem:[%s11501_s2 + $0x2f4] ss:$8 sps:$4 sm:$0xff]  }
 0x341   :  { %2137 = vmatpush2.bf16.msra.mxu1 %v8150_v38  ;;  %v8252_v38 = vld [vmem:[%s11501_s2 + $0x334] ss:$8 sps:$4 sm:$0xff]  }
 0x342   :  { %2138 = vmatprep.subr.bf16.mxu1 %v8155_v20  ;;  %v8255_v20 = vld [vmem:[%s11501_s2 + $0x2e4] ss:$8 sps:$4 sm:$0xff]  }
 0x345   :  { %2139 = vmatpush2.bf16.msra.mxu1 %v8153_v4  ;;  %v8258_v4 = vld [vmem:[%s11501_s2 + $0x324] ss:$8 sps:$4 sm:$0xff]  }
 0x346   :  { %2140 = vmatprep.subr.bf16.mxu1 %v8158_v14  ;;  %v8264_v14 = vld [vmem:[%s11501_s2 + $0x314] ss:$8 sps:$4 sm:$0xff]  }
 0x349   :  { %2141 = vmatpush2.bf16.msra.mxu1 %v8156_v28  ;;  %v8259_v28 = vld [vmem:[%s11501_s2 + $0x2d0] ss:$8 sps:$4 sm:$0xff]  }
 0x34a   :  { %2405 = vmatprep.subr.bf16.mxu1 %v9634_v22 }
 0x3bc   :  { %v1784_v34 = vpop.f32.mrf.mxu1 }
 0x3be   :  { %v1786_v39 = vpop.f32.mrf.mxu1 }
 0x3c0   :  { %v1788_v10 = vpop.f32.mrf.mxu1 }
 0x3c1   :  { %v1803_v46 = vpack.c.bf16 %v1788_v10, %v1784_v34  ;;  %v8267_v34 = vld [vmem:[%s11501_s2 + $0x2c4] ss:$8 sps:$4 sm:$0xff]   ;;  %v8265_v10 = vld [vmem:[%s11501_s2 + $0x2c0] ss:$8 sps:$4 sm:$0xff]  }
 0x3c2   :  { %v1790_v44 = vpop.f32.mrf.mxu1 }
 0x3c3   :  { %v1804_v40 = vpack.c.bf16 %v1790_v44, %v1786_v39  ;;  %v8270_v39 = vld [vmem:[%s11501_s2 + $0x304] ss:$8 sps:$4 sm:$0xff]   ;;  %v8268_v44 = vld [vmem:[%s11501_s2 + $0x300] ss:$8 sps:$4 sm:$0xff]  }
 0x3c4   :  { %v1794_v54 = vpop.f32.mrf.mxu1 }
 0x3c5   :  { %2355 = vmatprep.mubr.bf16.mxu0 %v1804_v40  ;;  %v8273_v40 = vld [vmem:[%s11501_s2 + $0x2b4] ss:$8 sps:$4 sm:$0xff]  }
 0x3c6   :  { %v1796_v27 = vpop.f32.mrf.mxu1  ;;  %2356 = vmatmul.mubr.bf16.vlgmr.msra.gmra.mxu0 %v1803_v46  ;;  %v8271_v46 = vld [vmem:[%s11501_s2 + $0x2b0] ss:$8 sps:$4 sm:$0xff]  }
 0x3c7   :  { %2648 = vmatpush1.bf16.msra.mxu0 %v8211_v53  ;;  %v8276_v53 = vld [vmem:[%s11501_s2 + $0x3f4] ss:$8 sps:$4 sm:$0xff]  }
 0x3c8   :  { %v1798_v59 = vpop.f32.mrf.mxu1  ;;  %2649 = vmatprep.subr.bf16.mxu0 %v8216_v42  ;;  %v8279_v42 = vld [vmem:[%s11501_s2 + $0x2a4] ss:$8 sps:$4 sm:$0xff]  }
 0x3c9   :  { %v1805_v61 = vpack.c.bf16 %v1798_v59, %v1794_v54  ;;  %v8274_v54 = vld [vmem:[%s11501_s2 + $0x3f0] ss:$8 sps:$4 sm:$0xff]   ;;  %v8280_v59 = vld [vmem:[%s11501_s2 + $0x3e0] ss:$8 sps:$4 sm:$0xff]  }
 0x3ca   :  { %v1800_v48 = vpop.f32.mrf.mxu1 }
 0x3cb   :  { %v1806_v55 = vpack.c.bf16 %v1800_v48, %v1796_v27  ;;  %2650 = vmatpush1.bf16.msra.mxu0 %v8214_v45  ;;  %v8282_v27 = vld [vmem:[%s11501_s2 + $0x3e4] ss:$8 sps:$4 sm:$0xff]   ;;  %v8277_v45 = vld [vmem:[%s11501_s2 + $0x2a0] ss:$8 sps:$4 sm:$0xff]   ;;  %v8288_v48 = vld [vmem:[%s11501_s2 + $0x3d4] ss:$8 sps:$4 sm:$0xff]  }
 0x3cc   :  { %v1894_v2 = vpop.f32.mrf.mxu1  ;;  %2651 = vmatprep.subr.bf16.mxu0 %v8219_v35  ;;  %v8285_v35 = vld [vmem:[%s11501_s2 + $0x294] ss:$8 sps:$4 sm:$0xff]  }
 0x3cd   :  { %2365 = vmatprep.mubr.bf16.mxu0 %v1806_v55  ;;  %v8283_v55 = vld [vmem:[%s11501_s2 + $0x290] ss:$8 sps:$4 sm:$0xff]  }
 0x3ce   :  { %v1896_v29 = vpop.f32.mrf.mxu1  ;;  %2366 = vmatmul.mubr.bf16.gmra.mxu0 %v1805_v61  ;;  %v8291_v61 = vld [vmem:[%s11501_s2 + $0x284] ss:$8 sps:$4 sm:$0xff]  }
 0x3cf   :  { %2652 = vmatpush1.bf16.msra.mxu0 %v8217_v36  ;;  %v8286_v36 = vld [vmem:[%s11501_s2 + $0x3d0] ss:$8 sps:$4 sm:$0xff]  }
 0x3d0   :  { %v1898_v7 = vpop.f32.mrf.mxu1  ;;  %2653 = vmatprep.subr.bf16.mxu0 %v8222_v63  ;;  %v8289_v63 = vld [vmem:[%s11501_s2 + $0x280] ss:$8 sps:$4 sm:$0xff]  }
 0x3d1   :  { %v1913_v41 = vpack.c.bf16 %v1898_v7, %v1894_v2  ;;  %v8294_v2 = vld [vmem:[%s11501_s2 + $0x3c4] ss:$8 sps:$4 sm:$0xff]   ;;  %v8295_v7 = vld [vmem:[%s11501_s2 + $0x3b0] ss:$8 sps:$4 sm:$0xff]  }
 0x3d2   :  { %v1900_v11 = vpop.f32.mrf.mxu1 }
 0x3d3   :  { %v1914_v15 = vpack.c.bf16 %v1900_v11, %v1896_v29  ;;  %2654 = vmatpush1.bf16.msra.mxu0 %v8220_v47  ;;  %v8292_v29 = vld [vmem:[%s11501_s2 + $0x3c0] ss:$8 sps:$4 sm:$0xff]   ;;  %v8297_v47 = vld [vmem:[%s11501_s2 + $0x3b4] ss:$8 sps:$4 sm:$0xff]  }
 0x3d4   :  { %v1904_v56 = vpop.f32.mrf.mxu1  ;;  %2655 = vmatprep.subr.bf16.mxu0 %v8225_v6  ;;  %v8300_v6 = vld [vmem:[%s11501_s2 + $0x3a4] ss:$8 sps:$4 sm:$0xff]   ;;  %v8298_v11 = vld [vmem:[%s11501_s2 + $0x3a0] ss:$8 sps:$4 sm:$0xff]  }
 0x3d5   :  { %2142 = vmatprep.mubr.bf16.mxu1 %v1914_v15  ;;  %v8303_v15 = vld [vmem:[%s11501_s2 + $0x394] ss:$8 sps:$4 sm:$0xff]  }
 0x3d6   :  { %v1906_v33 = vpop.f32.mrf.mxu1  ;;  %2143 = vmatmul.mubr.bf16.vlgmr.msra.gmra.mxu1 %v1913_v41  ;;  %v8306_v41 = vld [vmem:[%s11501_s2 + $0x384] ss:$8 sps:$4 sm:$0xff]  }
 0x3d7   :  { %2406 = vmatpush1.bf16.msra.mxu1 %v9629_v25  ;;  %2656 = vmatpush1.bf16.msra.mxu0 %v8223_v37  ;;  %v8301_v37 = vld [vmem:[%s11501_s2 + $0x390] ss:$8 sps:$4 sm:$0xff]  }
 0x3d8   :  { %2407 = vmatprep.subr.bf16.mxu1 %v9640_v30  ;;  %v1908_v13 = vpop.f32.mrf.mxu1  ;;  %2657 = vmatprep.subr.bf16.mxu0 %v8231_v12 }
 0x3d9   :  { %v1915_v0 = vpack.c.bf16 %v1908_v13, %v1904_v56  ;;  %v8304_v56 = vld [vmem:[%s11501_s2 + $0x380] ss:$8 sps:$4 sm:$0xff]  }
 0x3da   :  { %v1910_v21 = vpop.f32.mrf.mxu1 }
 0x3db   :  { %v1916_v43 = vpack.c.bf16 %v1910_v21, %v1906_v33  ;;  %2408 = vmatpush1.bf16.msra.mxu1 %v9601_v50  ;;  %2658 = vmatpush1.bf16.msra.mxu0 %v8229_v49 }
 0x3dc   :  { %2409 = vmatprep.subr.bf16.mxu1 %v9651_v52 }
 0x3dd   :  { %2152 = vmatprep.mubr.bf16.mxu1 %v1916_v43 }
 0x3de   :  { %2153 = vmatmul.mubr.bf16.gmra.mxu1 %v1915_v0 }
 0x3df   :  { %2410 = vmatpush1.bf16.msra.mxu1 %v9574_v32  ;;  %2429 = vmatprep.mubr.bf16.mxu1 %v8705_v3 }
 0x3e0   :  { %2411 = vmatprep.subr.bf16.mxu1 %v9661_v57 }
 0x3e3   :  { %2412 = vmatpush1.bf16.msra.mxu1 %v9553_v8 }
 0x3e4   :  { %2737 = vmatprep.subr.bf16.mxu1 %v9634_v22  ;;  %v8209_v22 = vld [vmem:[%s11502_s30 + $0x30] sm:$0xff]  }
 0x3e6   :  { %7072 = vmatmul.mubr.msk.bf16.vlgmr.msra.gmra.mxu1 %vm1743_vm0, %v8207_v16 }
 0x3e7   :  { %2738 = vmatpush1.bf16.msra.mxu1 %v9629_v25  ;;  %2439 = vmatprep.mubr.bf16.mxu1 %v8705_v3  ;;  %v8228_v25 = vld [vmem:[%s11501_s2 + $0x374] ss:$8 sps:$4 sm:$0xff]  }
 0x3e8   :  { %2739 = vmatprep.subr.bf16.mxu1 %v9640_v30  ;;  %v8232_v30 = vld [vmem:[%s11501_s2 + $0x360] ss:$8 sps:$4 sm:$0xff]  }
 0x3eb   :  { %2740 = vmatpush1.bf16.msra.mxu1 %v9601_v50  ;;  %v8226_v50 = vld [vmem:[%s11501_s2 + $0x370] ss:$8 sps:$4 sm:$0xff]  }
 0x3ec   :  { %2741 = vmatprep.subr.bf16.mxu1 %v9651_v52  ;;  %v8235_v52 = vld [vmem:[%s11501_s2 + $0x210] ss:$8 sps:$4 sm:$0xff]  }
 0x3ee   :  { %7073 = vmatmul.mubr.msk.bf16.gmra.mxu1 %vm1743_vm0, %v8208_v17 }
 0x3ef   :  { %2742 = vmatpush1.bf16.msra.mxu1 %v9574_v32  ;;  %2761 = vmatprep.mubr.bf16.mxu1 %v8705_v3  ;;  %v8234_v32 = vld [vmem:[%s11501_s2 + $0x364] ss:$8 sps:$4 sm:$0xff]  }
 0x3f0   :  { %2743 = vmatprep.subr.bf16.mxu1 %v9661_v57  ;;  %v8237_v57 = vld [vmem:[%s11501_s2 + $0x214] ss:$8 sps:$4 sm:$0xff]  }
 0x3f1   :  { %2659 = vmatprep.subr.bf16.mxu0 %v8237_v57 }
 0x3f2   :  { %2660 = vmatpush1.bf16.msra.mxu0 %v8235_v52 }
 0x3f3   :  { %2744 = vmatpush1.bf16.msra.mxu1 %v9553_v8  ;;  %v8210_v8 = vld [vmem:[%s11502_s30 + $0x38] sm:$0xff]   ;;  %2661 = vmatprep.subr.bf16.mxu0 %v8243_v5 }
 0x3f4   :  { %2979 = vmatprep.subr.bf16.mxu1 %v8228_v25 }
 0x3f6   :  { %7144 = vmatmul.mubr.msk.bf16.vlgmr.msra.gmra.mxu1 %vm1743_vm0, %v8209_v22  ;;  %2662 = vmatpush1.bf16.msra.mxu0 %v8241_v62 }
 0x3f7   :  { %2771 = vmatprep.mubr.bf16.mxu1 %v8705_v3  ;;  %2980 = vmatpush1.bf16.msra.mxu1 %v8226_v50 }
 0x3f8   :  { %2981 = vmatprep.subr.bf16.mxu1 %v8234_v32  ;;  %2663 = vmatprep.subr.bf16.mxu0 %v8249_v24 }
 0x3fa   :  { %2664 = vmatpush2.bf16.msra.mxu0 %v8247_v23 }
 0x3fb   :  { %2982 = vmatpush1.bf16.msra.mxu1 %v8232_v30  ;;  %2665 = vmatprep.subr.bf16.mxu0 %v8255_v20 }
 0x3fc   :  { %2983 = vmatprep.subr.bf16.mxu1 %v8240_v1 }
 0x3fe   :  { %7145 = vmatmul.mubr.msk.bf16.gmra.mxu1 %vm1743_vm0, %v8210_v8  ;;  %2666 = vmatpush2.bf16.msra.mxu0 %v8253_v51 }
 0x3ff   :  { %2984 = vmatpush1.bf16.msra.mxu1 %v8238_v60  ;;  %2667 = vmatprep.subr.bf16.mxu0 %v8261_v58 }
 0x400   :  { %2985 = vmatprep.subr.bf16.mxu1 %v8246_v19 }
 0x402   :  { %2668 = vmatpush2.bf16.msra.mxu0 %v8259_v28  ;;  %v3073_v28 = vld [vmem:[%s11503_s27 + $0x78] sm:$0xff] }
 0x403   :  { %2986 = vmatpush1.bf16.msra.mxu1 %v8244_v18  ;;  %2669 = vmatprep.subr.bf16.mxu0 %v8267_v34  ;;  %v3072_v34 = vld [vmem:[%s11503_s27 + $0x70] sm:$0xff] }
 0x404   :  { %2987 = vmatprep.subr.bf16.mxu1 %v8252_v38 }
 0x406   :  { %2670 = vmatpush2.bf16.msra.mxu0 %v8265_v10  ;;  %v3071_v10 = vld [vmem:[%s11503_s27 + $0x68] sm:$0xff] }
 0x407   :  { %2988 = vmatpush1.bf16.msra.mxu1 %v8250_v9  ;;  %2671 = vmatprep.subr.bf16.mxu0 %v8273_v40  ;;  %v3070_v40 = vld [vmem:[%s11503_s27 + $0x60] sm:$0xff] }
 0x408   :  { %2989 = vmatprep.subr.bf16.mxu1 %v8258_v4 }
 0x40a   :  { %2672 = vmatpush2.bf16.msra.mxu0 %v8271_v46  ;;  %v3069_v46 = vld [vmem:[%s11503_s27 + $0x58] sm:$0xff] }
 0x40b   :  { %2990 = vmatpush1.bf16.msra.mxu1 %v8256_v26  ;;  %2673 = vmatprep.subr.bf16.mxu0 %v8279_v42  ;;  %v3068_v42 = vld [vmem:[%s11503_s27 + $0x50] sm:$0xff] }
 0x40c   :  { %2991 = vmatprep.subr.bf16.mxu1 %v8264_v14  ;;  %v3089_v14 = vld [vmem:[%s11503_s27 + $0xf8] sm:$0xff] }
 0x40e   :  { %2674 = vmatpush2.bf16.msra.mxu0 %v8277_v45  ;;  %v3067_v45 = vld [vmem:[%s11503_s27 + $0x48] sm:$0xff] }
 0x40f   :  { %2992 = vmatpush1.bf16.msra.mxu1 %v8262_v31  ;;  %2675 = vmatprep.subr.bf16.mxu0 %v8285_v35  ;;  %v3088_v31 = vld [vmem:[%s11503_s27 + $0xf0] sm:$0xff]  ;;  %v3066_v35 = vld [vmem:[%s11503_s27 + $0x40] sm:$0xff] }
 0x410   :  { %2993 = vmatprep.subr.bf16.mxu1 %v8270_v39  ;;  %v3087_v39 = vld [vmem:[%s11503_s27 + $0xe8] sm:$0xff] }
 0x412   :  { %2676 = vmatpush2.bf16.msra.mxu0 %v8283_v55  ;;  %v3065_v55 = vld [vmem:[%s11503_s27 + $0x38] sm:$0xff] }
 0x413   :  { %2994 = vmatpush1.bf16.msra.mxu1 %v8268_v44  ;;  %2677 = vmatprep.subr.bf16.mxu0 %v8291_v61  ;;  %v3086_v44 = vld [vmem:[%s11503_s27 + $0xe0] sm:$0xff]  ;;  %v3064_v61 = vld [vmem:[%s11503_s27 + $0x30] sm:$0xff] }
 0x414   :  { %2995 = vmatprep.subr.bf16.mxu1 %v8276_v53  ;;  %v3085_v53 = vld [vmem:[%s11503_s27 + $0xd8] sm:$0xff] }
 0x416   :  { %2678 = vmatpush2.bf16.msra.mxu0 %v8289_v63  ;;  %v3063_v63 = vld [vmem:[%s11503_s27 + $0x28] sm:$0xff] }
 0x417   :  { %2996 = vmatpush2.bf16.msra.mxu1 %v8274_v54  ;;  %7687 = vmatprep.subr.mxu0 %v3089_v14  ;;  %v3084_v54 = vld [vmem:[%s11503_s27 + $0xd0] sm:$0xff] }
 0x418   :  { %2997 = vmatprep.subr.bf16.mxu1 %v8282_v27  ;;  %v3083_v27 = vld [vmem:[%s11503_s27 + $0xc8] sm:$0xff] }
 0x41b   :  { %2998 = vmatpush2.bf16.msra.mxu1 %v8280_v59  ;;  %v3082_v59 = vld [vmem:[%s11503_s27 + $0xc0] sm:$0xff] }
 0x41c   :  { %2999 = vmatprep.subr.bf16.mxu1 %v8288_v48  ;;  %v3081_v48 = vld [vmem:[%s11503_s27 + $0xb8] sm:$0xff] }
 0x41f   :  { %3000 = vmatpush2.bf16.msra.mxu1 %v8286_v36  ;;  %v3080_v36 = vld [vmem:[%s11503_s27 + $0xb0] sm:$0xff] }
 0x420   :  { %3001 = vmatprep.subr.bf16.mxu1 %v8294_v2  ;;  %v3079_v2 = vld [vmem:[%s11503_s27 + $0xa8] sm:$0xff] }
 0x423   :  { %3002 = vmatpush2.bf16.msra.mxu1 %v8292_v29  ;;  %v3078_v29 = vld [vmem:[%s11503_s27 + $0xa0] sm:$0xff] }
 0x424   :  { %3003 = vmatprep.subr.bf16.mxu1 %v8297_v47  ;;  %v3062_v47 = vld [vmem:[%s11503_s27 + $0x20] sm:$0xff] }
 0x427   :  { %3004 = vmatpush2.bf16.msra.mxu1 %v8295_v7  ;;  %v3077_v7 = vld [vmem:[%s11503_s27 + $0x98] sm:$0xff] }
 0x428   :  { %3005 = vmatprep.subr.bf16.mxu1 %v8300_v6  ;;  %v3061_v6 = vld [vmem:[%s11503_s27 + $0x18] sm:$0xff] }
 0x42b   :  { %3006 = vmatpush2.bf16.msra.mxu1 %v8298_v11  ;;  %v3076_v11 = vld [vmem:[%s11503_s27 + $0x90] sm:$0xff] }
 0x42c   :  { %3007 = vmatprep.subr.bf16.mxu1 %v8303_v15  ;;  %v3060_v15 = vld [vmem:[%s11503_s27 + $0x10] sm:$0xff] }
 0x42f   :  { %3008 = vmatpush2.bf16.msra.mxu1 %v8301_v37  ;;  %v3075_v37 = vld [vmem:[%s11503_s27 + $0x88] sm:$0xff] }
 0x430   :  { %3009 = vmatprep.subr.bf16.mxu1 %v8306_v41  ;;  %v3059_v41 = vld [vmem:[%s11503_s27 + $0x8] sm:$0xff] }
 0x433   :  { %3010 = vmatpush2.bf16.msra.mxu1 %v8304_v56  ;;  %v3074_v56 = vld [vmem:[%s11503_s27 + $0x80] sm:$0xff] }
 0x434   :  { %7722 = vmatprep.subr.mxu1 %v3089_v14 }
 0x496   :  { %v10044_v12 = vpop.f32.mrf.mxu1 }
 0x498   :  { %v10046_v33 = vpop.f32.mrf.mxu1 }
 0x49a   :  { %v10048_v49 = vpop.f32.mrf.mxu1 }
 0x49c   :  { %v10050_v13 = vpop.f32.mrf.mxu1 }
 0x49e   :  { %v10052_v21 = vpop.f32.mrf.mxu1 }
 0x4a0   :  { %v10054_v43 = vpop.f32.mrf.mxu1 }
 0x4a2   :  { %v10056_v0 = vpop.f32.mrf.mxu1 }
 0x4a4   :  { %v10058_v16 = vpop.f32.mrf.mxu1 }
 0x4a6   :  { %v2431_v17 = vpop.f32.mrf.mxu1 }
 0x4a8   :  { %v2433_v25 = vpop.f32.mrf.mxu1 }
 0x4aa   :  { %v2435_v22 = vpop.f32.mrf.mxu1 }
 0x4ab   :  { %v2450_v30 = vpack.c.bf16 %v2435_v22, %v2431_v17  ;;  %v3058_v17 = vld [vmem:[%s11503_s27] sm:$0xff] }
 0x4ac   :  { %v2437_v50 = vpop.f32.mrf.mxu1 }
 0x4ad   :  { %v2451_v32 = vpack.c.bf16 %v2437_v50, %v2433_v25  ;;  %v2357_v25 = vpop.f32.mrf.mxu0 }
 0x4ae   :  { %v2441_v8 = vpop.f32.mrf.mxu1 }
 0x4af   :  { %2679 = vmatprep.mubr.bf16.mxu0 %v2451_v32  ;;  %v2359_v22 = vpop.f32.mrf.mxu0 }
 0x4b0   :  { %v2443_v52 = vpop.f32.mrf.mxu1  ;;  %2680 = vmatmul.mubr.bf16.vlgmr.msra.gmra.mxu0 %v2450_v30 }
 0x4b1   :  { %7688 = vmatpush3.msra.mxu0 %v3073_v28  ;;  %v2361_v50 = vpop.f32.mrf.mxu0 }
 0x4b2   :  { %v2445_v57 = vpop.f32.mrf.mxu1  ;;  %7689 = vmatprep.subr.mxu0 %v3088_v31 }
 0x4b3   :  { %v2452_v62 = vpack.c.bf16 %v2445_v57, %v2441_v8  ;;  %7690 = vmatpush3.msra.mxu0 %v3072_v34  ;;  %v2363_v32 = vpop.f32.mrf.mxu0 }
 0x4b4   :  { %v2447_v60 = vpop.f32.mrf.mxu1  ;;  %7691 = vmatprep.subr.mxu0 %v3087_v39 }
 0x4b5   :  { %v2453_v1 = vpack.c.bf16 %v2447_v60, %v2443_v52  ;;  %7692 = vmatpush3.msra.mxu0 %v3071_v10  ;;  %v2367_v30 = vpop.f32.mrf.mxu0 }
 0x4b6   :  { %v2763_v5 = vpop.f32.mrf.mxu1  ;;  %7693 = vmatprep.subr.mxu0 %v3086_v44  ;;  %v2368_v14 = vadd.f32 %v2367_v30, %v10052_v21 }
 0x4b7   :  { %2689 = vmatprep.mubr.bf16.mxu0 %v2453_v1  ;;  %7694 = vmatpush3.msra.mxu0 %v3070_v40  ;;  %v2369_v8 = vpop.f32.mrf.mxu0 }
 0x4b8   :  { %2690 = vmatmul.mubr.bf16.gmra.mxu0 %v2452_v62  ;;  %v2765_v18 = vpop.f32.mrf.mxu1  ;;  %7695 = vmatprep.subr.mxu0 %v3085_v53 }
 0x4b9   :  { %7696 = vmatpush3.msra.mxu0 %v3069_v46  ;;  %v2371_v52 = vpop.f32.mrf.mxu0 }
 0x4ba   :  { %v2767_v19 = vpop.f32.mrf.mxu1  ;;  %7697 = vmatprep.subr.mxu0 %v3084_v54  ;;  %v2372_v21 = vadd.f32 %v2371_v52, %v10056_v0 }
 0x4bb   :  { %v2782_v9 = vpack.c.bf16 %v2767_v19, %v2763_v5  ;;  %7698 = vmatpush3.msra.mxu0 %v3068_v42  ;;  %v2373_v57 = vpop.f32.mrf.mxu0 }
 0x4bc   :  { %v2769_v23 = vpop.f32.mrf.mxu1  ;;  %7699 = vmatprep.subr.mxu0 %v3083_v27 }
 0x4bd   :  { %v2783_v24 = vpack.c.bf16 %v2769_v23, %v2765_v18  ;;  %7700 = vmatpush3.msra.mxu0 %v3067_v45  ;;  %v2362_v23 = vadd.f32 %v2361_v50, %v10048_v49 }
 0x4be   :  { %v2773_v38 = vpop.f32.mrf.mxu1  ;;  %7701 = vmatprep.subr.mxu0 %v3082_v59 }
 0x4bf   :  { %3011 = vmatprep.mubr.bf16.mxu1 %v2783_v24  ;;  %7702 = vmatpush3.msra.mxu0 %v3066_v35 }
 0x4c0   :  { %v2775_v51 = vpop.f32.mrf.mxu1  ;;  %3012 = vmatmul.mubr.bf16.vlgmr.msra.gmra.mxu1 %v2782_v9  ;;  %7703 = vmatprep.subr.mxu0 %v3081_v48  ;;  %v2358_v9 = vadd.f32 %v2357_v25, %v10044_v12  ;;  %v2370_v12 = vadd.f32 %v2369_v8, %v10054_v43 }
 0x4c1   :  { %7723 = vmatpush3.msra.mxu1 %v3073_v28  ;;  %7704 = vmatpush3.msra.mxu0 %v3065_v55 }
 0x4c2   :  { %v2777_v20 = vpop.f32.mrf.mxu1  ;;  %7724 = vmatprep.subr.mxu1 %v3088_v31  ;;  %7705 = vmatprep.subr.mxu0 %v3080_v36 }
 0x4c3   :  { %v2784_v58 = vpack.c.bf16 %v2777_v20, %v2773_v38  ;;  %7725 = vmatpush3.msra.mxu1 %v3072_v34  ;;  %7706 = vmatpush3.msra.mxu0 %v3064_v61 }
 0x4c4   :  { %v2779_v26 = vpop.f32.mrf.mxu1  ;;  %7726 = vmatprep.subr.mxu1 %v3087_v39  ;;  %7707 = vmatprep.subr.mxu0 %v3079_v2 }
 0x4c5   :  { %v2785_v4 = vpack.c.bf16 %v2779_v26, %v2775_v51  ;;  %7727 = vmatpush3.msra.mxu1 %v3071_v10  ;;  %7708 = vmatpush3.msra.mxu0 %v3063_v63  ;;  %v2364_v51 = vadd.f32 %v2363_v32, %v10050_v13  ;;  %v2360_v26 = vadd.f32 %v2359_v22, %v10046_v33 }
 0x4c6   :  { %7728 = vmatprep.subr.mxu1 %v3086_v44  ;;  %7709 = vmatprep.subr.mxu0 %v3078_v29 }
 0x4c7   :  { %3021 = vmatprep.mubr.bf16.mxu1 %v2785_v4  ;;  %7729 = vmatpush3.msra.mxu1 %v3070_v40 }
 0x4c8   :  { %3022 = vmatmul.mubr.bf16.gmra.mxu1 %v2784_v58  ;;  %7730 = vmatprep.subr.mxu1 %v3085_v53 }
 0x4c9   :  { %7731 = vmatpush3.msra.mxu1 %v3069_v46  ;;  %7710 = vmatpush3.msra.mxu0 %v3062_v47 }
 0x4ca   :  { %7732 = vmatprep.subr.mxu1 %v3084_v54  ;;  %7711 = vmatprep.subr.mxu0 %v3077_v7 }
 0x4cb   :  { %7733 = vmatpush3.msra.mxu1 %v3068_v42  ;;  %7712 = vmatpush3.msra.mxu0 %v3061_v6 }
 0x4cc   :  { %7734 = vmatprep.subr.mxu1 %v3083_v27  ;;  %7713 = vmatprep.subr.mxu0 %v3076_v11  ;;  %v2374_v27 = vadd.f32 %v2373_v57, %v10058_v16 }
 0x4cd   :  { %7735 = vmatpush3.msra.mxu1 %v3067_v45  ;;  %7714 = vmatpush3.msra.mxu0 %v3060_v15 }
 0x4ce   :  { %7736 = vmatprep.subr.mxu1 %v3082_v59  ;;  %7715 = vmatprep.subr.mxu0 %v3075_v37 }
 0x4cf   :  { %7737 = vmatpush3.msra.mxu1 %v3066_v35  ;;  %7716 = vmatpush3.msra.mxu0 %v3059_v41 }
 0x4d0   :  { %7738 = vmatprep.subr.mxu1 %v3081_v48  ;;  %7717 = vmatprep.subr.mxu0 %v3074_v56 }
 0x4d1   :  { %7739 = vmatpush3.msra.mxu1 %v3065_v55  ;;  %7718 = vmatpush3.msra.mxu0 %v3058_v17 }
 0x4d2   :  { %7740 = vmatprep.subr.mxu1 %v3080_v36 }
 0x4d3   :  { %7741 = vmatpush3.msra.mxu1 %v3064_v61 }
 0x4d4   :  { %7742 = vmatprep.subr.mxu1 %v3079_v2 }
 0x4d5   :  { %7743 = vmatpush3.msra.mxu1 %v3063_v63 }
 0x4d6   :  { %7744 = vmatprep.subr.mxu1 %v3078_v29 }
 0x4d7   :  { %7745 = vmatpush3.msra.mxu1 %v3062_v47 }
 0x4d8   :  { %7746 = vmatprep.subr.mxu1 %v3077_v7 }
 0x4d9   :  { %7747 = vmatpush3.msra.mxu1 %v3061_v6 }
 0x4da   :  { %7748 = vmatprep.subr.mxu1 %v3076_v11 }
 0x4db   :  { %7749 = vmatpush3.msra.mxu1 %v3060_v15 }
 0x4dc   :  { %7750 = vmatprep.subr.mxu1 %v3075_v37 }
 0x4dd   :  { %7751 = vmatpush3.msra.mxu1 %v3059_v41 }
 0x4de   :  { %7752 = vmatprep.subr.mxu1 %v3074_v56 }
 0x4df   :  { %7753 = vmatpush3.msra.mxu1 %v3058_v17 }
 0x570   :  { %v2681_v60 = vpop.f32.mrf.mxu0 }
 0x571   :  { %v2700_v4 = vadd.f32 %v2681_v60, %v2358_v9 }
 0x572   :  { %v2683_v1 = vpop.f32.mrf.mxu0 }
 0x573   :  { %v2701_v39 = vadd.f32 %v2683_v1, %v2360_v26 }
 0x574   :  { %v2685_v62 = vpop.f32.mrf.mxu0 }
 0x575   :  { %v2702_v20 = vadd.f32 %v2685_v62, %v2362_v23 }
 0x576   :  { %v2687_v5 = vpop.f32.mrf.mxu0 }
 0x577   :  { %v2703_v28 = vadd.f32 %v2687_v5, %v2364_v51 }
 0x578   :  { %v2691_v18 = vpop.f32.mrf.mxu0 }
 0x579   :  { %v2704_v44 = vadd.f32 %v2691_v18, %v2368_v14 }
 0x57a   :  { %v2693_v24 = vpop.f32.mrf.mxu0 }
 0x57b   :  { %v2705_v46 = vadd.f32 %v2693_v24, %v2370_v12 }
 0x57c   :  { %v2695_v31 = vpop.f32.mrf.mxu0 }
 0x57d   :  { %v2706_v35 = vadd.f32 %v2695_v31, %v2372_v21  ;;  %v8706_v21 = vmov 0.0  }
 0x57e   :  { %v2697_v54 = vpop.f32.mrf.mxu0 }
 0x57f   :  { %v2707_v36 = vadd.f32 %v2697_v54, %v2374_v27  ;;  %v8307_v54 = vld [vmem:[%s11505_s4 + $0x170] ss:$8 sps:$4 sm:$0xff]   ;;  %v8309_v27 = vld [vmem:[%s11505_s4 + $0x174] ss:$8 sps:$4 sm:$0xff]  }
 0x580   :  { %v3013_v19 = vpop.f32.mrf.mxu1  ;;  %3818 = vmatprep.subr.bf16.mxu1 %v8309_v27 }
 0x581   :  { %v10163_v10 = vadd.f32 %v3013_v19, %v2700_v4 }
 0x582   :  { %v3015_v38 = vpop.f32.mrf.mxu1 }
 0x583   :  { %v10168_v13 = vadd.f32 %v3015_v38, %v2701_v39  ;;  %v3160_v43 = vmul.f32 %v10163_v10, %v10163_v10 }
 0x584   :  { %v3017_v58 = vpop.f32.mrf.mxu1 }
 0x585   :  { %v10161_v34 = vadd.f32 %v3017_v58, %v2702_v20  ;;  %v3161_v16 = vmul.f32 %v10168_v13, %v10168_v13 }
 0x586   :  { %v3019_v49 = vpop.f32.mrf.mxu1 }
 0x587   :  { %v10166_v40 = vadd.f32 %v3019_v49, %v2703_v28  ;;  %v3162_v33 = vmul.f32 %v10161_v34, %v10161_v34  ;;  %v3040_v48 = vadd.f32 %v10161_v34, %v10163_v10 }
 0x588   :  { %v3023_v53 = vpop.f32.mrf.mxu1 }
 0x589   :  { %v10173_v42 = vadd.f32 %v3023_v53, %v2704_v44  ;;  %v3163_v45 = vmul.f32 %v10166_v40, %v10166_v40  ;;  %v3168_v61 = vadd.f32 %v3162_v33, %v3160_v43  ;;  %v3049_v63 = vadd.f32 %v10166_v40, %v10168_v13  ;;  %v3271_v44 = vld [vmem:[%s11504_s7 + $0x18] sm:$0xff]  ;;  %v10210_v33 = vld [vmem:[%s11504_s7 + $0x10] sm:$0xff]  ;;  %v10215_v53 = vld [vmem:[%s11504_s7 + $0x8] sm:$0xff] }
 0x58a   :  { %v3025_v59 = vpop.f32.mrf.mxu1  ;;  %3304 = vmatprep.subr.mxu0 %v3271_v44  ;;  %v8312_v43 = vld [vmem:[%s11505_s4 + $0x164] ss:$8 sps:$4 sm:$0xff]  }
 0x58b   :  { %v3164_v0 = vmul.f32 %v10173_v42, %v10173_v42  ;;  %v10184_v55 = vadd.f32 %v3025_v59, %v2705_v46  ;;  %v3041_v29 = vadd.f32 %v3040_v48, %v10173_v42  ;;  %v3177_v6 = vadd.f32 %v3163_v45, %v3161_v16  ;;  %v10221_v46 = vld [vmem:[%s11504_s7] sm:$0xff]  ;;  %v8315_v59 = vld [vmem:[%s11505_s4 + $0x154] ss:$8 sps:$4 sm:$0xff]   ;;  %v8319_v16 = vld [vmem:[%s11505_s4 + $0x130] ss:$8 sps:$4 sm:$0xff]  }
 0x58c   :  { %v3027_v2 = vpop.f32.mrf.mxu1  ;;  %v8310_v45 = vld [vmem:[%s11505_s4 + $0x160] ss:$8 sps:$4 sm:$0xff]   ;;  %v8318_v48 = vld [vmem:[%s11505_s4 + $0x144] ss:$8 sps:$4 sm:$0xff]  }
 0x58d   :  { %v3165_v47 = vmul.f32 %v10184_v55, %v10184_v55  ;;  %v10193_v7 = vadd.f32 %v3027_v2, %v2706_v35  ;;  %v3169_v11 = vadd.f32 %v3168_v61, %v3164_v0  ;;  %v3050_v37 = vadd.f32 %v3049_v63, %v10184_v55  ;;  %v8313_v35 = vld [vmem:[%s11505_s4 + $0x150] ss:$8 sps:$4 sm:$0xff]   ;;  %v8316_v0 = vld [vmem:[%s11505_s4 + $0x140] ss:$8 sps:$4 sm:$0xff]   ;;  %v8324_v61 = vld [vmem:[%s11505_s4 + $0x124] ss:$8 sps:$4 sm:$0xff]  }
 0x58e   :  { %v3029_v15 = vpop.f32.mrf.mxu1  ;;  %v8322_v2 = vld [vmem:[%s11505_s4 + $0x120] ss:$8 sps:$4 sm:$0xff]   ;;  %v8327_v63 = vld [vmem:[%s11505_s4 + $0x114] ss:$8 sps:$4 sm:$0xff]  }
 0x58f   :  { %v3042_v41 = vadd.f32 %v3041_v29, %v10193_v7  ;;  %v3166_v56 = vmul.f32 %v10193_v7, %v10193_v7  ;;  %v10199_v17 = vadd.f32 %v3029_v15, %v2707_v36  ;;  %v3178_v25 = vadd.f32 %v3177_v6, %v3165_v47  ;;  %v8321_v36 = vld [vmem:[%s11505_s4 + $0x134] ss:$8 sps:$4 sm:$0xff]   ;;  %v8325_v29 = vld [vmem:[%s11505_s4 + $0x110] ss:$8 sps:$4 sm:$0xff]   ;;  %v8330_v47 = vld [vmem:[%s11505_s4 + $0x104] ss:$8 sps:$4 sm:$0xff]  }
 0x590   :  { %v8328_v6 = vld [vmem:[%s11505_s4 + $0x100] ss:$8 sps:$4 sm:$0xff]   ;;  %v8331_v15 = vld [vmem:[%s11505_s4 + $0x1f0] ss:$8 sps:$4 sm:$0xff]  }
 0x591   :  { %v3043_v22 = vrot.slane %v3042_v41, 4  ;;  %v3170_v50 = vadd.f32 %v3169_v11, %v3166_v56  ;;  %v3051_v32 = vadd.f32 %v3050_v37, %v10199_v17  ;;  %v3167_v30 = vmul.f32 %v10199_v17, %v10199_v17  ;;  %v8333_v11 = vld [vmem:[%s11505_s4 + $0x1f4] ss:$8 sps:$4 sm:$0xff]   ;;  %v8336_v37 = vld [vmem:[%s11505_s4 + $0x1e4] ss:$8 sps:$4 sm:$0xff]  }
 0x592   :  { %v8339_v56 = vld [vmem:[%s11505_s4 + $0x1d4] ss:$8 sps:$4 sm:$0xff]  }
 0x593   :  { %v3044_v8 = vadd.f32 %v3043_v22, %v3042_v41  ;;  %v3171_v52 = vrot.slane %v3170_v50, 4  ;;  %v3052_v57 = vrot.slane %v3051_v32, 4  ;;  %v3179_v60 = vadd.f32 %v3178_v25, %v3167_v30  ;;  %v8334_v41 = vld [vmem:[%s11505_s4 + $0x1e0] ss:$8 sps:$4 sm:$0xff]   ;;  %v8337_v25 = vld [vmem:[%s11505_s4 + $0x1d0] ss:$8 sps:$4 sm:$0xff]  }
 0x594   :  { %v8342_v22 = vld [vmem:[%s11505_s4 + $0x1c4] ss:$8 sps:$4 sm:$0xff]  }
 0x595   :  { %v3045_v1 = vrot.slane %v3044_v8, 2  ;;  %v3172_v62 = vadd.f32 %v3171_v52, %v3170_v50  ;;  %v3053_v5 = vadd.f32 %v3052_v57, %v3051_v32  ;;  %v3180_v18 = vrot.slane %v3179_v60, 4  ;;  %v8340_v50 = vld [vmem:[%s11505_s4 + $0x1c0] ss:$8 sps:$4 sm:$0xff]  }
 0x597   :  { %v3046_v19 = vadd.f32 %v3045_v1, %v3044_v8  ;;  %v3173_v23 = vrot.slane %v3172_v62, 2  ;;  %v3054_v24 = vrot.slane %v3053_v5, 2  ;;  %v3181_v9 = vadd.f32 %v3180_v18, %v3179_v60 }
 0x599   :  { %v3174_v38 = vadd.f32 %v3173_v23, %v3172_v62  ;;  %v3055_v51 = vadd.f32 %v3054_v24, %v3053_v5  ;;  %v3182_v20 = vrot.slane %v3181_v9, 2  ;;  %v3047_v26 = vrot.slane %v3046_v19, 1  ;;  %v3261_v24 = vld [vmem:[%s11466_s5] sm:$0x1] }
 0x59b   :  { %v3056_v4 = vrot.slane %v3055_v51, 1  ;;  %v3183_v58 = vadd.f32 %v3182_v20, %v3181_v9  ;;  %v3175_v14 = vrot.slane %v3174_v38, 1  ;;  %v3048_v39 = vadd.f32 %v3047_v26, %v3046_v19 }
 0x59d   :  { %v3057_v28 = vadd.f32 %v3056_v4, %v3055_v51  ;;  %v3184_v31 = vrot.slane %v3183_v58, 1  ;;  %v3176_v12 = vadd.f32 %v3175_v14, %v3174_v38  ;;  %v3265_v51 = vld [vmem:[%s11467_s6] sm:$0x1]  ;;  %v8345_v4 = vld [vmem:[%s11505_s4 + $0x1b4] ss:$8 sps:$4 sm:$0xff]  }
 0x59e   :  { %v8348_v14 = vld [vmem:[%s11505_s4 + $0x1a4] ss:$8 sps:$4 sm:$0xff]  }
 0x59f   :  { %3154 = vmatprep.mubr.f32.mxu0 %v3057_v28  ;;  %v3185_v49 = vadd.f32 %v3184_v31, %v3183_v58  ;;  %v8343_v58 = vld [vmem:[%s11505_s4 + $0x1b0] ss:$8 sps:$4 sm:$0xff]   ;;  %v8346_v28 = vld [vmem:[%s11505_s4 + $0x1a0] ss:$8 sps:$4 sm:$0xff]   ;;  %v8351_v31 = vld [vmem:[%s11505_s4 + $0x194] ss:$8 sps:$4 sm:$0xff]  }
 0x5a0   :  { %3155 = vmatmul.mubr.f32.vlgmr.msra.gmra.mxu0 %v3048_v39  ;;  %v8349_v39 = vld [vmem:[%s11505_s4 + $0x190] ss:$8 sps:$4 sm:$0xff]  }
 0x5a1   :  { %3250 = vmatprep.mubr.f32.mxu1 %v3185_v49  ;;  %3340 = vmatprep.mubr.f32.mxu0 %v8706_v21  ;;  %v8354_v49 = vld [vmem:[%s11505_s4 + $0x184] ss:$8 sps:$4 sm:$0xff]  }
 0x5a2   :  { %3251 = vmatmul.mubr.f32.vlgmr.msra.gmra.mxu1 %v3176_v12  ;;  %3305 = vmatpush1.msra.mxu0 %v10210_v33  ;;  %v8352_v12 = vld [vmem:[%s11505_s4 + $0x180] ss:$8 sps:$4 sm:$0xff]  }
 0x5a3   :  { %3306 = vmatprep.subr.mxu0 %v10215_v53  ;;  %3819 = vmatpush1.bf16.msra.mxu1 %v8307_v54 }
 0x5a4   :  { %3307 = vmatpush1.msra.mxu0 %v10221_v46  ;;  %3820 = vmatprep.subr.bf16.mxu1 %v8312_v43 }
 0x5a5   :  { %3378 = vmatprep.subr.mxu0 %v3271_v44  ;;  %v3421_v44 = vlaneseq }
 0x5a7   :  { %3821 = vmatpush1.bf16.msra.mxu1 %v8310_v45 }
 0x5a8   :  { %3822 = vmatprep.subr.bf16.mxu1 %v8315_v59 }
 0x5ab   :  { %3823 = vmatpush1.bf16.msra.mxu1 %v8313_v35 }
 0x5ac   :  { %3824 = vmatprep.subr.bf16.mxu1 %v8318_v48 }
 0x5af   :  { %3825 = vmatpush1.bf16.msra.mxu1 %v8316_v0 }
 0x5b0   :  { %3826 = vmatprep.subr.bf16.mxu1 %v8321_v36 }
 0x5b3   :  { %3827 = vmatpush1.bf16.msra.mxu1 %v8319_v16 }
 0x5b4   :  { %3828 = vmatprep.subr.bf16.mxu1 %v8324_v61 }
 0x5b7   :  { %3829 = vmatpush1.bf16.msra.mxu1 %v8322_v2 }
 0x5b8   :  { %3830 = vmatprep.subr.bf16.mxu1 %v8327_v63 }
 0x5bb   :  { %3831 = vmatpush1.bf16.msra.mxu1 %v8325_v29 }
 0x5bc   :  { %3832 = vmatprep.subr.bf16.mxu1 %v8330_v47 }
 0x5bf   :  { %3833 = vmatpush1.bf16.msra.mxu1 %v8328_v6 }
 0x5c0   :  { %3834 = vmatprep.subr.bf16.mxu1 %v8333_v11 }
 0x5c3   :  { %3835 = vmatpush2.bf16.msra.mxu1 %v8331_v15 }
 0x5c4   :  { %3836 = vmatprep.subr.bf16.mxu1 %v8336_v37 }
 0x5c7   :  { %3837 = vmatpush2.bf16.msra.mxu1 %v8334_v41 }
 0x5c8   :  { %3838 = vmatprep.subr.bf16.mxu1 %v8339_v56 }
 0x5cb   :  { %3839 = vmatpush2.bf16.msra.mxu1 %v8337_v25 }
 0x5cc   :  { %3840 = vmatprep.subr.bf16.mxu1 %v8342_v22 }
 0x5cf   :  { %3841 = vmatpush2.bf16.msra.mxu1 %v8340_v50 }
 0x5d0   :  { %3842 = vmatprep.subr.bf16.mxu1 %v8345_v4  ;;  %v8363_v4 = vld [vmem:[%s11505_s4 + $0x50] ss:$8 sps:$4 sm:$0xff]  }
 0x5d3   :  { %3843 = vmatpush2.bf16.msra.mxu1 %v8343_v58  ;;  %v8368_v58 = vld [vmem:[%s11505_s4 + $0x44] ss:$8 sps:$4 sm:$0xff]  }
 0x5d4   :  { %3844 = vmatprep.subr.bf16.mxu1 %v8348_v14  ;;  %v8366_v14 = vld [vmem:[%s11505_s4 + $0x40] ss:$8 sps:$4 sm:$0xff]  }
 0x5d7   :  { %3845 = vmatpush2.bf16.msra.mxu1 %v8346_v28  ;;  %v8371_v28 = vld [vmem:[%s11505_s4 + $0x34] ss:$8 sps:$4 sm:$0xff]  }
 0x5d8   :  { %3846 = vmatprep.subr.bf16.mxu1 %v8351_v31  ;;  %v8369_v31 = vld [vmem:[%s11505_s4 + $0x30] ss:$8 sps:$4 sm:$0xff]  }
 0x5db   :  { %3847 = vmatpush2.bf16.msra.mxu1 %v8349_v39  ;;  %v8374_v39 = vld [vmem:[%s11505_s4 + $0x24] ss:$8 sps:$4 sm:$0xff]  }
 0x5dc   :  { %3848 = vmatprep.subr.bf16.mxu1 %v8354_v49  ;;  %v8372_v49 = vld [vmem:[%s11505_s4 + $0x20] ss:$8 sps:$4 sm:$0xff]  }
 0x5df   :  { %3849 = vmatpush2.bf16.msra.mxu1 %v8352_v12  ;;  %v8377_v12 = vld [vmem:[%s11505_s4 + $0x14] ss:$8 sps:$4 sm:$0xff]  }
 0x660   :  { %v7719_v32 = vpop.f32.mrf.mxu0 }
 0x662   :  { %v7720_v30 = vpop.f32.mrf.mxu0  ;;  %v7754_v8 = vpop.f32.mrf.mxu1 }
 0x663   :  { %v7721_v52 = vadd.f32 %v7720_v30, %v7719_v32 }
 0x664   :  { %v7755_v57 = vpop.f32.mrf.mxu1 }
 0x665   :  { %v3256_v60 = vmul.f32 0.001953125, %v7721_v52  ;;  %v7756_v1 = vadd.f32 %v7755_v57, %v7754_v8 }
 0x667   :  { %v3258_v62 = vmul.f32 %v3256_v60, %v3256_v60  ;;  %v3257_v5 = vmul.f32 0.001953125, %v7756_v1 }
 0x669   :  { %v3259_v18 = vsub.f32 %v3257_v5, %v3258_v62 }
 0x66b   :  { %v3260_v19 = vmax.f32 %v3259_v18, 0.0 }
 0x66d   :  { %v3262_v23 = vadd.f32 1e-05, %v3260_v19 }
 0x66f   :  { %8695 = vrsqrt.f32 %v3262_v23  ;;  %v8355_v23 = vld [vmem:[%s11468_s9] sm:$0xff]  }
 0x67c   :  { %v8696_v9 = vpop.eup %8695 }
 0x67d   :  { %v3264_v38 = vmul.f32 %v8696_v9, %v3261_v24  ;;  %v8359_v24 = vld [vmem:[%s11505_s4 + $0x74] ss:$8 sps:$4 sm:$0xff]   ;;  %v8356_v9 = vld [vmem:[%s11468_s9 + $0x8] sm:$0xff]  }
 0x67f   :  { %7210 = vmatmul.mubr.msk.f32.vlgmr.msra.gmra.mxu0 %vm3272_vm1, %v3264_v38  ;;  %v3266_v20 = vmul.f32 %v3264_v38, %v3256_v60  ;;  %v8357_v38 = vld [vmem:[%s11505_s4 + $0x70] ss:$8 sps:$4 sm:$0xff]  }
 0x680   :  { %3379 = vmatpush1.msra.mxu0 %v10210_v33  ;;  %3414 = vmatprep.mubr.f32.mxu0 %v8706_v21  ;;  %v3422_v33 = vshrl.u32 %v3421_v44, 7  ;;  %v8375_v44 = vld [vmem:[%s11505_s4 + $0x10] ss:$8 sps:$4 sm:$0xff]  }
 0x681   :  { %3380 = vmatprep.subr.mxu0 %v10215_v53  ;;  %v3267_v26 = vsub.f32 %v3265_v51, %v3266_v20  ;;  %v8362_v51 = vld [vmem:[%s11505_s4 + $0x64] ss:$8 sps:$4 sm:$0xff]   ;;  %v8360_v20 = vld [vmem:[%s11505_s4 + $0x60] ss:$8 sps:$4 sm:$0xff]  }
 0x682   :  { %3381 = vmatpush1.msra.mxu0 %v10221_v46  ;;  %v10335_v53 = vsub.s32 0, %v3422_v33  ;;  %v8380_v33 = vld [vmem:[%s11505_s4 + $0x4] ss:$8 sps:$4 sm:$0xff]  }
 0x683   :  { %7211 = vmatmul.mubr.msk.f32.vlgmr.msra.gmra.mxu0 %vm3272_vm1, %v3267_v26  ;;  %v8365_v26 = vld [vmem:[%s11505_s4 + $0x54] ss:$8 sps:$4 sm:$0xff]  }
 0x684   :  { %3524 = vmatprep.mubr.bf16.mxu0 %v8705_v3 }
 0x73f   :  { %v3342_v46 = vpop.f32.mrf.mxu0 }
 0x740   :  { %v3424_v54 = vrot.slane %v3342_v46, %v10335_v53  ;;  %v8378_v46 = vld [vmem:[%s11505_s4] ss:$8 sps:$4 sm:$0xff]  }
 0x741   :  { %v3344_v27 = vpop.f32.mrf.mxu0 }
 0x742   :  { %v3428_v43 = vrot.slane %v3344_v27, %v10335_v53  ;;  %v3429_v59 = vmul.f32 %v3424_v54, %v10163_v10  ;;  %v3433_v35 = vmul.f32 %v3424_v54, %v10173_v42  ;;  %v3435_v48 = vmul.f32 %v3424_v54, %v10193_v7  ;;  %v8381_v27 = vld [vmem:[%s11505_s4 + $0xf0] ss:$8 sps:$4 sm:$0xff]  }
 0x743   :  { %v3416_v45 = vpop.f32.mrf.mxu0  ;;  %v3431_v36 = vmul.f32 %v3424_v54, %v10161_v34  ;;  %v8383_v54 = vld [vmem:[%s11505_s4 + $0xf4] ss:$8 sps:$4 sm:$0xff]  }
 0x744   :  { %v3440_v0 = vrot.slane %v3416_v45, %v10335_v53  ;;  %v3430_v16 = vmul.f32 %v3428_v43, %v10168_v13  ;;  %v3432_v2 = vmul.f32 %v3428_v43, %v10166_v40  ;;  %v3434_v6 = vmul.f32 %v3428_v43, %v10184_v55  ;;  %v8384_v45 = vld [vmem:[%s11505_s4 + $0xe0] ss:$8 sps:$4 sm:$0xff]  }
 0x745   :  { %v3418_v61 = vpop.f32.mrf.mxu0  ;;  %v3436_v10 = vmul.f32 %v3428_v43, %v10199_v17  ;;  %v8386_v43 = vld [vmem:[%s11505_s4 + $0xe4] ss:$8 sps:$4 sm:$0xff]  }
 0x746   :  { %v3445_v63 = vadd.f32 %v3440_v0, %v3429_v59  ;;  %v3449_v29 = vadd.f32 %v3440_v0, %v3433_v35  ;;  %v3451_v47 = vadd.f32 %v3440_v0, %v3435_v48  ;;  %v3447_v11 = vadd.f32 %v3440_v0, %v3431_v36  ;;  %v8389_v59 = vld [vmem:[%s11505_s4 + $0xd4] ss:$8 sps:$4 sm:$0xff]   ;;  %v8387_v35 = vld [vmem:[%s11505_s4 + $0xd0] ss:$8 sps:$4 sm:$0xff]   ;;  %v8392_v48 = vld [vmem:[%s11505_s4 + $0xc4] ss:$8 sps:$4 sm:$0xff]  }
 0x747   :  { %v3444_v42 = vrot.slane %v3418_v61, %v10335_v53  ;;  %v8390_v0 = vld [vmem:[%s11505_s4 + $0xc0] ss:$8 sps:$4 sm:$0xff]   ;;  %v8395_v36 = vld [vmem:[%s11505_s4 + $0xb4] ss:$8 sps:$4 sm:$0xff]   ;;  %v8398_v61 = vld [vmem:[%s11505_s4 + $0xa4] ss:$8 sps:$4 sm:$0xff]  }
 0x748   :  { %vm3457_vm2 = vcmp.ge.f32.partialorder %v3449_v29, 0.0  ;;  %vm3459_vm3 = vcmp.ge.f32.partialorder %v3451_v47, 0.0  ;;  %v3465_v7 = vmul.f32 0.2, %v3449_v29  ;;  %v3467_v15 = vmul.f32 0.2, %v3451_v47 }
 0x749   :  { %v3446_v34 = vadd.f32 %v3444_v42, %v3430_v16  ;;  %v3448_v37 = vadd.f32 %v3444_v42, %v3432_v2  ;;  %v3450_v13 = vadd.f32 %v3444_v42, %v3434_v6  ;;  %v3452_v41 = vadd.f32 %v3444_v42, %v3436_v10  ;;  %v8393_v16 = vld [vmem:[%s11505_s4 + $0xb0] ss:$8 sps:$4 sm:$0xff]   ;;  %v8396_v2 = vld [vmem:[%s11505_s4 + $0xa0] ss:$8 sps:$4 sm:$0xff]   ;;  %v8404_v6 = vld [vmem:[%s11505_s4 + $0x84] ss:$8 sps:$4 sm:$0xff]  }
 0x74a   :  { %v3473_v56 = vsel %vm3457_vm2, %v3449_v29, %v3465_v7  ;;  %v3475_v40 = vsel %vm3459_vm3, %v3451_v47, %v3467_v15  ;;  %vm3453_vm4 = vcmp.ge.f32.partialorder %v3445_v63, 0.0  ;;  %vm3455_vm9 = vcmp.ge.f32.partialorder %v3447_v11, 0.0  ;;  %v8401_v29 = vld [vmem:[%s11505_s4 + $0x94] ss:$8 sps:$4 sm:$0xff]   ;;  %v8402_v47 = vld [vmem:[%s11505_s4 + $0x80] ss:$8 sps:$4 sm:$0xff]  }
 0x74b   :  { %vm3458_vm5 = vcmp.ge.f32.partialorder %v3450_v13, 0.0  ;;  %vm3460_vm6 = vcmp.ge.f32.partialorder %v3452_v41, 0.0  ;;  %v3466_v25 = vmul.f32 0.2, %v3450_v13  ;;  %v3468_v55 = vmul.f32 0.2, %v3452_v41 }
 0x74c   :  { %vm3454_vm7 = vcmp.ge.f32.partialorder %v3446_v34, 0.0  ;;  %vm3456_vm8 = vcmp.ge.f32.partialorder %v3448_v37, 0.0  ;;  %v3462_v17 = vmul.f32 0.2, %v3446_v34  ;;  %v3464_v32 = vmul.f32 0.2, %v3448_v37 }
 0x74d   :  { %v3474_v22 = vsel %vm3458_vm5, %v3450_v13, %v3466_v25  ;;  %v3476_v50 = vsel %vm3460_vm6, %v3452_v41, %v3468_v55  ;;  %v3461_v30 = vmul.f32 0.2, %v3445_v63  ;;  %v3463_v57 = vmul.f32 0.2, %v3447_v11  ;;  %v8409_v10 = vld [vmem:[%s11505_s4 + $0x274] ss:$8 sps:$4 sm:$0xff]  }
 0x74e   :  { %v10349_v8 = vpack.c.bf16 %v3476_v50, %v3474_v22  ;;  %v3470_v52 = vsel %vm3454_vm7, %v3446_v34, %v3462_v17  ;;  %v10351_v60 = vpack.c.bf16 %v3475_v40, %v3473_v56  ;;  %v3472_v1 = vsel %vm3456_vm8, %v3448_v37, %v3464_v32  ;;  %v8407_v37 = vld [vmem:[%s11505_s4 + $0x270] ss:$8 sps:$4 sm:$0xff]   ;;  %v8412_v56 = vld [vmem:[%s11505_s4 + $0x264] ss:$8 sps:$4 sm:$0xff]   ;;  %v8410_v25 = vld [vmem:[%s11505_s4 + $0x260] ss:$8 sps:$4 sm:$0xff]  }
 0x74f   :  { %v10355_v62 = vpack.c.bf16 %v3472_v1, %v3470_v52  ;;  %v3469_v5 = vsel %vm3453_vm4, %v3445_v63, %v3461_v30  ;;  %v3471_v18 = vsel %vm3455_vm9, %v3447_v11, %v3463_v57  ;;  %v8399_v63 = vld [vmem:[%s11505_s4 + $0x90] ss:$8 sps:$4 sm:$0xff]   ;;  %v8415_v17 = vld [vmem:[%s11505_s4 + $0x254] ss:$8 sps:$4 sm:$0xff]   ;;  %v8421_v52 = vld [vmem:[%s11505_s4 + $0x244] ss:$8 sps:$4 sm:$0xff]  }
 0x750   :  { %3504 = vmatprep.subr.bf16.mxu0 %v10349_v8  ;;  %4087 = vmatprep.subr.bf16.mxu1 %v10349_v8  ;;  %v10360_v19 = vpack.c.bf16 %v3471_v18, %v3469_v5  ;;  %v8413_v30 = vld [vmem:[%s11505_s4 + $0x250] ss:$8 sps:$4 sm:$0xff]   ;;  %v8419_v57 = vld [vmem:[%s11505_s4 + $0x240] ss:$8 sps:$4 sm:$0xff]   ;;  %v8427_v1 = vld [vmem:[%s11505_s4 + $0x234] ss:$8 sps:$4 sm:$0xff]  }
 0x751   :  { %3505 = vmatpush1.bf16.msra.mxu0 %v10351_v60  ;;  %v8405_v5 = vld [vmem:[%s11468_s9 + $0x10] sm:$0xff]   ;;  %vm6676_vm2 = vcmask 1041408   ;;  %vm6688_vm3 = vcmask 1024  }
 0x752   :  { %3506 = vmatprep.subr.bf16.mxu0 %v10355_v62  ;;  %v8425_v18 = vld [vmem:[%s11505_s4 + $0x230] ss:$8 sps:$4 sm:$0xff]  }
 0x755   :  { %3507 = vmatpush1.bf16.msra.mxu0 %v10360_v19 }
 0x756   :  { %3592 = vmatprep.subr.bf16.mxu0 %v10349_v8 }
 0x758   :  { %7213 = vmatmul.mubr.msk.bf16.vlgmr.msra.gmra.mxu0 %vm3488_vm10, %v8355_v23  ;;  %v8433_v23 = vld [vmem:[%s11505_s4 + $0x224] ss:$8 sps:$4 sm:$0xff]  }
 0x759   :  { %3593 = vmatpush1.bf16.msra.mxu0 %v10351_v60  ;;  %3612 = vmatprep.mubr.bf16.mxu0 %v8705_v3 }
 0x75a   :  { %3594 = vmatprep.subr.bf16.mxu0 %v10355_v62 }
 0x75d   :  { %3595 = vmatpush1.bf16.msra.mxu0 %v10360_v19 }
 0x75e   :  { %4021 = vmatprep.subr.bf16.mxu0 %v8359_v24  ;;  %v8431_v24 = vld [vmem:[%s11505_s4 + $0x220] ss:$8 sps:$4 sm:$0xff]  }
 0x760   :  { %7217 = vmatmul.mubr.msk.bf16.vlgmr.msra.gmra.mxu0 %vm3488_vm10, %v8356_v9  ;;  %v8439_v9 = vld [vmem:[%s11505_s4 + $0x214] ss:$8 sps:$4 sm:$0xff]  }
 0x761   :  { %4022 = vmatpush1.bf16.msra.mxu0 %v8357_v38  ;;  %v8424_v38 = vld [vmem:[%s11505_s4 + $0x364] ss:$8 sps:$4 sm:$0xff]  }
 0x762   :  { %4023 = vmatprep.subr.bf16.mxu0 %v8362_v51  ;;  %v8437_v51 = vld [vmem:[%s11505_s4 + $0x210] ss:$8 sps:$4 sm:$0xff]  }
 0x765   :  { %4024 = vmatpush1.bf16.msra.mxu0 %v8360_v20  ;;  %v8445_v20 = vld [vmem:[%s11505_s4 + $0x204] ss:$8 sps:$4 sm:$0xff]  }
 0x766   :  { %4025 = vmatprep.subr.bf16.mxu0 %v8365_v26  ;;  %v8430_v26 = vld [vmem:[%s11505_s4 + $0x354] ss:$8 sps:$4 sm:$0xff]  }
 0x769   :  { %4026 = vmatpush1.bf16.msra.mxu0 %v8363_v4  ;;  %v8443_v4 = vld [vmem:[%s11505_s4 + $0x200] ss:$8 sps:$4 sm:$0xff]  }
 0x76a   :  { %4027 = vmatprep.subr.bf16.mxu0 %v8368_v58  ;;  %v8451_v58 = vld [vmem:[%s11505_s4 + $0x2f4] ss:$8 sps:$4 sm:$0xff]  }
 0x76d   :  { %4028 = vmatpush1.bf16.msra.mxu0 %v8366_v14  ;;  %v8428_v14 = vld [vmem:[%s11505_s4 + $0x350] ss:$8 sps:$4 sm:$0xff]  }
 0x76e   :  { %4029 = vmatprep.subr.bf16.mxu0 %v8371_v28  ;;  %v8436_v28 = vld [vmem:[%s11505_s4 + $0x344] ss:$8 sps:$4 sm:$0xff]  }
 0x771   :  { %4030 = vmatpush1.bf16.msra.mxu0 %v8369_v31  ;;  %v8449_v31 = vld [vmem:[%s11505_s4 + $0x2f0] ss:$8 sps:$4 sm:$0xff]  }
 0x772   :  { %4031 = vmatprep.subr.bf16.mxu0 %v8374_v39  ;;  %v8457_v39 = vld [vmem:[%s11505_s4 + $0x2e4] ss:$8 sps:$4 sm:$0xff]  }
 0x775   :  { %4032 = vmatpush1.bf16.msra.mxu0 %v8372_v49  ;;  %v8434_v49 = vld [vmem:[%s11505_s4 + $0x340] ss:$8 sps:$4 sm:$0xff]  }
 0x776   :  { %4033 = vmatprep.subr.bf16.mxu0 %v8377_v12  ;;  %v8442_v12 = vld [vmem:[%s11505_s4 + $0x334] ss:$8 sps:$4 sm:$0xff]  }
 0x779   :  { %4034 = vmatpush1.bf16.msra.mxu0 %v8375_v44  ;;  %v8455_v44 = vld [vmem:[%s11505_s4 + $0x2e0] ss:$8 sps:$4 sm:$0xff]  }
 0x77a   :  { %4035 = vmatprep.subr.bf16.mxu0 %v8380_v33  ;;  %v8440_v33 = vld [vmem:[%s11505_s4 + $0x330] ss:$8 sps:$4 sm:$0xff]  }
 0x77d   :  { %4036 = vmatpush1.bf16.msra.mxu0 %v8378_v46  ;;  %v8448_v46 = vld [vmem:[%s11505_s4 + $0x324] ss:$8 sps:$4 sm:$0xff]  }
 0x77e   :  { %4037 = vmatprep.subr.bf16.mxu0 %v8383_v54  ;;  %v8446_v54 = vld [vmem:[%s11505_s4 + $0x320] ss:$8 sps:$4 sm:$0xff]  }
 0x781   :  { %4038 = vmatpush2.bf16.msra.mxu0 %v8381_v27  ;;  %v8454_v27 = vld [vmem:[%s11505_s4 + $0x314] ss:$8 sps:$4 sm:$0xff]  }
 0x782   :  { %4039 = vmatprep.subr.bf16.mxu0 %v8386_v43  ;;  %v8452_v43 = vld [vmem:[%s11505_s4 + $0x310] ss:$8 sps:$4 sm:$0xff]  }
 0x785   :  { %4040 = vmatpush2.bf16.msra.mxu0 %v8384_v45  ;;  %v8460_v45 = vld [vmem:[%s11505_s4 + $0x304] ss:$8 sps:$4 sm:$0xff]  }
 0x786   :  { %4041 = vmatprep.subr.bf16.mxu0 %v8389_v59  ;;  %v8458_v59 = vld [vmem:[%s11505_s4 + $0x300] ss:$8 sps:$4 sm:$0xff]  }
 0x789   :  { %4042 = vmatpush2.bf16.msra.mxu0 %v8387_v35  ;;  %v8461_v35 = vld [vmem:[%s11505_s4 + $0x2d0] ss:$8 sps:$4 sm:$0xff]  }
 0x78a   :  { %4043 = vmatprep.subr.bf16.mxu0 %v8392_v48  ;;  %v8463_v48 = vld [vmem:[%s11505_s4 + $0x2d4] ss:$8 sps:$4 sm:$0xff]  }
 0x78d   :  { %4044 = vmatpush2.bf16.msra.mxu0 %v8390_v0  ;;  %v8464_v0 = vld [vmem:[%s11505_s4 + $0x3f0] ss:$8 sps:$4 sm:$0xff]  }
 0x78e   :  { %4045 = vmatprep.subr.bf16.mxu0 %v8395_v36  ;;  %v8466_v36 = vld [vmem:[%s11505_s4 + $0x3f4] ss:$8 sps:$4 sm:$0xff]  }
 0x791   :  { %4046 = vmatpush2.bf16.msra.mxu0 %v8393_v16  ;;  %v8467_v16 = vld [vmem:[%s11505_s4 + $0x2c0] ss:$8 sps:$4 sm:$0xff]  }
 0x792   :  { %4047 = vmatprep.subr.bf16.mxu0 %v8398_v61  ;;  %v8469_v61 = vld [vmem:[%s11505_s4 + $0x2c4] ss:$8 sps:$4 sm:$0xff]  }
 0x795   :  { %4048 = vmatpush2.bf16.msra.mxu0 %v8396_v2  ;;  %v8470_v2 = vld [vmem:[%s11505_s4 + $0x3e0] ss:$8 sps:$4 sm:$0xff]  }
 0x796   :  { %4049 = vmatprep.subr.bf16.mxu0 %v8401_v29  ;;  %v8473_v29 = vld [vmem:[%s11505_s4 + $0x2b0] ss:$8 sps:$4 sm:$0xff]  }
 0x799   :  { %4050 = vmatpush2.bf16.msra.mxu0 %v8399_v63  ;;  %v8472_v63 = vld [vmem:[%s11505_s4 + $0x3e4] ss:$8 sps:$4 sm:$0xff]  }
 0x79a   :  { %4051 = vmatprep.subr.bf16.mxu0 %v8404_v6  ;;  %v8476_v6 = vld [vmem:[%s11505_s4 + $0x3d0] ss:$8 sps:$4 sm:$0xff]  }
 0x79d   :  { %4052 = vmatpush2.bf16.msra.mxu0 %v8402_v47  ;;  %v8475_v47 = vld [vmem:[%s11505_s4 + $0x2b4] ss:$8 sps:$4 sm:$0xff]  }
 0x79e   :  { %4313 = vmatprep.subr.bf16.mxu0 %v8409_v10  ;;  %v8478_v10 = vld [vmem:[%s11505_s4 + $0x3d4] ss:$8 sps:$4 sm:$0xff]  }
 0x818   :  { %v3526_v11 = vpop.f32.mrf.mxu0 }
 0x81a   :  { %v3528_v42 = vpop.f32.mrf.mxu0 }
 0x81c   :  { %v3530_v7 = vpop.f32.mrf.mxu0 }
 0x81d   :  { %v3535_v13 = vpack.c.bf16 %v3530_v7, %v3526_v11  ;;  %v8479_v11 = vld [vmem:[%s11505_s4 + $0x2a0] ss:$8 sps:$4 sm:$0xff]  }
 0x81e   :  { %v3532_v15 = vpop.f32.mrf.mxu0  ;;  %v8482_v7 = vld [vmem:[%s11505_s4 + $0x3c0] ss:$8 sps:$4 sm:$0xff]  }
 0x81f   :  { %v3536_v34 = vpack.c.bf16 %v3532_v15, %v3528_v42  ;;  %v8481_v42 = vld [vmem:[%s11505_s4 + $0x2a4] ss:$8 sps:$4 sm:$0xff]  }
 0x820   :  { %v3614_v41 = vpop.f32.mrf.mxu0  ;;  %v8484_v15 = vld [vmem:[%s11505_s4 + $0x3c4] ss:$8 sps:$4 sm:$0xff]  }
 0x821   :  { %4053 = vmatprep.mubr.bf16.mxu0 %v3536_v34  ;;  %v8485_v34 = vld [vmem:[%s11505_s4 + $0x290] ss:$8 sps:$4 sm:$0xff]  }
 0x822   :  { %v3616_v40 = vpop.f32.mrf.mxu0  ;;  %4054 = vmatmul.mubr.bf16.vlgmr.msra.gmra.mxu0 %v3535_v13  ;;  %v8488_v13 = vld [vmem:[%s11505_s4 + $0x3b0] ss:$8 sps:$4 sm:$0xff]  }
 0x823   :  { %4314 = vmatpush1.bf16.msra.mxu0 %v8407_v37  ;;  %v8487_v37 = vld [vmem:[%s11505_s4 + $0x294] ss:$8 sps:$4 sm:$0xff]  }
 0x824   :  { %v3618_v55 = vpop.f32.mrf.mxu0  ;;  %4315 = vmatprep.subr.bf16.mxu0 %v8412_v56  ;;  %v8491_v56 = vld [vmem:[%s11505_s4 + $0x280] ss:$8 sps:$4 sm:$0xff]  }
 0x825   :  { %v3623_v32 = vpack.c.bf16 %v3618_v55, %v3614_v41  ;;  %v8490_v41 = vld [vmem:[%s11505_s4 + $0x3b4] ss:$8 sps:$4 sm:$0xff]   ;;  %v8496_v55 = vld [vmem:[%s11505_s4 + $0x3a4] ss:$8 sps:$4 sm:$0xff]  }
 0x826   :  { %v3620_v22 = vpop.f32.mrf.mxu0 }
 0x827   :  { %v3624_v50 = vpack.c.bf16 %v3620_v22, %v3616_v40  ;;  %4316 = vmatpush1.bf16.msra.mxu0 %v8410_v25  ;;  %v8493_v40 = vld [vmem:[%s11505_s4 + $0x284] ss:$8 sps:$4 sm:$0xff]   ;;  %v8494_v25 = vld [vmem:[%s11505_s4 + $0x3a0] ss:$8 sps:$4 sm:$0xff]   ;;  %v8497_v22 = vld [vmem:[%s11505_s4 + $0x390] ss:$8 sps:$4 sm:$0xff]  }
 0x828   :  { %4317 = vmatprep.subr.bf16.mxu0 %v8415_v17  ;;  %v8499_v17 = vld [vmem:[%s11505_s4 + $0x394] ss:$8 sps:$4 sm:$0xff]  }
 0x829   :  { %3850 = vmatprep.mubr.bf16.mxu1 %v3624_v50  ;;  %v8500_v50 = vld [vmem:[%s11505_s4 + $0x380] ss:$8 sps:$4 sm:$0xff]  }
 0x82a   :  { %3851 = vmatmul.mubr.bf16.vlgmr.msra.gmra.mxu1 %v3623_v32  ;;  %v8502_v32 = vld [vmem:[%s11505_s4 + $0x384] ss:$8 sps:$4 sm:$0xff]  }
 0x82b   :  { %4088 = vmatpush1.bf16.msra.mxu1 %v10351_v60  ;;  %4107 = vmatprep.mubr.bf16.mxu1 %v8705_v3 }
 0x82c   :  { %4089 = vmatprep.subr.bf16.mxu1 %v10355_v62  ;;  %4318 = vmatpush1.bf16.msra.mxu0 %v8413_v30 }
 0x82d   :  { %4319 = vmatprep.subr.bf16.mxu0 %v8421_v52 }
 0x82f   :  { %4090 = vmatpush1.bf16.msra.mxu1 %v10360_v19 }
 0x830   :  { %4383 = vmatprep.subr.bf16.mxu1 %v10349_v8  ;;  %4320 = vmatpush1.bf16.msra.mxu0 %v8419_v57  ;;  %v8418_v8 = vld [vmem:[%s11505_s4 + $0x374] ss:$8 sps:$4 sm:$0xff]  }
 0x831   :  { %4321 = vmatprep.subr.bf16.mxu0 %v8427_v1 }
 0x832   :  { %7317 = vmatmul.mubr.msk.bf16.vlgmr.msra.gmra.mxu1 %vm3488_vm10, %v8405_v5 }
 0x833   :  { %4384 = vmatpush1.bf16.msra.mxu1 %v10351_v60  ;;  %4403 = vmatprep.mubr.bf16.mxu1 %v8705_v3  ;;  %v8406_v60 = vld [vmem:[%s11468_s9 + $0x18] sm:$0xff]  }
 0x834   :  { %4385 = vmatprep.subr.bf16.mxu1 %v10355_v62  ;;  %4322 = vmatpush1.bf16.msra.mxu0 %v8425_v18  ;;  %v8416_v62 = vld [vmem:[%s11505_s4 + $0x370] ss:$8 sps:$4 sm:$0xff]  }
 0x835   :  { %4323 = vmatprep.subr.bf16.mxu0 %v8433_v23 }
 0x837   :  { %4386 = vmatpush1.bf16.msra.mxu1 %v10360_v19  ;;  %v8422_v19 = vld [vmem:[%s11505_s4 + $0x360] ss:$8 sps:$4 sm:$0xff]  }
 0x838   :  { %4609 = vmatprep.subr.bf16.mxu1 %v8418_v8  ;;  %4324 = vmatpush1.bf16.msra.mxu0 %v8431_v24 }
 0x839   :  { %4325 = vmatprep.subr.bf16.mxu0 %v8439_v9 }
 0x83a   :  { %7385 = vmatmul.mubr.msk.bf16.vlgmr.msra.gmra.mxu1 %vm3488_vm10, %v8406_v60 }
 0x83b   :  { %4610 = vmatpush1.bf16.msra.mxu1 %v8416_v62 }
 0x83c   :  { %4611 = vmatprep.subr.bf16.mxu1 %v8424_v38  ;;  %4326 = vmatpush1.bf16.msra.mxu0 %v8437_v51 }
 0x83d   :  { %4327 = vmatprep.subr.bf16.mxu0 %v8445_v20 }
 0x83f   :  { %4612 = vmatpush1.bf16.msra.mxu1 %v8422_v19 }
 0x840   :  { %4613 = vmatprep.subr.bf16.mxu1 %v8430_v26  ;;  %4328 = vmatpush1.bf16.msra.mxu0 %v8443_v4  ;;  %v4701_v26 = vld [vmem:[%s11469_s13 + $0xf8] sm:$0xff] }
 0x841   :  { %4329 = vmatprep.subr.bf16.mxu0 %v8451_v58  ;;  %v4685_v4 = vld [vmem:[%s11469_s13 + $0x78] sm:$0xff]  ;;  %v4700_v58 = vld [vmem:[%s11469_s13 + $0xf0] sm:$0xff] }
 0x843   :  { %4614 = vmatpush1.bf16.msra.mxu1 %v8428_v14  ;;  %v4684_v14 = vld [vmem:[%s11469_s13 + $0x70] sm:$0xff] }
 0x844   :  { %4615 = vmatprep.subr.bf16.mxu1 %v8436_v28  ;;  %4330 = vmatpush2.bf16.msra.mxu0 %v8449_v31  ;;  %v4699_v28 = vld [vmem:[%s11469_s13 + $0xe8] sm:$0xff] }
 0x845   :  { %4331 = vmatprep.subr.bf16.mxu0 %v8457_v39  ;;  %v4683_v31 = vld [vmem:[%s11469_s13 + $0x68] sm:$0xff]  ;;  %v4698_v39 = vld [vmem:[%s11469_s13 + $0xe0] sm:$0xff] }
 0x847   :  { %4616 = vmatpush1.bf16.msra.mxu1 %v8434_v49  ;;  %v4682_v49 = vld [vmem:[%s11469_s13 + $0x60] sm:$0xff] }
 0x848   :  { %4617 = vmatprep.subr.bf16.mxu1 %v8442_v12  ;;  %4332 = vmatpush2.bf16.msra.mxu0 %v8455_v44  ;;  %v4697_v12 = vld [vmem:[%s11469_s13 + $0xd8] sm:$0xff] }
 0x849   :  { %4333 = vmatprep.subr.bf16.mxu0 %v8463_v48  ;;  %v4681_v44 = vld [vmem:[%s11469_s13 + $0x58] sm:$0xff]  ;;  %v4692_v48 = vld [vmem:[%s11469_s13 + $0xb0] sm:$0xff] }
 0x84b   :  { %4618 = vmatpush1.bf16.msra.mxu1 %v8440_v33  ;;  %v4696_v33 = vld [vmem:[%s11469_s13 + $0xd0] sm:$0xff] }
 0x84c   :  { %4619 = vmatprep.subr.bf16.mxu1 %v8448_v46  ;;  %4334 = vmatpush2.bf16.msra.mxu0 %v8461_v35  ;;  %v4680_v46 = vld [vmem:[%s11469_s13 + $0x50] sm:$0xff]  ;;  %v4677_v35 = vld [vmem:[%s11469_s13 + $0x38] sm:$0xff] }
 0x84d   :  { %4335 = vmatprep.subr.bf16.mxu0 %v8469_v61  ;;  %v4690_v61 = vld [vmem:[%s11469_s13 + $0xa0] sm:$0xff] }
 0x84f   :  { %4620 = vmatpush1.bf16.msra.mxu1 %v8446_v54  ;;  %v4695_v54 = vld [vmem:[%s11469_s13 + $0xc8] sm:$0xff] }
 0x850   :  { %4621 = vmatprep.subr.bf16.mxu1 %v8454_v27  ;;  %4336 = vmatpush2.bf16.msra.mxu0 %v8467_v16  ;;  %v4679_v27 = vld [vmem:[%s11469_s13 + $0x48] sm:$0xff] }
 0x851   :  { %4337 = vmatprep.subr.bf16.mxu0 %v8475_v47  ;;  %v4675_v16 = vld [vmem:[%s11469_s13 + $0x28] sm:$0xff]  ;;  %v4688_v47 = vld [vmem:[%s11469_s13 + $0x90] sm:$0xff] }
 0x853   :  { %4622 = vmatpush1.bf16.msra.mxu1 %v8452_v43  ;;  %v4694_v43 = vld [vmem:[%s11469_s13 + $0xc0] sm:$0xff] }
 0x854   :  { %4623 = vmatprep.subr.bf16.mxu1 %v8460_v45  ;;  %4338 = vmatpush2.bf16.msra.mxu0 %v8473_v29  ;;  %v4678_v45 = vld [vmem:[%s11469_s13 + $0x40] sm:$0xff]  ;;  %v4673_v29 = vld [vmem:[%s11469_s13 + $0x18] sm:$0xff] }
 0x855   :  { %4339 = vmatprep.subr.bf16.mxu0 %v8481_v42  ;;  %v4686_v42 = vld [vmem:[%s11469_s13 + $0x80] sm:$0xff] }
 0x857   :  { %4624 = vmatpush1.bf16.msra.mxu1 %v8458_v59  ;;  %v4693_v59 = vld [vmem:[%s11469_s13 + $0xb8] sm:$0xff] }
 0x858   :  { %4625 = vmatprep.subr.bf16.mxu1 %v8466_v36  ;;  %4340 = vmatpush2.bf16.msra.mxu0 %v8479_v11  ;;  %v4691_v36 = vld [vmem:[%s11469_s13 + $0xa8] sm:$0xff] }
 0x859   :  { %4341 = vmatprep.subr.bf16.mxu0 %v8487_v37  ;;  %v4671_v11 = vld [vmem:[%s11469_s13 + $0x8] sm:$0xff] }
 0x85b   :  { %4626 = vmatpush2.bf16.msra.mxu1 %v8464_v0  ;;  %v4676_v0 = vld [vmem:[%s11469_s13 + $0x30] sm:$0xff] }
 0x85c   :  { %4627 = vmatprep.subr.bf16.mxu1 %v8472_v63  ;;  %4342 = vmatpush2.bf16.msra.mxu0 %v8485_v34  ;;  %v4689_v63 = vld [vmem:[%s11469_s13 + $0x98] sm:$0xff] }
 0x85d   :  { %4343 = vmatprep.subr.bf16.mxu0 %v8493_v40 }
 0x85f   :  { %4628 = vmatpush2.bf16.msra.mxu1 %v8470_v2  ;;  %v4674_v2 = vld [vmem:[%s11469_s13 + $0x20] sm:$0xff] }
 0x860   :  { %4629 = vmatprep.subr.bf16.mxu1 %v8478_v10  ;;  %4344 = vmatpush2.bf16.msra.mxu0 %v8491_v56  ;;  %v4687_v10 = vld [vmem:[%s11469_s13 + $0x88] sm:$0xff] }
 0x861   :  { %7757 = vmatprep.subr.mxu0 %v4701_v26 }
 0x863   :  { %4630 = vmatpush2.bf16.msra.mxu1 %v8476_v6  ;;  %v4672_v6 = vld [vmem:[%s11469_s13 + $0x10] sm:$0xff] }
 0x864   :  { %4631 = vmatprep.subr.bf16.mxu1 %v8484_v15 }
 0x867   :  { %4632 = vmatpush2.bf16.msra.mxu1 %v8482_v7  ;;  %v4670_v7 = vld [vmem:[%s11469_s13] sm:$0xff] }
 0x868   :  { %4633 = vmatprep.subr.bf16.mxu1 %v8490_v41 }
 0x86b   :  { %4634 = vmatpush2.bf16.msra.mxu1 %v8488_v13 }
 0x86c   :  { %4635 = vmatprep.subr.bf16.mxu1 %v8496_v55 }
 0x86f   :  { %4636 = vmatpush2.bf16.msra.mxu1 %v8494_v25 }
 0x870   :  { %4637 = vmatprep.subr.bf16.mxu1 %v8499_v17 }
 0x873   :  { %4638 = vmatpush2.bf16.msra.mxu1 %v8497_v22 }
 0x874   :  { %4639 = vmatprep.subr.bf16.mxu1 %v8502_v32 }
 0x877   :  { %4640 = vmatpush2.bf16.msra.mxu1 %v8500_v50 }
 0x878   :  { %7792 = vmatprep.subr.mxu1 %v4701_v26 }
 0x8e2   :  { %v4055_v15 = vpop.f32.mrf.mxu0 }
 0x8e4   :  { %v4057_v34 = vpop.f32.mrf.mxu0 }
 0x8e6   :  { %v4059_v37 = vpop.f32.mrf.mxu0 }
 0x8e8   :  { %v4061_v13 = vpop.f32.mrf.mxu0 }
 0x8ea   :  { %v10681_v30 = vpop.f32.mrf.mxu1 }
 0x8eb   :  { %v4056_v25 = vadd.f32 %v4055_v15, %v10681_v30  ;;  %v4874_v15 = vld [vmem:[%s11470_s14 + $0x10] sm:$0xff] }
 0x8ec   :  { %v10683_v52 = vpop.f32.mrf.mxu1 }
 0x8ed   :  { %v4058_v55 = vadd.f32 %v4057_v34, %v10683_v52  ;;  %v4873_v34 = vld [vmem:[%s11470_s14 + $0x8] sm:$0xff] }
 0x8ee   :  { %v10685_v57 = vpop.f32.mrf.mxu1 }
 0x8ef   :  { %v4060_v22 = vadd.f32 %v4059_v37, %v10685_v57  ;;  %v4872_v37 = vld [vmem:[%s11470_s14] sm:$0xff] }
 0x8f0   :  { %v10687_v1 = vpop.f32.mrf.mxu1 }
 0x8f2   :  { %v4109_v5 = vpop.f32.mrf.mxu1 }
 0x8f4   :  { %v4111_v18 = vpop.f32.mrf.mxu1 }
 0x8f6   :  { %v4113_v23 = vpop.f32.mrf.mxu1 }
 0x8f7   :  { %v4118_v9 = vpack.c.bf16 %v4113_v23, %v4109_v5  ;;  %v4062_v23 = vadd.f32 %v4061_v13, %v10687_v1 }
 0x8f8   :  { %v4115_v8 = vpop.f32.mrf.mxu1 }
 0x8f9   :  { %v4119_v24 = vpack.c.bf16 %v4115_v8, %v4111_v18 }
 0x8fa   :  { %v4405_v60 = vpop.f32.mrf.mxu1 }
 0x8fb   :  { %4345 = vmatprep.mubr.bf16.mxu0 %v4119_v24 }
 0x8fc   :  { %4346 = vmatmul.mubr.bf16.vlgmr.msra.gmra.mxu0 %v4118_v9  ;;  %v4407_v62 = vpop.f32.mrf.mxu1 }
 0x8fd   :  { %7758 = vmatpush3.msra.mxu0 %v4685_v4 }
 0x8fe   :  { %v4409_v38 = vpop.f32.mrf.mxu1  ;;  %7759 = vmatprep.subr.mxu0 %v4700_v58 }
 0x8ff   :  { %v4414_v19 = vpack.c.bf16 %v4409_v38, %v4405_v60  ;;  %7760 = vmatpush3.msra.mxu0 %v4684_v14 }
 0x900   :  { %v4411_v51 = vpop.f32.mrf.mxu1  ;;  %7761 = vmatprep.subr.mxu0 %v4699_v28 }
 0x901   :  { %v4415_v20 = vpack.c.bf16 %v4411_v51, %v4407_v62  ;;  %7762 = vmatpush3.msra.mxu0 %v4683_v31 }
 0x902   :  { %7763 = vmatprep.subr.mxu0 %v4698_v39 }
 0x903   :  { %4641 = vmatprep.mubr.bf16.mxu1 %v4415_v20  ;;  %7764 = vmatpush3.msra.mxu0 %v4682_v49 }
 0x904   :  { %4642 = vmatmul.mubr.bf16.vlgmr.msra.gmra.mxu1 %v4414_v19  ;;  %7765 = vmatprep.subr.mxu0 %v4697_v12 }
 0x905   :  { %7793 = vmatpush3.msra.mxu1 %v4685_v4  ;;  %7766 = vmatpush3.msra.mxu0 %v4681_v44 }
 0x906   :  { %7794 = vmatprep.subr.mxu1 %v4700_v58  ;;  %7767 = vmatprep.subr.mxu0 %v4696_v33 }
 0x907   :  { %7795 = vmatpush3.msra.mxu1 %v4684_v14  ;;  %7768 = vmatpush3.msra.mxu0 %v4680_v46 }
 0x908   :  { %7796 = vmatprep.subr.mxu1 %v4699_v28  ;;  %7769 = vmatprep.subr.mxu0 %v4695_v54 }
 0x909   :  { %7797 = vmatpush3.msra.mxu1 %v4683_v31  ;;  %7770 = vmatpush3.msra.mxu0 %v4679_v27 }
 0x90a   :  { %7798 = vmatprep.subr.mxu1 %v4698_v39  ;;  %7771 = vmatprep.subr.mxu0 %v4694_v43 }
 0x90b   :  { %7799 = vmatpush3.msra.mxu1 %v4682_v49  ;;  %7772 = vmatpush3.msra.mxu0 %v4678_v45 }
 0x90c   :  { %7800 = vmatprep.subr.mxu1 %v4697_v12  ;;  %7773 = vmatprep.subr.mxu0 %v4693_v59 }
 0x90d   :  { %7801 = vmatpush3.msra.mxu1 %v4681_v44  ;;  %7774 = vmatpush3.msra.mxu0 %v4677_v35 }
 0x90e   :  { %7802 = vmatprep.subr.mxu1 %v4696_v33  ;;  %7775 = vmatprep.subr.mxu0 %v4692_v48 }
 0x90f   :  { %7803 = vmatpush3.msra.mxu1 %v4680_v46  ;;  %7776 = vmatpush3.msra.mxu0 %v4676_v0 }
 0x910   :  { %7804 = vmatprep.subr.mxu1 %v4695_v54  ;;  %7777 = vmatprep.subr.mxu0 %v4691_v36 }
 0x911   :  { %7805 = vmatpush3.msra.mxu1 %v4679_v27  ;;  %7778 = vmatpush3.msra.mxu0 %v4675_v16 }
 0x912   :  { %7806 = vmatprep.subr.mxu1 %v4694_v43  ;;  %7779 = vmatprep.subr.mxu0 %v4690_v61 }
 0x913   :  { %7807 = vmatpush3.msra.mxu1 %v4678_v45  ;;  %7780 = vmatpush3.msra.mxu0 %v4674_v2 }
 0x914   :  { %7808 = vmatprep.subr.mxu1 %v4693_v59  ;;  %7781 = vmatprep.subr.mxu0 %v4689_v63 }
 0x915   :  { %7809 = vmatpush3.msra.mxu1 %v4677_v35  ;;  %7782 = vmatpush3.msra.mxu0 %v4673_v29 }
 0x916   :  { %7810 = vmatprep.subr.mxu1 %v4692_v48  ;;  %7783 = vmatprep.subr.mxu0 %v4688_v47 }
 0x917   :  { %7811 = vmatpush3.msra.mxu1 %v4676_v0  ;;  %7784 = vmatpush3.msra.mxu0 %v4672_v6 }
 0x918   :  { %7812 = vmatprep.subr.mxu1 %v4691_v36  ;;  %7785 = vmatprep.subr.mxu0 %v4687_v10 }
 0x919   :  { %7813 = vmatpush3.msra.mxu1 %v4675_v16  ;;  %7786 = vmatpush3.msra.mxu0 %v4671_v11 }
 0x91a   :  { %7814 = vmatprep.subr.mxu1 %v4690_v61  ;;  %7787 = vmatprep.subr.mxu0 %v4686_v42 }
 0x91b   :  { %7815 = vmatpush3.msra.mxu1 %v4674_v2  ;;  %7788 = vmatpush3.msra.mxu0 %v4670_v7 }
 0x91c   :  { %7816 = vmatprep.subr.mxu1 %v4689_v63 }
 0x91d   :  { %7817 = vmatpush3.msra.mxu1 %v4673_v29 }
 0x91e   :  { %7818 = vmatprep.subr.mxu1 %v4688_v47 }
 0x91f   :  { %7819 = vmatpush3.msra.mxu1 %v4672_v6  ;;  %v4879_v6 = vld [vmem:[%s11470_s14 + $0x38] sm:$0xff] }
 0x920   :  { %7820 = vmatprep.subr.mxu1 %v4687_v10  ;;  %v4878_v10 = vld [vmem:[%s11470_s14 + $0x30] sm:$0xff]  ;;  %4907 = vmatprep.subr.mxu0 %v4879_v6 }
 0x921   :  { %7821 = vmatpush3.msra.mxu1 %v4671_v11  ;;  %v4877_v11 = vld [vmem:[%s11470_s14 + $0x28] sm:$0xff] }
 0x922   :  { %7822 = vmatprep.subr.mxu1 %v4686_v42  ;;  %v4876_v42 = vld [vmem:[%s11470_s14 + $0x20] sm:$0xff] }
 0x923   :  { %7823 = vmatpush3.msra.mxu1 %v4670_v7  ;;  %v4875_v7 = vld [vmem:[%s11470_s14 + $0x18] sm:$0xff] }
 0x9bc   :  { %v4347_v41 = vpop.f32.mrf.mxu0 }
 0x9bd   :  { %v4356_v50 = vadd.f32 %v4347_v41, %v4056_v25 }
 0x9be   :  { %v4349_v56 = vpop.f32.mrf.mxu0 }
 0x9bf   :  { %v4357_v32 = vadd.f32 %v4349_v56, %v4058_v55 }
 0x9c0   :  { %v4351_v40 = vpop.f32.mrf.mxu0 }
 0x9c1   :  { %v4358_v8 = vadd.f32 %v4351_v40, %v4060_v22 }
 0x9c2   :  { %v4353_v5 = vpop.f32.mrf.mxu0 }
 0x9c3   :  { %v4359_v62 = vadd.f32 %v4353_v5, %v4062_v23  ;;  %v4865_v23 = vld [vmem:[%s11471_s11] sm:$0x1] }
 0x9c4   :  { %v4643_v17 = vpop.f32.mrf.mxu1 }
 0x9c5   :  { %v10789_v24 = vadd.f32 %v4643_v17, %v4356_v50 }
 0x9c6   :  { %v4645_v18 = vpop.f32.mrf.mxu1 }
 0x9c7   :  { %v10791_v9 = vadd.f32 %v4645_v18, %v4357_v32  ;;  %v4772_v52 = vmul.f32 %v10789_v24, %v10789_v24 }
 0x9c8   :  { %v4647_v60 = vpop.f32.mrf.mxu1 }
 0x9c9   :  { %v10793_v38 = vadd.f32 %v4647_v60, %v4358_v8  ;;  %v4773_v20 = vmul.f32 %v10791_v9, %v10791_v9 }
 0x9ca   :  { %v4649_v30 = vpop.f32.mrf.mxu1 }
 0x9cb   :  { %v4656_v57 = vadd.f32 %v10793_v38, %v10789_v24  ;;  %v4774_v51 = vmul.f32 %v10793_v38, %v10793_v38  ;;  %v10801_v1 = vadd.f32 %v4649_v30, %v4359_v62  ;;  %v4869_v30 = vld [vmem:[%s11472_s12] sm:$0x1] }
 0x9cd   :  { %v4657_v19 = vrot.slane %v4656_v57, 4  ;;  %v4776_v26 = vadd.f32 %v4774_v51, %v4772_v52  ;;  %v4663_v4 = vadd.f32 %v10801_v1, %v10791_v9  ;;  %v4775_v58 = vmul.f32 %v10801_v1, %v10801_v1 }
 0x9cf   :  { %v4658_v14 = vadd.f32 %v4657_v19, %v4656_v57  ;;  %v4777_v28 = vrot.slane %v4776_v26, 4  ;;  %v4664_v31 = vrot.slane %v4663_v4, 4  ;;  %v4783_v39 = vadd.f32 %v4775_v58, %v4773_v20 }
 0x9d1   :  { %v4659_v49 = vrot.slane %v4658_v14, 2  ;;  %v4778_v12 = vadd.f32 %v4777_v28, %v4776_v26  ;;  %v4665_v44 = vadd.f32 %v4664_v31, %v4663_v4  ;;  %v4784_v33 = vrot.slane %v4783_v39, 4 }
 0x9d3   :  { %v4660_v46 = vadd.f32 %v4659_v49, %v4658_v14  ;;  %v4779_v54 = vrot.slane %v4778_v12, 2  ;;  %v4666_v27 = vrot.slane %v4665_v44, 2  ;;  %v4785_v43 = vadd.f32 %v4784_v33, %v4783_v39 }
 0x9d5   :  { %v4780_v45 = vadd.f32 %v4779_v54, %v4778_v12  ;;  %v4667_v59 = vadd.f32 %v4666_v27, %v4665_v44  ;;  %v4786_v35 = vrot.slane %v4785_v43, 2  ;;  %v4661_v48 = vrot.slane %v4660_v46, 1 }
 0x9d7   :  { %v4668_v0 = vrot.slane %v4667_v59, 1  ;;  %v4787_v36 = vadd.f32 %v4786_v35, %v4785_v43  ;;  %v4781_v16 = vrot.slane %v4780_v45, 1  ;;  %v4662_v63 = vadd.f32 %v4661_v48, %v4660_v46 }
 0x9d9   :  { %v4669_v61 = vadd.f32 %v4668_v0, %v4667_v59  ;;  %v4788_v2 = vrot.slane %v4787_v36, 1  ;;  %v4782_v47 = vadd.f32 %v4781_v16, %v4780_v45  ;;  %v8503_v16 = vld [vmem:[%s11473_s16 + $0x170] ss:$8 sps:$4 sm:$0xff]  }
 0x9db   :  { %4766 = vmatprep.mubr.f32.mxu0 %v4669_v61  ;;  %v4789_v29 = vadd.f32 %v4788_v2, %v4787_v36  ;;  %v7453_v36 = vld [vmem:[%s11474_s15 + $0x4] sm:$0xf]  ;;  %v5066_v61 = vld [vmem:[%s11474_s15] sm:$0xf]  ;;  %v8551_v2 = vld [vmem:[%s11473_s16 + $0x70] ss:$8 sps:$4 sm:$0xff]  }
 0x9dc   :  { %4767 = vmatmul.mubr.f32.vlgmr.msra.gmra.mxu0 %v4662_v63  ;;  %v8508_v63 = vld [vmem:[%s11473_s16 + $0x164] ss:$8 sps:$4 sm:$0xff]  }
 0x9dd   :  { %4854 = vmatprep.mubr.f32.mxu1 %v4789_v29  ;;  %4947 = vmatprep.mubr.f32.mxu0 %v8706_v21  ;;  %v8556_v29 = vld [vmem:[%s11473_s16 + $0x64] ss:$8 sps:$4 sm:$0xff]  }
 0x9de   :  { %4855 = vmatmul.mubr.f32.vlgmr.msra.gmra.mxu1 %v4782_v47  ;;  %4908 = vmatpush1.msra.mxu0 %v4878_v10  ;;  %v8506_v47 = vld [vmem:[%s11473_s16 + $0x160] ss:$8 sps:$4 sm:$0xff]  }
 0x9df   :  { %5102 = vmatprep.mubr.bf16.mxu1 %v8705_v3  ;;  %4909 = vmatprep.subr.mxu0 %v4877_v11 }
 0x9e0   :  { %4910 = vmatpush1.msra.mxu0 %v4876_v42 }
 0x9e1   :  { %4911 = vmatprep.subr.mxu0 %v4875_v7 }
 0x9e2   :  { %4912 = vmatpush1.msra.mxu0 %v4874_v15 }
 0x9e3   :  { %4913 = vmatprep.subr.mxu0 %v4873_v34 }
 0x9e4   :  { %4914 = vmatpush1.msra.mxu0 %v4872_v37 }
 0x9e5   :  { %4981 = vmatprep.subr.mxu0 %v4879_v6  ;;  %v8554_v6 = vld [vmem:[%s11473_s16 + $0x60] ss:$8 sps:$4 sm:$0xff]  }
 0xa9c   :  { %v7789_v13 = vpop.f32.mrf.mxu0 }
 0xa9e   :  { %v7790_v41 = vpop.f32.mrf.mxu0  ;;  %v7824_v56 = vpop.f32.mrf.mxu1 }
 0xa9f   :  { %v7791_v40 = vadd.f32 %v7790_v41, %v7789_v13  ;;  %v8560_v13 = vld [vmem:[%s11473_s16 + $0x40] ss:$8 sps:$4 sm:$0xff]   ;;  %v8517_v41 = vld [vmem:[%s11473_s16 + $0x134] ss:$8 sps:$4 sm:$0xff]  }
 0xaa0   :  { %v7825_v25 = vpop.f32.mrf.mxu1 }
 0xaa1   :  { %v4860_v55 = vmul.f32 0.0078125, %v7791_v40  ;;  %v7826_v17 = vadd.f32 %v7825_v25, %v7824_v56  ;;  %v8565_v56 = vld [vmem:[%s11473_s16 + $0x34] ss:$8 sps:$4 sm:$0xff]   ;;  %v8515_v40 = vld [vmem:[%s11473_s16 + $0x130] ss:$8 sps:$4 sm:$0xff]  }
 0xaa2   :  { %v8563_v25 = vld [vmem:[%s11473_s16 + $0x30] ss:$8 sps:$4 sm:$0xff]  }
 0xaa3   :  { %v4862_v22 = vmul.f32 %v4860_v55, %v4860_v55  ;;  %v4861_v50 = vmul.f32 0.0078125, %v7826_v17  ;;  %v8568_v17 = vld [vmem:[%s11473_s16 + $0x24] ss:$8 sps:$4 sm:$0xff]  }
 0xaa5   :  { %v4863_v32 = vsub.f32 %v4861_v50, %v4862_v22  ;;  %v8518_v22 = vld [vmem:[%s11473_s16 + $0x120] ss:$8 sps:$4 sm:$0xff]  }
 0xaa6   :  { %v8566_v50 = vld [vmem:[%s11473_s16 + $0x20] ss:$8 sps:$4 sm:$0xff]  }
 0xaa7   :  { %v4864_v5 = vmax.f32 %v4863_v32, 0.0  ;;  %v8523_v32 = vld [vmem:[%s11473_s16 + $0x114] ss:$8 sps:$4 sm:$0xff]  }
 0xaa9   :  { %v4866_v18 = vadd.f32 1e-05, %v4864_v5  ;;  %v8571_v5 = vld [vmem:[%s11473_s16 + $0x14] ss:$8 sps:$4 sm:$0xff]  }
 0xaab   :  { %8697 = vrsqrt.f32 %v4866_v18  ;;  %v8521_v18 = vld [vmem:[%s11473_s16 + $0x110] ss:$8 sps:$4 sm:$0xff]  }
 0xab8   :  { %v8698_v8 = vpop.eup %8697 }
 0xab9   :  { %v4868_v60 = vmul.f32 %v8698_v8, %v4865_v23  ;;  %v8569_v23 = vld [vmem:[%s11473_s16 + $0x10] ss:$8 sps:$4 sm:$0xff]   ;;  %v8526_v8 = vld [vmem:[%s11473_s16 + $0x104] ss:$8 sps:$4 sm:$0xff]  }
 0xabb   :  { %7450 = vmatmul.mubr.msk.f32.vlgmr.msra.gmra.mxu0 %vm3488_vm10, %v4868_v60  ;;  %v4870_v62 = vmul.f32 %v4868_v60, %v4860_v55  ;;  %v8520_v55 = vld [vmem:[%s11473_s16 + $0x124] ss:$8 sps:$4 sm:$0xff]  }
 0xabc   :  { %4982 = vmatpush1.msra.mxu0 %v4878_v10  ;;  %5021 = vmatprep.mubr.f32.mxu0 %v8706_v21  ;;  %v8511_v10 = vld [vmem:[%s11473_s16 + $0x154] ss:$8 sps:$4 sm:$0xff]   ;;  %v8574_v60 = vld [vmem:[%s11473_s16 + $0x4] ss:$8 sps:$4 sm:$0xff]  }
 0xabd   :  { %4983 = vmatprep.subr.mxu0 %v4877_v11  ;;  %v4871_v52 = vsub.f32 %v4869_v30, %v4870_v62  ;;  %v8559_v11 = vld [vmem:[%s11473_s16 + $0x54] ss:$8 sps:$4 sm:$0xff]   ;;  %v8524_v62 = vld [vmem:[%s11473_s16 + $0x100] ss:$8 sps:$4 sm:$0xff]  }
 0xabe   :  { %4984 = vmatpush1.msra.mxu0 %v4876_v42  ;;  %v8509_v42 = vld [vmem:[%s11473_s16 + $0x150] ss:$8 sps:$4 sm:$0xff]   ;;  %v8572_v30 = vld [vmem:[%s11473_s16] ss:$8 sps:$4 sm:$0xff]  }
 0xabf   :  { %4985 = vmatprep.subr.mxu0 %v4875_v7  ;;  %v8557_v7 = vld [vmem:[%s11473_s16 + $0x50] ss:$8 sps:$4 sm:$0xff]  }
 0xac0   :  { %4986 = vmatpush1.msra.mxu0 %v4874_v15  ;;  %v8514_v15 = vld [vmem:[%s11473_s16 + $0x144] ss:$8 sps:$4 sm:$0xff]  }
 0xac1   :  { %4987 = vmatprep.subr.mxu0 %v4873_v34  ;;  %v8562_v34 = vld [vmem:[%s11473_s16 + $0x44] ss:$8 sps:$4 sm:$0xff]  }
 0xac2   :  { %4988 = vmatpush1.msra.mxu0 %v4872_v37  ;;  %v8512_v37 = vld [vmem:[%s11473_s16 + $0x140] ss:$8 sps:$4 sm:$0xff]  }
 0xac3   :  { %7451 = vmatmul.mubr.msk.f32.vlgmr.msra.gmra.mxu0 %vm3488_vm10, %v4871_v52  ;;  %v8529_v52 = vld [vmem:[%s11473_s16 + $0x1f4] ss:$8 sps:$4 sm:$0xff]  }
 0xac4   :  { %5182 = vmatprep.mubr.bf16.mxu0 %v8705_v3 }
 0xb7b   :  { %v4949_v57 = vpop.f32.mrf.mxu0 }
 0xb7c   :  { %v5031_v51 = vrot.slane %v4949_v57, %v10335_v53  ;;  %v8577_v57 = vld [vmem:[%s11473_s16 + $0xf4] ss:$8 sps:$4 sm:$0xff]  }
 0xb7d   :  { %v4951_v20 = vpop.f32.mrf.mxu0 }
 0xb7e   :  { %v5035_v19 = vrot.slane %v4951_v20, %v10335_v53  ;;  %v5036_v4 = vmul.f32 %v5031_v51, %v10789_v24  ;;  %v5038_v58 = vmul.f32 %v5031_v51, %v10793_v38  ;;  %v8527_v51 = vld [vmem:[%s11473_s16 + $0x1f0] ss:$8 sps:$4 sm:$0xff]  }
 0xb7f   :  { %v8575_v20 = vld [vmem:[%s11473_s16 + $0xf0] ss:$8 sps:$4 sm:$0xff]  }
 0xb80   :  { %v5037_v12 = vmul.f32 %v5035_v19, %v10791_v9  ;;  %v5039_v44 = vmul.f32 %v5035_v19, %v10801_v1  ;;  %v8505_v9 = vld [vmem:[%s11473_s16 + $0x174] ss:$8 sps:$4 sm:$0xff]   ;;  %v8532_v19 = vld [vmem:[%s11473_s16 + $0x1e4] ss:$8 sps:$4 sm:$0xff]  }
 0xb81   :  { %v8553_v1 = vld [vmem:[%s11473_s16 + $0x74] ss:$8 sps:$4 sm:$0xff]  }
 0xb83   :  { %v5023_v26 = vpop.f32.mrf.mxu0 }
 0xb84   :  { %v5043_v14 = vrot.slane %v5023_v26, %v10335_v53  ;;  %v8580_v26 = vld [vmem:[%s11473_s16 + $0xe4] ss:$8 sps:$4 sm:$0xff]  }
 0xb85   :  { %v5025_v28 = vpop.f32.mrf.mxu0 }
 0xb86   :  { %v5048_v31 = vadd.f32 %v5043_v14, %v5036_v4  ;;  %v5050_v39 = vadd.f32 %v5043_v14, %v5038_v58  ;;  %v5047_v49 = vrot.slane %v5025_v28, %v10335_v53  ;;  %v8530_v4 = vld [vmem:[%s11473_s16 + $0x1e0] ss:$8 sps:$4 sm:$0xff]   ;;  %v8535_v14 = vld [vmem:[%s11473_s16 + $0x1d4] ss:$8 sps:$4 sm:$0xff]  }
 0xb87   :  { %v8578_v58 = vld [vmem:[%s11473_s16 + $0xe0] ss:$8 sps:$4 sm:$0xff]   ;;  %v8583_v28 = vld [vmem:[%s11473_s16 + $0xd4] ss:$8 sps:$4 sm:$0xff]  }
 0xb88   :  { %v5056_v33 = vmul.f32 0.2, %v5048_v31  ;;  %v5058_v46 = vmul.f32 0.2, %v5050_v39  ;;  %vm5052_vm11 = vcmp.ge.f32.partialorder %v5048_v31, 0.0  ;;  %vm5054_vm12 = vcmp.ge.f32.partialorder %v5050_v39, 0.0 }
 0xb89   :  { %v5049_v54 = vadd.f32 %v5047_v49, %v5037_v12  ;;  %v5051_v27 = vadd.f32 %v5047_v49, %v5039_v44  ;;  %v8538_v49 = vld [vmem:[%s11473_s16 + $0x1c4] ss:$8 sps:$4 sm:$0xff]   ;;  %v8536_v44 = vld [vmem:[%s11473_s16 + $0x1c0] ss:$8 sps:$4 sm:$0xff]  }
 0xb8a   :  { %v5060_v43 = vsel %vm5052_vm11, %v5048_v31, %v5056_v33  ;;  %v5062_v45 = vsel %vm5054_vm12, %v5050_v39, %v5058_v46  ;;  %v8533_v31 = vld [vmem:[%s11473_s16 + $0x1d0] ss:$8 sps:$4 sm:$0xff]   ;;  %v8586_v12 = vld [vmem:[%s11473_s16 + $0xc4] ss:$8 sps:$4 sm:$0xff]   ;;  %v8584_v33 = vld [vmem:[%s11473_s16 + $0xc0] ss:$8 sps:$4 sm:$0xff]  }
 0xb8b   :  { %vm5053_vm13 = vcmp.ge.f32.partialorder %v5049_v54, 0.0  ;;  %vm5055_vm14 = vcmp.ge.f32.partialorder %v5051_v27, 0.0  ;;  %v5057_v24 = vmul.f32 0.2, %v5049_v54  ;;  %v5059_v38 = vmul.f32 0.2, %v5051_v27 }
 0xb8c   :  { %v10861_v0 = vpack.c.bf16 %v5062_v45, %v5060_v43  ;;  %v8581_v39 = vld [vmem:[%s11473_s16 + $0xd0] ss:$8 sps:$4 sm:$0xff]   ;;  %v8541_v46 = vld [vmem:[%s11473_s16 + $0x1b4] ss:$8 sps:$4 sm:$0xff]   ;;  %v8542_v43 = vld [vmem:[%s11473_s16 + $0x1a0] ss:$8 sps:$4 sm:$0xff]  }
 0xb8d   :  { %v5061_v59 = vsel %vm5053_vm13, %v5049_v54, %v5057_v24  ;;  %v5063_v35 = vsel %vm5055_vm14, %v5051_v27, %v5059_v38  ;;  %v8589_v54 = vld [vmem:[%s11473_s16 + $0xb4] ss:$8 sps:$4 sm:$0xff]   ;;  %v8539_v27 = vld [vmem:[%s11473_s16 + $0x1b0] ss:$8 sps:$4 sm:$0xff]   ;;  %v8544_v38 = vld [vmem:[%s11473_s16 + $0x1a4] ss:$8 sps:$4 sm:$0xff]  }
 0xb8e   :  { %v10853_v48 = vpack.c.bf16 %v5063_v35, %v5061_v59  ;;  %v8587_v24 = vld [vmem:[%s11473_s16 + $0xb0] ss:$8 sps:$4 sm:$0xff]   ;;  %v8547_v45 = vld [vmem:[%s11473_s16 + $0x194] ss:$8 sps:$4 sm:$0xff]   ;;  %v8550_v35 = vld [vmem:[%s11473_s16 + $0x184] ss:$8 sps:$4 sm:$0xff]  }
 0xb8f   :  { %v8545_v59 = vld [vmem:[%s11473_s16 + $0x190] ss:$8 sps:$4 sm:$0xff]  }
 0xb90   :  { %5084 = vmatprep.subr.bf16.mxu1 %v10853_v48  ;;  %5164 = vmatprep.subr.bf16.mxu0 %v10853_v48 }
 0xb91   :  { %5085 = vmatpush1.bf16.msra.mxu1 %v10861_v0  ;;  %5165 = vmatpush1.bf16.msra.mxu0 %v10861_v0 }
 0xb92   :  { %5386 = vmatprep.subr.bf16.mxu1 %v8505_v9  ;;  %5587 = vmatprep.subr.bf16.mxu0 %v8553_v1  ;;  %v8548_v9 = vld [vmem:[%s11473_s16 + $0x180] ss:$8 sps:$4 sm:$0xff]   ;;  %v8592_v1 = vld [vmem:[%s11473_s16 + $0xa4] ss:$8 sps:$4 sm:$0xff]  }
 0xb94   :  { %7454 = vmatmul.mubr.msk.bf16.vlgmr.msra.gmra.mxu0 %vm3272_vm1, %v7453_v36  ;;  %7452 = vmatmul.mubr.msk.bf16.vlgmr.msra.gmra.mxu1 %vm3272_vm1, %v5066_v61  ;;  %v8590_v36 = vld [vmem:[%s11473_s16 + $0xa0] ss:$8 sps:$4 sm:$0xff]   ;;  %v8593_v61 = vld [vmem:[%s11473_s16 + $0x90] ss:$8 sps:$4 sm:$0xff]  }
 0xb95   :  { %5387 = vmatpush1.bf16.msra.mxu1 %v8503_v16  ;;  %5588 = vmatpush1.bf16.msra.mxu0 %v8551_v2  ;;  %v8595_v16 = vld [vmem:[%s11473_s16 + $0x94] ss:$8 sps:$4 sm:$0xff]   ;;  %v8598_v2 = vld [vmem:[%s11473_s16 + $0x84] ss:$8 sps:$4 sm:$0xff]  }
 0xb96   :  { %5388 = vmatprep.subr.bf16.mxu1 %v8508_v63  ;;  %5589 = vmatprep.subr.bf16.mxu0 %v8556_v29  ;;  %v8596_v63 = vld [vmem:[%s11473_s16 + $0x80] ss:$8 sps:$4 sm:$0xff]   ;;  %v8601_v29 = vld [vmem:[%s11473_s16 + $0x274] ss:$8 sps:$4 sm:$0xff]  }
 0xb99   :  { %5389 = vmatpush1.bf16.msra.mxu1 %v8506_v47  ;;  %5590 = vmatpush1.bf16.msra.mxu0 %v8554_v6 }
 0xb9a   :  { %5390 = vmatprep.subr.bf16.mxu1 %v8511_v10  ;;  %5591 = vmatprep.subr.bf16.mxu0 %v8559_v11 }
 0xb9d   :  { %5391 = vmatpush1.bf16.msra.mxu1 %v8509_v42  ;;  %5592 = vmatpush1.bf16.msra.mxu0 %v8557_v7 }
 0xb9e   :  { %5392 = vmatprep.subr.bf16.mxu1 %v8514_v15  ;;  %5593 = vmatprep.subr.bf16.mxu0 %v8562_v34 }
 0xba1   :  { %5393 = vmatpush1.bf16.msra.mxu1 %v8512_v37  ;;  %5594 = vmatpush1.bf16.msra.mxu0 %v8560_v13 }
 0xba2   :  { %5394 = vmatprep.subr.bf16.mxu1 %v8517_v41  ;;  %5595 = vmatprep.subr.bf16.mxu0 %v8565_v56  ;;  %v8599_v41 = vld [vmem:[%s11473_s16 + $0x270] ss:$8 sps:$4 sm:$0xff]   ;;  %v8604_v56 = vld [vmem:[%s11473_s16 + $0x264] ss:$8 sps:$4 sm:$0xff]  }
 0xba5   :  { %5395 = vmatpush1.bf16.msra.mxu1 %v8515_v40  ;;  %5596 = vmatpush1.bf16.msra.mxu0 %v8563_v25 }
 0xba6   :  { %5396 = vmatprep.subr.bf16.mxu1 %v8520_v55  ;;  %5597 = vmatprep.subr.bf16.mxu0 %v8568_v17  ;;  %v8602_v55 = vld [vmem:[%s11473_s16 + $0x260] ss:$8 sps:$4 sm:$0xff]   ;;  %v8607_v17 = vld [vmem:[%s11473_s16 + $0x254] ss:$8 sps:$4 sm:$0xff]  }
 0xba9   :  { %5397 = vmatpush1.bf16.msra.mxu1 %v8518_v22  ;;  %5598 = vmatpush1.bf16.msra.mxu0 %v8566_v50  ;;  %v7551_v22 = vld [vmem:[%s11474_s15 + $0x8] sm:$0xf]  ;;  %v8605_v50 = vld [vmem:[%s11473_s16 + $0x250] ss:$8 sps:$4 sm:$0xff]  }
 0xbaa   :  { %5398 = vmatprep.subr.bf16.mxu1 %v8523_v32  ;;  %5599 = vmatprep.subr.bf16.mxu0 %v8571_v5  ;;  %v8613_v32 = vld [vmem:[%s11473_s16 + $0x244] ss:$8 sps:$4 sm:$0xff]   ;;  %v8611_v5 = vld [vmem:[%s11473_s16 + $0x240] ss:$8 sps:$4 sm:$0xff]  }
 0xbad   :  { %5399 = vmatpush1.bf16.msra.mxu1 %v8521_v18  ;;  %5600 = vmatpush1.bf16.msra.mxu0 %v8569_v23  ;;  %v8619_v18 = vld [vmem:[%s11473_s16 + $0x234] ss:$8 sps:$4 sm:$0xff]   ;;  %v7617_v23 = vld [vmem:[%s11474_s15 + $0xc] sm:$0xf] }
 0xbae   :  { %5400 = vmatprep.subr.bf16.mxu1 %v8526_v8  ;;  %5601 = vmatprep.subr.bf16.mxu0 %v8574_v60  ;;  %v8617_v8 = vld [vmem:[%s11473_s16 + $0x230] ss:$8 sps:$4 sm:$0xff]   ;;  %v8625_v60 = vld [vmem:[%s11473_s16 + $0x224] ss:$8 sps:$4 sm:$0xff]  }
 0xbb1   :  { %5401 = vmatpush1.bf16.msra.mxu1 %v8524_v62  ;;  %5602 = vmatpush1.bf16.msra.mxu0 %v8572_v30  ;;  %v8614_v62 = vld [vmem:[%s11473_s16 + $0x360] ss:$8 sps:$4 sm:$0xff]   ;;  %v8622_v30 = vld [vmem:[%s11473_s16 + $0x354] ss:$8 sps:$4 sm:$0xff]  }
 0xbb2   :  { %5402 = vmatprep.subr.bf16.mxu1 %v8529_v52  ;;  %5603 = vmatprep.subr.bf16.mxu0 %v8577_v57  ;;  %v8623_v52 = vld [vmem:[%s11473_s16 + $0x220] ss:$8 sps:$4 sm:$0xff]   ;;  %v8631_v57 = vld [vmem:[%s11473_s16 + $0x214] ss:$8 sps:$4 sm:$0xff]  }
 0xbb5   :  { %5403 = vmatpush2.bf16.msra.mxu1 %v8527_v51  ;;  %5604 = vmatpush2.bf16.msra.mxu0 %v8575_v20  ;;  %v8620_v51 = vld [vmem:[%s11473_s16 + $0x350] ss:$8 sps:$4 sm:$0xff]   ;;  %v8628_v20 = vld [vmem:[%s11473_s16 + $0x344] ss:$8 sps:$4 sm:$0xff]  }
 0xbb6   :  { %5404 = vmatprep.subr.bf16.mxu1 %v8532_v19  ;;  %5605 = vmatprep.subr.bf16.mxu0 %v8580_v26  ;;  %v8629_v19 = vld [vmem:[%s11473_s16 + $0x210] ss:$8 sps:$4 sm:$0xff]   ;;  %v8637_v26 = vld [vmem:[%s11473_s16 + $0x204] ss:$8 sps:$4 sm:$0xff]  }
 0xbb9   :  { %5405 = vmatpush2.bf16.msra.mxu1 %v8530_v4  ;;  %5606 = vmatpush2.bf16.msra.mxu0 %v8578_v58  ;;  %v8626_v4 = vld [vmem:[%s11473_s16 + $0x340] ss:$8 sps:$4 sm:$0xff]   ;;  %v8634_v58 = vld [vmem:[%s11473_s16 + $0x334] ss:$8 sps:$4 sm:$0xff]  }
 0xbba   :  { %5406 = vmatprep.subr.bf16.mxu1 %v8535_v14  ;;  %5607 = vmatprep.subr.bf16.mxu0 %v8583_v28  ;;  %v8635_v14 = vld [vmem:[%s11473_s16 + $0x200] ss:$8 sps:$4 sm:$0xff]   ;;  %v8643_v28 = vld [vmem:[%s11473_s16 + $0x2f4] ss:$8 sps:$4 sm:$0xff]  }
 0xbbd   :  { %5407 = vmatpush2.bf16.msra.mxu1 %v8533_v31  ;;  %5608 = vmatpush2.bf16.msra.mxu0 %v8581_v39  ;;  %v8632_v31 = vld [vmem:[%s11473_s16 + $0x330] ss:$8 sps:$4 sm:$0xff]   ;;  %v8640_v39 = vld [vmem:[%s11473_s16 + $0x324] ss:$8 sps:$4 sm:$0xff]  }
 0xbbe   :  { %5408 = vmatprep.subr.bf16.mxu1 %v8538_v49  ;;  %5609 = vmatprep.subr.bf16.mxu0 %v8586_v12  ;;  %v8641_v49 = vld [vmem:[%s11473_s16 + $0x2f0] ss:$8 sps:$4 sm:$0xff]   ;;  %v8649_v12 = vld [vmem:[%s11473_s16 + $0x2e4] ss:$8 sps:$4 sm:$0xff]  }
 0xbc1   :  { %5409 = vmatpush2.bf16.msra.mxu1 %v8536_v44  ;;  %5610 = vmatpush2.bf16.msra.mxu0 %v8584_v33  ;;  %v8638_v44 = vld [vmem:[%s11473_s16 + $0x320] ss:$8 sps:$4 sm:$0xff]   ;;  %v8646_v33 = vld [vmem:[%s11473_s16 + $0x314] ss:$8 sps:$4 sm:$0xff]  }
 0xbc2   :  { %5410 = vmatprep.subr.bf16.mxu1 %v8541_v46  ;;  %5611 = vmatprep.subr.bf16.mxu0 %v8589_v54  ;;  %v8647_v46 = vld [vmem:[%s11473_s16 + $0x2e0] ss:$8 sps:$4 sm:$0xff]   ;;  %v8655_v54 = vld [vmem:[%s11473_s16 + $0x2d4] ss:$8 sps:$4 sm:$0xff]  }
 0xbc5   :  { %5411 = vmatpush2.bf16.msra.mxu1 %v8539_v27  ;;  %5612 = vmatpush2.bf16.msra.mxu0 %v8587_v24  ;;  %v8644_v27 = vld [vmem:[%s11473_s16 + $0x310] ss:$8 sps:$4 sm:$0xff]   ;;  %v8652_v24 = vld [vmem:[%s11473_s16 + $0x304] ss:$8 sps:$4 sm:$0xff]  }
 0xbc6   :  { %5412 = vmatprep.subr.bf16.mxu1 %v8544_v38  ;;  %5613 = vmatprep.subr.bf16.mxu0 %v8592_v1  ;;  %v8653_v38 = vld [vmem:[%s11473_s16 + $0x2d0] ss:$8 sps:$4 sm:$0xff]  }
 0xbc7   :  { %v8656_v1 = vld [vmem:[%s11473_s16 + $0x3f0] ss:$8 sps:$4 sm:$0xff]  }
 0xbc9   :  { %5413 = vmatpush2.bf16.msra.mxu1 %v8542_v43  ;;  %5614 = vmatpush2.bf16.msra.mxu0 %v8590_v36  ;;  %v8661_v43 = vld [vmem:[%s11473_s16 + $0x2c4] ss:$8 sps:$4 sm:$0xff]  }
 0xbca   :  { %5414 = vmatprep.subr.bf16.mxu1 %v8547_v45  ;;  %5615 = vmatprep.subr.bf16.mxu0 %v8595_v16  ;;  %v8650_v45 = vld [vmem:[%s11473_s16 + $0x300] ss:$8 sps:$4 sm:$0xff]   ;;  %v8664_v36 = vld [vmem:[%s11473_s16 + $0x3e4] ss:$8 sps:$4 sm:$0xff]   ;;  %v8665_v16 = vld [vmem:[%s11473_s16 + $0x2b0] ss:$8 sps:$4 sm:$0xff]  }
 0xbcd   :  { %5415 = vmatpush2.bf16.msra.mxu1 %v8545_v59  ;;  %5616 = vmatpush2.bf16.msra.mxu0 %v8593_v61  ;;  %v8658_v59 = vld [vmem:[%s11473_s16 + $0x3f4] ss:$8 sps:$4 sm:$0xff]   ;;  %v8662_v61 = vld [vmem:[%s11473_s16 + $0x3e0] ss:$8 sps:$4 sm:$0xff]  }
 0xbce   :  { %5416 = vmatprep.subr.bf16.mxu1 %v8550_v35  ;;  %5617 = vmatprep.subr.bf16.mxu0 %v8598_v2  ;;  %v8659_v35 = vld [vmem:[%s11473_s16 + $0x2c0] ss:$8 sps:$4 sm:$0xff]   ;;  %v8670_v2 = vld [vmem:[%s11473_s16 + $0x3d4] ss:$8 sps:$4 sm:$0xff]  }
 0xbd1   :  { %5417 = vmatpush2.bf16.msra.mxu1 %v8548_v9  ;;  %5618 = vmatpush2.bf16.msra.mxu0 %v8596_v63  ;;  %v8667_v9 = vld [vmem:[%s11473_s16 + $0x2b4] ss:$8 sps:$4 sm:$0xff]   ;;  %v8668_v63 = vld [vmem:[%s11473_s16 + $0x3d0] ss:$8 sps:$4 sm:$0xff]  }
 0xbd2   :  { %5647 = vmatprep.subr.bf16.mxu1 %v10853_v48  ;;  %5869 = vmatprep.subr.bf16.mxu0 %v8601_v29  ;;  %v8671_v29 = vld [vmem:[%s11473_s16 + $0x2a0] ss:$8 sps:$4 sm:$0xff]  }
 0xc54   :  { %v5184_v47 = vpop.f32.mrf.mxu0  ;;  %v5104_v6 = vpop.f32.mrf.mxu1 }
 0xc55   :  { %v5111_v11 = vpack.c.bf16 %v5104_v6, %v5104_v6  ;;  %v5191_v34 = vpack.c.bf16 %v5184_v47, %v5184_v47  ;;  %v8673_v47 = vld [vmem:[%s11473_s16 + $0x2a4] ss:$8 sps:$4 sm:$0xff]   ;;  %v8674_v6 = vld [vmem:[%s11473_s16 + $0x3c0] ss:$8 sps:$4 sm:$0xff]  }
 0xc56   :  { %v5186_v10 = vpop.f32.mrf.mxu0  ;;  %v5106_v42 = vpop.f32.mrf.mxu1 }
 0xc57   :  { %v5192_v7 = vpack.c.bf16 %v5186_v10, %v5186_v10  ;;  %v5112_v15 = vpack.c.bf16 %v5106_v42, %v5106_v42  ;;  %v8676_v10 = vld [vmem:[%s11473_s16 + $0x3c4] ss:$8 sps:$4 sm:$0xff]   ;;  %v8679_v42 = vld [vmem:[%s11473_s16 + $0x294] ss:$8 sps:$4 sm:$0xff]  }
 0xc58   :  { %v5188_v37 = vpop.f32.mrf.mxu0  ;;  %v5108_v13 = vpop.f32.mrf.mxu1 }
 0xc59   :  { %5418 = vmatprep.mubr.bf16.mxu1 %v5192_v7  ;;  %5619 = vmatprep.mubr.bf16.mxu0 %v5112_v15  ;;  %v8680_v7 = vld [vmem:[%s11473_s16 + $0x3b0] ss:$8 sps:$4 sm:$0xff]   ;;  %v8682_v15 = vld [vmem:[%s11473_s16 + $0x3b4] ss:$8 sps:$4 sm:$0xff]   ;;  %v8685_v37 = vld [vmem:[%s11473_s16 + $0x284] ss:$8 sps:$4 sm:$0xff]  }
 0xc5a   :  { %5419 = vmatmul.mubr.bf16.vlgmr.msra.gmra.mxu1 %v5191_v34  ;;  %v5189_v40 = vpop.f32.mrf.mxu0  ;;  %5620 = vmatmul.mubr.bf16.vlgmr.msra.gmra.mxu0 %v5111_v11  ;;  %v5109_v25 = vpop.f32.mrf.mxu1  ;;  %v8677_v11 = vld [vmem:[%s11473_s16 + $0x290] ss:$8 sps:$4 sm:$0xff]   ;;  %v8683_v34 = vld [vmem:[%s11473_s16 + $0x280] ss:$8 sps:$4 sm:$0xff]  }
 0xc5b   :  { %5648 = vmatpush1.bf16.msra.mxu1 %v10861_v0  ;;  %5665 = vmatprep.mubr.bf16.mxu1 %v8705_v3  ;;  %v8686_v13 = vld [vmem:[%s11473_s16 + $0x3a0] ss:$8 sps:$4 sm:$0xff]   ;;  %v8689_v40 = vld [vmem:[%s11473_s16 + $0x390] ss:$8 sps:$4 sm:$0xff]  }
 0xc5c   :  { %5931 = vmatprep.subr.bf16.mxu1 %v10853_v48  ;;  %5870 = vmatpush1.bf16.msra.mxu0 %v8599_v41  ;;  %v8610_v48 = vld [vmem:[%s11473_s16 + $0x374] ss:$8 sps:$4 sm:$0xff]   ;;  %v8688_v41 = vld [vmem:[%s11473_s16 + $0x3a4] ss:$8 sps:$4 sm:$0xff]   ;;  %v8692_v25 = vld [vmem:[%s11473_s16 + $0x380] ss:$8 sps:$4 sm:$0xff]  }
 0xc5d   :  { %5871 = vmatprep.subr.bf16.mxu0 %v8604_v56  ;;  %v8691_v56 = vld [vmem:[%s11473_s16 + $0x394] ss:$8 sps:$4 sm:$0xff]  }
 0xc60   :  { %5872 = vmatpush1.bf16.msra.mxu0 %v8602_v55  ;;  %v8694_v55 = vld [vmem:[%s11473_s16 + $0x384] ss:$8 sps:$4 sm:$0xff]  }
 0xc61   :  { %5873 = vmatprep.subr.bf16.mxu0 %v8607_v17  ;;  %v6239_v17 = vld [vmem:[%s11475_s19 + $0xf8] sm:$0xff] }
 0xc62   :  { %7552 = vmatmul.mubr.msk.bf16.vlgmr.msra.gmra.mxu1 %vm3272_vm1, %v7551_v22 }
 0xc63   :  { %5932 = vmatpush1.bf16.msra.mxu1 %v10861_v0  ;;  %5949 = vmatprep.mubr.bf16.mxu1 %v8705_v3  ;;  %v8608_v0 = vld [vmem:[%s11473_s16 + $0x370] ss:$8 sps:$4 sm:$0xff]   ;;  %v8616_v3 = vld [vmem:[%s11473_s16 + $0x364] ss:$8 sps:$4 sm:$0xff]  }
 0xc64   :  { %6153 = vmatprep.subr.bf16.mxu1 %v8610_v48  ;;  %5874 = vmatpush1.bf16.msra.mxu0 %v8605_v50 }
 0xc65   :  { %5875 = vmatprep.subr.bf16.mxu0 %v8613_v32 }
 0xc68   :  { %5876 = vmatpush1.bf16.msra.mxu0 %v8611_v5 }
 0xc69   :  { %5877 = vmatprep.subr.bf16.mxu0 %v8619_v18 }
 0xc6a   :  { %7618 = vmatmul.mubr.msk.bf16.vlgmr.msra.gmra.mxu1 %vm3272_vm1, %v7617_v23  ;;  %vm6601_vm1 = vcmask 64512  }
 0xc6b   :  { %6154 = vmatpush1.bf16.msra.mxu1 %v8608_v0 }
 0xc6c   :  { %6155 = vmatprep.subr.bf16.mxu1 %v8616_v3  ;;  %5878 = vmatpush1.bf16.msra.mxu0 %v8617_v8 }
 0xc6d   :  { %5879 = vmatprep.subr.bf16.mxu0 %v8625_v60 }
 0xc6f   :  { %6156 = vmatpush1.bf16.msra.mxu1 %v8614_v62 }
 0xc70   :  { %6157 = vmatprep.subr.bf16.mxu1 %v8622_v30  ;;  %5880 = vmatpush1.bf16.msra.mxu0 %v8623_v52 }
 0xc71   :  { %5881 = vmatprep.subr.bf16.mxu0 %v8631_v57 }
 0xc73   :  { %6158 = vmatpush1.bf16.msra.mxu1 %v8620_v51  ;;  %v6223_v51 = vld [vmem:[%s11475_s19 + $0x78] sm:$0xff] }
 0xc74   :  { %6159 = vmatprep.subr.bf16.mxu1 %v8628_v20  ;;  %5882 = vmatpush1.bf16.msra.mxu0 %v8629_v19  ;;  %v6238_v20 = vld [vmem:[%s11475_s19 + $0xf0] sm:$0xff] }
 0xc75   :  { %5883 = vmatprep.subr.bf16.mxu0 %v8637_v26  ;;  %v6222_v26 = vld [vmem:[%s11475_s19 + $0x70] sm:$0xff] }
 0xc77   :  { %6160 = vmatpush1.bf16.msra.mxu1 %v8626_v4  ;;  %v6237_v4 = vld [vmem:[%s11475_s19 + $0xe8] sm:$0xff] }
 0xc78   :  { %6161 = vmatprep.subr.bf16.mxu1 %v8634_v58  ;;  %5884 = vmatpush1.bf16.msra.mxu0 %v8635_v14  ;;  %v6221_v14 = vld [vmem:[%s11475_s19 + $0x68] sm:$0xff] }
 0xc79   :  { %5885 = vmatprep.subr.bf16.mxu0 %v8643_v28 }
 0xc7b   :  { %6162 = vmatpush1.bf16.msra.mxu1 %v8632_v31 }
 0xc7c   :  { %6163 = vmatprep.subr.bf16.mxu1 %v8640_v39  ;;  %5886 = vmatpush2.bf16.msra.mxu0 %v8641_v49 }
 0xc7d   :  { %5887 = vmatprep.subr.bf16.mxu0 %v8649_v12 }
 0xc7f   :  { %6164 = vmatpush1.bf16.msra.mxu1 %v8638_v44  ;;  %v6236_v44 = vld [vmem:[%s11475_s19 + $0xe0] sm:$0xff] }
 0xc80   :  { %6165 = vmatprep.subr.bf16.mxu1 %v8646_v33  ;;  %5888 = vmatpush2.bf16.msra.mxu0 %v8647_v46  ;;  %v6220_v33 = vld [vmem:[%s11475_s19 + $0x60] sm:$0xff]  ;;  %v6235_v46 = vld [vmem:[%s11475_s19 + $0xd8] sm:$0xff] }
 0xc81   :  { %5889 = vmatprep.subr.bf16.mxu0 %v8655_v54  ;;  %v6219_v54 = vld [vmem:[%s11475_s19 + $0x58] sm:$0xff] }
 0xc83   :  { %6166 = vmatpush1.bf16.msra.mxu1 %v8644_v27  ;;  %v6234_v27 = vld [vmem:[%s11475_s19 + $0xd0] sm:$0xff] }
 0xc84   :  { %6167 = vmatprep.subr.bf16.mxu1 %v8652_v24  ;;  %5890 = vmatpush2.bf16.msra.mxu0 %v8653_v38  ;;  %v6218_v24 = vld [vmem:[%s11475_s19 + $0x50] sm:$0xff]  ;;  %v6233_v38 = vld [vmem:[%s11475_s19 + $0xc8] sm:$0xff] }
 0xc85   :  { %5891 = vmatprep.subr.bf16.mxu0 %v8661_v43  ;;  %v6217_v43 = vld [vmem:[%s11475_s19 + $0x48] sm:$0xff] }
 0xc87   :  { %6168 = vmatpush1.bf16.msra.mxu1 %v8650_v45  ;;  %v6232_v45 = vld [vmem:[%s11475_s19 + $0xc0] sm:$0xff] }
 0xc88   :  { %6169 = vmatprep.subr.bf16.mxu1 %v8658_v59  ;;  %5892 = vmatpush2.bf16.msra.mxu0 %v8659_v35  ;;  %v6216_v59 = vld [vmem:[%s11475_s19 + $0x40] sm:$0xff]  ;;  %v6231_v35 = vld [vmem:[%s11475_s19 + $0xb8] sm:$0xff] }
 0xc89   :  { %5893 = vmatprep.subr.bf16.mxu0 %v8667_v9  ;;  %v6215_v9 = vld [vmem:[%s11475_s19 + $0x38] sm:$0xff] }
 0xc8b   :  { %6170 = vmatpush2.bf16.msra.mxu1 %v8656_v1  ;;  %v6230_v1 = vld [vmem:[%s11475_s19 + $0xb0] sm:$0xff] }
 0xc8c   :  { %6171 = vmatprep.subr.bf16.mxu1 %v8664_v36  ;;  %5894 = vmatpush2.bf16.msra.mxu0 %v8665_v16  ;;  %v6214_v36 = vld [vmem:[%s11475_s19 + $0x30] sm:$0xff]  ;;  %v6229_v16 = vld [vmem:[%s11475_s19 + $0xa8] sm:$0xff] }
 0xc8d   :  { %5895 = vmatprep.subr.bf16.mxu0 %v8673_v47  ;;  %v6211_v47 = vld [vmem:[%s11475_s19 + $0x18] sm:$0xff] }
 0xc8f   :  { %6172 = vmatpush2.bf16.msra.mxu1 %v8662_v61  ;;  %v6213_v61 = vld [vmem:[%s11475_s19 + $0x28] sm:$0xff] }
 0xc90   :  { %6173 = vmatprep.subr.bf16.mxu1 %v8670_v2  ;;  %5896 = vmatpush2.bf16.msra.mxu0 %v8671_v29  ;;  %v6228_v2 = vld [vmem:[%s11475_s19 + $0xa0] sm:$0xff]  ;;  %v6227_v29 = vld [vmem:[%s11475_s19 + $0x98] sm:$0xff] }
 0xc91   :  { %5897 = vmatprep.subr.bf16.mxu0 %v8679_v42  ;;  %v6209_v42 = vld [vmem:[%s11475_s19 + $0x8] sm:$0xff] }
 0xc93   :  { %6174 = vmatpush2.bf16.msra.mxu1 %v8668_v63  ;;  %v6212_v63 = vld [vmem:[%s11475_s19 + $0x20] sm:$0xff] }
 0xc94   :  { %6175 = vmatprep.subr.bf16.mxu1 %v8676_v10  ;;  %5898 = vmatpush2.bf16.msra.mxu0 %v8677_v11  ;;  %v6210_v10 = vld [vmem:[%s11475_s19 + $0x10] sm:$0xff]  ;;  %v6225_v11 = vld [vmem:[%s11475_s19 + $0x88] sm:$0xff] }
 0xc95   :  { %5899 = vmatprep.subr.bf16.mxu0 %v8685_v37 }
 0xc97   :  { %6176 = vmatpush2.bf16.msra.mxu1 %v8674_v6  ;;  %v6226_v6 = vld [vmem:[%s11475_s19 + $0x90] sm:$0xff] }
 0xc98   :  { %6177 = vmatprep.subr.bf16.mxu1 %v8682_v15  ;;  %5900 = vmatpush2.bf16.msra.mxu0 %v8683_v34  ;;  %v6208_v15 = vld [vmem:[%s11475_s19] sm:$0xff] }
 0xc99   :  { %7827 = vmatprep.subr.mxu0 %v6239_v17 }
 0xc9b   :  { %6178 = vmatpush2.bf16.msra.mxu1 %v8680_v7  ;;  %v6224_v7 = vld [vmem:[%s11475_s19 + $0x80] sm:$0xff] }
 0xc9c   :  { %6179 = vmatprep.subr.bf16.mxu1 %v8688_v41 }
 0xc9f   :  { %6180 = vmatpush2.bf16.msra.mxu1 %v8686_v13 }
 0xca0   :  { %6181 = vmatprep.subr.bf16.mxu1 %v8691_v56 }
 0xca3   :  { %6182 = vmatpush2.bf16.msra.mxu1 %v8689_v40 }
 0xca4   :  { %6183 = vmatprep.subr.bf16.mxu1 %v8694_v55 }
 0xca7   :  { %6184 = vmatpush2.bf16.msra.mxu1 %v8692_v25 }
 0xca8   :  { %7862 = vmatprep.subr.mxu1 %v6239_v17 }
 0xd1a   :  { %v5420_v22 = vpop.f32.mrf.mxu1  ;;  %v5621_v50 = vpop.f32.mrf.mxu0 }
 0xd1b   :  { %v11270_v48 = vadd.f32 %v5621_v50, %v5420_v22 }
 0xd1c   :  { %v5422_v32 = vpop.f32.mrf.mxu1  ;;  %v5623_v5 = vpop.f32.mrf.mxu0 }
 0xd1d   :  { %v11272_v18 = vadd.f32 %v5623_v5, %v5422_v32 }
 0xd1e   :  { %v5424_v23 = vpop.f32.mrf.mxu1  ;;  %v5625_v0 = vpop.f32.mrf.mxu0 }
 0xd20   :  { %v5425_v3 = vpop.f32.mrf.mxu1  ;;  %v5626_v8 = vpop.f32.mrf.mxu0 }
 0xd22   :  { %v5667_v60 = vpop.f32.mrf.mxu1 }
 0xd23   :  { %v5674_v52 = vpack.c.bf16 %v5667_v60, %v5667_v60 }
 0xd24   :  { %v5669_v62 = vpop.f32.mrf.mxu1 }
 0xd25   :  { %v5675_v30 = vpack.c.bf16 %v5669_v62, %v5669_v62 }
 0xd26   :  { %v5671_v57 = vpop.f32.mrf.mxu1 }
 0xd27   :  { %5901 = vmatprep.mubr.bf16.mxu0 %v5675_v30 }
 0xd28   :  { %v5672_v19 = vpop.f32.mrf.mxu1  ;;  %5902 = vmatmul.mubr.bf16.vlgmr.msra.gmra.mxu0 %v5674_v52 }
 0xd29   :  { %7828 = vmatpush3.msra.mxu0 %v6223_v51 }
 0xd2a   :  { %v5951_v58 = vpop.f32.mrf.mxu1  ;;  %7829 = vmatprep.subr.mxu0 %v6238_v20 }
 0xd2b   :  { %7830 = vmatpush3.msra.mxu0 %v6222_v26  ;;  %v5958_v39 = vpack.c.bf16 %v5951_v58, %v5951_v58 }
 0xd2c   :  { %v5953_v28 = vpop.f32.mrf.mxu1  ;;  %7831 = vmatprep.subr.mxu0 %v6237_v4 }
 0xd2d   :  { %v5959_v31 = vpack.c.bf16 %v5953_v28, %v5953_v28  ;;  %7832 = vmatpush3.msra.mxu0 %v6221_v14 }
 0xd2e   :  { %v5955_v49 = vpop.f32.mrf.mxu1  ;;  %7833 = vmatprep.subr.mxu0 %v6236_v44 }
 0xd2f   :  { %6185 = vmatprep.mubr.bf16.mxu1 %v5959_v31  ;;  %7834 = vmatpush3.msra.mxu0 %v6220_v33 }
 0xd30   :  { %6186 = vmatmul.mubr.bf16.vlgmr.msra.gmra.mxu1 %v5958_v39  ;;  %v5956_v12 = vpop.f32.mrf.mxu1  ;;  %7835 = vmatprep.subr.mxu0 %v6235_v46 }
 0xd31   :  { %7863 = vmatpush3.msra.mxu1 %v6223_v51  ;;  %7836 = vmatpush3.msra.mxu0 %v6219_v54 }
 0xd32   :  { %7864 = vmatprep.subr.mxu1 %v6238_v20  ;;  %7837 = vmatprep.subr.mxu0 %v6234_v27 }
 0xd33   :  { %7865 = vmatpush3.msra.mxu1 %v6222_v26  ;;  %7838 = vmatpush3.msra.mxu0 %v6218_v24 }
 0xd34   :  { %7866 = vmatprep.subr.mxu1 %v6237_v4  ;;  %7839 = vmatprep.subr.mxu0 %v6233_v38 }
 0xd35   :  { %7867 = vmatpush3.msra.mxu1 %v6221_v14  ;;  %7840 = vmatpush3.msra.mxu0 %v6217_v43 }
 0xd36   :  { %7868 = vmatprep.subr.mxu1 %v6236_v44  ;;  %7841 = vmatprep.subr.mxu0 %v6232_v45 }
 0xd37   :  { %7869 = vmatpush3.msra.mxu1 %v6220_v33  ;;  %7842 = vmatpush3.msra.mxu0 %v6216_v59 }
 0xd38   :  { %7870 = vmatprep.subr.mxu1 %v6235_v46  ;;  %7843 = vmatprep.subr.mxu0 %v6231_v35  ;;  %v6421_v46 = vld [vmem:[%s11476_s20 + $0x78] sm:$0xff] }
 0xd39   :  { %7871 = vmatpush3.msra.mxu1 %v6219_v54  ;;  %7844 = vmatpush3.msra.mxu0 %v6215_v9  ;;  %v6420_v54 = vld [vmem:[%s11476_s20 + $0x70] sm:$0xff] }
 0xd3a   :  { %7872 = vmatprep.subr.mxu1 %v6234_v27  ;;  %7845 = vmatprep.subr.mxu0 %v6230_v1  ;;  %v6419_v27 = vld [vmem:[%s11476_s20 + $0x68] sm:$0xff] }
 0xd3b   :  { %7873 = vmatpush3.msra.mxu1 %v6218_v24  ;;  %7846 = vmatpush3.msra.mxu0 %v6214_v36  ;;  %v6418_v24 = vld [vmem:[%s11476_s20 + $0x60] sm:$0xff] }
 0xd3c   :  { %7874 = vmatprep.subr.mxu1 %v6233_v38  ;;  %7847 = vmatprep.subr.mxu0 %v6229_v16  ;;  %v6417_v38 = vld [vmem:[%s11476_s20 + $0x58] sm:$0xff] }
 0xd3d   :  { %7875 = vmatpush3.msra.mxu1 %v6217_v43  ;;  %7848 = vmatpush3.msra.mxu0 %v6213_v61  ;;  %v6416_v43 = vld [vmem:[%s11476_s20 + $0x50] sm:$0xff] }
 0xd3e   :  { %7876 = vmatprep.subr.mxu1 %v6232_v45  ;;  %7849 = vmatprep.subr.mxu0 %v6228_v2  ;;  %v6415_v45 = vld [vmem:[%s11476_s20 + $0x48] sm:$0xff] }
 0xd3f   :  { %7877 = vmatpush3.msra.mxu1 %v6216_v59  ;;  %7850 = vmatpush3.msra.mxu0 %v6212_v63  ;;  %v6414_v59 = vld [vmem:[%s11476_s20 + $0x40] sm:$0xff] }
 0xd40   :  { %7878 = vmatprep.subr.mxu1 %v6231_v35  ;;  %7851 = vmatprep.subr.mxu0 %v6227_v29  ;;  %v6413_v35 = vld [vmem:[%s11476_s20 + $0x38] sm:$0xff] }
 0xd41   :  { %7879 = vmatpush3.msra.mxu1 %v6215_v9  ;;  %7852 = vmatpush3.msra.mxu0 %v6211_v47  ;;  %v6412_v9 = vld [vmem:[%s11476_s20 + $0x30] sm:$0xff] }
 0xd42   :  { %7880 = vmatprep.subr.mxu1 %v6230_v1  ;;  %7853 = vmatprep.subr.mxu0 %v6226_v6  ;;  %v6411_v1 = vld [vmem:[%s11476_s20 + $0x28] sm:$0xff] }
 0xd43   :  { %7881 = vmatpush3.msra.mxu1 %v6214_v36  ;;  %7854 = vmatpush3.msra.mxu0 %v6210_v10  ;;  %v6410_v36 = vld [vmem:[%s11476_s20 + $0x20] sm:$0xff] }
 0xd44   :  { %7882 = vmatprep.subr.mxu1 %v6229_v16  ;;  %7855 = vmatprep.subr.mxu0 %v6225_v11  ;;  %v6409_v16 = vld [vmem:[%s11476_s20 + $0x18] sm:$0xff] }
 0xd45   :  { %7883 = vmatpush3.msra.mxu1 %v6213_v61  ;;  %7856 = vmatpush3.msra.mxu0 %v6209_v42  ;;  %v6408_v61 = vld [vmem:[%s11476_s20 + $0x10] sm:$0xff] }
 0xd46   :  { %7884 = vmatprep.subr.mxu1 %v6228_v2  ;;  %7857 = vmatprep.subr.mxu0 %v6224_v7  ;;  %v6407_v2 = vld [vmem:[%s11476_s20 + $0x8] sm:$0xff] }
 0xd47   :  { %7885 = vmatpush3.msra.mxu1 %v6212_v63  ;;  %7858 = vmatpush3.msra.mxu0 %v6208_v15  ;;  %v6406_v63 = vld [vmem:[%s11476_s20] sm:$0xff] }
 0xd48   :  { %7886 = vmatprep.subr.mxu1 %v6227_v29  ;;  %6441 = vmatprep.subr.mxu0 %v6421_v46 }
 0xd49   :  { %7887 = vmatpush3.msra.mxu1 %v6211_v47 }
 0xd4a   :  { %7888 = vmatprep.subr.mxu1 %v6226_v6 }
 0xd4b   :  { %7889 = vmatpush3.msra.mxu1 %v6210_v10 }
 0xd4c   :  { %7890 = vmatprep.subr.mxu1 %v6225_v11 }
 0xd4d   :  { %7891 = vmatpush3.msra.mxu1 %v6209_v42 }
 0xd4e   :  { %7892 = vmatprep.subr.mxu1 %v6224_v7 }
 0xd4f   :  { %7893 = vmatpush3.msra.mxu1 %v6208_v15 }
 0xd50   :  { %6515 = vmatprep.subr.mxu1 %v6421_v46 }
 0xde8   :  { %v5903_v34 = vpop.f32.mrf.mxu0 }
 0xde9   :  { %v5910_v56 = vadd.f32 %v5903_v34, %v11270_v48 }
 0xdea   :  { %v5905_v37 = vpop.f32.mrf.mxu0 }
 0xdeb   :  { %v5911_v25 = vadd.f32 %v5905_v37, %v11272_v18 }
 0xdec   :  { %v5907_v13 = vpop.f32.mrf.mxu0 }
 0xdee   :  { %v5908_v41 = vpop.f32.mrf.mxu0 }
 0xdf0   :  { %v6187_v40 = vpop.f32.mrf.mxu1 }
 0xdf1   :  { %v11369_v55 = vadd.f32 %v6187_v40, %v5910_v56  ;;  %v6399_v56 = vld [vmem:[%s11477_s17] sm:$0x1] }
 0xdf2   :  { %v6189_v17 = vpop.f32.mrf.mxu1 }
 0xdf3   :  { %v6196_v22 = vrot.slane %v11369_v55, 4  ;;  %v6310_v50 = vmul.f32 %v11369_v55, %v11369_v55  ;;  %v11374_v32 = vadd.f32 %v6189_v17, %v5911_v25  ;;  %v6403_v17 = vld [vmem:[%s11478_s18] sm:$0x1] }
 0xdf4   :  { %v6191_v5 = vpop.f32.mrf.mxu1 }
 0xdf5   :  { %v6197_v23 = vadd.f32 %v6196_v22, %v11369_v55  ;;  %v6312_v0 = vrot.slane %v6310_v50, 4  ;;  %v6202_v3 = vrot.slane %v11374_v32, 4  ;;  %v6311_v48 = vmul.f32 %v11374_v32, %v11374_v32 }
 0xdf6   :  { %v6192_v18 = vpop.f32.mrf.mxu1 }
 0xdf7   :  { %v6198_v8 = vrot.slane %v6197_v23, 2  ;;  %v6313_v60 = vadd.f32 %v6312_v0, %v6310_v50  ;;  %v6203_v62 = vadd.f32 %v6202_v3, %v11374_v32  ;;  %v6318_v30 = vrot.slane %v6311_v48, 4 }
 0xdf9   :  { %v6199_v52 = vadd.f32 %v6198_v8, %v6197_v23  ;;  %v6314_v57 = vrot.slane %v6313_v60, 2  ;;  %v6204_v51 = vrot.slane %v6203_v62, 2  ;;  %v6319_v20 = vadd.f32 %v6318_v30, %v6311_v48 }
 0xdfb   :  { %v6315_v19 = vadd.f32 %v6314_v57, %v6313_v60  ;;  %v6205_v26 = vadd.f32 %v6204_v51, %v6203_v62  ;;  %v6320_v4 = vrot.slane %v6319_v20, 2  ;;  %v6200_v58 = vrot.slane %v6199_v52, 1 }
 0xdfd   :  { %v6206_v14 = vrot.slane %v6205_v26, 1  ;;  %v6321_v28 = vadd.f32 %v6320_v4, %v6319_v20  ;;  %v6316_v31 = vrot.slane %v6315_v19, 1  ;;  %v6201_v12 = vadd.f32 %v6200_v58, %v6199_v52  ;;  %v6597_v20 = vld [vmem:[%s11479_s21 + $0x8] sm:$0xff] }
 0xdff   :  { %v6207_v39 = vadd.f32 %v6206_v14, %v6205_v26  ;;  %v6322_v49 = vrot.slane %v6321_v28, 1  ;;  %v6317_v33 = vadd.f32 %v6316_v31, %v6315_v19 }
 0xe01   :  { %6304 = vmatprep.mubr.f32.mxu0 %v6207_v39  ;;  %v6323_v44 = vadd.f32 %v6322_v49, %v6321_v28 }
 0xe02   :  { %6305 = vmatmul.mubr.f32.vlgmr.msra.gmra.mxu0 %v6201_v12 }
 0xe03   :  { %6388 = vmatprep.mubr.f32.mxu1 %v6323_v44  ;;  %6489 = vmatprep.mubr.f32.mxu0 %v8706_v21 }
 0xe04   :  { %6389 = vmatmul.mubr.f32.vlgmr.msra.gmra.mxu1 %v6317_v33  ;;  %6442 = vmatpush1.msra.mxu0 %v6420_v54 }
 0xe05   :  { %6563 = vmatprep.mubr.f32.mxu1 %v8706_v21  ;;  %6516 = vmatpush1.msra.mxu1 %v6420_v54 }
 0xe06   :  { %6443 = vmatprep.subr.mxu0 %v6419_v27  ;;  %6517 = vmatprep.subr.mxu1 %v6419_v27 }
 0xe07   :  { %6444 = vmatpush1.msra.mxu0 %v6418_v24  ;;  %6518 = vmatpush1.msra.mxu1 %v6418_v24 }
 0xe08   :  { %6445 = vmatprep.subr.mxu0 %v6417_v38  ;;  %6519 = vmatprep.subr.mxu1 %v6417_v38 }
 0xe09   :  { %6446 = vmatpush1.msra.mxu0 %v6416_v43  ;;  %6520 = vmatpush1.msra.mxu1 %v6416_v43 }
 0xe0a   :  { %6447 = vmatprep.subr.mxu0 %v6415_v45  ;;  %6521 = vmatprep.subr.mxu1 %v6415_v45 }
 0xe0b   :  { %6448 = vmatpush1.msra.mxu0 %v6414_v59  ;;  %6522 = vmatpush1.msra.mxu1 %v6414_v59 }
 0xe0c   :  { %6449 = vmatprep.subr.mxu0 %v6413_v35  ;;  %6523 = vmatprep.subr.mxu1 %v6413_v35 }
 0xe0d   :  { %6450 = vmatpush1.msra.mxu0 %v6412_v9  ;;  %6524 = vmatpush1.msra.mxu1 %v6412_v9 }
 0xe0e   :  { %6451 = vmatprep.subr.mxu0 %v6411_v1  ;;  %6525 = vmatprep.subr.mxu1 %v6411_v1 }
 0xe0f   :  { %6452 = vmatpush1.msra.mxu0 %v6410_v36  ;;  %6526 = vmatpush1.msra.mxu1 %v6410_v36 }
 0xe10   :  { %6453 = vmatprep.subr.mxu0 %v6409_v16  ;;  %6527 = vmatprep.subr.mxu1 %v6409_v16 }
 0xe11   :  { %6454 = vmatpush1.msra.mxu0 %v6408_v61  ;;  %6528 = vmatpush1.msra.mxu1 %v6408_v61 }
 0xe12   :  { %6455 = vmatprep.subr.mxu0 %v6407_v2  ;;  %6529 = vmatprep.subr.mxu1 %v6407_v2 }
 0xe13   :  { %6456 = vmatpush1.msra.mxu0 %v6406_v63  ;;  %6530 = vmatpush1.msra.mxu1 %v6406_v63 }
 0xec2   :  { %v7859_v29 = vpop.f32.mrf.mxu0 }
 0xec4   :  { %v7860_v47 = vpop.f32.mrf.mxu0  ;;  %v7894_v6 = vpop.f32.mrf.mxu1 }
 0xec5   :  { %v7861_v10 = vadd.f32 %v7860_v47, %v7859_v29 }
 0xec6   :  { %v7895_v11 = vpop.f32.mrf.mxu1 }
 0xec7   :  { %v6394_v42 = vmul.f32 0.03125, %v7861_v10  ;;  %v7896_v7 = vadd.f32 %v7895_v11, %v7894_v6 }
 0xec9   :  { %v6396_v15 = vmul.f32 %v6394_v42, %v6394_v42  ;;  %v6395_v34 = vmul.f32 0.03125, %v7896_v7 }
 0xecb   :  { %v6397_v37 = vsub.f32 %v6395_v34, %v6396_v15 }
 0xecd   :  { %v6398_v13 = vmax.f32 %v6397_v37, 0.0 }
 0xecf   :  { %v6400_v41 = vadd.f32 1e-05, %v6398_v13 }
 0xed1   :  { %8699 = vrsqrt.f32 %v6400_v41 }
 0xede   :  { %v8700_v40 = vpop.eup %8699 }
 0xedf   :  { %v6402_v25 = vmul.f32 %v8700_v40, %v6399_v56 }
 0xee1   :  { %7683 = vmatmul.mubr.msk.f32.vlgmr.msra.gmra.mxu0 %vm1743_vm0, %v6402_v25  ;;  %v6404_v22 = vmul.f32 %v6402_v25, %v6394_v42 }
 0xee2   :  { %6669 = vmatprep.mubr.f32.mxu0 %v8706_v21 }
 0xee3   :  { %v6405_v50 = vsub.f32 %v6403_v17, %v6404_v22 }
 0xee5   :  { %7684 = vmatmul.mubr.msk.f32.vlgmr.msra.gmra.mxu1 %vm1743_vm0, %v6405_v50 }
 0xfa1   :  { %v6491_v5 = vpop.f32.mrf.mxu0 }
 0xfa2   :  { %v6573_v23 = vrot.slane %v6491_v5, %v10335_v53 }
 0xfa3   :  { %v6493_v0 = vpop.f32.mrf.mxu0 }
 0xfa4   :  { %v6577_v3 = vrot.slane %v6493_v0, %v10335_v53  ;;  %v6578_v18 = vmul.f32 %v6573_v23, %v11369_v55  ;;  %v6596_v55 = vld [vmem:[%s11479_s21] sm:$0xff] }
 0xfa5   :  { %v6565_v48 = vpop.f32.mrf.mxu1 }
 0xfa6   :  { %v6583_v8 = vrot.slane %v6565_v48, %v10335_v53  ;;  %v6579_v62 = vmul.f32 %v6577_v3, %v11374_v32 }
 0xfa7   :  { %v6567_v60 = vpop.f32.mrf.mxu1 }
 0xfa8   :  { %v6588_v30 = vadd.f32 %v6583_v8, %v6578_v18  ;;  %v6587_v21 = vrot.slane %v6567_v60, %v10335_v53  ;;  %v6600_v53 = vld [vmem:[%s11480_s22] sm:$0x3] }
 0xfaa   :  { %vm6590_vm15 = vcmp.ge.f32.partialorder %v6588_v30, 0.0  ;;  %v6592_v52 = vmul.f32 0.2, %v6588_v30  ;;  %v6589_v57 = vadd.f32 %v6587_v21, %v6579_v62 }
 0xfac   :  { %vm6591_vm0 = vcmp.ge.f32.partialorder %v6589_v57, 0.0  ;;  %v6593_v51 = vmul.f32 0.2, %v6589_v57  ;;  %v6594_v19 = vsel %vm6590_vm15, %v6588_v30, %v6592_v52 }
 0xfad   :  { %v6598_v32 = vmul.f32 %v6596_v55, %v6594_v19 }
 0xfae   :  { %v6595_v26 = vsel %vm6591_vm0, %v6589_v57, %v6593_v51 }
 0xfaf   :  { %v6599_v4 = vmul.f32 %v6597_v20, %v6595_v26 }
 0xfb1   :  { %6635 = vmatprep.subr.mxu0 %v6599_v4 }
 0xfb2   :  { %6636 = vmatpush1.msra.mxu0 %v6598_v32 }
 0xfb3   :  { %7685 = vmatmul.mubr.msk.f32.vlgmr.msra.gmra.mxu0 %vm6601_vm1, %v6600_v53 }
0x1073   :  { %v6671_v58 = vpop.f32.mrf.mxu0 }
0x1074   :  { %v6677_v28 = vsel %vm6676_vm2, %v6671_v58, 0.0 }
0x1075   :  { %v6673_v14 = vpop.f32.mrf.mxu0 }
0x1076   :  { %v6678_v31 = vsel %vm6676_vm2, %v6673_v14, 0.0 }
0x1077   :  { %v6679_v39 = vadd.f32 %v6678_v31, %v6677_v28 }
0x1079   :  { %6680 = vadd.xlane.f32.xlu0 %v6679_v39 }
0x1102   :  { %v6681_v49 = vpop.xlane.xlu0 %6680 }
0x1103   :  { %v7686_v12 = vmul.f32 -1.442695, %v6681_v49 }
0x1105   :  { %8701 = vpow2.f32 %v7686_v12 }
0x1112   :  { %v8702_v44 = vpop.eup %8701 }
0x1113   :  { %v6685_v33 = vadd.f32 1.0, %v8702_v44 }
0x1115   :  { %8703 = vrcp.f32 %v6685_v33 }
0x1122   :  { %v8704_v46 = vpop.eup %8703 }
0x1123   :  { %6689 = vst.msk [vmem:[%s11481_s23] sm:$0x3] %vm6688_vm3, %v8704_v46 }

</bundles_post_ra>
